<compile_context>
chip_gen: v7x
topology: tpu7x:2x2x1
jax: 0.10.0
libtpu: 0.0.40
codegen_flags: <defaults>
</compile_context>

<pallas_src>
import math
from functools import partial

import numpy as np
import jax
import jax.numpy as jnp
from jax.experimental import pallas as pl
from jax.experimental.pallas import tpu as pltpu


# ----------------------------------------------------------------------------
# host-side glue: Wigner 3j (real basis), spherical harmonics, radial embedding
# ----------------------------------------------------------------------------
def _w3j_complex(j1, j2, j3, m1, m2, m3):
    if m1 + m2 + m3 != 0:
        return 0.0
    if not (abs(j1 - j2) <= j3 <= j1 + j2):
        return 0.0
    if abs(m1) > j1 or abs(m2) > j2 or abs(m3) > j3:
        return 0.0
    f = math.factorial
    t_min = max(0, j2 - j3 - m1, j1 - j3 + m2)
    t_max = min(j1 + j2 - j3, j1 - m1, j2 + m2)
    s = 0.0
    for t in range(t_min, t_max + 1):
        s += (-1) ** t / (
            f(t) * f(j3 - j2 + t + m1) * f(j3 - j1 + t - m2)
            * f(j1 + j2 - j3 - t) * f(j1 - t - m1) * f(j2 - t + m2))
    delta = (f(j1 + j2 - j3) * f(j1 - j2 + j3) * f(-j1 + j2 + j3)
             / f(j1 + j2 + j3 + 1))
    pref = math.sqrt(delta * f(j1 + m1) * f(j1 - m1) * f(j2 + m2)
                     * f(j2 - m2) * f(j3 + m3) * f(j3 - m3))
    return (-1) ** (j1 - j2 - m3) * pref * s


def _real_basis(l):
    U = np.zeros((2 * l + 1, 2 * l + 1), dtype=np.complex128)
    U[l, l] = 1.0
    for m in range(1, l + 1):
        U[l + m, l + m] = (-1) ** m / math.sqrt(2)
        U[l + m, l - m] = 1 / math.sqrt(2)
        U[l - m, l + m] = -1j * (-1) ** m / math.sqrt(2)
        U[l - m, l - m] = 1j / math.sqrt(2)
    return U


def real_wigner_3j(l1, l2, l3):
    # TODO(synk): sign/phase convention may differ from e3nn.o3.wigner_3j; the
    # tensor is the (unique up to sign) real intertwiner with unit Frobenius norm.
    C = np.zeros((2 * l1 + 1, 2 * l2 + 1, 2 * l3 + 1), dtype=np.complex128)
    for m1 in range(-l1, l1 + 1):
        for m2 in range(-l2, l2 + 1):
            for m3 in range(-l3, l3 + 1):
                C[l1 + m1, l2 + m2, l3 + m3] = _w3j_complex(l1, l2, l3, m1, m2, m3)
    T = np.einsum('am,bn,co,mno->abc',
                  _real_basis(l1), _real_basis(l2), _real_basis(l3), C)
    R = T.real if np.linalg.norm(T.real) >= np.linalg.norm(T.imag) else T.imag
    n = np.linalg.norm(R)
    return (R / n if n > 1e-12 else R)


def spherical_harmonics_l3(vec):
    # real SH l=0..3, 'component' normalization on the normalized vector.
    # TODO(synk): e3nn's generated SH may permute/flip components (axis convention).
    v = vec / np.linalg.norm(vec, axis=1, keepdims=True)
    x, y, z = v[:, 0], v[:, 1], v[:, 2]
    s3, s5, s7, s15, s105 = map(math.sqrt, (3., 5., 7., 15., 105.))
    sh = [np.ones_like(x),
          s3 * y, s3 * z, s3 * x,
          s15 * x * y, s15 * y * z, 0.5 * s5 * (3 * z * z - 1),
          s15 * x * z, 0.5 * s15 * (x * x - y * y),
          math.sqrt(35. / 8.) * y * (3 * x * x - y * y),
          s105 * x * y * z,
          math.sqrt(21. / 8.) * y * (5 * z * z - 1),
          0.5 * s7 * z * (5 * z * z - 3),
          math.sqrt(21. / 8.) * x * (5 * z * z - 1),
          0.5 * s105 * z * (x * x - y * y),
          math.sqrt(35. / 8.) * x * (x * x - 3 * y * y)]
    return np.stack(sh, axis=1).astype(np.float32)


def soft_one_hot_smooth_finite(d, start, end, number):
    # TODO(synk): matches e3nn soft_one_hot_linspace(basis='smooth_finite',
    # cutoff=True) up to its exact hard-coded constant.
    values = np.linspace(start, end, number + 2)[1:-1]
    step = (end - start) / (number + 1)
    u = (d[:, None] - values[None, :]) / step
    inside = np.abs(u) < 1.0
    denom = np.where(inside, 1.0 - u * u, 1.0)
    y = np.where(inside, 1.14136 * math.exp(2.0) * np.exp(-1.0 / denom), 0.0)
    return y.astype(np.float32)


def _norm2mom(fn):
    # normalization constant so that E[ (c*fn(z))^2 ] = 1 for z ~ N(0,1)  (e3nn normalize2mom)
    z = np.linspace(-10.0, 10.0, 200001)
    dz = z[1] - z[0]
    pdf = np.exp(-0.5 * z * z) / math.sqrt(2 * math.pi)
    m2 = float(np.sum(fn(z) ** 2 * pdf) * dz)
    return float(1.0 / math.sqrt(m2))


# ----------------------------------------------------------------------------
# FullyConnectedTensorProduct -> dense matmul factorization (host-side build)
# ----------------------------------------------------------------------------
def build_fully_connected_tp(blocks1, blocks2, blocks3):
    """blocks = list of (mul, l, parity). Builds matrices realizing
       out[E,K] = ((w @ WE) * ((((x1 @ R1) * (x2 @ R2)) @ CG) @ SE)) @ RED."""
    def dims(blocks):
        offs, d = [], 0
        for (mul, l, _) in blocks:
            offs.append(d)
            d += mul * (2 * l + 1)
        return offs, d

    off1, I = dims(blocks1)
    off2, J = dims(blocks2)
    off3, K = dims(blocks3)

    ins = []
    for a, (mu1, l1, p1) in enumerate(blocks1):
        for b, (mu2, l2, p2) in enumerate(blocks2):
            for c, (mu3, l3, p3) in enumerate(blocks3):
                if abs(l1 - l2) <= l3 <= l1 + l2 and p1 * p2 == p3:
                    ins.append((a, b, c))

    fan = {}
    for (a, b, c) in ins:
        fan[c] = fan.get(c, 0) + blocks1[a][0] * blocks2[b][0]

    P = sum(blocks1[a][0] * blocks2[b][0] * blocks3[c][0] for a, b, c in ins)
    NC = sum(blocks1[a][0] * blocks2[b][0] * (2 * blocks3[c][1] + 1) for a, b, c in ins)
    Q = sum(blocks1[a][0] * blocks2[b][0] * blocks3[c][0] * (2 * blocks3[c][1] + 1)
            for a, b, c in ins)

    R1 = np.zeros((I, I * J), np.float32)
    R2 = np.zeros((J, I * J), np.float32)
    for i in range(I):
        for j in range(J):
            R1[i, i * J + j] = 1.0
            R2[j, i * J + j] = 1.0

    CG = np.zeros((I * J, NC), np.float32)
    WE = np.zeros((P, Q), np.float32)
    SE = np.zeros((NC, Q), np.float32)
    RED = np.zeros((Q, K), np.float32)

    p_off = c_off = q_off = 0
    for (a, b, c) in ins:
        mu1, l1, _ = blocks1[a]
        mu2, l2, _ = blocks2[b]
        mu3, l3, _ = blocks3[c]
        d1, d2, d3 = 2 * l1 + 1, 2 * l2 + 1, 2 * l3 + 1
        cg = real_wigner_3j(l1, l2, l3)
        # TODO(synk): approximation of e3nn 'component' irrep / 'element' path normalization
        alpha = math.sqrt(d3 / fan[c])
        for u in range(mu1):
            for v in range(mu2):
                col = c_off + (u * mu2 + v) * d3
                for m1 in range(d1):
                    ii = off1[a] + u * d1 + m1
                    for m2 in range(d2):
                        jj = off2[b] + v * d2 + m2
                        for m3 in range(d3):
                            CG[ii * J + jj, col + m3] += cg[m1, m2, m3]
                for w in range(mu3):
                    p = p_off + (u * mu2 + v) * mu3 + w
                    for m3 in range(d3):
                        q = q_off + ((u * mu2 + v) * mu3 + w) * d3 + m3
                        WE[p, q] = 1.0
                        SE[col + m3, q] = 1.0
                        RED[q, off3[c] + w * d3 + m3] = alpha
        p_off += mu1 * mu2 * mu3
        c_off += mu1 * mu2 * d3
        q_off += mu1 * mu2 * mu3 * d3
    return dict(R1=R1, R2=R2, CG=CG, WE=WE, SE=SE, RED=RED, P=P)


# ----------------------------------------------------------------------------
# the Pallas kernel: full Network forward (conv1 -> gate -> conv2 -> readout)
# ----------------------------------------------------------------------------
def _network_kernel(feat_in_ref, gsd_ref, bsd_ref,
                    msr_ref, msa_ref, mgr_ref, mgt_ref,
                    win_ref, w2blk_ref,
                    cgse1_ref, red1_ref,
                    r1bsc_ref, r1bgd_ref, cgse2_ref, red2_ref,
                    gexp_ref, out_ref, *, d_hid, d_r2a, d_r2b, q1p):
    dot = lambda a, b: jnp.dot(a, b, preferred_element_type=jnp.float32)
    relu = lambda v: jnp.maximum(v, 0.0)

    gsd = gsd_ref[...]            # [E, E]  gather(edge_src) o scatter(edge_dst) / sqrt(nn)

    # ---- fused front end: radial MLP layer 1 + sh@R2 (both convs) + sh@R1 ----
    # feat_in = [edge_scalars(8) | sh(16)]; win is the block matrix stacking
    # wa, R2(conv1), R2(conv2), R1(conv1).  All slice offsets are multiples of 128.
    feat = dot(feat_in_ref[...], win_ref[...])                     # [E, 3072]
    c0 = d_hid
    c1 = c0 + d_r2a
    c2 = c1 + d_r2b
    hidden = relu(feat[:, :c0])                                    # [E, 512]
    sh_r2a = feat[:, c0:c1]                                        # [E, 256]   sh @ R2 (conv1)
    sh_r2b = feat[:, c1:c2]                                        # [E, 2048]  sh @ R2 (conv2)
    x_src1 = dot(gsd, feat[:, c2:])                                # [E, 256]   gather(x) @ R1 (conv1)

    # merged radial MLP second layer (WE already folded -> weights in Q-space)
    w_all = dot(hidden, w2blk_ref[...])                            # [E, Q1p + Q2]
    w1_e = w_all[:, :q1p]
    w2_e = w_all[:, q1p:]

    # ---- Convolution 1 -------------------------------------------------------
    outer1 = x_src1 * sh_r2a                                       # x1 (x) x2   [E, 256]
    t1 = w1_e * dot(outer1, cgse1_ref[...])                        # CG-contract [E, Q1p]
    # scatter(edge_dst)/sqrt(nn) followed by gather(edge_src) is one matmul (gsd)
    gate_in = dot(gsd, dot(t1, red1_ref[...]))                     # [E, 256] (160 real + pad)

    # ---- Gate ----------------------------------------------------------------
    # TODO(synk): e3nn's Gate internally sorts/merges irreps (a fixed channel
    # permutation); the unsorted layout used here is semantically equivalent.
    s = gate_in[:, 0:32]
    g = gate_in[:, 32:64]
    gated = gate_in[:, 64:160]
    scal_act = msr_ref[...] * relu(s) + msa_ref[...] * jnp.abs(s)  # [E, 32]
    gates = mgr_ref[...] * relu(g) + mgt_ref[...] * jnp.tanh(g)    # [E, 32]
    gated_out = dot(gates, gexp_ref[...]) * gated                  # [E, 96]

    # ---- Convolution 2 ("final") ----------------------------------------------
    outer2 = (dot(scal_act, r1bsc_ref[...]) + dot(gated_out, r1bgd_ref[...])) \
             * sh_r2b                                              # [E, 2048]
    t2 = w2_e * dot(outer2, cgse2_ref[...])                        # [E, 256]

    # ---- scatter(edge_dst)/sqrt(nn) then graph readout /sqrt(num_nodes): folded
    out_ref[...] = dot(bsd_ref[...], dot(t2, red2_ref[...]))       # [Gp, 128] (G x 8 real + pad)


def network_forward(inputs, num_graphs, g_pad, *, d_hid, d_r2a, d_r2b, q1p):
    kernel = partial(_network_kernel, d_hid=d_hid, d_r2a=d_r2a, d_r2b=d_r2b, q1p=q1p)
    out_padded = pl.pallas_call(
        kernel,
        out_shape=jax.ShapeDtypeStruct((g_pad, 128), jnp.float32),
        in_specs=[pl.BlockSpec(memory_space=pltpu.MemorySpace.VMEM)] * len(inputs),
        out_specs=pl.BlockSpec(memory_space=pltpu.MemorySpace.VMEM),
    )(*inputs)
    return out_padded[:num_graphs, :8]


# ----------------------------------------------------------------------------
if __name__ == "__main__":
    key = jax.random.PRNGKey(0)
    k_pos, k1a, k1b, k2a, k2b = jax.random.split(key, 5)

    # --- a small batch of tetris-like graphs (4 nodes each) -------------------
    # batching several graphs per pallas_call raises MXU row utilization.
    G = 4
    base = np.array([[0., 0., 0.], [0., 0., 1.], [1., 0., 0.], [1., 1., 0.]], np.float64)
    noise = 0.05 * np.asarray(jax.random.normal(k_pos, (G, 4, 3)), np.float64)

    pos_list, batch_list, src, dst = [], [], [], []
    node_off = 0
    for gidx in range(G):
        p = base + noise[gidx]
        pos_list.append(p)
        batch_list.append(np.full(4, gidx, np.int32))
        # radius_graph(r=2.5): directed edges, no self loops, within-graph only
        for i in range(4):
            for j in range(4):
                if i != j and np.linalg.norm(p[i] - p[j]) < 2.5:
                    src.append(node_off + i)
                    dst.append(node_off + j)
        node_off += 4
    pos = np.concatenate(pos_list, axis=0)
    batch = np.concatenate(batch_list)
    N = pos.shape[0]
    edge_src, edge_dst = np.array(src), np.array(dst)
    E = len(src)

    edge_vec = pos[edge_src] - pos[edge_dst]
    edge_attr = spherical_harmonics_l3(edge_vec)                               # [E, 16]
    edge_len = np.linalg.norm(edge_vec, axis=1)
    edge_scalars = soft_one_hot_smooth_finite(edge_len, 0.5, 2.5, 3) * math.sqrt(3.0)
    edge_scalars_p = np.pad(edge_scalars, ((0, 0), (0, 5)))                    # K=3 -> 8

    gs = np.zeros((E, N), np.float32)
    gs[np.arange(E), edge_src] = 1.0
    sd = np.zeros((N, E), np.float32)
    sd[edge_dst, np.arange(E)] = 1.0
    bsum = np.zeros((G, N), np.float32)
    bsum[batch, np.arange(N)] = 1.0

    inv_nn = 1.0 / math.sqrt(3.8)          # num_neighbors ** 0.5
    inv_nodes = 1.0 / math.sqrt(4.0)       # num_nodes ** 0.5 (hard-coded 4 in the module)
    sd_s = sd * inv_nn                     # bake scalar constants host-side
    bsum_s = bsum * inv_nodes

    # fold gather(edge_src) o scatter(edge_dst) and the batch readout o scatter
    # into single edge->edge / graph->edge matrices (removes 3 serial matmuls).
    gsd = (gs @ sd_s).astype(np.float32)                    # [E, E]
    G_PAD = 8                                               # sublane-dense output store
    bsd = np.zeros((G_PAD, E), np.float32)
    bsd[:G] = bsum_s @ sd_s                                 # [Gp, E]

    # --- irreps bookkeeping (module uses spherical_harmonics(3, p=1): all even) -
    sh_blocks = [(1, 0, 1), (1, 1, 1), (1, 2, 1), (1, 3, 1)]                   # 16 dims
    gate_in_blocks = [(16, 0, 1), (16, 0, -1), (8, 0, 1), (8, 0, -1),
                      (8, 0, 1), (8, 0, -1), (16, 1, -1), (16, 1, 1)]          # 160 dims
    gate_out_blocks = [(16, 0, 1), (16, 0, -1), (16, 1, -1), (16, 1, 1)]       # 128 dims
    final_out_blocks = [(8, 0, 1)]                                             # 8 dims

    tp1 = build_fully_connected_tp(sh_blocks, sh_blocks, gate_in_blocks)       # P = 272, Q = 560
    tp2 = build_fully_connected_tp(gate_out_blocks, sh_blocks, final_out_blocks)  # P = 256, Q = 256

    # --- deterministic parameters: FullyConnectedNet([3, 256, P], relu) --------
    c_relu = _norm2mom(lambda v: np.maximum(v, 0.0))
    c_abs = _norm2mom(np.abs)
    c_tanh = _norm2mom(np.tanh)

    w1a = np.asarray(jax.random.normal(k1a, (3, 256)), np.float32) / math.sqrt(3.0)
    w1b = np.asarray(jax.random.normal(k1b, (256, tp1['P'])), np.float32) * (c_relu / math.sqrt(256.0))
    w2a = np.asarray(jax.random.normal(k2a, (3, 256)), np.float32) / math.sqrt(3.0)
    w2b = np.asarray(jax.random.normal(k2b, (256, tp2['P'])), np.float32) * (c_relu / math.sqrt(256.0))

    # --- host-side algebraic folding & padding ----------------------------------
    Q1 = tp1['SE'].shape[1]        # 560
    Q2 = tp2['SE'].shape[1]        # 256
    Q1P = 640                      # pad 560 -> 5*128
    GATE_IN_P = 256                # pad gate input 160 -> 256
    OUT_P = 128                    # pad final irreps 8 -> 128 (lane-dense output)
    D_HID = 512                    # merged radial-MLP hidden width (256 + 256)
    D_R2A = tp1['R2'].shape[1]     # 256
    D_R2B = tp2['R2'].shape[1]     # 2048
    D_R1A = tp1['R1'].shape[1]     # 256

    # fold WE into the second MLP layer -> weights directly in Q-space
    w1b_q = np.pad(w1b @ tp1['WE'], ((0, 0), (0, Q1P - Q1)))       # [256, 640]
    w2b_q = w2b @ tp2['WE']                                        # [256, 256]
    # merged radial MLPs: one relu layer + one block-diagonal second layer
    w2blk = np.zeros((D_HID, Q1P + Q2), np.float32)
    w2blk[:256, :Q1P] = w1b_q
    w2blk[256:, Q1P:] = w2b_q
    wa = np.pad(np.concatenate([w1a, w2a], axis=1), ((0, 5), (0, 0)))  # [8, 512]

    # fused front-end block matrix: [edge_scalars | sh] @ win gives
    # [mlp-hidden | sh@R2(conv1) | sh@R2(conv2) | sh@R1(conv1)] in one matmul.
    win = np.zeros((8 + 16, D_HID + D_R2A + D_R2B + D_R1A), np.float32)   # [24, 3072]
    win[0:8, 0:D_HID] = wa
    win[8:24, D_HID:D_HID + D_R2A] = tp1['R2']
    win[8:24, D_HID + D_R2A:D_HID + D_R2A + D_R2B] = tp2['R2']
    win[8:24, D_HID + D_R2A + D_R2B:] = tp1['R1']
    edge_feat = np.concatenate([edge_scalars_p, edge_attr], axis=1)       # [E, 24]

    # fold CG @ SE into one matrix per convolution
    cgse1 = np.pad(tp1['CG'] @ tp1['SE'], ((0, 0), (0, Q1P - Q1)))     # [256, 640]
    red1 = np.pad(tp1['RED'], ((0, Q1P - Q1), (0, GATE_IN_P - 160)))   # [640, 256]
    cgse2 = tp2['CG'] @ tp2['SE']                                      # [2048, 256]
    red2 = np.pad(tp2['RED'], ((0, 0), (0, OUT_P - tp2['RED'].shape[1])))  # [256, 128]

    r1b_sc, r1b_gd = tp2['R1'][:32], tp2['R1'][32:]                    # [32, 2048], [96, 2048]

    # --- gate bookkeeping (normalize2mom constants baked into the masks) --------
    gexp = np.zeros((32, 96), np.float32)
    for u in range(32):
        gexp[u, 3 * u:3 * u + 3] = 1.0
    scmask = np.zeros((1, 32), np.float32)
    scmask[0, :16] = 1.0                      # relu (16x0e) vs abs (16x0o)
    gmask = np.zeros((1, 32), np.float32)
    gmask[0, :8] = 1.0
    gmask[0, 16:24] = 1.0                     # relu (8x0e) vs tanh (8x0o), twice
    m_sr = scmask * c_relu
    m_sa = (1.0 - scmask) * c_abs
    m_gr = gmask * c_relu
    m_gt = (1.0 - gmask) * c_tanh

    inputs = [edge_feat, gsd, bsd,
              m_sr, m_sa, m_gr, m_gt,
              win, w2blk,
              cgse1, red1,
              r1b_sc, r1b_gd, cgse2, red2,
              gexp]
    inputs = [jnp.asarray(a, jnp.float32) for a in inputs]

    out = network_forward(inputs, G, G_PAD,
                          d_hid=D_HID, d_r2a=D_R2A, d_r2b=D_R2B, q1p=Q1P)
    out = jax.block_until_ready(out)
    assert out.shape == (G, 8) and bool(np.all(np.isfinite(np.asarray(out))))
    print("KERNEL_OK")
</pallas_src>

<mosaic_0001>
module attributes {stable_mosaic.version = 11 : i64} {
  func.func @_network_kernel(%arg0: memref<48x24xf32, #tpu.memory_space<vmem>>, %arg1: memref<48x48xf32, #tpu.memory_space<vmem>>, %arg2: memref<8x48xf32, #tpu.memory_space<vmem>>, %arg3: memref<1x32xf32, #tpu.memory_space<vmem>>, %arg4: memref<1x32xf32, #tpu.memory_space<vmem>>, %arg5: memref<1x32xf32, #tpu.memory_space<vmem>>, %arg6: memref<1x32xf32, #tpu.memory_space<vmem>>, %arg7: memref<24x3072xf32, #tpu.memory_space<vmem>>, %arg8: memref<512x896xf32, #tpu.memory_space<vmem>>, %arg9: memref<256x640xf32, #tpu.memory_space<vmem>>, %arg10: memref<640x256xf32, #tpu.memory_space<vmem>>, %arg11: memref<32x2048xf32, #tpu.memory_space<vmem>>, %arg12: memref<96x2048xf32, #tpu.memory_space<vmem>>, %arg13: memref<2048x256xf32, #tpu.memory_space<vmem>>, %arg14: memref<256x128xf32, #tpu.memory_space<vmem>>, %arg15: memref<32x96xf32, #tpu.memory_space<vmem>>, %arg16: memref<8x128xf32, #tpu.memory_space<vmem>>) attributes {dimension_semantics = [], scalar_prefetch = 0 : i64, scratch_operands = 0 : i64, tpu.core_type = #tpu.core_type<tc>} {
    %c0 = arith.constant 0 : index
    %c0_0 = arith.constant 0 : index
    %0 = vector.load %arg1[%c0, %c0_0] : memref<48x48xf32, #tpu.memory_space<vmem>>, vector<48x48xf32>
    %c0_1 = arith.constant 0 : index
    %c0_2 = arith.constant 0 : index
    %1 = vector.load %arg0[%c0_1, %c0_2] : memref<48x24xf32, #tpu.memory_space<vmem>>, vector<48x24xf32>
    %c0_3 = arith.constant 0 : index
    %c0_4 = arith.constant 0 : index
    %2 = vector.load %arg7[%c0_3, %c0_4] : memref<24x3072xf32, #tpu.memory_space<vmem>>, vector<24x3072xf32>
    %cst = arith.constant dense<0.000000e+00> : vector<48x3072xf32>
    %3 = tpu.matmul %1, %2, %cst {dimension_numbers = #tpu.dot_dimension_numbers<[1], [0], [0], [1], [0, 0, 1, 1], [], []>} : vector<48x24xf32>, vector<24x3072xf32>, vector<48x3072xf32> -> vector<48x3072xf32>
    %4 = vector.extract_strided_slice %3 {offsets = [0, 0], sizes = [48, 512], strides = [1, 1]} : vector<48x3072xf32> to vector<48x512xf32>
    %cst_5 = arith.constant 0.000000e+00 : f32
    %5 = vector.broadcast %cst_5 : f32 to vector<48x512xf32>
    %6 = arith.maximumf %4, %5 : vector<48x512xf32>
    %7 = vector.extract_strided_slice %3 {offsets = [0, 512], sizes = [48, 256], strides = [1, 1]} : vector<48x3072xf32> to vector<48x256xf32>
    %8 = vector.extract_strided_slice %3 {offsets = [0, 768], sizes = [48, 2048], strides = [1, 1]} : vector<48x3072xf32> to vector<48x2048xf32>
    %9 = vector.extract_strided_slice %3 {offsets = [0, 2816], sizes = [48, 256], strides = [1, 1]} : vector<48x3072xf32> to vector<48x256xf32>
    %cst_6 = arith.constant dense<0.000000e+00> : vector<48x256xf32>
    %10 = tpu.matmul %0, %9, %cst_6 {dimension_numbers = #tpu.dot_dimension_numbers<[1], [0], [0], [1], [0, 0, 1, 1], [], []>} : vector<48x48xf32>, vector<48x256xf32>, vector<48x256xf32> -> vector<48x256xf32>
    %c0_7 = arith.constant 0 : index
    %c0_8 = arith.constant 0 : index
    %11 = vector.load %arg8[%c0_7, %c0_8] : memref<512x896xf32, #tpu.memory_space<vmem>>, vector<512x896xf32>
    %cst_9 = arith.constant dense<0.000000e+00> : vector<48x896xf32>
    %12 = tpu.matmul %6, %11, %cst_9 {dimension_numbers = #tpu.dot_dimension_numbers<[1], [0], [0], [1], [0, 0, 1, 1], [], []>} : vector<48x512xf32>, vector<512x896xf32>, vector<48x896xf32> -> vector<48x896xf32>
    %13 = vector.extract_strided_slice %12 {offsets = [0, 0], sizes = [48, 640], strides = [1, 1]} : vector<48x896xf32> to vector<48x640xf32>
    %14 = vector.extract_strided_slice %12 {offsets = [0, 640], sizes = [48, 256], strides = [1, 1]} : vector<48x896xf32> to vector<48x256xf32>
    %15 = arith.mulf %10, %7 : vector<48x256xf32>
    %c0_10 = arith.constant 0 : index
    %c0_11 = arith.constant 0 : index
    %16 = vector.load %arg9[%c0_10, %c0_11] : memref<256x640xf32, #tpu.memory_space<vmem>>, vector<256x640xf32>
    %cst_12 = arith.constant dense<0.000000e+00> : vector<48x640xf32>
    %17 = tpu.matmul %15, %16, %cst_12 {dimension_numbers = #tpu.dot_dimension_numbers<[1], [0], [0], [1], [0, 0, 1, 1], [], []>} : vector<48x256xf32>, vector<256x640xf32>, vector<48x640xf32> -> vector<48x640xf32>
    %18 = arith.mulf %13, %17 : vector<48x640xf32>
    %c0_13 = arith.constant 0 : index
    %c0_14 = arith.constant 0 : index
    %19 = vector.load %arg10[%c0_13, %c0_14] : memref<640x256xf32, #tpu.memory_space<vmem>>, vector<640x256xf32>
    %cst_15 = arith.constant dense<0.000000e+00> : vector<48x256xf32>
    %20 = tpu.matmul %18, %19, %cst_15 {dimension_numbers = #tpu.dot_dimension_numbers<[1], [0], [0], [1], [0, 0, 1, 1], [], []>} : vector<48x640xf32>, vector<640x256xf32>, vector<48x256xf32> -> vector<48x256xf32>
    %cst_16 = arith.constant dense<0.000000e+00> : vector<48x256xf32>
    %21 = tpu.matmul %0, %20, %cst_16 {dimension_numbers = #tpu.dot_dimension_numbers<[1], [0], [0], [1], [0, 0, 1, 1], [], []>} : vector<48x48xf32>, vector<48x256xf32>, vector<48x256xf32> -> vector<48x256xf32>
    %22 = vector.extract_strided_slice %21 {offsets = [0, 0], sizes = [48, 32], strides = [1, 1]} : vector<48x256xf32> to vector<48x32xf32>
    %23 = vector.extract_strided_slice %21 {offsets = [0, 32], sizes = [48, 32], strides = [1, 1]} : vector<48x256xf32> to vector<48x32xf32>
    %24 = vector.extract_strided_slice %21 {offsets = [0, 64], sizes = [48, 96], strides = [1, 1]} : vector<48x256xf32> to vector<48x96xf32>
    %c0_17 = arith.constant 0 : index
    %c0_18 = arith.constant 0 : index
    %25 = vector.load %arg3[%c0_17, %c0_18] : memref<1x32xf32, #tpu.memory_space<vmem>>, vector<1x32xf32>
    %cst_19 = arith.constant 0.000000e+00 : f32
    %26 = vector.broadcast %cst_19 : f32 to vector<48x32xf32>
    %27 = arith.maximumf %22, %26 : vector<48x32xf32>
    %28 = vector.broadcast %25 : vector<1x32xf32> to vector<48x32xf32>
    %29 = arith.mulf %28, %27 : vector<48x32xf32>
    %c0_20 = arith.constant 0 : index
    %c0_21 = arith.constant 0 : index
    %30 = vector.load %arg4[%c0_20, %c0_21] : memref<1x32xf32, #tpu.memory_space<vmem>>, vector<1x32xf32>
    %31 = math.absf %22 : vector<48x32xf32>
    %32 = vector.broadcast %30 : vector<1x32xf32> to vector<48x32xf32>
    %33 = arith.mulf %32, %31 : vector<48x32xf32>
    %34 = arith.addf %29, %33 : vector<48x32xf32>
    %c0_22 = arith.constant 0 : index
    %c0_23 = arith.constant 0 : index
    %35 = vector.load %arg5[%c0_22, %c0_23] : memref<1x32xf32, #tpu.memory_space<vmem>>, vector<1x32xf32>
    %cst_24 = arith.constant 0.000000e+00 : f32
    %36 = vector.broadcast %cst_24 : f32 to vector<48x32xf32>
    %37 = arith.maximumf %23, %36 : vector<48x32xf32>
    %38 = vector.broadcast %35 : vector<1x32xf32> to vector<48x32xf32>
    %39 = arith.mulf %38, %37 : vector<48x32xf32>
    %c0_25 = arith.constant 0 : index
    %c0_26 = arith.constant 0 : index
    %40 = vector.load %arg6[%c0_25, %c0_26] : memref<1x32xf32, #tpu.memory_space<vmem>>, vector<1x32xf32>
    %41 = math.tanh %23 : vector<48x32xf32>
    %42 = vector.broadcast %40 : vector<1x32xf32> to vector<48x32xf32>
    %43 = arith.mulf %42, %41 : vector<48x32xf32>
    %44 = arith.addf %39, %43 : vector<48x32xf32>
    %c0_27 = arith.constant 0 : index
    %c0_28 = arith.constant 0 : index
    %45 = vector.load %arg15[%c0_27, %c0_28] : memref<32x96xf32, #tpu.memory_space<vmem>>, vector<32x96xf32>
    %cst_29 = arith.constant dense<0.000000e+00> : vector<48x96xf32>
    %46 = tpu.matmul %44, %45, %cst_29 {dimension_numbers = #tpu.dot_dimension_numbers<[1], [0], [0], [1], [0, 0, 1, 1], [], []>} : vector<48x32xf32>, vector<32x96xf32>, vector<48x96xf32> -> vector<48x96xf32>
    %47 = arith.mulf %46, %24 : vector<48x96xf32>
    %c0_30 = arith.constant 0 : index
    %c0_31 = arith.constant 0 : index
    %48 = vector.load %arg11[%c0_30, %c0_31] : memref<32x2048xf32, #tpu.memory_space<vmem>>, vector<32x2048xf32>
    %cst_32 = arith.constant dense<0.000000e+00> : vector<48x2048xf32>
    %49 = tpu.matmul %34, %48, %cst_32 {dimension_numbers = #tpu.dot_dimension_numbers<[1], [0], [0], [1], [0, 0, 1, 1], [], []>} : vector<48x32xf32>, vector<32x2048xf32>, vector<48x2048xf32> -> vector<48x2048xf32>
    %c0_33 = arith.constant 0 : index
    %c0_34 = arith.constant 0 : index
    %50 = vector.load %arg12[%c0_33, %c0_34] : memref<96x2048xf32, #tpu.memory_space<vmem>>, vector<96x2048xf32>
    %cst_35 = arith.constant dense<0.000000e+00> : vector<48x2048xf32>
    %51 = tpu.matmul %47, %50, %cst_35 {dimension_numbers = #tpu.dot_dimension_numbers<[1], [0], [0], [1], [0, 0, 1, 1], [], []>} : vector<48x96xf32>, vector<96x2048xf32>, vector<48x2048xf32> -> vector<48x2048xf32>
    %52 = arith.addf %49, %51 : vector<48x2048xf32>
    %53 = arith.mulf %52, %8 : vector<48x2048xf32>
    %c0_36 = arith.constant 0 : index
    %c0_37 = arith.constant 0 : index
    %54 = vector.load %arg13[%c0_36, %c0_37] : memref<2048x256xf32, #tpu.memory_space<vmem>>, vector<2048x256xf32>
    %cst_38 = arith.constant dense<0.000000e+00> : vector<48x256xf32>
    %55 = tpu.matmul %53, %54, %cst_38 {dimension_numbers = #tpu.dot_dimension_numbers<[1], [0], [0], [1], [0, 0, 1, 1], [], []>} : vector<48x2048xf32>, vector<2048x256xf32>, vector<48x256xf32> -> vector<48x256xf32>
    %56 = arith.mulf %14, %55 : vector<48x256xf32>
    %c0_39 = arith.constant 0 : index
    %c0_40 = arith.constant 0 : index
    %57 = vector.load %arg2[%c0_39, %c0_40] : memref<8x48xf32, #tpu.memory_space<vmem>>, vector<8x48xf32>
    %c0_41 = arith.constant 0 : index
    %c0_42 = arith.constant 0 : index
    %58 = vector.load %arg14[%c0_41, %c0_42] : memref<256x128xf32, #tpu.memory_space<vmem>>, vector<256x128xf32>
    %cst_43 = arith.constant dense<0.000000e+00> : vector<48x128xf32>
    %59 = tpu.matmul %56, %58, %cst_43 {dimension_numbers = #tpu.dot_dimension_numbers<[1], [0], [0], [1], [0, 0, 1, 1], [], []>} : vector<48x256xf32>, vector<256x128xf32>, vector<48x128xf32> -> vector<48x128xf32>
    %cst_44 = arith.constant dense<0.000000e+00> : vector<8x128xf32>
    %60 = tpu.matmul %57, %59, %cst_44 {dimension_numbers = #tpu.dot_dimension_numbers<[1], [0], [0], [1], [0, 0, 1, 1], [], []>} : vector<8x48xf32>, vector<48x128xf32>, vector<8x128xf32> -> vector<8x128xf32>
    %c0_45 = arith.constant 0 : index
    %c0_46 = arith.constant 0 : index
    %61 = vector.load %arg16[%c0_45, %c0_46] : memref<8x128xf32, #tpu.memory_space<vmem>>, vector<8x128xf32>
    tpu.vector_store %arg16[%c0_45, %c0_46], %60 {strides = array<i32>} : memref<8x128xf32, #tpu.memory_space<vmem>>, vector<8x128xf32>,
    return
  }
}

</mosaic_0001>

<bundles_post_ra>
// kernel: tpu_custom_call.1
= control target key start
LH: loop header
LB: loop body
LE: loop exit
PB: predicated region body
PF: predicated region fallthrough
CT: control target
= control target key end

     0   :  { %s12587_s0 = inlined_call_operand.vmem [shape: f32[48,24], index: 0, kind: input, shape index: {}]   ;;  %s12588_s1 = inlined_call_operand.hbm [shape: f32[48,48], index: 1, kind: input, shape index: {}]   ;;  %s12589_s2 = inlined_call_operand.hbm [shape: f32[8,48], index: 2, kind: input, shape index: {}]   ;;  %s12590_s3 = inlined_call_operand.hbm [shape: f32[1,32], index: 3, kind: input, shape index: {}]   ;;  %s12591_s4 = inlined_call_operand.hbm [shape: f32[1,32], index: 4, kind: input, shape index: {}]   ;;  %s12592_s5 = inlined_call_operand.hbm [shape: f32[1,32], index: 5, kind: input, shape index: {}]   ;;  %s12593_s6 = inlined_call_operand.hbm [shape: f32[1,32], index: 6, kind: input, shape index: {}]   ;;  %s12594_s7 = inlined_call_operand.hbm [shape: f32[24,3072], index: 7, kind: input, shape index: {}]   ;;  %s12595_s8 = inlined_call_operand.hbm [shape: f32[512,896], index: 8, kind: input, shape index: {}]   ;;  %s12596_s9 = inlined_call_operand.hbm [shape: f32[256,640], index: 9, kind: input, shape index: {}]   ;;  %s12597_s10 = inlined_call_operand.hbm [shape: f32[640,256], index: 10, kind: input, shape index: {}]   ;;  %s12598_s11 = inlined_call_operand.hbm [shape: f32[32,2048], index: 11, kind: input, shape index: {}]   ;;  %s12599_s12 = inlined_call_operand.hbm [shape: f32[96,2048], index: 12, kind: input, shape index: {}]   ;;  %s12600_s13 = inlined_call_operand.hbm [shape: f32[2048,256], index: 13, kind: input, shape index: {}]   ;;  %s12601_s14 = inlined_call_operand.hbm [shape: f32[256,128], index: 14, kind: input, shape index: {}]   ;;  %s12602_s15 = inlined_call_operand.hbm [shape: f32[32,96], index: 15, kind: input, shape index: {}]   ;;  %s12603_s16 = inlined_call_operand.hbm [shape: f32[8,128], index: 16, kind: output, shape index: {}]  }
   0x1   :  { %12608 = sst [smem:[#allocation150_spill]] %s12587_s0 }
   0x2   :  { %21 = vsyncpa [#allocation3], 0 }
   0x3   :  { %22 = vsyncpa [#allocation6], 0 }
   0x4   :  { %23 = vsyncpa [#allocation9], 0 }
   0x5   :  { %24 = vsyncpa [#allocation12], 0 }
   0x6   :  { %25 = vsyncpa [#allocation15], 0 }
   0x7   :  { %26 = vsyncpa [#allocation18], 0 }
   0x8   :  { %27 = vsyncpa [#allocation21], 0 }
   0x9   :  { %28 = vsyncpa [#allocation24], 0 }
   0xa   :  { %29 = vsyncpa [#allocation4], 0  ;;  %s10634_s21 = smov [#allocation5]   ;;  %s10635_s23 = smov [#allocation8]  }
   0xb   :  { %s50_s22 = sshll.u32 %s10634_s21, 4  ;;  %s70_s24 = sshll.u32 %s10635_s23, 4  ;;  %s51_s22 = int_to_ptr.vmem [resolvable:$true] %s50_s22  ;;  %s71_s24 = int_to_ptr.vmem [resolvable:$true] %s70_s24 }
   0xc   :  { %s10264_s27 = scalar_lea.hbm %s12589_s2, 128 }
   0xd   :  { %p10265_p0 = scmp.ne.s32.totalorder %s12589_s2, %s10264_s27  ;;  %p10268_p1 = scmp.lt.u32.totalorder %s10264_s27, %s12589_s2 }
   0xf   :  { %p10270_p2 = pnand %p10268_p1, %p10265_p0 }
  0x11   :  { %10273 = shalt.err (!%p10270_p2)
}
  0x12   :  { %s10274_s17 = scalar_lea.vmem %s51_s22, 128  ;;  %p10279_p4 = scmp.lt.s32.totalorder %s51_s22, %s51_s22 }
  0x13   :  { %p10275_p3 = scmp.ne.s32.totalorder %s51_s22, %s10274_s17  ;;  %p10280_p5 = scmp.lt.s32.totalorder %s10274_s17, %s10274_s17 }
  0x15   :  { %p10281_p6 = por %p10280_p5, %p10279_p4 }
  0x17   :  { %p10282_p7 = pnand %p10281_p6, %p10275_p3 }
  0x19   :  { %10285 = shalt.err (!%p10282_p7)
}
  0x1a   :  { %53 = dma.hbm_to_vmem [thread:$0]  %s12589_s2, 128, %s51_s22, [#allocation6]  }
  0x1b   :  { %s10286_s23 = scalar_lea.hbm %s12591_s4, 16 }
  0x1c   :  { %p10287_p8 = scmp.ne.s32.totalorder %s12591_s4, %s10286_s23  ;;  %p10290_p9 = scmp.lt.u32.totalorder %s10286_s23, %s12591_s4 }
  0x1e   :  { %p10292_p10 = pnand %p10290_p9, %p10287_p8 }
  0x20   :  { %10295 = shalt.err (!%p10292_p10)
}
  0x21   :  { %s10296_s29 = scalar_lea.vmem %s71_s24, 16  ;;  %s10300_s30 = scalar_lea.vmem %s71_s24, 32 }
  0x22   :  { %p10297_p11 = scmp.ne.s32.totalorder %s71_s24, %s10296_s29  ;;  %p10301_p12 = scmp.lt.s32.totalorder %s71_s24, %s71_s24 }
  0x23   :  { %p10302_p13 = scmp.lt.s32.totalorder %s10300_s30, %s10296_s29 }
  0x25   :  { %p10303_p0 = por %p10302_p13, %p10301_p12 }
  0x27   :  { %p10304_p1 = pnand %p10303_p0, %p10297_p11 }
  0x29   :  { %10307 = shalt.err (!%p10304_p1)
}
  0x2a   :  { %73 = dma.hbm_to_vmem [thread:$0]  %s12591_s4, 16, %s71_s24, [#allocation9]  }
  0x2b   :  { %s10636_s0 = smov [#allocation11]   ;;  %s10637_s18 = smov [#allocation14]  }
  0x2c   :  { %s90_s17 = sshll.u32 %s10636_s0, 4  ;;  %s111_s19 = sshll.u32 %s10637_s18, 4  ;;  %s91_s17 = int_to_ptr.vmem [resolvable:$true] %s90_s17  ;;  %s10775_s19 = int_to_ptr.vmem [resolvable:$true] %s111_s19 }
  0x2d   :  { %s10308_s23 = scalar_lea.hbm %s12593_s6, 16 }
  0x2e   :  { %p10309_p2 = scmp.ne.s32.totalorder %s12593_s6, %s10308_s23  ;;  %p10312_p3 = scmp.lt.u32.totalorder %s10308_s23, %s12593_s6 }
  0x30   :  { %p10314_p4 = pnand %p10312_p3, %p10309_p2 }
  0x32   :  { %10317 = shalt.err (!%p10314_p4)
}
  0x33   :  { %s10318_s4 = scalar_lea.vmem %s91_s17, 16  ;;  %s10322_s24 = scalar_lea.vmem %s91_s17, 32 }
  0x34   :  { %p10319_p5 = scmp.ne.s32.totalorder %s91_s17, %s10318_s4  ;;  %p10323_p6 = scmp.lt.s32.totalorder %s91_s17, %s91_s17 }
  0x35   :  { %p10324_p7 = scmp.lt.s32.totalorder %s10322_s24, %s10318_s4 }
  0x37   :  { %p10325_p8 = por %p10324_p7, %p10323_p6 }
  0x39   :  { %p10326_p9 = pnand %p10325_p8, %p10319_p5 }
  0x3b   :  { %10329 = shalt.err (!%p10326_p9)
}
  0x3c   :  { %93 = dma.hbm_to_vmem [thread:$0]  %s12593_s6, 16, %s91_s17, [#allocation12]  }
  0x3d   :  { %s10330_s0 = scalar_lea.hbm %s12595_s8, 57344 }
  0x3e   :  { %p10331_p10 = scmp.ne.s32.totalorder %s12595_s8, %s10330_s0  ;;  %p10334_p11 = scmp.lt.u32.totalorder %s10330_s0, %s12595_s8 }
  0x40   :  { %p10336_p12 = pnand %p10334_p11, %p10331_p10 }
  0x42   :  { %10339 = shalt.err (!%p10336_p12)
}
  0x43   :  { %s10340_s25 = scalar_lea.vmem %s10775_s19, 57344  ;;  %p10345_p0 = scmp.lt.s32.totalorder %s10775_s19, %s10775_s19 }
  0x44   :  { %p10341_p13 = scmp.ne.s32.totalorder %s10775_s19, %s10340_s25  ;;  %p10346_p1 = scmp.lt.s32.totalorder %s10340_s25, %s10340_s25 }
  0x46   :  { %p10347_p2 = por %p10346_p1, %p10345_p0 }
  0x48   :  { %p10348_p3 = pnand %p10347_p2, %p10341_p13 }
  0x4a   :  { %10351 = shalt.err (!%p10348_p3)
}
  0x4b   :  { %s10638_s6 = smov 896   ;;  %s10639_s17 = smov 56  }
  0x4c   :  { %117 = dma.hbm_to_vmem [thread:$0]  %s12595_s8, 57344, %s10775_s19, [#allocation15], %s10638_s6, %s10638_s6, %s10639_s17  }
  0x4d   :  { %s10640_s28 = smov [#allocation17]   ;;  %s10352_s30 = scalar_lea.hbm %s12597_s10, 20480 }
  0x4e   :  { %s135_s4 = sshll.u32 %s10640_s28, 4  ;;  %p10353_p4 = scmp.ne.s32.totalorder %s12597_s10, %s10352_s30  ;;  %s136_s4 = int_to_ptr.vmem [resolvable:$true] %s135_s4 }
  0x4f   :  { %p10356_p5 = scmp.lt.u32.totalorder %s10352_s30, %s12597_s10 }
  0x51   :  { %p10358_p6 = pnand %p10356_p5, %p10353_p4 }
  0x53   :  { %10361 = shalt.err (!%p10358_p6)
}
  0x54   :  { %s10362_s20 = scalar_lea.vmem %s136_s4, 20480  ;;  %p10367_p8 = scmp.lt.s32.totalorder %s136_s4, %s136_s4 }
  0x55   :  { %p10363_p7 = scmp.ne.s32.totalorder %s136_s4, %s10362_s20  ;;  %p10368_p9 = scmp.lt.s32.totalorder %s10362_s20, %s10362_s20 }
  0x57   :  { %p10369_p10 = por %p10368_p9, %p10367_p8 }
  0x59   :  { %p10370_p11 = pnand %p10369_p10, %p10363_p7 }
  0x5b   :  { %10373 = shalt.err (!%p10370_p11)
}
  0x5c   :  { %s10641_s8 = smov 256   ;;  %s10642_s19 = smov 16  }
  0x5d   :  { %141 = dma.hbm_to_vmem [thread:$0]  %s12597_s10, 20480, %s136_s4, [#allocation18], %s10641_s8, %s10641_s8, %s10642_s19  }
  0x5e   :  { %s10643_s25 = smov [#allocation20]   ;;  %s10374_s27 = scalar_lea.hbm %s12599_s12, 24576 }
  0x5f   :  { %s159_s6 = sshll.u32 %s10643_s25, 4  ;;  %p10375_p12 = scmp.ne.s32.totalorder %s12599_s12, %s10374_s27  ;;  %s160_s6 = int_to_ptr.vmem [resolvable:$true] %s159_s6 }
  0x60   :  { %p10378_p13 = scmp.lt.u32.totalorder %s10374_s27, %s12599_s12 }
  0x62   :  { %p10380_p0 = pnand %p10378_p13, %p10375_p12 }
  0x64   :  { %10383 = shalt.err (!%p10380_p0)
}
  0x65   :  { %s10384_s2 = scalar_lea.vmem %s160_s6, 24576  ;;  %p10389_p2 = scmp.lt.s32.totalorder %s160_s6, %s160_s6 }
  0x66   :  { %p10385_p1 = scmp.ne.s32.totalorder %s160_s6, %s10384_s2  ;;  %p10390_p3 = scmp.lt.s32.totalorder %s10384_s2, %s10384_s2 }
  0x68   :  { %p10391_p4 = por %p10390_p3, %p10389_p2 }
  0x6a   :  { %p10392_p5 = pnand %p10391_p4, %p10385_p1 }
  0x6c   :  { %10395 = shalt.err (!%p10392_p5)
}
  0x6d   :  { %s10644_s10 = smov 2048   ;;  %s10645_s4 = smov 128  }
  0x6e   :  { %165 = dma.hbm_to_vmem [thread:$0]  %s12599_s12, 24576, %s160_s6, [#allocation21], %s10644_s10, %s10644_s10, %s10645_s4  }
  0x6f   :  { %s10646_s18 = smov [#allocation23]   ;;  %s10647_s21 = smov [#allocation2]  }
  0x70   :  { %s183_s20 = sshll.u32 %s10646_s18, 4  ;;  %s37_s23 = sshll.u32 %s10647_s21, 4  ;;  %s184_s20 = int_to_ptr.vmem [resolvable:$true] %s183_s20  ;;  %s38_s23 = int_to_ptr.vmem [resolvable:$true] %s37_s23 }
  0x71   :  { %s10396_s26 = scalar_lea.hbm %s12601_s14, 4096 }
  0x72   :  { %p10397_p6 = scmp.ne.s32.totalorder %s12601_s14, %s10396_s26  ;;  %p10400_p7 = scmp.lt.u32.totalorder %s10396_s26, %s12601_s14 }
  0x74   :  { %p10402_p8 = pnand %p10400_p7, %p10397_p6 }
  0x76   :  { %10405 = shalt.err (!%p10402_p8)
}
  0x77   :  { %s10406_s12 = scalar_lea.vmem %s184_s20, 4096  ;;  %p10411_p10 = scmp.lt.s32.totalorder %s184_s20, %s184_s20 }
  0x78   :  { %p10407_p9 = scmp.ne.s32.totalorder %s184_s20, %s10406_s12  ;;  %p10412_p11 = scmp.lt.s32.totalorder %s10406_s12, %s10406_s12 }
  0x7a   :  { %p10413_p12 = por %p10412_p11, %p10411_p10 }
  0x7c   :  { %p10414_p13 = pnand %p10413_p12, %p10407_p9 }
  0x7e   :  { %10417 = shalt.err (!%p10414_p13)
}
  0x7f   :  { %s10648_s6 = smov 8   ;;  %s10418_s18 = scalar_lea.hbm %s12588_s1, 768 }
  0x80   :  { %189 = dma.hbm_to_vmem [thread:$0]  %s12601_s14, 4096, %s184_s20, [#allocation24], %s10645_s4, %s10645_s4, %s10648_s6  }
  0x81   :  { %p10419_p0 = scmp.ne.s32.totalorder %s12588_s1, %s10418_s18  ;;  %p10422_p1 = scmp.lt.u32.totalorder %s10418_s18, %s12588_s1 }
  0x83   :  { %p10424_p2 = pnand %p10422_p1, %p10419_p0 }
  0x85   :  { %10427 = shalt.err (!%p10424_p2)
}
  0x86   :  { %s10428_s27 = scalar_lea.vmem %s38_s23, 768  ;;  %p10433_p4 = scmp.lt.s32.totalorder %s38_s23, %s38_s23 }
  0x87   :  { %p10429_p3 = scmp.ne.s32.totalorder %s38_s23, %s10428_s27  ;;  %p10434_p5 = scmp.lt.s32.totalorder %s10428_s27, %s10428_s27 }
  0x89   :  { %p10435_p6 = por %p10434_p5, %p10433_p4 }
  0x8b   :  { %p10436_p7 = pnand %p10435_p6, %p10429_p3 }
  0x8d   :  { %10439 = shalt.err (!%p10436_p7)
}
  0x8e   :  { %43 = dma.hbm_to_vmem [thread:$0]  %s12588_s1, 768, %s38_s23, [#allocation3], %s10645_s4, %s10645_s4, %s10648_s6  }
  0x8f   :  { %s10649_s28 = smov [#allocation7]   ;;  %s10650_s29 = smov [#allocation10]  }
  0x90   :  { %s60_s24 = sshll.u32 %s10649_s28, 4  ;;  %s80_s12 = sshll.u32 %s10650_s29, 4  ;;  %s61_s24 = int_to_ptr.vmem [resolvable:$true] %s60_s24  ;;  %s81_s12 = int_to_ptr.vmem [resolvable:$true] %s80_s12 }
  0x91   :  { %s10440_s22 = scalar_lea.hbm %s12590_s3, 16 }
  0x92   :  { %p10441_p8 = scmp.ne.s32.totalorder %s12590_s3, %s10440_s22  ;;  %p10444_p9 = scmp.lt.u32.totalorder %s10440_s22, %s12590_s3 }
  0x94   :  { %p10446_p10 = pnand %p10444_p9, %p10441_p8 }
  0x96   :  { %10449 = shalt.err (!%p10446_p10)
}
  0x97   :  { %s10450_s1 = scalar_lea.vmem %s61_s24, 16  ;;  %s10454_s23 = scalar_lea.vmem %s61_s24, 32 }
  0x98   :  { %p10451_p11 = scmp.ne.s32.totalorder %s61_s24, %s10450_s1  ;;  %p10455_p12 = scmp.lt.s32.totalorder %s61_s24, %s61_s24 }
  0x99   :  { %p10456_p13 = scmp.lt.s32.totalorder %s10454_s23, %s10450_s1 }
  0x9b   :  { %p10457_p0 = por %p10456_p13, %p10455_p12 }
  0x9d   :  { %p10458_p1 = pnand %p10457_p0, %p10451_p11 }
  0x9f   :  { %10461 = shalt.err (!%p10458_p1)
}
  0xa0   :  { %63 = dma.hbm_to_vmem [thread:$0]  %s12590_s3, 16, %s61_s24, [#allocation6]  }
  0xa1   :  { %s10462_s20 = scalar_lea.hbm %s12592_s5, 16 }
  0xa2   :  { %p10463_p2 = scmp.ne.s32.totalorder %s12592_s5, %s10462_s20  ;;  %p10466_p3 = scmp.lt.u32.totalorder %s10462_s20, %s12592_s5 }
  0xa4   :  { %p10468_p4 = pnand %p10466_p3, %p10463_p2 }
  0xa6   :  { %10471 = shalt.err (!%p10468_p4)
}
  0xa7   :  { %s10472_s22 = scalar_lea.vmem %s81_s12, 16  ;;  %s10476_s0 = scalar_lea.vmem %s81_s12, 32 }
  0xa8   :  { %p10473_p5 = scmp.ne.s32.totalorder %s81_s12, %s10472_s22  ;;  %p10477_p6 = scmp.lt.s32.totalorder %s81_s12, %s81_s12 }
  0xa9   :  { %p10478_p7 = scmp.lt.s32.totalorder %s10476_s0, %s10472_s22 }
  0xab   :  { %p10479_p8 = por %p10478_p7, %p10477_p6 }
  0xad   :  { %p10480_p9 = pnand %p10479_p8, %p10473_p5 }
  0xaf   :  { %10483 = shalt.err (!%p10480_p9)
}
  0xb0   :  { %83 = dma.hbm_to_vmem [thread:$0]  %s12592_s5, 16, %s81_s12, [#allocation9]  }
  0xb1   :  { %s10651_s18 = smov [#allocation13]   ;;  %s10484_s23 = scalar_lea.hbm %s12594_s7, 9216 }
  0xb2   :  { %s99_s21 = sshll.u32 %s10651_s18, 4  ;;  %p10485_p10 = scmp.ne.s32.totalorder %s12594_s7, %s10484_s23  ;;  %s100_s21 = int_to_ptr.vmem [resolvable:$true] %s99_s21 }
  0xb3   :  { %p10488_p11 = scmp.lt.u32.totalorder %s10484_s23, %s12594_s7 }
  0xb5   :  { %p10490_p12 = pnand %p10488_p11, %p10485_p10 }
  0xb7   :  { %10493 = shalt.err (!%p10490_p12)
}
  0xb8   :  { %s10494_s20 = scalar_lea.vmem %s100_s21, 9216  ;;  %p10499_p0 = scmp.lt.s32.totalorder %s100_s21, %s100_s21 }
  0xb9   :  { %p10495_p13 = scmp.ne.s32.totalorder %s100_s21, %s10494_s20  ;;  %p10500_p1 = scmp.lt.s32.totalorder %s10494_s20, %s10494_s20 }
  0xbb   :  { %p10501_p2 = por %p10500_p1, %p10499_p0 }
  0xbd   :  { %p10502_p3 = pnand %p10501_p2, %p10495_p13 }
  0xbf   :  { %10505 = shalt.err (!%p10502_p3)
}
  0xc0   :  { %s10652_s5 = smov 3072   ;;  %s10653_s12 = smov 192  }
  0xc1   :  { %105 = dma.hbm_to_vmem [thread:$0]  %s12594_s7, 9216, %s100_s21, [#allocation12], %s10652_s5, %s10652_s5, %s10653_s12  }
  0xc2   :  { %s10654_s30 = smov [#allocation16]   ;;  %s10506_s3 = scalar_lea.hbm %s12596_s9, 20480 }
  0xc3   :  { %s123_s2 = sshll.u32 %s10654_s30, 4  ;;  %p10507_p4 = scmp.ne.s32.totalorder %s12596_s9, %s10506_s3  ;;  %s124_s2 = int_to_ptr.vmem [resolvable:$true] %s123_s2 }
  0xc4   :  { %p10510_p5 = scmp.lt.u32.totalorder %s10506_s3, %s12596_s9 }
  0xc6   :  { %p10512_p6 = pnand %p10510_p5, %p10507_p4 }
  0xc8   :  { %10515 = shalt.err (!%p10512_p6)
}
  0xc9   :  { %s10516_s23 = scalar_lea.vmem %s124_s2, 20480  ;;  %p10521_p8 = scmp.lt.s32.totalorder %s124_s2, %s124_s2 }
  0xca   :  { %p10517_p7 = scmp.ne.s32.totalorder %s124_s2, %s10516_s23  ;;  %p10522_p9 = scmp.lt.s32.totalorder %s10516_s23, %s10516_s23 }
  0xcc   :  { %p10523_p10 = por %p10522_p9, %p10521_p8 }
  0xce   :  { %p10524_p11 = pnand %p10523_p10, %p10517_p7 }
  0xd0   :  { %10527 = shalt.err (!%p10524_p11)
}
  0xd1   :  { %s10655_s7 = smov 640   ;;  %s10656_s21 = smov 40  }
  0xd2   :  { %129 = dma.hbm_to_vmem [thread:$0]  %s12596_s9, 20480, %s124_s2, [#allocation15], %s10655_s7, %s10655_s7, %s10656_s21  }
  0xd3   :  { %s10657_s27 = smov [#allocation19]   ;;  %s10658_s20 = smov [#allocation22]  }
  0xd4   :  { %s147_s14 = sshll.u32 %s10657_s27, 4  ;;  %s171_s5 = sshll.u32 %s10658_s20, 4  ;;  %s148_s14 = int_to_ptr.vmem [resolvable:$true] %s147_s14  ;;  %s172_s5 = int_to_ptr.vmem [resolvable:$true] %s171_s5 }
  0xd5   :  { %s10528_s29 = scalar_lea.hbm %s12598_s11, 8192 }
  0xd6   :  { %p10529_p12 = scmp.ne.s32.totalorder %s12598_s11, %s10528_s29  ;;  %p10532_p13 = scmp.lt.u32.totalorder %s10528_s29, %s12598_s11 }
  0xd8   :  { %p10534_p0 = pnand %p10532_p13, %p10529_p12 }
  0xda   :  { %10537 = shalt.err (!%p10534_p0)
}
  0xdb   :  { %s10538_s9 = scalar_lea.vmem %s148_s14, 8192  ;;  %p10543_p2 = scmp.lt.s32.totalorder %s148_s14, %s148_s14 }
  0xdc   :  { %p10539_p1 = scmp.ne.s32.totalorder %s148_s14, %s10538_s9  ;;  %p10544_p3 = scmp.lt.s32.totalorder %s10538_s9, %s10538_s9 }
  0xde   :  { %p10545_p4 = por %p10544_p3, %p10543_p2 }
  0xe0   :  { %p10546_p5 = pnand %p10545_p4, %p10539_p1 }
  0xe2   :  { %10549 = shalt.err (!%p10546_p5)
}
  0xe3   :  { %153 = dma.hbm_to_vmem [thread:$0]  %s12598_s11, 8192, %s148_s14, [#allocation18], %s10644_s10, %s10644_s10, %s10645_s4  }
  0xe4   :  { %s10550_s1 = scalar_lea.hbm %s12600_s13, 65536 }
  0xe5   :  { %p10551_p6 = scmp.ne.s32.totalorder %s12600_s13, %s10550_s1  ;;  %p10554_p7 = scmp.lt.u32.totalorder %s10550_s1, %s12600_s13 }
  0xe7   :  { %p10556_p8 = pnand %p10554_p7, %p10551_p6 }
  0xe9   :  { %10559 = shalt.err (!%p10556_p8)
}
  0xea   :  { %s10560_s26 = scalar_lea.vmem %s172_s5, 65536  ;;  %p10565_p10 = scmp.lt.s32.totalorder %s172_s5, %s172_s5 }
  0xeb   :  { %p10561_p9 = scmp.ne.s32.totalorder %s172_s5, %s10560_s26  ;;  %p10566_p11 = scmp.lt.s32.totalorder %s10560_s26, %s10560_s26 }
  0xed   :  { %p10567_p12 = por %p10566_p11, %p10565_p10 }
  0xef   :  { %p10568_p13 = pnand %p10567_p12, %p10561_p9 }
  0xf1   :  { %10571 = shalt.err (!%p10568_p13)
}
  0xf2   :  { %177 = dma.hbm_to_vmem [thread:$0]  %s12600_s13, 65536, %s172_s5, [#allocation21], %s10641_s8, %s10641_s8, %s10642_s19  }
  0xf3   :  { %s10659_s27 = smov [#allocation25]   ;;  %s10572_s28 = scalar_lea.hbm %s12602_s15, 512 }
  0xf4   :  { %s195_s14 = sshll.u32 %s10659_s27, 4  ;;  %p10573_p0 = scmp.ne.s32.totalorder %s12602_s15, %s10572_s28  ;;  %s196_s14 = int_to_ptr.vmem [resolvable:$true] %s195_s14 }
  0xf5   :  { %p10576_p1 = scmp.lt.u32.totalorder %s10572_s28, %s12602_s15 }
  0xf7   :  { %p10578_p2 = pnand %p10576_p1, %p10573_p0 }
  0xf9   :  { %10581 = shalt.err (!%p10578_p2)
}
  0xfa   :  { %s10582_s3 = scalar_lea.vmem %s196_s14, 512  ;;  %p10587_p4 = scmp.lt.s32.totalorder %s196_s14, %s196_s14 }
  0xfb   :  { %p10583_p3 = scmp.ne.s32.totalorder %s196_s14, %s10582_s3  ;;  %p10588_p5 = scmp.lt.s32.totalorder %s10582_s3, %s10582_s3 }
  0xfd   :  { %p10589_p6 = por %p10588_p5, %p10587_p4 }
  0xff   :  { %p10590_p7 = pnand %p10589_p6, %p10583_p3 }
 0x101   :  { %10593 = shalt.err (!%p10590_p7)
}
 0x102   :  { %201 = dma.hbm_to_vmem [thread:$0]  %s12602_s15, 512, %s196_s14, [#allocation24], %s10645_s4, %s10645_s4, %s10648_s6  }
 0x103   :  { %10616 = dma.done.wait [#allocation3], 768  }
 0x104   :  { %10617 = vsyncadd [#allocation3], 4294966528 }
 0x105   :  { %10618 = dma.done.wait [#allocation6], 144  }
 0x106   :  { %10619 = vsyncadd [#allocation6], 4294967152 }
 0x107   :  { %10620 = dma.done.wait [#allocation9], 32  }
 0x108   :  { %10621 = vsyncadd [#allocation9], 4294967264 }
 0x109   :  { %10622 = dma.done.wait [#allocation12], 9232  }
 0x10a   :  { %10623 = vsyncadd [#allocation12], 4294958064 }
 0x10b   :  { %10624 = dma.done.wait [#allocation15], 77824  }
 0x10c   :  { %10625 = vsyncadd [#allocation15], 4294889472 }
 0x10d   :  { %10626 = dma.done.wait [#allocation18], 28672  }
 0x10e   :  { %10627 = vsyncadd [#allocation18], 4294938624 }
 0x10f   :  { %10628 = dma.done.wait [#allocation21], 90112  }
 0x110   :  { %10629 = vsyncadd [#allocation21], 4294877184 }
 0x111   :  { %10630 = dma.done.wait [#allocation24], 4608  }
 0x112   :  { %10631 = vsyncadd [#allocation24], 4294962688  ;;  %v12605_v0 = vmov 0.0   ;;  %v260_v1 = vld [vmem:[#allocation13 + $0x8] sm:$0xff]  ;;  %v262_v3 = vld [vmem:[#allocation13 + $0x18] sm:$0xff]  ;;  %s12609_s4 = sld [smem:[#allocation150_spill]] }
 0x113   :  { %414 = vmatprep.mubr.f32.mxu0 %v12605_v0  ;;  %515 = vmatprep.mubr.f32.mxu1 %v12605_v0  ;;  %v284_v2 = vld [vmem:[#allocation13 + $0xc8] sm:$0xff]  ;;  %v286_v5 = vld [vmem:[#allocation13 + $0xd8] sm:$0xff]  ;;  %v259_v6 = vld [vmem:[#allocation13] sm:$0xff]  ;;  %vm331_vm0 = vcmask 195584   ;;  %vm1586_vm1 = vcmask 392192   ;;  %s10661_s21 = smov 96  }
 0x114   :  { %v8317_v4 = vpack.c.bf16 %v284_v2, %v260_v1  ;;  %v283_v7 = vld [vmem:[#allocation13 + $0xc0] sm:$0xff]  ;;  %v8321_v8 = vpack.c.bf16 %v286_v5, %v262_v3  ;;  %v261_v10 = vld [vmem:[#allocation13 + $0x10] sm:$0xff]  ;;  %v308_v12 = vld [vmem:[#allocation13 + $0x188] sm:$0xff]  ;;  %s10662_s17 = smov 64   ;;  %vm4147_vm2 = vcmask 261120   ;;  %vm4297_vm3 = vcmask 523264  }
 0x115   :  { %v8319_v9 = vpack.c.bf16 %v283_v7, %v259_v6  ;;  %v285_v11 = vld [vmem:[#allocation13 + $0xd0] sm:$0xff]  ;;  %v310_v14 = vld [vmem:[#allocation13 + $0x198] sm:$0xff]  ;;  %v307_v15 = vld [vmem:[#allocation13 + $0x180] sm:$0xff]  ;;  %vm4572_vm4 = vcmask 785408   ;;  %vm10664_vm5 = vmmov 0   ;;  %s10665_s26 = smov [#allocation26]  }
 0x116   :  { %8318 = vmatprep.subr.bf16.mxu0 %v8317_v4  ;;  %v8323_v13 = vpack.c.bf16 %v285_v11, %v261_v10  ;;  %8322 = vmatprep.subr.bf16.mxu1 %v8321_v8  ;;  %v309_v16 = vld [vmem:[#allocation13 + $0x190] sm:$0xff]  ;;  %v266_v18 = vld [vmem:[#allocation13 + $0x38] sm:$0xff]  ;;  %v1707_v62 = vld [vmem:[#allocation14 + $0x8] sm:$0xff]  ;;  %s7861_s11 = sshll.u32 %s10665_s26, 4  ;;  %s7862_s11 = int_to_ptr.vmem [resolvable:$true] %s7861_s11 }
 0x117   :  { %8320 = vmatpush1.bf16.msra.mxu0 %v8319_v9  ;;  %v290_v19 = vld [vmem:[#allocation13 + $0xf8] sm:$0xff]  ;;  %v265_v20 = vld [vmem:[#allocation13 + $0x30] sm:$0xff]  ;;  %v1714_v63 = vld [vmem:[#allocation14 + $0x40] sm:$0xff]  ;;  %s10594_s10 = scalar_lea.vmem %s7862_s11, 128  ;;  %p10599_p9 = scmp.lt.s32.totalorder %s7862_s11, %s7862_s11 }
 0x118   :  { %8324 = vmatpush1.bf16.msra.mxu1 %v8323_v13  ;;  %354 = vmatprep.subr.mxu0 %v308_v12  ;;  %v10964_v17 = vld [vmem:[%s12609_s4] sm:$0xff]  ;;  %v289_v21 = vld [vmem:[#allocation13 + $0xf0] sm:$0xff]  ;;  %v8329_v22 = vpack.c.bf16 %v290_v19, %v266_v18  ;;  %v10971_v24 = vld [vmem:[%s12609_s4 + $0x8] sm:$0xff]  ;;  %v8377_v2 = vpack.c.bf16 %v1714_v63, %v1707_v62  ;;  %p10595_p8 = scmp.ne.s32.totalorder %s7862_s11, %s10594_s10  ;;  %p10600_p10 = scmp.lt.s32.totalorder %s10594_s10, %s10594_s10 }
 0x119   :  { %455 = vmatprep.subr.mxu1 %v310_v14  ;;  %v8331_v23 = vpack.c.bf16 %v289_v21, %v265_v20  ;;  %v314_v25 = vld [vmem:[#allocation13 + $0x1b8] sm:$0xff]  ;;  %v313_v28 = vld [vmem:[#allocation13 + $0x1b0] sm:$0xff]  ;;  %v11007_v32 = vld [vmem:[%s12609_s4 + $0x20] sm:$0xff] }
 0x11a   :  { %v270_v26 = vld [vmem:[#allocation13 + $0x58] sm:$0xff]  ;;  %v10985_v30 = vld [vmem:[%s12609_s4 + $0x10] sm:$0xff]  ;;  %v11018_v33 = vld [vmem:[%s12609_s4 + $0x28] sm:$0xff]  ;;  %p10601_p11 = por %p10600_p10, %p10599_p9 }
 0x11b   :  { %355 = vmatpush1.msra.mxu0 %v307_v15  ;;  %v294_v27 = vld [vmem:[#allocation13 + $0x118] sm:$0xff]  ;;  %v269_v34 = vld [vmem:[#allocation13 + $0x50] sm:$0xff]  ;;  %v264_v3 = vld [vmem:[#allocation13 + $0x28] sm:$0xff] }
 0x11c   :  { %456 = vmatpush1.msra.mxu1 %v309_v16  ;;  %7877 = vmatmul.mubr.msk.f32.vlgmr.msra.gmra.mrb[0].mxu0 %vm331_vm0, %v10964_v17  ;;  %v8337_v29 = vpack.c.bf16 %v294_v27, %v270_v26  ;;  %v10996_v31 = vld [vmem:[%s12609_s4 + $0x18] sm:$0xff]  ;;  %v293_v35 = vld [vmem:[#allocation13 + $0x110] sm:$0xff]  ;;  %v288_v4 = vld [vmem:[#allocation13 + $0xe8] sm:$0xff]  ;;  %p10602_p12 = pnand %p10601_p11, %p10595_p8 }
 0x11d   :  { %7883 = vmatmul.mubr.msk.f32.vlgmr.msra.gmra.mrb[0].mxu1 %vm331_vm0, %v10964_v17  ;;  %420 = vmatprep.mubr.f32.mxu0 %v12605_v0  ;;  %v8339_v36 = vpack.c.bf16 %v293_v35, %v269_v34  ;;  %v318_v37 = vld [vmem:[#allocation13 + $0x1d8] sm:$0xff]  ;;  %v317_v40 = vld [vmem:[#allocation13 + $0x1d0] sm:$0xff]  ;;  %v8325_v5 = vpack.c.bf16 %v288_v4, %v264_v3  ;;  %v263_v6 = vld [vmem:[#allocation13 + $0x20] sm:$0xff] }
 0x11e   :  { %521 = vmatprep.mubr.f32.mxu1 %v12605_v0  ;;  %8330 = vmatprep.subr.bf16.mxu1 %v8329_v22  ;;  %v274_v38 = vld [vmem:[#allocation13 + $0x78] sm:$0xff]  ;;  %v273_v42 = vld [vmem:[#allocation13 + $0x70] sm:$0xff]  ;;  %v287_v7 = vld [vmem:[#allocation13 + $0xe0] sm:$0xff] }
 0x11f   :  { %8332 = vmatpush1.bf16.msra.mxu1 %v8331_v23  ;;  %v298_v39 = vld [vmem:[#allocation13 + $0x138] sm:$0xff]  ;;  %v297_v43 = vld [vmem:[#allocation13 + $0x130] sm:$0xff]  ;;  %v8327_v8 = vpack.c.bf16 %v287_v7, %v263_v6  ;;  %8326 = vmatprep.subr.bf16.mxu0 %v8325_v5  ;;  %v312_v9 = vld [vmem:[#allocation13 + $0x1a8] sm:$0xff] }
 0x120   :  { %7878 = vmatmul.mubr.msk.f32.gmra.mrb[2].mxu0 %vm331_vm0, %v10971_v24  ;;  %657 = vmatprep.subr.mxu1 %v314_v25  ;;  %v8345_v41 = vpack.c.bf16 %v298_v39, %v274_v38  ;;  %v8347_v44 = vpack.c.bf16 %v297_v43, %v273_v42  ;;  %v322_v45 = vld [vmem:[#allocation13 + $0x1f8] sm:$0xff]  ;;  %v321_v48 = vld [vmem:[#allocation13 + $0x1f0] sm:$0xff]  ;;  %v311_v10 = vld [vmem:[#allocation13 + $0x1a0] sm:$0xff] }
 0x121   :  { %7884 = vmatmul.mubr.msk.f32.gmra.mrb[2].mxu1 %vm331_vm0, %v10971_v24  ;;  %426 = vmatprep.mubr.f32.mxu0 %v12605_v0  ;;  %v278_v46 = vld [vmem:[#allocation13 + $0x98] sm:$0xff]  ;;  %v277_v50 = vld [vmem:[#allocation13 + $0x90] sm:$0xff]  ;;  %v1706_v11 = vld [vmem:[#allocation14] sm:$0xff] }
 0x122   :  { %527 = vmatprep.mubr.f32.mxu1 %v12605_v0  ;;  %v302_v47 = vld [vmem:[#allocation13 + $0x158] sm:$0xff]  ;;  %v301_v51 = vld [vmem:[#allocation13 + $0x150] sm:$0xff]  ;;  %8328 = vmatpush1.bf16.msra.mxu0 %v8327_v8  ;;  %v1727_v19 = vld [vmem:[#allocation14 + $0xa8] sm:$0xff] }
 0x123   :  { %658 = vmatpush1.msra.mxu1 %v313_v28  ;;  %v8353_v49 = vpack.c.bf16 %v302_v47, %v278_v46  ;;  %v8355_v52 = vpack.c.bf16 %v301_v51, %v277_v50  ;;  %v326_v53 = vld [vmem:[#allocation13 + $0x218] sm:$0xff]  ;;  %v325_v56 = vld [vmem:[#allocation13 + $0x210] sm:$0xff]  ;;  %556 = vmatprep.subr.mxu0 %v312_v9  ;;  %v1735_v20 = vld [vmem:[#allocation14 + $0xe8] sm:$0xff] }
 0x124   :  { %7879 = vmatmul.mubr.msk.f32.gmra.mrb[4].mxu0 %vm331_vm0, %v10985_v30  ;;  %8338 = vmatprep.subr.bf16.mxu1 %v8337_v29  ;;  %v282_v54 = vld [vmem:[#allocation13 + $0xb8] sm:$0xff]  ;;  %v281_v58 = vld [vmem:[#allocation13 + $0xb0] sm:$0xff]  ;;  %v1742_v21 = vld [vmem:[#allocation14 + $0x120] sm:$0xff] }
 0x125   :  { %7885 = vmatmul.mubr.msk.f32.gmra.mrb[4].mxu1 %vm331_vm0, %v10985_v30  ;;  %432 = vmatprep.mubr.f32.mxu0 %v12605_v0  ;;  %v306_v55 = vld [vmem:[#allocation13 + $0x178] sm:$0xff]  ;;  %v305_v59 = vld [vmem:[#allocation13 + $0x170] sm:$0xff]  ;;  %v8385_v23 = vpack.c.bf16 %v1742_v21, %v1735_v20  ;;  %v1734_v25 = vld [vmem:[#allocation14 + $0xe0] sm:$0xff] }
 0x126   :  { %533 = vmatprep.mubr.f32.mxu1 %v12605_v0  ;;  %v8361_v57 = vpack.c.bf16 %v306_v55, %v282_v54  ;;  %v8363_v60 = vpack.c.bf16 %v305_v59, %v281_v58  ;;  %v330_v61 = vld [vmem:[#allocation13 + $0x238] sm:$0xff]  ;;  %v329_v1 = vld [vmem:[#allocation13 + $0x230] sm:$0xff]  ;;  %557 = vmatpush1.msra.mxu0 %v311_v10  ;;  %v1755_v35 = vld [vmem:[#allocation14 + $0x188] sm:$0xff] }
 0x127   :  { %v1713_v12 = vld [vmem:[#allocation14 + $0x38] sm:$0xff]  ;;  %v1728_v14 = vld [vmem:[#allocation14 + $0xb0] sm:$0xff]  ;;  %v268_v38 = vld [vmem:[#allocation13 + $0x48] sm:$0xff] }
 0x128   :  { %7880 = vmatmul.mubr.msk.f32.gmra.mrb[6].mxu0 %vm331_vm0, %v10996_v31  ;;  %v1721_v13 = vld [vmem:[#allocation14 + $0x78] sm:$0xff]  ;;  %v8379_v15 = vpack.c.bf16 %v1713_v12, %v1706_v11  ;;  %v1720_v18 = vld [vmem:[#allocation14 + $0x70] sm:$0xff]  ;;  %v292_v39 = vld [vmem:[#allocation13 + $0x108] sm:$0xff] }
 0x129   :  { %7886 = vmatmul.mubr.msk.f32.gmra.mrb[6].mxu1 %vm331_vm0, %v10996_v31  ;;  %438 = vmatprep.mubr.f32.mxu0 %v12605_v0  ;;  %v8381_v16 = vpack.c.bf16 %v1728_v14, %v1721_v13  ;;  %v8383_v22 = vpack.c.bf16 %v1727_v19, %v1720_v18  ;;  %v1741_v26 = vld [vmem:[#allocation14 + $0x118] sm:$0xff]  ;;  %v1756_v28 = vld [vmem:[#allocation14 + $0x190] sm:$0xff]  ;;  %v267_v42 = vld [vmem:[#allocation13 + $0x40] sm:$0xff] }
 0x12a   :  { %539 = vmatprep.mubr.f32.mxu1 %v12605_v0  ;;  %v1749_v27 = vld [vmem:[#allocation14 + $0x158] sm:$0xff]  ;;  %v8387_v29 = vpack.c.bf16 %v1741_v26, %v1734_v25  ;;  %v1748_v34 = vld [vmem:[#allocation14 + $0x150] sm:$0xff]  ;;  %v291_v43 = vld [vmem:[#allocation13 + $0x100] sm:$0xff] }
 0x12b   :  { %v1762_v47 = vld [vmem:[#allocation14 + $0x1c0] sm:$0xff]  ;;  %v1784_v50 = vld [vmem:[#allocation14 + $0x270] sm:$0xff]  ;;  %v316_v51 = vld [vmem:[#allocation13 + $0x1c8] sm:$0xff] }
 0x12c   :  { %7881 = vmatmul.mubr.msk.f32.gmra.mrb[8].mxu0 %vm331_vm0, %v11007_v32  ;;  %v1776_v55 = vld [vmem:[#allocation14 + $0x230] sm:$0xff]  ;;  %v1798_v58 = vld [vmem:[#allocation14 + $0x2e0] sm:$0xff]  ;;  %v1797_v62 = vld [vmem:[#allocation14 + $0x2d8] sm:$0xff] }
 0x12d   :  { %7887 = vmatmul.mubr.msk.f32.gmra.mrb[8].mxu1 %vm331_vm0, %v11007_v32  ;;  %444 = vmatprep.mubr.f32.mxu0 %v12605_v0  ;;  %v1805_v63 = vld [vmem:[#allocation14 + $0x318] sm:$0xff]  ;;  %v1804_v4 = vld [vmem:[#allocation14 + $0x310] sm:$0xff]  ;;  %v1811_v5 = vld [vmem:[#allocation14 + $0x348] sm:$0xff] }
 0x12e   :  { %545 = vmatprep.mubr.f32.mxu1 %v12605_v0  ;;  %v1819_v6 = vld [vmem:[#allocation14 + $0x388] sm:$0xff]  ;;  %v1826_v7 = vld [vmem:[#allocation14 + $0x3c0] sm:$0xff]  ;;  %v8407_v8 = vpack.c.bf16 %v1811_v5, %v1804_v4  ;;  %v1825_v11 = vld [vmem:[#allocation14 + $0x3b8] sm:$0xff] }
 0x12f   :  { %v8409_v9 = vpack.c.bf16 %v1826_v7, %v1819_v6  ;;  %v1818_v10 = vld [vmem:[#allocation14 + $0x380] sm:$0xff]  ;;  %v1833_v12 = vld [vmem:[#allocation14 + $0x3f8] sm:$0xff]  ;;  %v1840_v13 = vld [vmem:[#allocation14 + $0x430] sm:$0xff] }
 0x130   :  { %7882 = vmatmul.mubr.msk.f32.gmra.mrb[10].mxu0 %vm331_vm0, %v11018_v33  ;;  %v8411_v14 = vpack.c.bf16 %v1825_v11, %v1818_v10  ;;  %v8413_v18 = vpack.c.bf16 %v1840_v13, %v1833_v12  ;;  %v1847_v19 = vld [vmem:[#allocation14 + $0x468] sm:$0xff]  ;;  %v271_v25 = vld [vmem:[#allocation13 + $0x60] sm:$0xff] }
 0x131   :  { %7888 = vmatmul.mubr.msk.f32.gmra.mrb[10].mxu1 %vm331_vm0, %v11018_v33  ;;  %616 = vmatprep.mubr.f32.mxu0 %v12605_v0  ;;  %v272_v20 = vld [vmem:[#allocation13 + $0x68] sm:$0xff]  ;;  %v295_v26 = vld [vmem:[#allocation13 + $0x120] sm:$0xff] }
 0x132   :  { %717 = vmatprep.mubr.f32.mxu1 %v12605_v0  ;;  %v296_v21 = vld [vmem:[#allocation13 + $0x128] sm:$0xff]  ;;  %v275_v10 = vld [vmem:[#allocation13 + $0x80] sm:$0xff] }
 0x133   :  { %v1931_v5 = vld [vmem:[#allocation14 + $0x708] sm:$0xff]  ;;  %v299_v11 = vld [vmem:[#allocation13 + $0x140] sm:$0xff] }
 0x134   :  { %7889 = vmatmul.mubr.msk.f32.vlgmr.msra.gmra.mrb[12].mxu0 %vm331_vm0, %v10964_v17  ;;  %v276_v6 = vld [vmem:[#allocation13 + $0x88] sm:$0xff]  ;;  %v8351_v12 = vpack.c.bf16 %v299_v11, %v275_v10 }
 0x135   :  { %7895 = vmatmul.mubr.msk.f32.vlgmr.msra.gmra.mrb[12].mxu1 %vm331_vm0, %v10964_v17  ;;  %622 = vmatprep.mubr.f32.mxu0 %v12605_v0  ;;  %v300_v7 = vld [vmem:[#allocation13 + $0x148] sm:$0xff] }
 0x136   :  { %723 = vmatprep.mubr.f32.mxu1 %v12605_v0  ;;  %8340 = vmatpush1.bf16.msra.mxu1 %v8339_v36  ;;  %v8389_v36 = vpack.c.bf16 %v1756_v28, %v1749_v27  ;;  %v8343_v27 = vpack.c.bf16 %v295_v26, %v271_v25  ;;  %v328_v25 = vld [vmem:[#allocation13 + $0x228] sm:$0xff]  ;;  %v327_v26 = vld [vmem:[#allocation13 + $0x220] sm:$0xff] }
 0x137   :  { %859 = vmatprep.subr.mxu1 %v318_v37  ;;  %v1763_v37 = vld [vmem:[#allocation14 + $0x1c8] sm:$0xff] }
 0x138   :  { %7890 = vmatmul.mubr.msk.f32.gmra.mrb[14].mxu0 %vm331_vm0, %v10971_v24 }
 0x139   :  { %7896 = vmatmul.mubr.msk.f32.gmra.mrb[14].mxu1 %vm331_vm0, %v10971_v24  ;;  %628 = vmatprep.mubr.f32.mxu0 %v12605_v0 }
 0x13a   :  { %729 = vmatprep.mubr.f32.mxu1 %v12605_v0  ;;  %860 = vmatpush1.msra.mxu1 %v317_v40  ;;  %v1770_v40 = vld [vmem:[#allocation14 + $0x200] sm:$0xff] }
 0x13b   :  { %8346 = vmatprep.subr.bf16.mxu1 %v8345_v41  ;;  %v8333_v41 = vpack.c.bf16 %v292_v39, %v268_v38  ;;  %v8393_v46 = vpack.c.bf16 %v1770_v40, %v1763_v37  ;;  %v1868_v37 = vld [vmem:[#allocation14 + $0x510] sm:$0xff]  ;;  %v320_v38 = vld [vmem:[#allocation13 + $0x1e8] sm:$0xff]  ;;  %v319_v39 = vld [vmem:[#allocation13 + $0x1e0] sm:$0xff] }
 0x13c   :  { %7891 = vmatmul.mubr.msk.f32.gmra.mrb[16].mxu0 %vm331_vm0, %v10985_v30 }
 0x13d   :  { %7897 = vmatmul.mubr.msk.f32.gmra.mrb[16].mxu1 %vm331_vm0, %v10985_v30  ;;  %634 = vmatprep.mubr.f32.mxu0 %v12605_v0 }
 0x13e   :  { %735 = vmatprep.mubr.f32.mxu1 %v12605_v0  ;;  %8334 = vmatprep.subr.bf16.mxu0 %v8333_v41 }
 0x140   :  { %7892 = vmatmul.mubr.msk.f32.gmra.mrb[18].mxu0 %vm331_vm0, %v10996_v31 }
 0x141   :  { %7898 = vmatmul.mubr.msk.f32.gmra.mrb[18].mxu1 %vm331_vm0, %v10996_v31  ;;  %640 = vmatprep.mubr.f32.mxu0 %v12605_v0 }
 0x142   :  { %741 = vmatprep.mubr.f32.mxu1 %v12605_v0 }
 0x144   :  { %7893 = vmatmul.mubr.msk.f32.gmra.mrb[20].mxu0 %vm331_vm0, %v11007_v32 }
 0x145   :  { %7899 = vmatmul.mubr.msk.f32.gmra.mrb[20].mxu1 %vm331_vm0, %v11007_v32  ;;  %646 = vmatprep.mubr.f32.mxu0 %v12605_v0 }
 0x146   :  { %747 = vmatprep.mubr.f32.mxu1 %v12605_v0 }
 0x148   :  { %7894 = vmatmul.mubr.msk.f32.gmra.mrb[22].mxu0 %vm331_vm0, %v11018_v33 }
 0x149   :  { %7900 = vmatmul.mubr.msk.f32.gmra.mrb[22].mxu1 %vm331_vm0, %v11018_v33  ;;  %818 = vmatprep.mubr.f32.mxu0 %v12605_v0 }
 0x14a   :  { %919 = vmatprep.mubr.f32.mxu1 %v12605_v0 }
 0x14d   :  { %7907 = vmatmul.mubr.msk.f32.vlgmr.msra.gmra.mrb[24].mxu1 %vm331_vm0, %v10964_v17 }
 0x14e   :  { %925 = vmatprep.mubr.f32.mxu1 %v12605_v0  ;;  %8348 = vmatpush1.bf16.msra.mxu1 %v8347_v44  ;;  %v8335_v44 = vpack.c.bf16 %v291_v43, %v267_v42  ;;  %v1860_v42 = vld [vmem:[#allocation14 + $0x4d0] sm:$0xff]  ;;  %v1867_v43 = vld [vmem:[#allocation14 + $0x508] sm:$0xff] }
 0x14f   :  { %1061 = vmatprep.subr.mxu1 %v322_v45  ;;  %v8391_v45 = vpack.c.bf16 %v1755_v35, %v1748_v34  ;;  %v1846_v34 = vld [vmem:[#allocation14 + $0x460] sm:$0xff]  ;;  %v1853_v35 = vld [vmem:[#allocation14 + $0x498] sm:$0xff] }
 0x150   :  { %8336 = vmatpush1.bf16.msra.mxu0 %v8335_v44  ;;  %v8419_v40 = vpack.c.bf16 %v1853_v35, %v1846_v34  ;;  %v1875_v44 = vld [vmem:[#allocation14 + $0x548] sm:$0xff]  ;;  %v1945_v34 = vld [vmem:[#allocation14 + $0x778] sm:$0xff]  ;;  %v1952_v35 = vld [vmem:[#allocation14 + $0x7b0] sm:$0xff] }
 0x151   :  { %7908 = vmatmul.mubr.msk.f32.gmra.mrb[26].mxu1 %vm331_vm0, %v10971_v24  ;;  %758 = vmatprep.subr.mxu0 %v316_v51  ;;  %v1896_v51 = vld [vmem:[#allocation14 + $0x5f0] sm:$0xff] }
 0x152   :  { %931 = vmatprep.mubr.f32.mxu1 %v12605_v0  ;;  %1062 = vmatpush1.msra.mxu1 %v321_v48  ;;  %v1769_v48 = vld [vmem:[#allocation14 + $0x1f8] sm:$0xff] }
 0x153   :  { %8354 = vmatprep.subr.bf16.mxu1 %v8353_v49  ;;  %v1777_v49 = vld [vmem:[#allocation14 + $0x238] sm:$0xff] }
 0x154   :  { %v8397_v54 = vpack.c.bf16 %v1784_v50, %v1777_v49  ;;  %v1881_v49 = vld [vmem:[#allocation14 + $0x578] sm:$0xff] }
 0x155   :  { %7909 = vmatmul.mubr.msk.f32.gmra.mrb[28].mxu1 %vm331_vm0, %v10985_v30  ;;  %v1889_v50 = vld [vmem:[#allocation14 + $0x5b8] sm:$0xff] }
 0x156   :  { %937 = vmatprep.mubr.f32.mxu1 %v12605_v0 }
 0x159   :  { %7910 = vmatmul.mubr.msk.f32.gmra.mrb[30].mxu1 %vm331_vm0, %v10996_v31 }
 0x15a   :  { %943 = vmatprep.mubr.f32.mxu1 %v12605_v0 }
 0x15d   :  { %7911 = vmatmul.mubr.msk.f32.gmra.mrb[32].mxu1 %vm331_vm0, %v11007_v32 }
 0x15e   :  { %949 = vmatprep.mubr.f32.mxu1 %v12605_v0 }
 0x161   :  { %7912 = vmatmul.mubr.msk.f32.gmra.mrb[34].mxu1 %vm331_vm0, %v11018_v33 }
 0x162   :  { %1121 = vmatprep.mubr.f32.mxu1 %v12605_v0 }
 0x165   :  { %7919 = vmatmul.mubr.msk.f32.vlgmr.msra.gmra.mrb[36].mxu1 %vm331_vm0, %v10964_v17 }
 0x166   :  { %1127 = vmatprep.mubr.f32.mxu1 %v12605_v0  ;;  %8356 = vmatpush1.bf16.msra.mxu1 %v8355_v52  ;;  %v315_v52 = vld [vmem:[#allocation13 + $0x1c0] sm:$0xff] }
 0x167   :  { %1263 = vmatprep.subr.mxu1 %v326_v53  ;;  %v8395_v53 = vpack.c.bf16 %v1769_v48, %v1762_v47  ;;  %759 = vmatpush1.msra.mxu0 %v315_v52  ;;  %v1874_v48 = vld [vmem:[#allocation14 + $0x540] sm:$0xff] }
 0x168   :  { %7901 = vmatmul.mubr.msk.f32.vlgmr.msra.gmra.mrb[24].mxu0 %vm331_vm0, %v10964_v17  ;;  %v8427_v52 = vpack.c.bf16 %v1881_v49, %v1874_v48 }
 0x169   :  { %7920 = vmatmul.mubr.msk.f32.gmra.mrb[38].mxu1 %vm331_vm0, %v10971_v24  ;;  %824 = vmatprep.mubr.f32.mxu0 %v12605_v0 }
 0x16a   :  { %1133 = vmatprep.mubr.f32.mxu1 %v12605_v0  ;;  %1264 = vmatpush1.msra.mxu1 %v325_v56  ;;  %v1783_v56 = vld [vmem:[#allocation14 + $0x268] sm:$0xff] }
 0x16b   :  { %8362 = vmatprep.subr.bf16.mxu1 %v8361_v57  ;;  %v1791_v57 = vld [vmem:[#allocation14 + $0x2a8] sm:$0xff]  ;;  %v8399_v59 = vpack.c.bf16 %v1783_v56, %v1776_v55 }
 0x16c   :  { %7902 = vmatmul.mubr.msk.f32.gmra.mrb[26].mxu0 %vm331_vm0, %v10971_v24  ;;  %v1895_v55 = vld [vmem:[#allocation14 + $0x5e8] sm:$0xff] }
 0x16d   :  { %7921 = vmatmul.mubr.msk.f32.gmra.mrb[40].mxu1 %vm331_vm0, %v10985_v30  ;;  %830 = vmatprep.mubr.f32.mxu0 %v12605_v0  ;;  %v1903_v56 = vld [vmem:[#allocation14 + $0x628] sm:$0xff] }
 0x16e   :  { %1139 = vmatprep.mubr.f32.mxu1 %v12605_v0 }
 0x170   :  { %7903 = vmatmul.mubr.msk.f32.gmra.mrb[28].mxu0 %vm331_vm0, %v10985_v30 }
 0x171   :  { %7922 = vmatmul.mubr.msk.f32.gmra.mrb[42].mxu1 %vm331_vm0, %v10996_v31  ;;  %836 = vmatprep.mubr.f32.mxu0 %v12605_v0 }
 0x172   :  { %1145 = vmatprep.mubr.f32.mxu1 %v12605_v0 }
 0x174   :  { %7904 = vmatmul.mubr.msk.f32.gmra.mrb[30].mxu0 %vm331_vm0, %v10996_v31 }
 0x175   :  { %7923 = vmatmul.mubr.msk.f32.gmra.mrb[44].mxu1 %vm331_vm0, %v11007_v32  ;;  %842 = vmatprep.mubr.f32.mxu0 %v12605_v0 }
 0x176   :  { %1151 = vmatprep.mubr.f32.mxu1 %v12605_v0 }
 0x178   :  { %7905 = vmatmul.mubr.msk.f32.gmra.mrb[32].mxu0 %vm331_vm0, %v11007_v32 }
 0x179   :  { %7924 = vmatmul.mubr.msk.f32.gmra.mrb[46].mxu1 %vm331_vm0, %v11018_v33  ;;  %848 = vmatprep.mubr.f32.mxu0 %v12605_v0 }
 0x17a   :  { %1323 = vmatprep.mubr.f32.mxu1 %v12605_v0 }
 0x17c   :  { %7906 = vmatmul.mubr.msk.f32.gmra.mrb[34].mxu0 %vm331_vm0, %v11018_v33 }
 0x17d   :  { %7931 = vmatmul.mubr.msk.f32.vlgmr.msra.gmra.mrb[48].mxu1 %vm331_vm0, %v10964_v17  ;;  %1020 = vmatprep.mubr.f32.mxu0 %v12605_v0 }
 0x17e   :  { %1329 = vmatprep.mubr.f32.mxu1 %v12605_v0  ;;  %8364 = vmatpush1.bf16.msra.mxu1 %v8363_v60  ;;  %v8401_v60 = vpack.c.bf16 %v1798_v58, %v1791_v57  ;;  %v1910_v57 = vld [vmem:[#allocation14 + $0x660] sm:$0xff] }
 0x17f   :  { %1465 = vmatprep.subr.mxu1 %v330_v61  ;;  %v1790_v61 = vld [vmem:[#allocation14 + $0x2a0] sm:$0xff] }
 0x181   :  { %7932 = vmatmul.mubr.msk.f32.gmra.mrb[50].mxu1 %vm331_vm0, %v10971_v24 }
 0x182   :  { %1335 = vmatprep.mubr.f32.mxu1 %v12605_v0  ;;  %1466 = vmatpush1.msra.mxu1 %v329_v1  ;;  %v1812_v1 = vld [vmem:[#allocation14 + $0x350] sm:$0xff] }
 0x183   :  { %8378 = vmatprep.subr.bf16.mxu1 %v8377_v2  ;;  %v8403_v2 = vpack.c.bf16 %v1797_v62, %v1790_v61  ;;  %v8405_v3 = vpack.c.bf16 %v1812_v1, %v1805_v63  ;;  %v1909_v61 = vld [vmem:[#allocation14 + $0x658] sm:$0xff]  ;;  %v1924_v63 = vld [vmem:[#allocation14 + $0x6d0] sm:$0xff] }
 0x184   :  { %v1917_v62 = vld [vmem:[#allocation14 + $0x698] sm:$0xff] }
 0x185   :  { %7933 = vmatmul.mubr.msk.f32.gmra.mrb[52].mxu1 %vm331_vm0, %v10985_v30  ;;  %v8437_v4 = vpack.c.bf16 %v1924_v63, %v1917_v62 }
 0x186   :  { %1341 = vmatprep.mubr.f32.mxu1 %v12605_v0 }
 0x189   :  { %7934 = vmatmul.mubr.msk.f32.gmra.mrb[54].mxu1 %vm331_vm0, %v10996_v31 }
 0x18a   :  { %1347 = vmatprep.mubr.f32.mxu1 %v12605_v0 }
 0x18d   :  { %7935 = vmatmul.mubr.msk.f32.gmra.mrb[56].mxu1 %vm331_vm0, %v11007_v32 }
 0x18e   :  { %1353 = vmatprep.mubr.f32.mxu1 %v12605_v0 }
 0x191   :  { %7936 = vmatmul.mubr.msk.f32.gmra.mrb[58].mxu1 %vm331_vm0, %v11018_v33 }
 0x192   :  { %1525 = vmatprep.mubr.f32.mxu1 %v12605_v0 }
 0x195   :  { %7943 = vmatmul.mubr.msk.f32.vlgmr.msra.gmra.mrb[60].mxu1 %vm331_vm0, %v10964_v17 }
 0x196   :  { %1531 = vmatprep.mubr.f32.mxu1 %v12605_v0  ;;  %8380 = vmatpush1.bf16.msra.mxu1 %v8379_v15  ;;  %v1832_v15 = vld [vmem:[#allocation14 + $0x3f0] sm:$0xff] }
 0x197   :  { %8382 = vmatprep.subr.bf16.mxu1 %v8381_v16  ;;  %v1839_v16 = vld [vmem:[#allocation14 + $0x428] sm:$0xff] }
 0x198   :  { %v8415_v28 = vpack.c.bf16 %v1839_v16, %v1832_v15  ;;  %v324_v15 = vld [vmem:[#allocation13 + $0x208] sm:$0xff]  ;;  %v323_v16 = vld [vmem:[#allocation13 + $0x200] sm:$0xff] }
 0x199   :  { %7944 = vmatmul.mubr.msk.f32.gmra.mrb[62].mxu1 %vm331_vm0, %v10971_v24 }
 0x19a   :  { %1537 = vmatprep.mubr.f32.mxu1 %v12605_v0  ;;  %8384 = vmatpush1.bf16.msra.mxu1 %v8383_v22  ;;  %v1854_v22 = vld [vmem:[#allocation14 + $0x4a0] sm:$0xff] }
 0x19b   :  { %8386 = vmatprep.subr.bf16.mxu1 %v8385_v23  ;;  %v8341_v23 = vpack.c.bf16 %v296_v21, %v272_v20  ;;  %v279_v21 = vld [vmem:[#allocation13 + $0xa0] sm:$0xff] }
 0x19d   :  { %7945 = vmatmul.mubr.msk.f32.gmra.mrb[64].mxu1 %vm331_vm0, %v10985_v30  ;;  %8342 = vmatprep.subr.bf16.mxu0 %v8341_v23 }
 0x19e   :  { %1543 = vmatprep.mubr.f32.mxu1 %v12605_v0  ;;  %8388 = vmatpush1.bf16.msra.mxu1 %v8387_v29  ;;  %v8417_v29 = vpack.c.bf16 %v1854_v22, %v1847_v19  ;;  %v304_v19 = vld [vmem:[#allocation13 + $0x168] sm:$0xff]  ;;  %v303_v22 = vld [vmem:[#allocation13 + $0x160] sm:$0xff] }
 0x19f   :  { %8390 = vmatprep.subr.bf16.mxu1 %v8389_v36  ;;  %v1861_v36 = vld [vmem:[#allocation14 + $0x4d8] sm:$0xff]  ;;  %8344 = vmatpush1.bf16.msra.mxu0 %v8343_v27  ;;  %v8359_v23 = vpack.c.bf16 %v303_v22, %v279_v21  ;;  %v1930_v27 = vld [vmem:[#allocation14 + $0x700] sm:$0xff] }
 0x1a0   :  { %960 = vmatprep.subr.mxu0 %v320_v38  ;;  %v8421_v41 = vpack.c.bf16 %v1868_v37, %v1861_v36 }
 0x1a1   :  { %7946 = vmatmul.mubr.msk.f32.gmra.mrb[66].mxu1 %vm331_vm0, %v10996_v31 }
 0x1a2   :  { %1549 = vmatprep.mubr.f32.mxu1 %v12605_v0  ;;  %8392 = vmatpush1.bf16.msra.mxu1 %v8391_v45  ;;  %v1882_v45 = vld [vmem:[#allocation14 + $0x580] sm:$0xff] }
 0x1a3   :  { %8394 = vmatprep.subr.bf16.mxu1 %v8393_v46  ;;  %961 = vmatpush1.msra.mxu0 %v319_v39  ;;  %v8423_v46 = vpack.c.bf16 %v1867_v43, %v1860_v42  ;;  %v8425_v47 = vpack.c.bf16 %v1882_v45, %v1875_v44  ;;  %v1944_v42 = vld [vmem:[#allocation14 + $0x770] sm:$0xff]  ;;  %v1951_v43 = vld [vmem:[#allocation14 + $0x7a8] sm:$0xff] }
 0x1a4   :  { %7913 = vmatmul.mubr.msk.f32.vlgmr.msra.gmra.mrb[36].mxu0 %vm331_vm0, %v10964_v17  ;;  %v1959_v45 = vld [vmem:[#allocation14 + $0x7e8] sm:$0xff] }
 0x1a5   :  { %7947 = vmatmul.mubr.msk.f32.gmra.mrb[68].mxu1 %vm331_vm0, %v11007_v32  ;;  %1026 = vmatprep.mubr.f32.mxu0 %v12605_v0 }
 0x1a6   :  { %1555 = vmatprep.mubr.f32.mxu1 %v12605_v0  ;;  %8396 = vmatpush1.bf16.msra.mxu1 %v8395_v53  ;;  %v8429_v53 = vpack.c.bf16 %v1896_v51, %v1889_v50  ;;  %v8447_v50 = vpack.c.bf16 %v1951_v43, %v1944_v42 }
 0x1a7   :  { %8398 = vmatprep.subr.bf16.mxu1 %v8397_v54  ;;  %v1888_v54 = vld [vmem:[#allocation14 + $0x5b0] sm:$0xff] }
 0x1a8   :  { %7914 = vmatmul.mubr.msk.f32.gmra.mrb[38].mxu0 %vm331_vm0, %v10971_v24  ;;  %v8431_v58 = vpack.c.bf16 %v1895_v55, %v1888_v54  ;;  %v1965_v54 = vld [vmem:[#allocation14 + $0x818] sm:$0xff] }
 0x1a9   :  { %7948 = vmatmul.mubr.msk.f32.gmra.mrb[70].mxu1 %vm331_vm0, %v11018_v33  ;;  %1032 = vmatprep.mubr.f32.mxu0 %v12605_v0 }
 0x1aa   :  { %8400 = vmatpush1.bf16.msra.mxu1 %v8399_v59  ;;  %v8433_v59 = vpack.c.bf16 %v1910_v57, %v1903_v56  ;;  %v1973_v56 = vld [vmem:[#allocation14 + $0x858] sm:$0xff]  ;;  %v1980_v57 = vld [vmem:[#allocation14 + $0x890] sm:$0xff] }
 0x1ab   :  { %8402 = vmatprep.subr.bf16.mxu1 %v8401_v60  ;;  %v1902_v60 = vld [vmem:[#allocation14 + $0x620] sm:$0xff]  ;;  %v8453_v63 = vpack.c.bf16 %v1980_v57, %v1973_v56  ;;  %v2043_v56 = vld [vmem:[#allocation14 + $0xa88] sm:$0xff] }
 0x1ac   :  { %7915 = vmatmul.mubr.msk.f32.gmra.mrb[40].mxu0 %vm331_vm0, %v10985_v30  ;;  %v8435_v1 = vpack.c.bf16 %v1909_v61, %v1902_v60  ;;  %v2050_v57 = vld [vmem:[#allocation14 + $0xac0] sm:$0xff] }
 0x1ad   :  { %1038 = vmatprep.mubr.f32.mxu0 %v12605_v0 }
 0x1ae   :  { %8404 = vmatpush1.bf16.msra.mxu1 %v8403_v2  ;;  %v1916_v2 = vld [vmem:[#allocation14 + $0x690] sm:$0xff] }
 0x1af   :  { %8406 = vmatprep.subr.bf16.mxu1 %v8405_v3  ;;  %v1923_v3 = vld [vmem:[#allocation14 + $0x6c8] sm:$0xff] }
 0x1b0   :  { %7916 = vmatmul.mubr.msk.f32.gmra.mrb[42].mxu0 %vm331_vm0, %v10996_v31  ;;  %v8439_v13 = vpack.c.bf16 %v1923_v3, %v1916_v2  ;;  %v1979_v2 = vld [vmem:[#allocation14 + $0x888] sm:$0xff] }
 0x1b1   :  { %1044 = vmatprep.mubr.f32.mxu0 %v12605_v0 }
 0x1b2   :  { %8408 = vmatpush1.bf16.msra.mxu1 %v8407_v8  ;;  %v1938_v8 = vld [vmem:[#allocation14 + $0x740] sm:$0xff] }
 0x1b3   :  { %8410 = vmatprep.subr.bf16.mxu1 %v8409_v9  ;;  %v8349_v9 = vpack.c.bf16 %v300_v7, %v276_v6 }
 0x1b4   :  { %7917 = vmatmul.mubr.msk.f32.gmra.mrb[44].mxu0 %vm331_vm0, %v11007_v32 }
 0x1b5   :  { %8350 = vmatprep.subr.bf16.mxu0 %v8349_v9  ;;  %1050 = vmatprep.mubr.f32.mxu0 %v12605_v0 }
 0x1b6   :  { %8412 = vmatpush1.bf16.msra.mxu1 %v8411_v14  ;;  %v8441_v14 = vpack.c.bf16 %v1938_v8, %v1931_v5  ;;  %8352 = vmatpush1.bf16.msra.mxu0 %v8351_v12  ;;  %v1994_v5 = vld [vmem:[#allocation14 + $0x900] sm:$0xff] }
 0x1b7   :  { %8414 = vmatprep.subr.bf16.mxu1 %v8413_v18  ;;  %1162 = vmatprep.subr.mxu0 %v324_v15  ;;  %v280_v18 = vld [vmem:[#allocation13 + $0xa8] sm:$0xff]  ;;  %v1986_v12 = vld [vmem:[#allocation14 + $0x8c0] sm:$0xff]  ;;  %v2001_v15 = vld [vmem:[#allocation14 + $0x938] sm:$0xff] }
 0x1b8   :  { %7918 = vmatmul.mubr.msk.f32.gmra.mrb[46].mxu0 %vm331_vm0, %v11018_v33  ;;  %v8357_v20 = vpack.c.bf16 %v304_v19, %v280_v18 }
 0x1b9   :  { %1222 = vmatprep.mubr.f32.mxu0 %v12605_v0 }
 0x1ba   :  { %8416 = vmatpush1.bf16.msra.mxu1 %v8415_v28  ;;  %1163 = vmatpush1.msra.mxu0 %v323_v16  ;;  %v1937_v28 = vld [vmem:[#allocation14 + $0x738] sm:$0xff]  ;;  %v2008_v16 = vld [vmem:[#allocation14 + $0x970] sm:$0xff] }
 0x1bb   :  { %8418 = vmatprep.subr.bf16.mxu1 %v8417_v29  ;;  %8358 = vmatprep.subr.bf16.mxu0 %v8357_v20  ;;  %v8443_v39 = vpack.c.bf16 %v1937_v28, %v1930_v27  ;;  %v2015_v28 = vld [vmem:[#allocation14 + $0x9a8] sm:$0xff] }
 0x1bc   :  { %7925 = vmatmul.mubr.msk.f32.vlgmr.msra.gmra.mrb[48].mxu0 %vm331_vm0, %v10964_v17 }
 0x1bd   :  { %1228 = vmatprep.mubr.f32.mxu0 %v12605_v0  ;;  %8360 = vmatpush1.bf16.msra.mxu0 %v8359_v23  ;;  %v8461_v23 = vpack.c.bf16 %v2008_v16, %v2001_v15  ;;  %v2071_v15 = vld [vmem:[#allocation14 + $0xb68] sm:$0xff]  ;;  %v2078_v16 = vld [vmem:[#allocation14 + $0xba0] sm:$0xff] }
 0x1be   :  { %8420 = vmatpush1.bf16.msra.mxu1 %v8419_v40  ;;  %1364 = vmatprep.subr.mxu0 %v328_v25  ;;  %v2000_v25 = vld [vmem:[#allocation14 + $0x930] sm:$0xff] }
 0x1bf   :  { %8422 = vmatprep.subr.bf16.mxu1 %v8421_v41 }
 0x1c0   :  { %7926 = vmatmul.mubr.msk.f32.gmra.mrb[50].mxu0 %vm331_vm0, %v10971_v24 }
 0x1c1   :  { %1234 = vmatprep.mubr.f32.mxu0 %v12605_v0  ;;  %1365 = vmatpush1.msra.mxu0 %v327_v26  ;;  %v2007_v26 = vld [vmem:[#allocation14 + $0x968] sm:$0xff] }
 0x1c2   :  { %8424 = vmatpush1.bf16.msra.mxu1 %v8423_v46  ;;  %v1966_v46 = vld [vmem:[#allocation14 + $0x820] sm:$0xff] }
 0x1c3   :  { %8426 = vmatprep.subr.bf16.mxu1 %v8425_v47 }
 0x1c4   :  { %7927 = vmatmul.mubr.msk.f32.gmra.mrb[52].mxu0 %vm331_vm0, %v10985_v30 }
 0x1c5   :  { %1240 = vmatprep.mubr.f32.mxu0 %v12605_v0 }
 0x1c6   :  { %8428 = vmatpush1.bf16.msra.mxu1 %v8427_v52  ;;  %v8449_v52 = vpack.c.bf16 %v1966_v46, %v1959_v45  ;;  %v2021_v45 = vld [vmem:[#allocation14 + $0x9d8] sm:$0xff] }
 0x1c7   :  { %8430 = vmatprep.subr.bf16.mxu1 %v8429_v53  ;;  %v1958_v53 = vld [vmem:[#allocation14 + $0x7e0] sm:$0xff]  ;;  %v2029_v46 = vld [vmem:[#allocation14 + $0xa18] sm:$0xff] }
 0x1c8   :  { %7928 = vmatmul.mubr.msk.f32.gmra.mrb[54].mxu0 %vm331_vm0, %v10996_v31  ;;  %v8451_v61 = vpack.c.bf16 %v1965_v54, %v1958_v53  ;;  %v2028_v54 = vld [vmem:[#allocation14 + $0xa10] sm:$0xff] }
 0x1c9   :  { %1246 = vmatprep.mubr.f32.mxu0 %v12605_v0 }
 0x1ca   :  { %8432 = vmatpush1.bf16.msra.mxu1 %v8431_v58 }
 0x1cb   :  { %8434 = vmatprep.subr.bf16.mxu1 %v8433_v59 }
 0x1cc   :  { %7929 = vmatmul.mubr.msk.f32.gmra.mrb[56].mxu0 %vm331_vm0, %v11007_v32 }
 0x1cd   :  { %1252 = vmatprep.mubr.f32.mxu0 %v12605_v0 }
 0x1ce   :  { %8436 = vmatpush1.bf16.msra.mxu1 %v8435_v1  ;;  %v1972_v1 = vld [vmem:[#allocation14 + $0x850] sm:$0xff] }
 0x1cf   :  { %8438 = vmatprep.subr.bf16.mxu1 %v8437_v4  ;;  %v1987_v4 = vld [vmem:[#allocation14 + $0x8c8] sm:$0xff]  ;;  %v8455_v9 = vpack.c.bf16 %v1979_v2, %v1972_v1  ;;  %v8473_v1 = vpack.c.bf16 %v2050_v57, %v2043_v56  ;;  %v2042_v2 = vld [vmem:[#allocation14 + $0xa80] sm:$0xff] }
 0x1d0   :  { %7930 = vmatmul.mubr.msk.f32.gmra.mrb[58].mxu0 %vm331_vm0, %v11018_v33  ;;  %v8457_v11 = vpack.c.bf16 %v1994_v5, %v1987_v4  ;;  %v2057_v4 = vld [vmem:[#allocation14 + $0xaf8] sm:$0xff]  ;;  %v2064_v5 = vld [vmem:[#allocation14 + $0xb30] sm:$0xff]  ;;  %v2098_v57 = vld [vmem:[#allocation14 + $0xc40] sm:$0xff] }
 0x1d1   :  { %1424 = vmatprep.mubr.f32.mxu0 %v12605_v0 }
 0x1d2   :  { %8440 = vmatpush1.bf16.msra.mxu1 %v8439_v13  ;;  %v1993_v13 = vld [vmem:[#allocation14 + $0x8f8] sm:$0xff] }
 0x1d3   :  { %8442 = vmatprep.subr.bf16.mxu1 %v8441_v14  ;;  %v8459_v21 = vpack.c.bf16 %v1993_v13, %v1986_v12  ;;  %v8477_v12 = vpack.c.bf16 %v2064_v5, %v2057_v4  ;;  %v2056_v13 = vld [vmem:[#allocation14 + $0xaf0] sm:$0xff] }
 0x1d4   :  { %7937 = vmatmul.mubr.msk.f32.vlgmr.msra.gmra.mrb[60].mxu0 %vm331_vm0, %v10964_v17  ;;  %v8445_v17 = vpack.c.bf16 %v1952_v35, %v1945_v34 }
 0x1d5   :  { %1430 = vmatprep.mubr.f32.mxu0 %v12605_v0 }
 0x1d8   :  { %7938 = vmatmul.mubr.msk.f32.gmra.mrb[62].mxu0 %vm331_vm0, %v10971_v24 }
 0x1d9   :  { %1436 = vmatprep.mubr.f32.mxu0 %v12605_v0 }
 0x1dc   :  { %7939 = vmatmul.mubr.msk.f32.gmra.mrb[64].mxu0 %vm331_vm0, %v10985_v30 }
 0x1dd   :  { %1442 = vmatprep.mubr.f32.mxu0 %v12605_v0 }
 0x1e0   :  { %7940 = vmatmul.mubr.msk.f32.gmra.mrb[66].mxu0 %vm331_vm0, %v10996_v31 }
 0x1e1   :  { %1448 = vmatprep.mubr.f32.mxu0 %v12605_v0 }
 0x1e4   :  { %7941 = vmatmul.mubr.msk.f32.gmra.mrb[68].mxu0 %vm331_vm0, %v11007_v32 }
 0x1e5   :  { %1454 = vmatprep.mubr.f32.mxu0 %v12605_v0 }
 0x1e8   :  { %7942 = vmatmul.mubr.msk.f32.gmra.mrb[70].mxu0 %vm331_vm0, %v11018_v33 }
 0x1e9   :  { %1669 = vmatprep.mubr.f32.mxu0 %v12605_v0  ;;  %v1772_v0 = vld [vmem:[#allocation14 + $0x210] sm:$0xff] }
 0x1ef   :  { %v416_v29 = vpop.f32.mrb[0].mxu0 }
 0x1f0   :  { %v418_v36 = vpop.f32.mrb[1].mxu0  ;;  %v11191_v37 = vpop.f32.mrb[0].mxu1  ;;  %v11199_v41 = vmax.f32 %v416_v29, 0.0  ;;  %v2022_v29 = vld [vmem:[#allocation14 + $0x9e0] sm:$0xff] }
 0x1f1   :  { %v11193_v38 = vmax.f32 %v418_v36, 0.0  ;;  %v11195_v40 = vpop.f32.mrb[1].mxu1  ;;  %v8465_v43 = vpack.c.bf16 %v2022_v29, %v2015_v28  ;;  %v2085_v28 = vld [vmem:[#allocation14 + $0xbd8] sm:$0xff]  ;;  %v2092_v29 = vld [vmem:[#allocation14 + $0xc10] sm:$0xff] }
 0x1f3   :  { %2218 = vmatprep.mubr.f32.mxu1 %v11193_v38  ;;  %v422_v44 = vpop.f32.mrb[2].mxu0 }
 0x1f4   :  { %v11203_v47 = vmax.f32 %v422_v44, 0.0  ;;  %2219 = vmatmul.mubr.f32.vlgmr.msra.gmra.mrb[72].mxu1 %v11199_v41  ;;  %v424_v48 = vpop.f32.mrb[3].mxu0  ;;  %v11206_v49 = vpop.f32.mrb[2].mxu1  ;;  %v2014_v44 = vld [vmem:[#allocation14 + $0x9a0] sm:$0xff] }
 0x1f5   :  { %8444 = vmatpush1.bf16.msra.mxu1 %v8443_v39  ;;  %v11208_v24 = vmax.f32 %v424_v48, 0.0  ;;  %v11210_v51 = vpop.f32.mrb[3].mxu1  ;;  %v11263_v39 = vmax.f32 %v11195_v40, 0.0  ;;  %v2036_v48 = vld [vmem:[#allocation14 + $0xa50] sm:$0xff]  ;;  %v8467_v40 = vpack.c.bf16 %v2021_v45, %v2014_v44  ;;  %v8485_v44 = vpack.c.bf16 %v2092_v29, %v2085_v28  ;;  %v2133_v28 = vld [vmem:[#allocation14 + $0xd58] sm:$0xff] }
 0x1f6   :  { %8446 = vmatprep.subr.bf16.mxu1 %v8445_v17  ;;  %v8463_v17 = vpack.c.bf16 %v2007_v26, %v2000_v25  ;;  %v8469_v53 = vpack.c.bf16 %v2036_v48, %v2029_v46  ;;  %v8481_v25 = vpack.c.bf16 %v2078_v16, %v2071_v15  ;;  %v2070_v26 = vld [vmem:[#allocation14 + $0xb60] sm:$0xff]  ;;  %v2084_v45 = vld [vmem:[#allocation14 + $0xbd0] sm:$0xff]  ;;  %v2091_v46 = vld [vmem:[#allocation14 + $0xc08] sm:$0xff] }
 0x1f7   :  { %v428_v55 = vpop.f32.mrb[4].mxu0  ;;  %2224 = vmatprep.mubr.f32.mxu1 %v11208_v24  ;;  %v2099_v48 = vld [vmem:[#allocation14 + $0xc48] sm:$0xff]  ;;  %v2134_v15 = vld [vmem:[#allocation14 + $0xd60] sm:$0xff]  ;;  %v2141_v29 = vld [vmem:[#allocation14 + $0xd98] sm:$0xff] }
 0x1f8   :  { %v11216_v58 = vmax.f32 %v428_v55, 0.0  ;;  %v430_v59 = vpop.f32.mrb[5].mxu0  ;;  %2225 = vmatmul.mubr.f32.gmra.mrb[74].mxu1 %v11203_v47  ;;  %v11219_v60 = vpop.f32.mrb[4].mxu1  ;;  %v2035_v55 = vld [vmem:[#allocation14 + $0xa48] sm:$0xff] }
 0x1f9   :  { %8448 = vmatpush1.bf16.msra.mxu1 %v8447_v50  ;;  %v11221_v30 = vmax.f32 %v430_v59, 0.0  ;;  %v11223_v62 = vpop.f32.mrb[5].mxu1 }
 0x1fa   :  { %8450 = vmatprep.subr.bf16.mxu1 %v8449_v52 }
 0x1fb   :  { %v434_v3 = vpop.f32.mrb[6].mxu0  ;;  %2230 = vmatprep.mubr.f32.mxu1 %v11221_v30 }
 0x1fc   :  { %v11229_v6 = vmax.f32 %v434_v3, 0.0  ;;  %v436_v7 = vpop.f32.mrb[7].mxu0  ;;  %2231 = vmatmul.mubr.f32.gmra.mrb[76].mxu1 %v11216_v58  ;;  %v11232_v8 = vpop.f32.mrb[6].mxu1  ;;  %v2049_v3 = vld [vmem:[#allocation14 + $0xab8] sm:$0xff] }
 0x1fd   :  { %8452 = vmatpush1.bf16.msra.mxu1 %v8451_v61  ;;  %v11234_v31 = vmax.f32 %v436_v7, 0.0  ;;  %v11236_v10 = vpop.f32.mrb[7].mxu1  ;;  %v8471_v61 = vpack.c.bf16 %v2035_v55, %v2028_v54  ;;  %v8487_v54 = vpack.c.bf16 %v2091_v46, %v2084_v45 }
 0x1fe   :  { %8454 = vmatprep.subr.bf16.mxu1 %v8453_v63 }
 0x1ff   :  { %v440_v14 = vpop.f32.mrb[8].mxu0  ;;  %2236 = vmatprep.mubr.f32.mxu1 %v11234_v31 }
 0x200   :  { %v11242_v18 = vmax.f32 %v440_v14, 0.0  ;;  %v442_v19 = vpop.f32.mrb[9].mxu0  ;;  %2237 = vmatmul.mubr.f32.gmra.mrb[78].mxu1 %v11229_v6  ;;  %v11245_v20 = vpop.f32.mrb[8].mxu1  ;;  %v2063_v14 = vld [vmem:[#allocation14 + $0xb28] sm:$0xff] }
 0x201   :  { %8456 = vmatpush1.bf16.msra.mxu1 %v8455_v9  ;;  %v11247_v32 = vmax.f32 %v442_v19, 0.0  ;;  %v11249_v22 = vpop.f32.mrb[9].mxu1  ;;  %v8475_v9 = vpack.c.bf16 %v2049_v3, %v2042_v2  ;;  %v2120_v2 = vld [vmem:[#allocation14 + $0xcf0] sm:$0xff] }
 0x202   :  { %8458 = vmatprep.subr.bf16.mxu1 %v8457_v11 }
 0x203   :  { %v446_v27 = vpop.f32.mrb[10].mxu0  ;;  %2242 = vmatprep.mubr.f32.mxu1 %v11247_v32 }
 0x204   :  { %v11255_v34 = vmax.f32 %v446_v27, 0.0  ;;  %v448_v35 = vpop.f32.mrb[11].mxu0  ;;  %2243 = vmatmul.mubr.f32.gmra.mrb[80].mxu1 %v11242_v18  ;;  %v11258_v36 = vpop.f32.mrb[10].mxu1  ;;  %v2077_v27 = vld [vmem:[#allocation14 + $0xb98] sm:$0xff] }
 0x205   :  { %8460 = vmatpush1.bf16.msra.mxu1 %v8459_v21  ;;  %v11260_v33 = vmax.f32 %v448_v35, 0.0  ;;  %v11265_v42 = vpop.f32.mrb[11].mxu1  ;;  %v8479_v21 = vpack.c.bf16 %v2063_v14, %v2056_v13  ;;  %v2119_v13 = vld [vmem:[#allocation14 + $0xce8] sm:$0xff] }
 0x206   :  { %8462 = vmatprep.subr.bf16.mxu1 %v8461_v23  ;;  %v2127_v14 = vld [vmem:[#allocation14 + $0xd28] sm:$0xff] }
 0x207   :  { %2248 = vmatprep.mubr.f32.mxu1 %v11260_v33 }
 0x208   :  { %2249 = vmatmul.mubr.f32.gmra.mrb[82].mxu1 %v11255_v34  ;;  %v11269_v50 = vpop.f32.mrb[12].mxu1 }
 0x209   :  { %12610 = vst [vmem:[#allocation36_spill] sm:$0xff] %v11269_v50  ;;  %8464 = vmatpush1.bf16.msra.mxu1 %v8463_v17  ;;  %2319 = vmatprep.mubr.f32.mxu1 %v11263_v39  ;;  %v11272_v52 = vpop.f32.mrb[13].mxu1  ;;  %v8483_v17 = vpack.c.bf16 %v2077_v27, %v2070_v26  ;;  %v8497_v26 = vpack.c.bf16 %v2134_v15, %v2127_v14  ;;  %v2126_v27 = vld [vmem:[#allocation14 + $0xd20] sm:$0xff] }
 0x20a   :  { %12611 = vst [vmem:[#allocation37_spill] sm:$0xff] %v11272_v52  ;;  %8466 = vmatprep.subr.bf16.mxu1 %v8465_v43  ;;  %v8499_v45 = vpack.c.bf16 %v2133_v28, %v2126_v27  ;;  %v1730_v14 = vld [vmem:[#allocation14 + $0xc0] sm:$0xff]  ;;  %v11315_v27 = vmax.f32 %v11191_v37, 0.0  ;;  %v11327_v37 = vmax.f32 %v11206_v49, 0.0  ;;  %v11339_v49 = vmax.f32 %v11219_v60, 0.0 }
 0x20b   :  { %v11351_v60 = vmax.f32 %v11232_v8, 0.0  ;;  %v11363_v8 = vmax.f32 %v11245_v20, 0.0  ;;  %v11375_v20 = vmax.f32 %v11258_v36, 0.0  ;;  %v1806_v36 = vld [vmem:[#allocation14 + $0x320] sm:$0xff] }
 0x20c   :  { %v11274_v59 = vpop.f32.mrb[14].mxu1 }
 0x20d   :  { %12612 = vst [vmem:[#allocation38_spill] sm:$0xff] %v11274_v59  ;;  %8468 = vmatpush1.bf16.msra.mxu1 %v8467_v40  ;;  %v11276_v63 = vpop.f32.mrb[15].mxu1  ;;  %v2106_v40 = vld [vmem:[#allocation14 + $0xc80] sm:$0xff] }
 0x20e   :  { %12613 = vst [vmem:[#allocation39_spill] sm:$0xff] %v11276_v63  ;;  %8470 = vmatprep.subr.bf16.mxu1 %v8469_v53  ;;  %v8489_v56 = vpack.c.bf16 %v2106_v40, %v2099_v48  ;;  %v2140_v40 = vld [vmem:[#allocation14 + $0xd90] sm:$0xff]  ;;  %v2066_v59 = vld [vmem:[#allocation14 + $0xb40] sm:$0xff] }
 0x210   :  { %v11278_v7 = vpop.f32.mrb[16].mxu1 }
 0x211   :  { %12614 = vst [vmem:[#allocation40_spill] sm:$0xff] %v11278_v7  ;;  %8472 = vmatpush1.bf16.msra.mxu1 %v8471_v61  ;;  %v11280_v11 = vpop.f32.mrb[17].mxu1  ;;  %v2105_v61 = vld [vmem:[#allocation14 + $0xc78] sm:$0xff] }
 0x212   :  { %12615 = vst [vmem:[#allocation41_spill] sm:$0xff] %v11280_v11  ;;  %8474 = vmatprep.subr.bf16.mxu1 %v8473_v1  ;;  %v2113_v1 = vld [vmem:[#allocation14 + $0xcb8] sm:$0xff]  ;;  %v8491_v4 = vpack.c.bf16 %v2105_v61, %v2098_v57  ;;  %v1716_v57 = vld [vmem:[#allocation14 + $0x50] sm:$0xff] }
 0x213   :  { %v1901_v7 = vld [vmem:[#allocation14 + $0x618] sm:$0xff] }
 0x214   :  { %v11282_v19 = vpop.f32.mrb[18].mxu1 }
 0x215   :  { %12616 = vst [vmem:[#allocation42_spill] sm:$0xff] %v11282_v19  ;;  %8476 = vmatpush1.bf16.msra.mxu1 %v8475_v9  ;;  %v11284_v23 = vpop.f32.mrb[19].mxu1  ;;  %v8493_v9 = vpack.c.bf16 %v2120_v2, %v2113_v1  ;;  %v1887_v19 = vld [vmem:[#allocation14 + $0x5a8] sm:$0xff] }
 0x216   :  { %12617 = vst [vmem:[#allocation43_spill] sm:$0xff] %v11284_v23  ;;  %8478 = vmatprep.subr.bf16.mxu1 %v8477_v12  ;;  %v2112_v12 = vld [vmem:[#allocation14 + $0xcb0] sm:$0xff] }
 0x218   :  { %v11286_v35 = vpop.f32.mrb[20].mxu1 }
 0x219   :  { %12618 = vst [vmem:[#allocation44_spill] sm:$0xff] %v11286_v35  ;;  %8480 = vmatpush1.bf16.msra.mxu1 %v8479_v21  ;;  %v11288_v43 = vpop.f32.mrb[21].mxu1  ;;  %v8495_v21 = vpack.c.bf16 %v2119_v13, %v2112_v12  ;;  %v1715_v12 = vld [vmem:[#allocation14 + $0x48] sm:$0xff]  ;;  %v1873_v35 = vld [vmem:[#allocation14 + $0x538] sm:$0xff] }
 0x21a   :  { %12619 = vst [vmem:[#allocation45_spill] sm:$0xff] %v11288_v43  ;;  %8482 = vmatprep.subr.bf16.mxu1 %v8481_v25  ;;  %v1723_v13 = vld [vmem:[#allocation14 + $0x88] sm:$0xff]  ;;  %v1866_v43 = vld [vmem:[#allocation14 + $0x500] sm:$0xff] }
 0x21b   :  { %v8509_v28 = vpack.c.bf16 %v1730_v14, %v1723_v13  ;;  %v1758_v13 = vld [vmem:[#allocation14 + $0x1a0] sm:$0xff] }
 0x21c   :  { %v11290_v53 = vpop.f32.mrb[22].mxu1 }
 0x21d   :  { %12620 = vst [vmem:[#allocation46_spill] sm:$0xff] %v11290_v53  ;;  %8484 = vmatpush1.bf16.msra.mxu1 %v8483_v17  ;;  %v11292_v55 = vpop.f32.mrb[23].mxu1  ;;  %v2148_v17 = vld [vmem:[#allocation14 + $0xdd0] sm:$0xff] }
 0x21e   :  { %12621 = vst [vmem:[#allocation47_spill] sm:$0xff] %v11292_v55  ;;  %8486 = vmatprep.subr.bf16.mxu1 %v8485_v44  ;;  %v8501_v48 = vpack.c.bf16 %v2148_v17, %v2141_v29  ;;  %v1722_v29 = vld [vmem:[#allocation14 + $0x80] sm:$0xff]  ;;  %v1729_v17 = vld [vmem:[#allocation14 + $0xb8] sm:$0xff]  ;;  %v1852_v53 = vld [vmem:[#allocation14 + $0x490] sm:$0xff] }
 0x220   :  { %v11294_v3 = vpop.f32.mrb[24].mxu1 }
 0x221   :  { %12622 = vst [vmem:[#allocation48_spill] sm:$0xff] %v11294_v3  ;;  %8488 = vmatpush1.bf16.msra.mxu1 %v8487_v54  ;;  %v11296_v5 = vpop.f32.mrb[25].mxu1  ;;  %v2147_v54 = vld [vmem:[#allocation14 + $0xdc8] sm:$0xff]  ;;  %v1845_v3 = vld [vmem:[#allocation14 + $0x458] sm:$0xff] }
 0x222   :  { %12623 = vst [vmem:[#allocation49_spill] sm:$0xff] %v11296_v5  ;;  %8490 = vmatprep.subr.bf16.mxu1 %v8489_v56  ;;  %v1709_v56 = vld [vmem:[#allocation14 + $0x18] sm:$0xff]  ;;  %v8503_v1 = vpack.c.bf16 %v2147_v54, %v2140_v40  ;;  %v1744_v40 = vld [vmem:[#allocation14 + $0x130] sm:$0xff] }
 0x224   :  { %v11298_v16 = vpop.f32.mrb[26].mxu1 }
 0x225   :  { %12624 = vst [vmem:[#allocation50_spill] sm:$0xff] %v11298_v16  ;;  %8492 = vmatpush1.bf16.msra.mxu1 %v8491_v4  ;;  %v11300_v25 = vpop.f32.mrb[27].mxu1  ;;  %v8505_v4 = vpack.c.bf16 %v1716_v57, %v1709_v56  ;;  %v8511_v56 = vpack.c.bf16 %v1729_v17, %v1722_v29  ;;  %v1750_v17 = vld [vmem:[#allocation14 + $0x160] sm:$0xff]  ;;  %v2003_v16 = vld [vmem:[#allocation14 + $0x948] sm:$0xff] }
 0x226   :  { %12625 = vst [vmem:[#allocation51_spill] sm:$0xff] %v11300_v25  ;;  %8494 = vmatprep.subr.bf16.mxu1 %v8493_v9  ;;  %v1708_v9 = vld [vmem:[#allocation14 + $0x10] sm:$0xff]  ;;  %v1995_v25 = vld [vmem:[#allocation14 + $0x908] sm:$0xff] }
 0x228   :  { %v11302_v44 = vpop.f32.mrb[28].mxu1 }
 0x229   :  { %12626 = vst [vmem:[#allocation52_spill] sm:$0xff] %v11302_v44  ;;  %8496 = vmatpush1.bf16.msra.mxu1 %v8495_v21  ;;  %v11304_v46 = vpop.f32.mrb[29].mxu1  ;;  %v8507_v21 = vpack.c.bf16 %v1715_v12, %v1708_v9  ;;  %v11330_v9 = vmax.f32 %v11223_v62, 0.0  ;;  %v1751_v12 = vld [vmem:[#allocation14 + $0x168] sm:$0xff]  ;;  %v1757_v62 = vld [vmem:[#allocation14 + $0x198] sm:$0xff]  ;;  %v1988_v44 = vld [vmem:[#allocation14 + $0x8d0] sm:$0xff] }
 0x22a   :  { %12627 = vst [vmem:[#allocation53_spill] sm:$0xff] %v11304_v46  ;;  %8498 = vmatprep.subr.bf16.mxu1 %v8497_v26  ;;  %v1947_v46 = vld [vmem:[#allocation14 + $0x788] sm:$0xff] }
 0x22c   :  { %v11306_v61 = vpop.f32.mrb[30].mxu1 }
 0x22d   :  { %12628 = vst [vmem:[#allocation54_spill] sm:$0xff] %v11306_v61  ;;  %8500 = vmatpush1.bf16.msra.mxu1 %v8499_v45  ;;  %v11308_v2 = vpop.f32.mrb[31].mxu1  ;;  %v11318_v45 = vmax.f32 %v11210_v51, 0.0  ;;  %v1743_v51 = vld [vmem:[#allocation14 + $0x128] sm:$0xff] }
 0x22e   :  { %12629 = vst [vmem:[#allocation55_spill] sm:$0xff] %v11308_v2  ;;  %8502 = vmatprep.subr.bf16.mxu1 %v8501_v48  ;;  %v1737_v48 = vld [vmem:[#allocation14 + $0xf8] sm:$0xff]  ;;  %v1939_v61 = vld [vmem:[#allocation14 + $0x748] sm:$0xff] }
 0x22f   :  { %v1933_v2 = vld [vmem:[#allocation14 + $0x718] sm:$0xff] }
 0x230   :  { %v11310_v15 = vpop.f32.mrb[32].mxu1 }
 0x231   :  { %12630 = vst [vmem:[#allocation56_spill] sm:$0xff] %v11310_v15  ;;  %8504 = vmatpush1.bf16.msra.mxu1 %v8503_v1  ;;  %v11312_v26 = vpop.f32.mrb[33].mxu1  ;;  %v8513_v1 = vpack.c.bf16 %v1744_v40, %v1737_v48  ;;  %v11342_v48 = vmax.f32 %v11236_v10, 0.0  ;;  %v1765_v40 = vld [vmem:[#allocation14 + $0x1d8] sm:$0xff]  ;;  %v1771_v10 = vld [vmem:[#allocation14 + $0x208] sm:$0xff] }
 0x232   :  { %12631 = vst [vmem:[#allocation57_spill] sm:$0xff] %v11312_v26  ;;  %8506 = vmatprep.subr.bf16.mxu1 %v8505_v4  ;;  %v1736_v4 = vld [vmem:[#allocation14 + $0xf0] sm:$0xff]  ;;  %v1835_v26 = vld [vmem:[#allocation14 + $0x408] sm:$0xff]  ;;  %v1925_v15 = vld [vmem:[#allocation14 + $0x6d8] sm:$0xff] }
 0x234   :  { %2320 = vmatmul.mubr.f32.vlgmr.msra.gmra.mrb[72].mxu1 %v11315_v27  ;;  %v11321_v54 = vpop.f32.mrb[34].mxu1 }
 0x235   :  { %12632 = vst [vmem:[#allocation58_spill] sm:$0xff] %v11321_v54  ;;  %2325 = vmatprep.mubr.f32.mxu1 %v11318_v45  ;;  %8508 = vmatpush1.bf16.msra.mxu1 %v8507_v21  ;;  %v11324_v57 = vpop.f32.mrb[35].mxu1  ;;  %v8515_v21 = vpack.c.bf16 %v1743_v51, %v1736_v4  ;;  %v1764_v51 = vld [vmem:[#allocation14 + $0x1d0] sm:$0xff]  ;;  %v1827_v54 = vld [vmem:[#allocation14 + $0x3c8] sm:$0xff] }
 0x236   :  { %12633 = vst [vmem:[#allocation59_spill] sm:$0xff] %v11324_v57  ;;  %8510 = vmatprep.subr.bf16.mxu1 %v8509_v28  ;;  %v8517_v28 = vpack.c.bf16 %v1758_v13, %v1751_v12  ;;  %v11354_v12 = vmax.f32 %v11249_v22, 0.0  ;;  %v1779_v13 = vld [vmem:[#allocation14 + $0x248] sm:$0xff]  ;;  %v1785_v22 = vld [vmem:[#allocation14 + $0x278] sm:$0xff] }
 0x238   :  { %2326 = vmatmul.mubr.f32.gmra.mrb[74].mxu1 %v11327_v37  ;;  %v11333_v14 = vpop.f32.mrb[36].mxu1 }
 0x239   :  { %12634 = vst [vmem:[#allocation60_spill] sm:$0xff] %v11333_v14  ;;  %2331 = vmatprep.mubr.f32.mxu1 %v11330_v9  ;;  %8512 = vmatpush1.bf16.msra.mxu1 %v8511_v56  ;;  %v11336_v29 = vpop.f32.mrb[37].mxu1  ;;  %v8519_v56 = vpack.c.bf16 %v1757_v62, %v1750_v17  ;;  %v11366_v62 = vmax.f32 %v11265_v42, 0.0  ;;  %v1799_v42 = vld [vmem:[#allocation14 + $0x2e8] sm:$0xff] }
 0x23a   :  { %12635 = vst [vmem:[#allocation61_spill] sm:$0xff] %v11336_v29  ;;  %8514 = vmatprep.subr.bf16.mxu1 %v8513_v1  ;;  %v8521_v1 = vpack.c.bf16 %v1772_v0, %v1765_v40  ;;  %v1786_v29 = vld [vmem:[#allocation14 + $0x280] sm:$0xff]  ;;  %v1793_v40 = vld [vmem:[#allocation14 + $0x2b8] sm:$0xff] }
 0x23b   :  { %v8525_v0 = vpack.c.bf16 %v1786_v29, %v1779_v13  ;;  %v1814_v13 = vld [vmem:[#allocation14 + $0x360] sm:$0xff] }
 0x23c   :  { %2332 = vmatmul.mubr.f32.gmra.mrb[76].mxu1 %v11339_v49  ;;  %v11345_v14 = vpop.f32.mrb[38].mxu1 }
 0x23d   :  { %12636 = vst [vmem:[#allocation62_spill] sm:$0xff] %v11345_v14  ;;  %2337 = vmatprep.mubr.f32.mxu1 %v11342_v48  ;;  %8516 = vmatpush1.bf16.msra.mxu1 %v8515_v21  ;;  %v11348_v4 = vpop.f32.mrb[39].mxu1  ;;  %v8523_v21 = vpack.c.bf16 %v1771_v10, %v1764_v51  ;;  %v1807_v10 = vld [vmem:[#allocation14 + $0x328] sm:$0xff] }
 0x23e   :  { %12637 = vst [vmem:[#allocation63_spill] sm:$0xff] %v11348_v4  ;;  %8518 = vmatprep.subr.bf16.mxu1 %v8517_v28  ;;  %v1778_v28 = vld [vmem:[#allocation14 + $0x240] sm:$0xff]  ;;  %v1800_v4 = vld [vmem:[#allocation14 + $0x2f0] sm:$0xff] }
 0x23f   :  { %v8529_v29 = vpack.c.bf16 %v1800_v4, %v1793_v40  ;;  %v1828_v4 = vld [vmem:[#allocation14 + $0x3d0] sm:$0xff] }
 0x240   :  { %2338 = vmatmul.mubr.f32.gmra.mrb[78].mxu1 %v11351_v60  ;;  %v11357_v14 = vpop.f32.mrb[40].mxu1 }
 0x241   :  { %12638 = vst [vmem:[#allocation64_spill] sm:$0xff] %v11357_v14  ;;  %2343 = vmatprep.mubr.f32.mxu1 %v11354_v12  ;;  %8520 = vmatpush1.bf16.msra.mxu1 %v8519_v56  ;;  %v11360_v17 = vpop.f32.mrb[41].mxu1  ;;  %v8527_v56 = vpack.c.bf16 %v1785_v22, %v1778_v28  ;;  %v8533_v22 = vpack.c.bf16 %v1814_v13, %v1807_v10 }
 0x242   :  { %12639 = vst [vmem:[#allocation65_spill] sm:$0xff] %v11360_v17  ;;  %8522 = vmatprep.subr.bf16.mxu1 %v8521_v1  ;;  %v1792_v1 = vld [vmem:[#allocation14 + $0x2b0] sm:$0xff] }
 0x244   :  { %2344 = vmatmul.mubr.f32.gmra.mrb[80].mxu1 %v11363_v8  ;;  %v11369_v14 = vpop.f32.mrb[42].mxu1 }
 0x245   :  { %12640 = vst [vmem:[#allocation66_spill] sm:$0xff] %v11369_v14  ;;  %2349 = vmatprep.mubr.f32.mxu1 %v11366_v62  ;;  %8524 = vmatpush1.bf16.msra.mxu1 %v8523_v21  ;;  %v11372_v51 = vpop.f32.mrb[43].mxu1  ;;  %v8531_v21 = vpack.c.bf16 %v1799_v42, %v1792_v1  ;;  %v1842_v1 = vld [vmem:[#allocation14 + $0x440] sm:$0xff] }
 0x246   :  { %12641 = vst [vmem:[#allocation67_spill] sm:$0xff] %v11372_v51  ;;  %8526 = vmatprep.subr.bf16.mxu1 %v8525_v0  ;;  %v1813_v51 = vld [vmem:[#allocation14 + $0x358] sm:$0xff]  ;;  %v8541_v13 = vpack.c.bf16 %v1842_v1, %v1835_v26 }
 0x247   :  { %v1821_v0 = vld [vmem:[#allocation14 + $0x398] sm:$0xff]  ;;  %v8535_v14 = vpack.c.bf16 %v1813_v51, %v1806_v36  ;;  %v1856_v51 = vld [vmem:[#allocation14 + $0x4b0] sm:$0xff] }
 0x248   :  { %2350 = vmatmul.mubr.f32.gmra.mrb[82].mxu1 %v11375_v20  ;;  %v11378_v17 = vpop.f32.mrb[44].mxu1 }
 0x249   :  { %12642 = vst [vmem:[#allocation68_spill] sm:$0xff] %v11378_v17  ;;  %8528 = vmatpush1.bf16.msra.mxu1 %v8527_v56  ;;  %2420 = vmatprep.mubr.f32.mxu1 %v11193_v38  ;;  %v11381_v28 = vpop.f32.mrb[45].mxu1  ;;  %v8537_v17 = vpack.c.bf16 %v1828_v4, %v1821_v0  ;;  %v1820_v56 = vld [vmem:[#allocation14 + $0x390] sm:$0xff] }
 0x24a   :  { %12643 = vst [vmem:[#allocation69_spill] sm:$0xff] %v11381_v28  ;;  %8530 = vmatprep.subr.bf16.mxu1 %v8529_v29  ;;  %v8539_v29 = vpack.c.bf16 %v1827_v54, %v1820_v56  ;;  %v1834_v28 = vld [vmem:[#allocation14 + $0x400] sm:$0xff] }
 0x24b   :  { %v1870_v54 = vld [vmem:[#allocation14 + $0x520] sm:$0xff] }
 0x24c   :  { %v11383_v40 = vpop.f32.mrb[46].mxu1 }
 0x24d   :  { %12644 = vst [vmem:[#allocation70_spill] sm:$0xff] %v11383_v40  ;;  %8532 = vmatpush1.bf16.msra.mxu1 %v8531_v21  ;;  %v11385_v57 = vpop.f32.mrb[47].mxu1  ;;  %v1841_v40 = vld [vmem:[#allocation14 + $0x438] sm:$0xff] }
 0x24e   :  { %12645 = vst [vmem:[#allocation71_spill] sm:$0xff] %v11385_v57  ;;  %8534 = vmatprep.subr.bf16.mxu1 %v8533_v22  ;;  %v1849_v21 = vld [vmem:[#allocation14 + $0x478] sm:$0xff]  ;;  %v8543_v22 = vpack.c.bf16 %v1841_v40, %v1834_v28  ;;  %v1848_v57 = vld [vmem:[#allocation14 + $0x470] sm:$0xff] }
 0x24f   :  { %v8545_v4 = vpack.c.bf16 %v1856_v51, %v1849_v21  ;;  %v1884_v28 = vld [vmem:[#allocation14 + $0x590] sm:$0xff] }
 0x250   :  { %v11387_v42 = vpop.f32.mrb[48].mxu1 }
 0x251   :  { %12646 = vst [vmem:[#allocation72_spill] sm:$0xff] %v11387_v42  ;;  %8536 = vmatpush1.bf16.msra.mxu1 %v8535_v14  ;;  %v11389_v10 = vpop.f32.mrb[49].mxu1  ;;  %v1855_v42 = vld [vmem:[#allocation14 + $0x4a8] sm:$0xff] }
 0x252   :  { %12647 = vst [vmem:[#allocation73_spill] sm:$0xff] %v11389_v10  ;;  %8538 = vmatprep.subr.bf16.mxu1 %v8537_v17  ;;  %v1863_v14 = vld [vmem:[#allocation14 + $0x4e8] sm:$0xff]  ;;  %v8547_v26 = vpack.c.bf16 %v1855_v42, %v1848_v57  ;;  %v1862_v10 = vld [vmem:[#allocation14 + $0x4e0] sm:$0xff] }
 0x253   :  { %v8549_v1 = vpack.c.bf16 %v1870_v54, %v1863_v14  ;;  %v1898_v57 = vld [vmem:[#allocation14 + $0x600] sm:$0xff] }
 0x254   :  { %v11391_v36 = vpop.f32.mrb[50].mxu1 }
 0x255   :  { %12648 = vst [vmem:[#allocation74_spill] sm:$0xff] %v11391_v36  ;;  %8540 = vmatpush1.bf16.msra.mxu1 %v8539_v29  ;;  %v11393_v0 = vpop.f32.mrb[51].mxu1  ;;  %v1869_v36 = vld [vmem:[#allocation14 + $0x518] sm:$0xff] }
 0x256   :  { %12649 = vst [vmem:[#allocation75_spill] sm:$0xff] %v11393_v0  ;;  %8542 = vmatprep.subr.bf16.mxu1 %v8541_v13  ;;  %v1877_v29 = vld [vmem:[#allocation14 + $0x558] sm:$0xff]  ;;  %v8551_v13 = vpack.c.bf16 %v1869_v36, %v1862_v10  ;;  %v1876_v0 = vld [vmem:[#allocation14 + $0x550] sm:$0xff] }
 0x257   :  { %v8553_v51 = vpack.c.bf16 %v1884_v28, %v1877_v29  ;;  %v1912_v10 = vld [vmem:[#allocation14 + $0x670] sm:$0xff] }
 0x258   :  { %v11395_v56 = vpop.f32.mrb[52].mxu1 }
 0x259   :  { %12650 = vst [vmem:[#allocation76_spill] sm:$0xff] %v11395_v56  ;;  %8544 = vmatpush1.bf16.msra.mxu1 %v8543_v22  ;;  %v11397_v17 = vpop.f32.mrb[53].mxu1  ;;  %v1883_v56 = vld [vmem:[#allocation14 + $0x588] sm:$0xff] }
 0x25a   :  { %12651 = vst [vmem:[#allocation77_spill] sm:$0xff] %v11397_v17  ;;  %8546 = vmatprep.subr.bf16.mxu1 %v8545_v4  ;;  %v1891_v22 = vld [vmem:[#allocation14 + $0x5c8] sm:$0xff]  ;;  %v8555_v4 = vpack.c.bf16 %v1883_v56, %v1876_v0  ;;  %v1890_v17 = vld [vmem:[#allocation14 + $0x5c0] sm:$0xff] }
 0x25b   :  { %v8557_v54 = vpack.c.bf16 %v1898_v57, %v1891_v22  ;;  %v1926_v0 = vld [vmem:[#allocation14 + $0x6e0] sm:$0xff] }
 0x25c   :  { %v11399_v40 = vpop.f32.mrb[54].mxu1 }
 0x25d   :  { %12652 = vst [vmem:[#allocation78_spill] sm:$0xff] %v11399_v40  ;;  %8548 = vmatpush1.bf16.msra.mxu1 %v8547_v26  ;;  %v11401_v21 = vpop.f32.mrb[55].mxu1  ;;  %v1897_v40 = vld [vmem:[#allocation14 + $0x5f8] sm:$0xff] }
 0x25e   :  { %12653 = vst [vmem:[#allocation79_spill] sm:$0xff] %v11401_v21  ;;  %8550 = vmatprep.subr.bf16.mxu1 %v8549_v1  ;;  %v1905_v26 = vld [vmem:[#allocation14 + $0x638] sm:$0xff]  ;;  %v8559_v1 = vpack.c.bf16 %v1897_v40, %v1890_v17  ;;  %v1904_v21 = vld [vmem:[#allocation14 + $0x630] sm:$0xff] }
 0x25f   :  { %v8561_v28 = vpack.c.bf16 %v1912_v10, %v1905_v26 }
 0x260   :  { %v11403_v42 = vpop.f32.mrb[56].mxu1 }
 0x261   :  { %12654 = vst [vmem:[#allocation80_spill] sm:$0xff] %v11403_v42  ;;  %8552 = vmatpush1.bf16.msra.mxu1 %v8551_v13  ;;  %v11405_v14 = vpop.f32.mrb[57].mxu1  ;;  %v1911_v42 = vld [vmem:[#allocation14 + $0x668] sm:$0xff] }
 0x262   :  { %12655 = vst [vmem:[#allocation81_spill] sm:$0xff] %v11405_v14  ;;  %8554 = vmatprep.subr.bf16.mxu1 %v8553_v51  ;;  %v1919_v13 = vld [vmem:[#allocation14 + $0x6a8] sm:$0xff]  ;;  %v8563_v51 = vpack.c.bf16 %v1911_v42, %v1904_v21  ;;  %v1918_v14 = vld [vmem:[#allocation14 + $0x6a0] sm:$0xff] }
 0x263   :  { %v8565_v57 = vpack.c.bf16 %v1926_v0, %v1919_v13  ;;  %v8567_v17 = vpack.c.bf16 %v1925_v15, %v1918_v14  ;;  %v1946_v0 = vld [vmem:[#allocation14 + $0x780] sm:$0xff]  ;;  %v1961_v15 = vld [vmem:[#allocation14 + $0x7f8] sm:$0xff]  ;;  %v1968_v14 = vld [vmem:[#allocation14 + $0x830] sm:$0xff] }
 0x264   :  { %v11407_v36 = vpop.f32.mrb[58].mxu1 }
 0x265   :  { %12656 = vst [vmem:[#allocation82_spill] sm:$0xff] %v11407_v36  ;;  %8556 = vmatpush1.bf16.msra.mxu1 %v8555_v4  ;;  %v11409_v29 = vpop.f32.mrb[59].mxu1  ;;  %v1940_v36 = vld [vmem:[#allocation14 + $0x750] sm:$0xff] }
 0x266   :  { %12657 = vst [vmem:[#allocation83_spill] sm:$0xff] %v11409_v29  ;;  %8558 = vmatprep.subr.bf16.mxu1 %v8557_v54  ;;  %v8569_v26 = vpack.c.bf16 %v1940_v36, %v1933_v2  ;;  %v1932_v29 = vld [vmem:[#allocation14 + $0x710] sm:$0xff] }
 0x267   :  { %v8571_v42 = vpack.c.bf16 %v1939_v61, %v1932_v29  ;;  %v8577_v61 = vpack.c.bf16 %v1968_v14, %v1961_v15  ;;  %v1960_v29 = vld [vmem:[#allocation14 + $0x7f0] sm:$0xff]  ;;  %v1989_v14 = vld [vmem:[#allocation14 + $0x8d8] sm:$0xff] }
 0x268   :  { %v1527_v56 = vpop.f32.mrb[60].mxu1 }
 0x269   :  { %8560 = vmatpush1.bf16.msra.mxu1 %v8559_v1  ;;  %v1529_v22 = vpop.f32.mrb[61].mxu1  ;;  %v1954_v1 = vld [vmem:[#allocation14 + $0x7c0] sm:$0xff] }
 0x26a   :  { %8562 = vmatprep.subr.bf16.mxu1 %v8561_v28  ;;  %v8573_v13 = vpack.c.bf16 %v1954_v1, %v1947_v46  ;;  %v1982_v46 = vld [vmem:[#allocation14 + $0x8a0] sm:$0xff] }
 0x26c   :  { %v1533_v4 = vpop.f32.mrb[62].mxu1 }
 0x26d   :  { %8564 = vmatpush1.bf16.msra.mxu1 %v8563_v51  ;;  %v8367_v40 = vpack.c.bf16 %v1533_v4, %v1527_v56  ;;  %v1535_v54 = vpop.f32.mrb[63].mxu1  ;;  %v1953_v51 = vld [vmem:[#allocation14 + $0x7b8] sm:$0xff]  ;;  %v1967_v4 = vld [vmem:[#allocation14 + $0x828] sm:$0xff] }
 0x26e   :  { %8566 = vmatprep.subr.bf16.mxu1 %v8565_v57  ;;  %v8365_v10 = vpack.c.bf16 %v1535_v54, %v1529_v22  ;;  %v8575_v22 = vpack.c.bf16 %v1953_v51, %v1946_v0  ;;  %v8579_v1 = vpack.c.bf16 %v1967_v4, %v1960_v29  ;;  %v1831_v0 = vld [vmem:[#allocation14 + $0x3e8] sm:$0xff]  ;;  %v1712_v4 = vld [vmem:[#allocation14 + $0x30] sm:$0xff] }
 0x270   :  { %v1539_v21 = vpop.f32.mrb[64].mxu1  ;;  %8366 = vmatprep.subr.bf16.mxu0 %v8365_v10 }
 0x271   :  { %8568 = vmatpush1.bf16.msra.mxu1 %v8567_v17  ;;  %v1541_v28 = vpop.f32.mrb[65].mxu1  ;;  %8368 = vmatpush1.bf16.msra.mxu0 %v8367_v40  ;;  %v1975_v17 = vld [vmem:[#allocation14 + $0x868] sm:$0xff]  ;;  %v11413_v40 = vpop.f32.mrb[12].mxu0 }
 0x272   :  { %8570 = vmatprep.subr.bf16.mxu1 %v8569_v26  ;;  %v11416_v26 = vpop.f32.mrb[13].mxu0 }
 0x273   :  { %v11419_v51 = vpop.f32.mrb[14].mxu0 }
 0x274   :  { %2421 = vmatmul.mubr.f32.vlgmr.msra.gmra.mrb[84].mxu1 %v11199_v41  ;;  %v1545_v2 = vpop.f32.mrb[66].mxu1 }
 0x275   :  { %2426 = vmatprep.mubr.f32.mxu1 %v11208_v24  ;;  %8572 = vmatpush1.bf16.msra.mxu1 %v8571_v42  ;;  %v8371_v36 = vpack.c.bf16 %v1545_v2, %v1539_v21  ;;  %v1547_v56 = vpop.f32.mrb[67].mxu1  ;;  %v8581_v21 = vpack.c.bf16 %v1982_v46, %v1975_v17  ;;  %v1974_v42 = vld [vmem:[#allocation14 + $0x860] sm:$0xff]  ;;  %v1996_v2 = vld [vmem:[#allocation14 + $0x910] sm:$0xff]  ;;  %v1719_v17 = vld [vmem:[#allocation14 + $0x68] sm:$0xff] }
 0x276   :  { %8574 = vmatprep.subr.bf16.mxu1 %v8573_v13  ;;  %v8369_v57 = vpack.c.bf16 %v1547_v56, %v1541_v28  ;;  %v1981_v28 = vld [vmem:[#allocation14 + $0x898] sm:$0xff]  ;;  %v1824_v13 = vld [vmem:[#allocation14 + $0x3b0] sm:$0xff]  ;;  %v11422_v56 = vpop.f32.mrb[15].mxu0  ;;  %v8585_v46 = vpack.c.bf16 %v1996_v2, %v1989_v14  ;;  %v2002_v14 = vld [vmem:[#allocation14 + $0x940] sm:$0xff] }
 0x277   :  { %v8761_v29 = vpack.c.bf16 %v1831_v0, %v1824_v13  ;;  %v11425_v5 = vpop.f32.mrb[16].mxu0  ;;  %v2009_v2 = vld [vmem:[#allocation14 + $0x978] sm:$0xff] }
 0x278   :  { %2427 = vmatmul.mubr.f32.gmra.mrb[86].mxu1 %v11203_v47  ;;  %v1551_v54 = vpop.f32.mrb[68].mxu1  ;;  %8370 = vmatprep.subr.bf16.mxu0 %v8369_v57  ;;  %v11428_v55 = vpop.f32.mrb[17].mxu0 }
 0x279   :  { %2432 = vmatprep.mubr.f32.mxu1 %v11221_v30  ;;  %8576 = vmatpush1.bf16.msra.mxu1 %v8575_v22  ;;  %v1553_v10 = vpop.f32.mrb[69].mxu1 }
 0x27a   :  { %8578 = vmatprep.subr.bf16.mxu1 %v8577_v61  ;;  %8372 = vmatpush1.bf16.msra.mxu0 %v8371_v36  ;;  %v8583_v61 = vpack.c.bf16 %v1981_v28, %v1974_v42  ;;  %v1726_v42 = vld [vmem:[#allocation14 + $0xa0] sm:$0xff]  ;;  %v1733_v28 = vld [vmem:[#allocation14 + $0xd8] sm:$0xff] }
 0x27c   :  { %v1557_v15 = vpop.f32.mrb[70].mxu1  ;;  %2433 = vmatmul.mubr.f32.gmra.mrb[88].mxu1 %v11216_v58 }
 0x27d   :  { %v8375_v57 = vpack.c.bf16 %v1557_v15, %v1551_v54  ;;  %v1559_v22 = vpop.f32.mrb[71].mxu1  ;;  %2438 = vmatprep.mubr.f32.mxu1 %v11234_v31  ;;  %8580 = vmatpush1.bf16.msra.mxu1 %v8579_v1  ;;  %v2010_v54 = vld [vmem:[#allocation14 + $0x980] sm:$0xff]  ;;  %v8763_v1 = vpack.c.bf16 %v1719_v17, %v1712_v4  ;;  %v1859_v4 = vld [vmem:[#allocation14 + $0x4c8] sm:$0xff]  ;;  %v1740_v17 = vld [vmem:[#allocation14 + $0x110] sm:$0xff] }
 0x27e   :  { %v8373_v36 = vpack.c.bf16 %v1559_v22, %v1553_v10  ;;  %8582 = vmatprep.subr.bf16.mxu1 %v8581_v21  ;;  %v1838_v15 = vld [vmem:[#allocation14 + $0x420] sm:$0xff]  ;;  %v8587_v21 = vpack.c.bf16 %v1995_v25, %v1988_v44  ;;  %v8589_v13 = vpack.c.bf16 %v2010_v54, %v2003_v16  ;;  %v2017_v22 = vld [vmem:[#allocation14 + $0x9b8] sm:$0xff]  ;;  %v248_v25 = vld [vmem:[#allocation2 + $0x8] sm:$0xff]  ;;  %v8767_v16 = vpack.c.bf16 %v1733_v28, %v1726_v42 }
 0x27f   :  { %v247_v10 = vld [vmem:[#allocation2] sm:$0xff]  ;;  %v8765_v0 = vpack.c.bf16 %v1845_v3, %v1838_v15  ;;  %v12658_v3 = vmov 0.0   ;;  %v8591_v44 = vpack.c.bf16 %v2009_v2, %v2002_v14  ;;  %v8769_v15 = vpack.c.bf16 %v1859_v4, %v1852_v53  ;;  %v249_v28 = vld [vmem:[#allocation2 + $0x10] sm:$0xff]  ;;  %v2037_v4 = vld [vmem:[#allocation14 + $0xa58] sm:$0xff] }
 0x280   :  { %8374 = vmatprep.subr.bf16.mxu0 %v8373_v36  ;;  %2439 = vmatmul.mubr.f32.gmra.mrb[90].mxu1 %v11229_v6  ;;  %v11431_v36 = vpop.f32.mrb[18].mxu0  ;;  %v2030_v14 = vld [vmem:[#allocation14 + $0xa20] sm:$0xff] }
 0x281   :  { %8376 = vmatpush1.bf16.msra.mxu0 %v8375_v57  ;;  %2444 = vmatprep.mubr.f32.mxu1 %v11247_v32  ;;  %v2024_v57 = vld [vmem:[#allocation14 + $0x9f0] sm:$0xff]  ;;  %v1754_v2 = vld [vmem:[#allocation14 + $0x180] sm:$0xff] }
 0x282   :  { %8584 = vmatpush1.bf16.msra.mxu1 %v8583_v61  ;;  %8762 = vmatprep.subr.bf16.mxu0 %v8761_v29  ;;  %v11435_v61 = vpop.f32.mrb[19].mxu0  ;;  %v2016_v29 = vld [vmem:[#allocation14 + $0x9b0] sm:$0xff]  ;;  %v8593_v54 = vpack.c.bf16 %v2024_v57, %v2017_v22  ;;  %v1761_v22 = vld [vmem:[#allocation14 + $0x1b8] sm:$0xff] }
 0x283   :  { %8586 = vmatprep.subr.bf16.mxu1 %v8585_v46  ;;  %v1747_v46 = vld [vmem:[#allocation14 + $0x148] sm:$0xff]  ;;  %v11439_v23 = vpop.f32.mrb[20].mxu0 }
 0x284   :  { %7949 = vmatmul.mubr.msk.f32.vlgmr.msra.gmra.mrb[72].mxu0 %vm1586_vm1, %v247_v10  ;;  %2445 = vmatmul.mubr.f32.gmra.mrb[92].mxu1 %v11242_v18  ;;  %v2023_v10 = vld [vmem:[#allocation14 + $0x9e8] sm:$0xff]  ;;  %v11443_v42 = vpop.f32.mrb[21].mxu0 }
 0x285   :  { %2450 = vmatprep.mubr.f32.mxu1 %v11260_v33  ;;  %8764 = vmatpush3.bf16.msra.mxu0 %v8763_v1  ;;  %v2031_v1 = vld [vmem:[#allocation14 + $0xa28] sm:$0xff]  ;;  %v8595_v53 = vpack.c.bf16 %v2023_v10, %v2016_v29  ;;  %v11447_v11 = vpop.f32.mrb[22].mxu0  ;;  %v8599_v29 = vpack.c.bf16 %v2037_v4, %v2030_v14 }
 0x286   :  { %8588 = vmatpush1.bf16.msra.mxu1 %v8587_v21  ;;  %1675 = vmatprep.mubr.f32.mxu0 %v12658_v3  ;;  %v2038_v21 = vld [vmem:[#allocation14 + $0xa60] sm:$0xff]  ;;  %v1775_v10 = vld [vmem:[#allocation14 + $0x228] sm:$0xff] }
 0x287   :  { %8590 = vmatprep.subr.bf16.mxu1 %v8589_v13  ;;  %8766 = vmatprep.subr.bf16.mxu0 %v8765_v0  ;;  %v8771_v13 = vpack.c.bf16 %v1747_v46, %v1740_v17  ;;  %v8773_v0 = vpack.c.bf16 %v1873_v35, %v1866_v43  ;;  %v8597_v57 = vpack.c.bf16 %v2038_v21, %v2031_v1  ;;  %v2052_v17 = vld [vmem:[#allocation14 + $0xad0] sm:$0xff]  ;;  %v250_v35 = vld [vmem:[#allocation2 + $0x18] sm:$0xff]  ;;  %v2051_v21 = vld [vmem:[#allocation14 + $0xac8] sm:$0xff] }
 0x288   :  { %7950 = vmatmul.mubr.msk.f32.gmra.mrb[74].mxu0 %vm1586_vm1, %v248_v25  ;;  %2451 = vmatmul.mubr.f32.gmra.mrb[94].mxu1 %v11255_v34  ;;  %v1880_v25 = vld [vmem:[#allocation14 + $0x570] sm:$0xff]  ;;  %v8775_v43 = vpack.c.bf16 %v1761_v22, %v1754_v2  ;;  %v2058_v2 = vld [vmem:[#allocation14 + $0xb00] sm:$0xff] }
 0x289   :  { %2521 = vmatprep.mubr.f32.mxu1 %v11263_v39  ;;  %8768 = vmatpush3.bf16.msra.mxu0 %v8767_v16  ;;  %v2045_v16 = vld [vmem:[#allocation14 + $0xa98] sm:$0xff]  ;;  %v8777_v46 = vpack.c.bf16 %v1887_v19, %v1880_v25  ;;  %v251_v19 = vld [vmem:[#allocation2 + $0x20] sm:$0xff] }
 0x28a   :  { %8592 = vmatpush1.bf16.msra.mxu1 %v8591_v44  ;;  %1681 = vmatprep.mubr.f32.mxu0 %v12658_v3  ;;  %v11450_v44 = vpop.f32.mrb[23].mxu0  ;;  %v8601_v1 = vpack.c.bf16 %v2052_v17, %v2045_v16  ;;  %v1782_v22 = vld [vmem:[#allocation14 + $0x260] sm:$0xff]  ;;  %v2065_v25 = vld [vmem:[#allocation14 + $0xb38] sm:$0xff]  ;;  %v1908_v16 = vld [vmem:[#allocation14 + $0x650] sm:$0xff] }
 0x28b   :  { %8594 = vmatprep.subr.bf16.mxu1 %v8593_v54  ;;  %8770 = vmatprep.subr.bf16.mxu0 %v8769_v15  ;;  %v2044_v54 = vld [vmem:[#allocation14 + $0xa90] sm:$0xff]  ;;  %v11453_v63 = vpop.f32.mrb[24].mxu0  ;;  %v1915_v17 = vld [vmem:[#allocation14 + $0x688] sm:$0xff] }
 0x28c   :  { %7951 = vmatmul.mubr.msk.f32.gmra.mrb[76].mxu0 %vm1586_vm1, %v249_v28  ;;  %v1768_v15 = vld [vmem:[#allocation14 + $0x1f0] sm:$0xff]  ;;  %v1894_v28 = vld [vmem:[#allocation14 + $0x5e0] sm:$0xff]  ;;  %12659 = vst [vmem:[#allocation84_spill] sm:$0xff] %v11453_v63  ;;  %v11456_v52 = vpop.f32.mrb[25].mxu0 }
 0x28d   :  { %8772 = vmatpush3.bf16.msra.mxu0 %v8771_v13  ;;  %1687 = vmatprep.mubr.f32.mxu0 %v12658_v3  ;;  %v2059_v13 = vld [vmem:[#allocation14 + $0xb08] sm:$0xff]  ;;  %12660 = vst [vmem:[#allocation85_spill] sm:$0xff] %v11456_v52  ;;  %v8781_v14 = vpack.c.bf16 %v1901_v7, %v1894_v28  ;;  %v2080_v52 = vld [vmem:[#allocation14 + $0xbb0] sm:$0xff]  ;;  %v1922_v28 = vld [vmem:[#allocation14 + $0x6c0] sm:$0xff] }
 0x28e   :  { %8596 = vmatpush1.bf16.msra.mxu1 %v8595_v53  ;;  %8774 = vmatprep.subr.bf16.mxu0 %v8773_v0  ;;  %v8779_v53 = vpack.c.bf16 %v1775_v10, %v1768_v15  ;;  %v8603_v0 = vpack.c.bf16 %v2051_v21, %v2044_v54  ;;  %v8605_v4 = vpack.c.bf16 %v2066_v59, %v2059_v13  ;;  %v252_v7 = vld [vmem:[#allocation2 + $0x28] sm:$0xff]  ;;  %v2072_v54 = vld [vmem:[#allocation14 + $0xb70] sm:$0xff]  ;;  %v1929_v13 = vld [vmem:[#allocation14 + $0x6f8] sm:$0xff] }
 0x28f   :  { %8598 = vmatprep.subr.bf16.mxu1 %v8597_v57  ;;  %v1789_v57 = vld [vmem:[#allocation14 + $0x298] sm:$0xff]  ;;  %v8785_v59 = vpack.c.bf16 %v1915_v17, %v1908_v16  ;;  %v1796_v15 = vld [vmem:[#allocation14 + $0x2d0] sm:$0xff]  ;;  %v1803_v10 = vld [vmem:[#allocation14 + $0x308] sm:$0xff] }
 0x290   :  { %7952 = vmatmul.mubr.msk.f32.gmra.mrb[78].mxu0 %vm1586_vm1, %v250_v35  ;;  %v11459_v35 = vpop.f32.mrb[26].mxu0  ;;  %v2079_v21 = vld [vmem:[#allocation14 + $0xba8] sm:$0xff]  ;;  %v2048_v16 = vld [vmem:[#allocation14 + $0xab0] sm:$0xff] }
 0x291   :  { %8776 = vmatpush3.bf16.msra.mxu0 %v8775_v43  ;;  %1693 = vmatprep.mubr.f32.mxu0 %v12658_v3  ;;  %12661 = vst [vmem:[#allocation86_spill] sm:$0xff] %v11459_v35  ;;  %v2073_v43 = vld [vmem:[#allocation14 + $0xb78] sm:$0xff]  ;;  %v11462_v63 = vpop.f32.mrb[27].mxu0  ;;  %v2055_v17 = vld [vmem:[#allocation14 + $0xae8] sm:$0xff] }
 0x292   :  { %8600 = vmatpush1.bf16.msra.mxu1 %v8599_v29  ;;  %8778 = vmatprep.subr.bf16.mxu0 %v8777_v46  ;;  %12662 = vst [vmem:[#allocation87_spill] sm:$0xff] %v11462_v63  ;;  %v8783_v29 = vpack.c.bf16 %v1789_v57, %v1782_v22  ;;  %v8607_v46 = vpack.c.bf16 %v2065_v25, %v2058_v2  ;;  %v2094_v63 = vld [vmem:[#allocation14 + $0xc20] sm:$0xff]  ;;  %v1817_v57 = vld [vmem:[#allocation14 + $0x378] sm:$0xff] }
 0x293   :  { %8602 = vmatprep.subr.bf16.mxu1 %v8601_v1  ;;  %v8609_v1 = vpack.c.bf16 %v2080_v52, %v2073_v43  ;;  %v8789_v2 = vpack.c.bf16 %v1929_v13, %v1922_v28  ;;  %v2086_v52 = vld [vmem:[#allocation14 + $0xbe0] sm:$0xff]  ;;  %v2093_v25 = vld [vmem:[#allocation14 + $0xc18] sm:$0xff] }
 0x294   :  { %7953 = vmatmul.mubr.msk.f32.gmra.mrb[80].mxu0 %vm1586_vm1, %v251_v19  ;;  %v11465_v19 = vpop.f32.mrb[28].mxu0  ;;  %v1810_v22 = vld [vmem:[#allocation14 + $0x340] sm:$0xff]  ;;  %v2069_v13 = vld [vmem:[#allocation14 + $0xb58] sm:$0xff] }
 0x295   :  { %8780 = vmatpush3.bf16.msra.mxu0 %v8779_v53  ;;  %1699 = vmatprep.mubr.f32.mxu0 %v12658_v3  ;;  %12663 = vst [vmem:[#allocation88_spill] sm:$0xff] %v11465_v19  ;;  %v2087_v53 = vld [vmem:[#allocation14 + $0xbe8] sm:$0xff]  ;;  %v11468_v35 = vpop.f32.mrb[29].mxu0  ;;  %v2062_v28 = vld [vmem:[#allocation14 + $0xb20] sm:$0xff] }
 0x296   :  { %8604 = vmatpush1.bf16.msra.mxu1 %v8603_v0  ;;  %8782 = vmatprep.subr.bf16.mxu0 %v8781_v14  ;;  %12664 = vst [vmem:[#allocation89_spill] sm:$0xff] %v11468_v35  ;;  %v8787_v0 = vpack.c.bf16 %v1803_v10, %v1796_v15  ;;  %v8611_v14 = vpack.c.bf16 %v2079_v21, %v2072_v54  ;;  %v11471_v43 = vpop.f32.mrb[30].mxu0  ;;  %v2108_v35 = vld [vmem:[#allocation14 + $0xc90] sm:$0xff]  ;;  %v1943_v21 = vld [vmem:[#allocation14 + $0x768] sm:$0xff]  ;;  %v2122_v19 = vld [vmem:[#allocation14 + $0xd00] sm:$0xff] }
 0x297   :  { %8606 = vmatprep.subr.bf16.mxu1 %v8605_v4  ;;  %v8613_v4 = vpack.c.bf16 %v2094_v63, %v2087_v53  ;;  %12665 = vst [vmem:[#allocation90_spill] sm:$0xff] %v11471_v43  ;;  %v8791_v15 = vpack.c.bf16 %v1817_v57, %v1810_v22  ;;  %v2100_v54 = vld [vmem:[#allocation14 + $0xc50] sm:$0xff]  ;;  %v2115_v43 = vld [vmem:[#allocation14 + $0xcc8] sm:$0xff]  ;;  %v1950_v22 = vld [vmem:[#allocation14 + $0x7a0] sm:$0xff] }
 0x298   :  { %7954 = vmatmul.mubr.msk.f32.gmra.mrb[82].mxu0 %vm1586_vm1, %v252_v7  ;;  %v2101_v7 = vld [vmem:[#allocation14 + $0xc58] sm:$0xff]  ;;  %v1936_v10 = vld [vmem:[#allocation14 + $0x730] sm:$0xff] }
 0x299   :  { %8784 = vmatpush3.bf16.msra.mxu0 %v8783_v29  ;;  %2824 = vmatprep.mubr.f32.mxu0 %v11193_v38  ;;  %v11473_v29 = vpop.f32.mrb[31].mxu0  ;;  %v8617_v63 = vpack.c.bf16 %v2108_v35, %v2101_v7  ;;  %v1957_v57 = vld [vmem:[#allocation14 + $0x7d8] sm:$0xff]  ;;  %v8621_v35 = vpack.c.bf16 %v2122_v19, %v2115_v43  ;;  %v2128_v19 = vld [vmem:[#allocation14 + $0xd30] sm:$0xff] }
 0x29a   :  { %8608 = vmatpush1.bf16.msra.mxu1 %v8607_v46  ;;  %8786 = vmatprep.subr.bf16.mxu0 %v8785_v59  ;;  %12666 = vst [vmem:[#allocation91_spill] sm:$0xff] %v11473_v29  ;;  %v8615_v46 = vpack.c.bf16 %v2093_v25, %v2086_v52  ;;  %v8793_v59 = vpack.c.bf16 %v2055_v17, %v2048_v16  ;;  %v11475_v53 = vpop.f32.mrb[32].mxu0  ;;  %v2114_v52 = vld [vmem:[#allocation14 + $0xcc0] sm:$0xff]  ;;  %v2076_v25 = vld [vmem:[#allocation14 + $0xb90] sm:$0xff]  ;;  %v2083_v16 = vld [vmem:[#allocation14 + $0xbc8] sm:$0xff] }
 0x29b   :  { %8610 = vmatprep.subr.bf16.mxu1 %v8609_v1  ;;  %v2107_v1 = vld [vmem:[#allocation14 + $0xc88] sm:$0xff]  ;;  %12667 = vst [vmem:[#allocation92_spill] sm:$0xff] %v11475_v53  ;;  %v11477_v50 = vpop.f32.mrb[33].mxu0  ;;  %v2129_v7 = vld [vmem:[#allocation14 + $0xd38] sm:$0xff]  ;;  %v1964_v43 = vld [vmem:[#allocation14 + $0x810] sm:$0xff] }
 0x29c   :  { %12668 = vst [vmem:[#allocation93_spill] sm:$0xff] %v11477_v50  ;;  %v11479_v17 = vpop.f32.mrb[34].mxu0  ;;  %v2136_v50 = vld [vmem:[#allocation14 + $0xd70] sm:$0xff]  ;;  %v2981_v53 = vld [vmem:[#allocation16 + $0x98] sm:$0xff] }
 0x29d   :  { %8788 = vmatpush3.bf16.msra.mxu0 %v8787_v0  ;;  %v8795_v0 = vpack.c.bf16 %v1943_v21, %v1936_v10  ;;  %12669 = vst [vmem:[#allocation94_spill] sm:$0xff] %v11479_v17  ;;  %v1971_v10 = vld [vmem:[#allocation14 + $0x848] sm:$0xff]  ;;  %v8625_v21 = vpack.c.bf16 %v2136_v50, %v2129_v7  ;;  %v2150_v17 = vld [vmem:[#allocation14 + $0xde0] sm:$0xff] }
 0x29e   :  { %8612 = vmatpush1.bf16.msra.mxu1 %v8611_v14  ;;  %8790 = vmatprep.subr.bf16.mxu0 %v8789_v2  ;;  %v8619_v14 = vpack.c.bf16 %v2107_v1, %v2100_v54  ;;  %v8797_v2 = vpack.c.bf16 %v2069_v13, %v2062_v28  ;;  %v8801_v54 = vpack.c.bf16 %v2083_v16, %v2076_v25  ;;  %v2090_v1 = vld [vmem:[#allocation14 + $0xc00] sm:$0xff]  ;;  %v2097_v28 = vld [vmem:[#allocation14 + $0xc38] sm:$0xff]  ;;  %v2104_v25 = vld [vmem:[#allocation14 + $0xc70] sm:$0xff] }
 0x29f   :  { %8614 = vmatprep.subr.bf16.mxu1 %v8613_v4  ;;  %v2121_v4 = vld [vmem:[#allocation14 + $0xcf8] sm:$0xff]  ;;  %v2142_v50 = vld [vmem:[#allocation14 + $0xda0] sm:$0xff]  ;;  %v2111_v16 = vld [vmem:[#allocation14 + $0xca8] sm:$0xff] }
 0x2a1   :  { %8792 = vmatpush3.bf16.msra.mxu0 %v8791_v15  ;;  %v11482_v15 = vpop.f32.mrb[35].mxu0 }
 0x2a2   :  { %8616 = vmatpush1.bf16.msra.mxu1 %v8615_v46  ;;  %8794 = vmatprep.subr.bf16.mxu0 %v8793_v59  ;;  %12670 = vst [vmem:[#allocation95_spill] sm:$0xff] %v11482_v15  ;;  %v8799_v46 = vpack.c.bf16 %v1957_v57, %v1950_v22  ;;  %v8623_v59 = vpack.c.bf16 %v2121_v4, %v2114_v52  ;;  %v11485_v13 = vpop.f32.mrb[36].mxu0  ;;  %v2143_v15 = vld [vmem:[#allocation14 + $0xda8] sm:$0xff]  ;;  %v1978_v22 = vld [vmem:[#allocation14 + $0x880] sm:$0xff]  ;;  %v1985_v57 = vld [vmem:[#allocation14 + $0x8b8] sm:$0xff] }
 0x2a3   :  { %8618 = vmatprep.subr.bf16.mxu1 %v8617_v63  ;;  %v2135_v63 = vld [vmem:[#allocation14 + $0xd68] sm:$0xff]  ;;  %12671 = vst [vmem:[#allocation96_spill] sm:$0xff] %v11485_v13  ;;  %v8805_v52 = vpack.c.bf16 %v2097_v28, %v2090_v1  ;;  %v2149_v4 = vld [vmem:[#allocation14 + $0xdd8] sm:$0xff]  ;;  %v1718_v13 = vld [vmem:[#allocation14 + $0x60] sm:$0xff] }
 0x2a4   :  { %2825 = vmatmul.mubr.f32.vlgmr.msra.gmra.mrb[84].mxu0 %v11199_v41  ;;  %v1725_v1 = vld [vmem:[#allocation14 + $0x98] sm:$0xff]  ;;  %v1732_v28 = vld [vmem:[#allocation14 + $0xd0] sm:$0xff] }
 0x2a5   :  { %2829 = vmatprep.mubr.f32.mxu0 %v11208_v24  ;;  %8796 = vmatpush3.bf16.msra.mxu0 %v8795_v0  ;;  %v11488_v0 = vpop.f32.mrb[37].mxu0 }
 0x2a6   :  { %8620 = vmatpush1.bf16.msra.mxu1 %v8619_v14  ;;  %8798 = vmatprep.subr.bf16.mxu0 %v8797_v2  ;;  %12672 = vst [vmem:[#allocation97_spill] sm:$0xff] %v11488_v0  ;;  %v8803_v14 = vpack.c.bf16 %v1971_v10, %v1964_v43  ;;  %v8627_v2 = vpack.c.bf16 %v2135_v63, %v2128_v19  ;;  %v11491_v7 = vpop.f32.mrb[38].mxu0  ;;  %v1711_v0 = vld [vmem:[#allocation14 + $0x28] sm:$0xff]  ;;  %v1717_v43 = vld [vmem:[#allocation14 + $0x58] sm:$0xff]  ;;  %v1992_v10 = vld [vmem:[#allocation14 + $0x8f0] sm:$0xff] }
 0x2a7   :  { %8622 = vmatprep.subr.bf16.mxu1 %v8621_v35  ;;  %v8629_v35 = vpack.c.bf16 %v2150_v17, %v2143_v15  ;;  %12673 = vst [vmem:[#allocation98_spill] sm:$0xff] %v11491_v7  ;;  %v8809_v19 = vpack.c.bf16 %v2111_v16, %v2104_v25  ;;  %v8633_v17 = vpack.c.bf16 %v1718_v13, %v1711_v0  ;;  %v1710_v15 = vld [vmem:[#allocation14 + $0x20] sm:$0xff]  ;;  %v1999_v63 = vld [vmem:[#allocation14 + $0x928] sm:$0xff]  ;;  %v2013_v25 = vld [vmem:[#allocation14 + $0x998] sm:$0xff] }
 0x2a8   :  { %2830 = vmatmul.mubr.f32.gmra.mrb[86].mxu0 %v11203_v47  ;;  %v8635_v13 = vpack.c.bf16 %v1717_v43, %v1710_v15  ;;  %v8811_v0 = vpack.c.bf16 %v1999_v63, %v1992_v10  ;;  %v1739_v16 = vld [vmem:[#allocation14 + $0x108] sm:$0xff]  ;;  %v1738_v10 = vld [vmem:[#allocation14 + $0x100] sm:$0xff]  ;;  %v1745_v63 = vld [vmem:[#allocation14 + $0x138] sm:$0xff] }
 0x2a9   :  { %2834 = vmatprep.mubr.f32.mxu0 %v11221_v30  ;;  %8800 = vmatpush3.bf16.msra.mxu0 %v8799_v46  ;;  %v11494_v46 = vpop.f32.mrb[39].mxu0  ;;  %v2976_v7 = vld [vmem:[#allocation16 + $0x70] sm:$0xff] }
 0x2aa   :  { %8624 = vmatpush1.bf16.msra.mxu1 %v8623_v59  ;;  %8802 = vmatprep.subr.bf16.mxu0 %v8801_v54  ;;  %12674 = vst [vmem:[#allocation99_spill] sm:$0xff] %v11494_v46  ;;  %v8807_v59 = vpack.c.bf16 %v1985_v57, %v1978_v22  ;;  %v8631_v54 = vpack.c.bf16 %v2149_v4, %v2142_v50  ;;  %v1724_v50 = vld [vmem:[#allocation14 + $0x90] sm:$0xff]  ;;  %v1731_v22 = vld [vmem:[#allocation14 + $0xc8] sm:$0xff]  ;;  %v2006_v57 = vld [vmem:[#allocation14 + $0x960] sm:$0xff] }
 0x2ab   :  { %8626 = vmatprep.subr.bf16.mxu1 %v8625_v21  ;;  %v11497_v21 = vpop.f32.mrb[40].mxu0  ;;  %v8815_v15 = vpack.c.bf16 %v2013_v25, %v2006_v57  ;;  %v1759_v57 = vld [vmem:[#allocation14 + $0x1a8] sm:$0xff] }
 0x2ac   :  { %2835 = vmatmul.mubr.f32.gmra.mrb[88].mxu0 %v11216_v58  ;;  %12675 = vst [vmem:[#allocation100_spill] sm:$0xff] %v11497_v21  ;;  %v11500_v46 = vpop.f32.mrb[41].mxu0 }
 0x2ad   :  { %2839 = vmatprep.mubr.f32.mxu0 %v11234_v31  ;;  %8804 = vmatpush3.bf16.msra.mxu0 %v8803_v14  ;;  %12676 = vst [vmem:[#allocation101_spill] sm:$0xff] %v11500_v46  ;;  %v2118_v14 = vld [vmem:[#allocation14 + $0xce0] sm:$0xff] }
 0x2ae   :  { %8628 = vmatpush1.bf16.msra.mxu1 %v8627_v2  ;;  %8806 = vmatprep.subr.bf16.mxu0 %v8805_v52  ;;  %v2125_v2 = vld [vmem:[#allocation14 + $0xd18] sm:$0xff]  ;;  %v8637_v52 = vpack.c.bf16 %v1732_v28, %v1725_v1  ;;  %v1746_v46 = vld [vmem:[#allocation14 + $0x140] sm:$0xff]  ;;  %v2020_v1 = vld [vmem:[#allocation14 + $0x9d0] sm:$0xff] }
 0x2af   :  { %8630 = vmatprep.subr.bf16.mxu1 %v8629_v35  ;;  %v11503_v35 = vpop.f32.mrb[42].mxu0  ;;  %v8813_v4 = vpack.c.bf16 %v2125_v2, %v2118_v14  ;;  %v8641_v43 = vpack.c.bf16 %v1746_v46, %v1739_v16  ;;  %v2027_v2 = vld [vmem:[#allocation14 + $0xa08] sm:$0xff]  ;;  %v2153_v46 = vld [vmem:[#allocation14 + $0xdf8] sm:$0xff] }
 0x2b0   :  { %2840 = vmatmul.mubr.f32.gmra.mrb[90].mxu0 %v11229_v6  ;;  %12677 = vst [vmem:[#allocation102_spill] sm:$0xff] %v11503_v35  ;;  %v1760_v35 = vld [vmem:[#allocation14 + $0x1b0] sm:$0xff] }
 0x2b1   :  { %2844 = vmatprep.mubr.f32.mxu0 %v11247_v32  ;;  %8808 = vmatpush3.bf16.msra.mxu0 %v8807_v59  ;;  %v11506_v59 = vpop.f32.mrb[43].mxu0 }
 0x2b2   :  { %8632 = vmatpush1.bf16.msra.mxu1 %v8631_v54  ;;  %8810 = vmatprep.subr.bf16.mxu0 %v8809_v19  ;;  %12678 = vst [vmem:[#allocation103_spill] sm:$0xff] %v11506_v59  ;;  %v2132_v54 = vld [vmem:[#allocation14 + $0xd50] sm:$0xff]  ;;  %v2139_v19 = vld [vmem:[#allocation14 + $0xd88] sm:$0xff]  ;;  %v11511_v28 = vpop.f32.mrb[44].mxu0  ;;  %v1753_v59 = vld [vmem:[#allocation14 + $0x178] sm:$0xff] }
 0x2b3   :  { %8634 = vmatprep.subr.bf16.mxu1 %v8633_v17  ;;  %v8639_v17 = vpack.c.bf16 %v1731_v22, %v1724_v50  ;;  %12679 = vst [vmem:[#allocation104_spill] sm:$0xff] %v11511_v28  ;;  %v8817_v14 = vpack.c.bf16 %v2139_v19, %v2132_v54  ;;  %v11514_v21 = vpop.f32.mrb[45].mxu0  ;;  %v8645_v50 = vpack.c.bf16 %v1760_v35, %v1753_v59  ;;  %v1752_v22 = vld [vmem:[#allocation14 + $0x170] sm:$0xff]  ;;  %v2041_v54 = vld [vmem:[#allocation14 + $0xa78] sm:$0xff]  ;;  %v1767_v19 = vld [vmem:[#allocation14 + $0x1e8] sm:$0xff] }
 0x2b4   :  { %2845 = vmatmul.mubr.f32.gmra.mrb[92].mxu0 %v11242_v18  ;;  %12680 = vst [vmem:[#allocation105_spill] sm:$0xff] %v11514_v21  ;;  %v11519_v25 = vpop.f32.mrb[46].mxu0  ;;  %v1774_v21 = vld [vmem:[#allocation14 + $0x220] sm:$0xff]  ;;  %v8647_v35 = vpack.c.bf16 %v1759_v57, %v1752_v22 }
 0x2b5   :  { %2522 = vmatmul.mubr.f32.vlgmr.msra.gmra.mrb[84].mxu1 %v11315_v27  ;;  %2849 = vmatprep.mubr.f32.mxu0 %v11260_v33  ;;  %12681 = vst [vmem:[#allocation106_spill] sm:$0xff] %v11519_v25  ;;  %v11521_v28 = vpop.f32.mrb[47].mxu0  ;;  %v2971_v25 = vld [vmem:[#allocation16 + $0x48] sm:$0xff] }
 0x2b6   :  { %2527 = vmatprep.mubr.f32.mxu1 %v11318_v45  ;;  %8636 = vmatpush1.bf16.msra.mxu1 %v8635_v13  ;;  %v2146_v13 = vld [vmem:[#allocation14 + $0xdc0] sm:$0xff]  ;;  %12682 = vst [vmem:[#allocation107_spill] sm:$0xff] %v11521_v28 }
 0x2b7   :  { %8812 = vmatpush3.bf16.msra.mxu0 %v8811_v0  ;;  %8638 = vmatprep.subr.bf16.mxu1 %v8637_v52  ;;  %v8643_v0 = vpack.c.bf16 %v1745_v63, %v1738_v10  ;;  %v8819_v52 = vpack.c.bf16 %v2027_v2, %v2020_v1  ;;  %v8821_v16 = vpack.c.bf16 %v2153_v46, %v2146_v13  ;;  %v3051_v10 = vld [vmem:[#allocation16 + $0x2c8] sm:$0xff]  ;;  %v1766_v63 = vld [vmem:[#allocation14 + $0x1e0] sm:$0xff]  ;;  %v1773_v1 = vld [vmem:[#allocation14 + $0x218] sm:$0xff] }
 0x2b8   :  { %2850 = vmatmul.mubr.f32.gmra.mrb[94].mxu0 %v11255_v34  ;;  %8814 = vmatprep.subr.bf16.mxu0 %v8813_v4  ;;  %v2034_v4 = vld [vmem:[#allocation14 + $0xa40] sm:$0xff]  ;;  %v1788_v46 = vld [vmem:[#allocation14 + $0x290] sm:$0xff] }
 0x2b9   :  { %2528 = vmatmul.mubr.f32.gmra.mrb[86].mxu1 %v11327_v37  ;;  %2919 = vmatprep.mubr.f32.mxu0 %v11263_v39  ;;  %v8823_v59 = vpack.c.bf16 %v2041_v54, %v2034_v4  ;;  %v2966_v28 = vld [vmem:[#allocation16 + $0x20] sm:$0xff]  ;;  %v1780_v4 = vld [vmem:[#allocation14 + $0x250] sm:$0xff]  ;;  %v1795_v54 = vld [vmem:[#allocation14 + $0x2c8] sm:$0xff] }
 0x2ba   :  { %2533 = vmatprep.mubr.f32.mxu1 %v11330_v9  ;;  %8640 = vmatpush1.bf16.msra.mxu1 %v8639_v17  ;;  %v3046_v17 = vld [vmem:[#allocation16 + $0x2a0] sm:$0xff] }
 0x2bb   :  { %8816 = vmatpush3.bf16.msra.mxu0 %v8815_v15  ;;  %8642 = vmatprep.subr.bf16.mxu1 %v8641_v43  ;;  %v8649_v15 = vpack.c.bf16 %v1774_v21, %v1767_v19  ;;  %v11525_v43 = vpop.f32.mrb[48].mxu0  ;;  %v8953_v2 = vpack.c.bf16 %v3051_v10, %v3046_v17  ;;  %v8955_v19 = vpack.c.bf16 %v2971_v25, %v2966_v28  ;;  %v1802_v10 = vld [vmem:[#allocation14 + $0x300] sm:$0xff] }
 0x2bc   :  { %8818 = vmatprep.subr.bf16.mxu0 %v8817_v14  ;;  %12683 = vst [vmem:[#allocation108_spill] sm:$0xff] %v11525_v43  ;;  %v1781_v14 = vld [vmem:[#allocation14 + $0x258] sm:$0xff]  ;;  %v11527_v13 = vpop.f32.mrb[49].mxu0 }
 0x2bd   :  { %2534 = vmatmul.mubr.f32.gmra.mrb[88].mxu1 %v11339_v49  ;;  %12684 = vst [vmem:[#allocation109_spill] sm:$0xff] %v11527_v13  ;;  %v11531_v21 = vpop.f32.mrb[50].mxu0  ;;  %v8653_v57 = vpack.c.bf16 %v1788_v46, %v1781_v14  ;;  %v1794_v14 = vld [vmem:[#allocation14 + $0x2c0] sm:$0xff]  ;;  %v1809_v46 = vld [vmem:[#allocation14 + $0x338] sm:$0xff] }
 0x2be   :  { %2539 = vmatprep.mubr.f32.mxu1 %v11342_v48  ;;  %8644 = vmatpush1.bf16.msra.mxu1 %v8643_v0  ;;  %v3056_v0 = vld [vmem:[#allocation16 + $0x2f0] sm:$0xff]  ;;  %12685 = vst [vmem:[#allocation110_spill] sm:$0xff] %v11531_v21  ;;  %v11533_v22 = vpop.f32.mrb[51].mxu0  ;;  %v1885_v21 = vld [vmem:[#allocation14 + $0x598] sm:$0xff] }
 0x2bf   :  { %8820 = vmatpush3.bf16.msra.mxu0 %v8819_v52  ;;  %8646 = vmatprep.subr.bf16.mxu1 %v8645_v50  ;;  %v3061_v52 = vld [vmem:[#allocation16 + $0x318] sm:$0xff]  ;;  %v8651_v50 = vpack.c.bf16 %v1773_v1, %v1766_v63  ;;  %12686 = vst [vmem:[#allocation111_spill] sm:$0xff] %v11533_v22  ;;  %v11535_v17 = vpop.f32.mrb[52].mxu0  ;;  %v8657_v1 = vpack.c.bf16 %v1802_v10, %v1795_v54  ;;  %v1815_v10 = vld [vmem:[#allocation14 + $0x368] sm:$0xff] }
 0x2c0   :  { %8822 = vmatprep.subr.bf16.mxu0 %v8821_v16  ;;  %v1787_v16 = vld [vmem:[#allocation14 + $0x288] sm:$0xff]  ;;  %12687 = vst [vmem:[#allocation112_spill] sm:$0xff] %v11535_v17  ;;  %v11538_v29 = vpop.f32.mrb[53].mxu0 }
 0x2c1   :  { %2540 = vmatmul.mubr.f32.gmra.mrb[90].mxu1 %v11351_v60  ;;  %12688 = vst [vmem:[#allocation113_spill] sm:$0xff] %v11538_v29  ;;  %v11542_v63 = vpop.f32.mrb[54].mxu0  ;;  %v8655_v28 = vpack.c.bf16 %v1787_v16, %v1780_v4  ;;  %v1816_v29 = vld [vmem:[#allocation14 + $0x370] sm:$0xff]  ;;  %v2991_v17 = vld [vmem:[#allocation16 + $0xe8] sm:$0xff]  ;;  %v3081_v4 = vld [vmem:[#allocation16 + $0x3b8] sm:$0xff] }
 0x2c2   :  { %2545 = vmatprep.mubr.f32.mxu1 %v11354_v12  ;;  %8648 = vmatpush1.bf16.msra.mxu1 %v8647_v35  ;;  %v8957_v35 = vpack.c.bf16 %v3061_v52, %v3056_v0  ;;  %12689 = vst [vmem:[#allocation114_spill] sm:$0xff] %v11542_v63  ;;  %v11545_v25 = vpop.f32.mrb[55].mxu0  ;;  %v8959_v0 = vpack.c.bf16 %v2981_v53, %v2976_v7 }
 0x2c3   :  { %8824 = vmatpush3.bf16.msra.mxu0 %v8823_v59  ;;  %8650 = vmatprep.subr.bf16.mxu1 %v8649_v15  ;;  %v3066_v59 = vld [vmem:[#allocation16 + $0x340] sm:$0xff]  ;;  %v3071_v15 = vld [vmem:[#allocation16 + $0x368] sm:$0xff]  ;;  %12690 = vst [vmem:[#allocation115_spill] sm:$0xff] %v11545_v25  ;;  %v11547_v52 = vpop.f32.mrb[56].mxu0  ;;  %v8661_v54 = vpack.c.bf16 %v1816_v29, %v1809_v46 }
 0x2c4   :  { %8954 = vmatprep.subr.bf16.mxu0 %v8953_v2  ;;  %v1801_v2 = vld [vmem:[#allocation14 + $0x2f8] sm:$0xff]  ;;  %12691 = vst [vmem:[#allocation116_spill] sm:$0xff] %v11547_v52  ;;  %v8961_v63 = vpack.c.bf16 %v3071_v15, %v3066_v59  ;;  %v11550_v22 = vpop.f32.mrb[57].mxu0  ;;  %v2996_v52 = vld [vmem:[#allocation16 + $0x110] sm:$0xff]  ;;  %v1878_v25 = vld [vmem:[#allocation14 + $0x560] sm:$0xff] }
 0x2c5   :  { %2546 = vmatmul.mubr.f32.gmra.mrb[92].mxu1 %v11363_v8  ;;  %12692 = vst [vmem:[#allocation117_spill] sm:$0xff] %v11550_v22  ;;  %v11554_v16 = vpop.f32.mrb[58].mxu0  ;;  %v8659_v53 = vpack.c.bf16 %v1801_v2, %v1794_v14  ;;  %v3086_v14 = vld [vmem:[#allocation16 + $0x3e0] sm:$0xff]  ;;  %v3091_v2 = vld [vmem:[#allocation16 + $0x408] sm:$0xff] }
 0x2c6   :  { %2920 = vmatmul.mubr.f32.vlgmr.msra.gmra.mrb[96].mxu0 %v11315_v27  ;;  %2551 = vmatprep.mubr.f32.mxu1 %v11366_v62  ;;  %12693 = vst [vmem:[#allocation118_spill] sm:$0xff] %v11554_v16  ;;  %v11557_v7 = vpop.f32.mrb[59].mxu0  ;;  %v3001_v16 = vld [vmem:[#allocation16 + $0x138] sm:$0xff] }
 0x2c7   :  { %8652 = vmatpush1.bf16.msra.mxu1 %v8651_v50  ;;  %2924 = vmatprep.mubr.f32.mxu0 %v11318_v45  ;;  %v2986_v50 = vld [vmem:[#allocation16 + $0xc0] sm:$0xff]  ;;  %12694 = vst [vmem:[#allocation119_spill] sm:$0xff] %v11557_v7  ;;  %v11559_v15 = vpop.f32.mrb[60].mxu0 }
 0x2c8   :  { %8654 = vmatprep.subr.bf16.mxu1 %v8653_v57  ;;  %8956 = vmatpush3.bf16.msra.mxu0 %v8955_v19  ;;  %v3076_v57 = vld [vmem:[#allocation16 + $0x390] sm:$0xff]  ;;  %v8963_v59 = vpack.c.bf16 %v2991_v17, %v2986_v50  ;;  %12695 = vst [vmem:[#allocation120_spill] sm:$0xff] %v11559_v15  ;;  %v1837_v50 = vld [vmem:[#allocation14 + $0x418] sm:$0xff]  ;;  %v8969_v15 = vpack.c.bf16 %v3091_v2, %v3086_v14  ;;  %v3006_v7 = vld [vmem:[#allocation16 + $0x160] sm:$0xff] }
 0x2c9   :  { %2552 = vmatmul.mubr.f32.gmra.mrb[94].mxu1 %v11375_v20  ;;  %8958 = vmatprep.subr.bf16.mxu0 %v8957_v35  ;;  %v1808_v19 = vld [vmem:[#allocation14 + $0x330] sm:$0xff]  ;;  %v1823_v35 = vld [vmem:[#allocation14 + $0x3a8] sm:$0xff]  ;;  %v8965_v22 = vpack.c.bf16 %v3081_v4, %v3076_v57  ;;  %v8967_v57 = vpack.c.bf16 %v3001_v16, %v2996_v52 }
 0x2ca   :  { %2925 = vmatmul.mubr.f32.gmra.mrb[98].mxu0 %v11327_v37  ;;  %2622 = vmatprep.mubr.f32.mxu1 %v11193_v38  ;;  %v1830_v38 = vld [vmem:[#allocation14 + $0x3e0] sm:$0xff]  ;;  %v8663_v29 = vpack.c.bf16 %v1815_v10, %v1808_v19  ;;  %v3096_v19 = vld [vmem:[#allocation16 + $0x430] sm:$0xff]  ;;  %v3101_v10 = vld [vmem:[#allocation16 + $0x458] sm:$0xff] }
 0x2cb   :  { %8656 = vmatpush1.bf16.msra.mxu1 %v8655_v28  ;;  %2929 = vmatprep.mubr.f32.mxu0 %v11330_v9  ;;  %v11561_v28 = vpop.f32.mrb[61].mxu0  ;;  %v8665_v46 = vpack.c.bf16 %v1830_v38, %v1823_v35  ;;  %v1851_v38 = vld [vmem:[#allocation14 + $0x488] sm:$0xff] }
 0x2cc   :  { %8658 = vmatprep.subr.bf16.mxu1 %v8657_v1  ;;  %8960 = vmatpush3.bf16.msra.mxu0 %v8959_v0  ;;  %12696 = vst [vmem:[#allocation121_spill] sm:$0xff] %v11561_v28  ;;  %v11564_v1 = vpop.f32.mrb[62].mxu0  ;;  %v1829_v0 = vld [vmem:[#allocation14 + $0x3d8] sm:$0xff]  ;;  %v1844_v28 = vld [vmem:[#allocation14 + $0x450] sm:$0xff] }
 0x2cd   :  { %8962 = vmatprep.subr.bf16.mxu0 %v8961_v63  ;;  %12697 = vst [vmem:[#allocation122_spill] sm:$0xff] %v11564_v1  ;;  %v11567_v17 = vpop.f32.mrb[63].mxu0  ;;  %v1822_v63 = vld [vmem:[#allocation14 + $0x3a0] sm:$0xff]  ;;  %v3011_v1 = vld [vmem:[#allocation16 + $0x188] sm:$0xff]  ;;  %v8669_v16 = vpack.c.bf16 %v1844_v28, %v1837_v50  ;;  %v1857_v50 = vld [vmem:[#allocation14 + $0x4b8] sm:$0xff] }
 0x2ce   :  { %2930 = vmatmul.mubr.f32.gmra.mrb[100].mxu0 %v11339_v49  ;;  %12698 = vst [vmem:[#allocation123_spill] sm:$0xff] %v11567_v17  ;;  %v11569_v4 = vpop.f32.mrb[64].mxu0  ;;  %v8667_v35 = vpack.c.bf16 %v1829_v0, %v1822_v63  ;;  %v8971_v14 = vpack.c.bf16 %v3011_v1, %v3006_v7  ;;  %v3016_v17 = vld [vmem:[#allocation16 + $0x1b0] sm:$0xff]  ;;  %v3106_v63 = vld [vmem:[#allocation16 + $0x480] sm:$0xff]  ;;  %v3111_v0 = vld [vmem:[#allocation16 + $0x4a8] sm:$0xff] }
 0x2cf   :  { %8660 = vmatpush1.bf16.msra.mxu1 %v8659_v53  ;;  %2934 = vmatprep.mubr.f32.mxu0 %v11342_v48  ;;  %12699 = vst [vmem:[#allocation124_spill] sm:$0xff] %v11569_v4  ;;  %v11571_v53 = vpop.f32.mrb[65].mxu0  ;;  %v8973_v4 = vpack.c.bf16 %v3101_v10, %v3096_v19  ;;  %v1872_v10 = vld [vmem:[#allocation14 + $0x530] sm:$0xff] }
 0x2d0   :  { %8662 = vmatprep.subr.bf16.mxu1 %v8661_v54  ;;  %8964 = vmatpush3.bf16.msra.mxu0 %v8963_v59  ;;  %12700 = vst [vmem:[#allocation125_spill] sm:$0xff] %v11571_v53  ;;  %v11574_v54 = vpop.f32.mrb[66].mxu0  ;;  %v1843_v59 = vld [vmem:[#allocation14 + $0x448] sm:$0xff]  ;;  %v1858_v53 = vld [vmem:[#allocation14 + $0x4c0] sm:$0xff] }
 0x2d1   :  { %8966 = vmatprep.subr.bf16.mxu0 %v8965_v22  ;;  %12701 = vst [vmem:[#allocation126_spill] sm:$0xff] %v11574_v54  ;;  %v11577_v52 = vpop.f32.mrb[67].mxu0  ;;  %v1836_v22 = vld [vmem:[#allocation14 + $0x410] sm:$0xff]  ;;  %v3021_v54 = vld [vmem:[#allocation16 + $0x1d8] sm:$0xff]  ;;  %v8673_v1 = vpack.c.bf16 %v1858_v53, %v1851_v38  ;;  %v1871_v53 = vld [vmem:[#allocation14 + $0x528] sm:$0xff] }
 0x2d2   :  { %2935 = vmatmul.mubr.f32.gmra.mrb[102].mxu0 %v11351_v60  ;;  %12702 = vst [vmem:[#allocation127_spill] sm:$0xff] %v11577_v52  ;;  %v11579_v2 = vpop.f32.mrb[68].mxu0  ;;  %v8671_v28 = vpack.c.bf16 %v1843_v59, %v1836_v22  ;;  %v8975_v19 = vpack.c.bf16 %v3021_v54, %v3016_v17  ;;  %v3031_v52 = vld [vmem:[#allocation16 + $0x228] sm:$0xff]  ;;  %v3041_v54 = vld [vmem:[#allocation16 + $0x278] sm:$0xff] }
 0x2d3   :  { %8664 = vmatpush1.bf16.msra.mxu1 %v8663_v29  ;;  %2939 = vmatprep.mubr.f32.mxu0 %v11354_v12  ;;  %12703 = vst [vmem:[#allocation128_spill] sm:$0xff] %v11579_v2  ;;  %v11581_v29 = vpop.f32.mrb[69].mxu0  ;;  %v3026_v2 = vld [vmem:[#allocation16 + $0x200] sm:$0xff]  ;;  %v1879_v38 = vld [vmem:[#allocation14 + $0x568] sm:$0xff] }
 0x2d4   :  { %8666 = vmatprep.subr.bf16.mxu1 %v8665_v46  ;;  %8968 = vmatpush3.bf16.msra.mxu0 %v8967_v57  ;;  %12704 = vst [vmem:[#allocation129_spill] sm:$0xff] %v11581_v29  ;;  %v11584_v46 = vpop.f32.mrb[70].mxu0  ;;  %v1865_v57 = vld [vmem:[#allocation14 + $0x4f8] sm:$0xff]  ;;  %v8977_v29 = vpack.c.bf16 %v3111_v0, %v3106_v63 }
 0x2d5   :  { %8970 = vmatprep.subr.bf16.mxu0 %v8969_v15  ;;  %12705 = vst [vmem:[#allocation130_spill] sm:$0xff] %v11584_v46  ;;  %v11587_v7 = vpop.f32.mrb[71].mxu0  ;;  %v1850_v15 = vld [vmem:[#allocation14 + $0x480] sm:$0xff]  ;;  %v3121_v46 = vld [vmem:[#allocation16 + $0x4f8] sm:$0xff]  ;;  %v8677_v59 = vpack.c.bf16 %v1872_v10, %v1865_v57 }
 0x2d6   :  { %2940 = vmatmul.mubr.f32.gmra.mrb[104].mxu0 %v11363_v8  ;;  %12706 = vst [vmem:[#allocation131_spill] sm:$0xff] %v11587_v7  ;;  %v8675_v22 = vpack.c.bf16 %v1857_v50, %v1850_v15  ;;  %v8979_v7 = vpack.c.bf16 %v3031_v52, %v3026_v2  ;;  %v1900_v15 = vld [vmem:[#allocation14 + $0x610] sm:$0xff]  ;;  %v8683_v50 = vpack.c.bf16 %v1885_v21, %v1878_v25  ;;  %v1914_v57 = vld [vmem:[#allocation14 + $0x680] sm:$0xff]  ;;  %v1927_v25 = vld [vmem:[#allocation14 + $0x6e8] sm:$0xff] }
 0x2d7   :  { %8668 = vmatpush1.bf16.msra.mxu1 %v8667_v35  ;;  %2944 = vmatprep.mubr.f32.mxu0 %v11366_v62  ;;  %v3116_v35 = vld [vmem:[#allocation16 + $0x4d0] sm:$0xff] }
 0x2d8   :  { %8670 = vmatprep.subr.bf16.mxu1 %v8669_v16  ;;  %8972 = vmatpush3.bf16.msra.mxu0 %v8971_v14  ;;  %v1864_v16 = vld [vmem:[#allocation14 + $0x4f0] sm:$0xff]  ;;  %v1886_v14 = vld [vmem:[#allocation14 + $0x5a0] sm:$0xff]  ;;  %v8981_v17 = vpack.c.bf16 %v3121_v46, %v3116_v35  ;;  %v1907_v46 = vld [vmem:[#allocation14 + $0x648] sm:$0xff] }
 0x2d9   :  { %8974 = vmatprep.subr.bf16.mxu0 %v8973_v4  ;;  %v3036_v4 = vld [vmem:[#allocation16 + $0x250] sm:$0xff]  ;;  %v8679_v63 = vpack.c.bf16 %v1871_v53, %v1864_v16  ;;  %v8681_v0 = vpack.c.bf16 %v1886_v14, %v1879_v38  ;;  %v8689_v10 = vpack.c.bf16 %v1914_v57, %v1907_v46  ;;  %v1906_v35 = vld [vmem:[#allocation14 + $0x640] sm:$0xff]  ;;  %v1935_v38 = vld [vmem:[#allocation14 + $0x728] sm:$0xff] }
 0x2da   :  { %2945 = vmatmul.mubr.f32.gmra.mrb[106].mxu0 %v11375_v20  ;;  %v1892_v2 = vld [vmem:[#allocation14 + $0x5d0] sm:$0xff]  ;;  %v1942_v14 = vld [vmem:[#allocation14 + $0x760] sm:$0xff] }
 0x2db   :  { %8672 = vmatpush1.bf16.msra.mxu1 %v8671_v28  ;;  %v8983_v28 = vpack.c.bf16 %v3041_v54, %v3036_v4  ;;  %v1920_v21 = vld [vmem:[#allocation14 + $0x6b0] sm:$0xff]  ;;  %v8697_v4 = vpack.c.bf16 %v1942_v14, %v1935_v38  ;;  %v1934_v54 = vld [vmem:[#allocation14 + $0x720] sm:$0xff]  ;;  %v2005_v14 = vld [vmem:[#allocation14 + $0x958] sm:$0xff] }
 0x2dc   :  { %8674 = vmatprep.subr.bf16.mxu1 %v8673_v1  ;;  %8976 = vmatpush3.bf16.msra.mxu0 %v8975_v19  ;;  %v1893_v1 = vld [vmem:[#allocation14 + $0x5d8] sm:$0xff]  ;;  %v1990_v38 = vld [vmem:[#allocation14 + $0x8e0] sm:$0xff] }
 0x2dd   :  { %8978 = vmatprep.subr.bf16.mxu0 %v8977_v29  ;;  %v8685_v52 = vpack.c.bf16 %v1900_v15, %v1893_v1  ;;  %v1899_v29 = vld [vmem:[#allocation14 + $0x608] sm:$0xff] }
 0x2de   :  { %v8687_v19 = vpack.c.bf16 %v1899_v29, %v1892_v2  ;;  %v1963_v2 = vld [vmem:[#allocation14 + $0x808] sm:$0xff]  ;;  %v1970_v29 = vld [vmem:[#allocation14 + $0x840] sm:$0xff] }
 0x2df   :  { %8676 = vmatpush1.bf16.msra.mxu1 %v8675_v22  ;;  %v1913_v22 = vld [vmem:[#allocation14 + $0x678] sm:$0xff]  ;;  %v8705_v57 = vpack.c.bf16 %v1970_v29, %v1963_v2 }
 0x2e0   :  { %8678 = vmatprep.subr.bf16.mxu1 %v8677_v59  ;;  %8980 = vmatpush3.bf16.msra.mxu0 %v8979_v7  ;;  %v1921_v7 = vld [vmem:[#allocation14 + $0x6b8] sm:$0xff]  ;;  %v1928_v59 = vld [vmem:[#allocation14 + $0x6f0] sm:$0xff]  ;;  %v8691_v16 = vpack.c.bf16 %v1913_v22, %v1906_v35 }
 0x2e1   :  { %8982 = vmatprep.subr.bf16.mxu0 %v8981_v17  ;;  %v8693_v53 = vpack.c.bf16 %v1928_v59, %v1921_v7  ;;  %v8695_v17 = vpack.c.bf16 %v1927_v25, %v1920_v21  ;;  %v1977_v35 = vld [vmem:[#allocation14 + $0x878] sm:$0xff]  ;;  %v1984_v22 = vld [vmem:[#allocation14 + $0x8b0] sm:$0xff] }
 0x2e2   :  { %v8709_v59 = vpack.c.bf16 %v1984_v22, %v1977_v35 }
 0x2e3   :  { %8680 = vmatpush1.bf16.msra.mxu1 %v8679_v63  ;;  %v1941_v63 = vld [vmem:[#allocation14 + $0x758] sm:$0xff] }
 0x2e4   :  { %8682 = vmatprep.subr.bf16.mxu1 %v8681_v0  ;;  %8984 = vmatpush3.bf16.msra.mxu0 %v8983_v28  ;;  %v1949_v0 = vld [vmem:[#allocation14 + $0x798] sm:$0xff]  ;;  %v1956_v28 = vld [vmem:[#allocation14 + $0x7d0] sm:$0xff]  ;;  %v8699_v1 = vpack.c.bf16 %v1941_v63, %v1934_v54  ;;  %v2019_v63 = vld [vmem:[#allocation14 + $0x9c8] sm:$0xff] }
 0x2e5   :  { %v8701_v15 = vpack.c.bf16 %v1956_v28, %v1949_v0  ;;  %v2004_v54 = vld [vmem:[#allocation14 + $0x950] sm:$0xff] }
 0x2e7   :  { %8684 = vmatpush1.bf16.msra.mxu1 %v8683_v50  ;;  %v1948_v50 = vld [vmem:[#allocation14 + $0x790] sm:$0xff] }
 0x2e8   :  { %8686 = vmatprep.subr.bf16.mxu1 %v8685_v52  ;;  %v1955_v52 = vld [vmem:[#allocation14 + $0x7c8] sm:$0xff] }
 0x2e9   :  { %v8703_v46 = vpack.c.bf16 %v1955_v52, %v1948_v50  ;;  %v2033_v50 = vld [vmem:[#allocation14 + $0xa38] sm:$0xff]  ;;  %v2040_v52 = vld [vmem:[#allocation14 + $0xa70] sm:$0xff] }
 0x2ea   :  { %v8725_v29 = vpack.c.bf16 %v2040_v52, %v2033_v50 }
 0x2eb   :  { %8688 = vmatpush1.bf16.msra.mxu1 %v8687_v19  ;;  %v1962_v19 = vld [vmem:[#allocation14 + $0x800] sm:$0xff] }
 0x2ec   :  { %8690 = vmatprep.subr.bf16.mxu1 %v8689_v10  ;;  %v1969_v10 = vld [vmem:[#allocation14 + $0x838] sm:$0xff] }
 0x2ed   :  { %v8707_v7 = vpack.c.bf16 %v1969_v10, %v1962_v19  ;;  %v2047_v19 = vld [vmem:[#allocation14 + $0xaa8] sm:$0xff]  ;;  %v2054_v10 = vld [vmem:[#allocation14 + $0xae0] sm:$0xff] }
 0x2ef   :  { %8692 = vmatpush1.bf16.msra.mxu1 %v8691_v16  ;;  %v1976_v16 = vld [vmem:[#allocation14 + $0x870] sm:$0xff] }
 0x2f0   :  { %8694 = vmatprep.subr.bf16.mxu1 %v8693_v53  ;;  %v1991_v53 = vld [vmem:[#allocation14 + $0x8e8] sm:$0xff] }
 0x2f3   :  { %8696 = vmatpush1.bf16.msra.mxu1 %v8695_v17 }
 0x2f4   :  { %8698 = vmatprep.subr.bf16.mxu1 %v8697_v4 }
 0x2f6   :  { %2623 = vmatmul.mubr.f32.vlgmr.msra.gmra.mrb[96].mxu1 %v11199_v41  ;;  %v1983_v41 = vld [vmem:[#allocation14 + $0x8a8] sm:$0xff] }
 0x2f7   :  { %2628 = vmatprep.mubr.f32.mxu1 %v11208_v24  ;;  %8700 = vmatpush1.bf16.msra.mxu1 %v8699_v1  ;;  %v1998_v24 = vld [vmem:[#allocation14 + $0x920] sm:$0xff]  ;;  %v8711_v21 = vpack.c.bf16 %v1983_v41, %v1976_v16  ;;  %v2061_v16 = vld [vmem:[#allocation14 + $0xb18] sm:$0xff]  ;;  %v2068_v41 = vld [vmem:[#allocation14 + $0xb50] sm:$0xff] }
 0x2f8   :  { %8702 = vmatprep.subr.bf16.mxu1 %v8701_v15  ;;  %v8713_v25 = vpack.c.bf16 %v1998_v24, %v1991_v53  ;;  %v2025_v15 = vld [vmem:[#allocation14 + $0x9f8] sm:$0xff] }
 0x2fa   :  { %2629 = vmatmul.mubr.f32.gmra.mrb[98].mxu1 %v11203_v47  ;;  %v1997_v47 = vld [vmem:[#allocation14 + $0x918] sm:$0xff] }
 0x2fb   :  { %2634 = vmatprep.mubr.f32.mxu1 %v11221_v30  ;;  %8704 = vmatpush1.bf16.msra.mxu1 %v8703_v46  ;;  %v2012_v30 = vld [vmem:[#allocation14 + $0x990] sm:$0xff]  ;;  %v8715_v17 = vpack.c.bf16 %v1997_v47, %v1990_v38  ;;  %v2067_v47 = vld [vmem:[#allocation14 + $0xb48] sm:$0xff] }
 0x2fc   :  { %8706 = vmatprep.subr.bf16.mxu1 %v8705_v57  ;;  %v8717_v4 = vpack.c.bf16 %v2012_v30, %v2005_v14  ;;  %v2032_v46 = vld [vmem:[#allocation14 + $0xa30] sm:$0xff]  ;;  %v2039_v57 = vld [vmem:[#allocation14 + $0xa68] sm:$0xff]  ;;  %v2082_v30 = vld [vmem:[#allocation14 + $0xbc0] sm:$0xff] }
 0x2fd   :  { %v8727_v22 = vpack.c.bf16 %v2039_v57, %v2032_v46  ;;  %v2060_v38 = vld [vmem:[#allocation14 + $0xb10] sm:$0xff]  ;;  %v2075_v14 = vld [vmem:[#allocation14 + $0xb88] sm:$0xff]  ;;  %v2110_v57 = vld [vmem:[#allocation14 + $0xca0] sm:$0xff] }
 0x2fe   :  { %2635 = vmatmul.mubr.f32.gmra.mrb[100].mxu1 %v11216_v58  ;;  %v2011_v58 = vld [vmem:[#allocation14 + $0x988] sm:$0xff] }
 0x2ff   :  { %2640 = vmatprep.mubr.f32.mxu1 %v11234_v31  ;;  %8708 = vmatpush1.bf16.msra.mxu1 %v8707_v7  ;;  %v2026_v31 = vld [vmem:[#allocation14 + $0xa00] sm:$0xff]  ;;  %v8719_v28 = vpack.c.bf16 %v2011_v58, %v2004_v54  ;;  %v8737_v58 = vpack.c.bf16 %v2082_v30, %v2075_v14  ;;  %v2103_v46 = vld [vmem:[#allocation14 + $0xc68] sm:$0xff] }
 0x300   :  { %8710 = vmatprep.subr.bf16.mxu1 %v8709_v59  ;;  %v2053_v59 = vld [vmem:[#allocation14 + $0xad8] sm:$0xff] }
 0x302   :  { %2641 = vmatmul.mubr.f32.gmra.mrb[102].mxu1 %v11229_v6  ;;  %v8721_v6 = vpack.c.bf16 %v2026_v31, %v2019_v63  ;;  %v2074_v63 = vld [vmem:[#allocation14 + $0xb80] sm:$0xff]  ;;  %v2081_v31 = vld [vmem:[#allocation14 + $0xbb8] sm:$0xff] }
 0x303   :  { %2646 = vmatprep.mubr.f32.mxu1 %v11247_v32  ;;  %8712 = vmatpush1.bf16.msra.mxu1 %v8711_v21  ;;  %v2018_v32 = vld [vmem:[#allocation14 + $0x9c0] sm:$0xff] }
 0x304   :  { %8714 = vmatprep.subr.bf16.mxu1 %v8713_v25  ;;  %v8733_v25 = vpack.c.bf16 %v2068_v41, %v2061_v16 }
 0x306   :  { %2647 = vmatmul.mubr.f32.gmra.mrb[104].mxu1 %v11242_v18 }
 0x307   :  { %2652 = vmatprep.mubr.f32.mxu1 %v11260_v33  ;;  %8716 = vmatpush1.bf16.msra.mxu1 %v8715_v17  ;;  %v11600_v0 = vpop.f32.mrb[72].mxu1  ;;  %v8723_v33 = vpack.c.bf16 %v2025_v15, %v2018_v32  ;;  %v8739_v15 = vpack.c.bf16 %v2081_v31, %v2074_v63  ;;  %v2145_v63 = vld [vmem:[#allocation14 + $0xdb8] sm:$0xff]  ;;  %v2152_v31 = vld [vmem:[#allocation14 + $0xdf0] sm:$0xff] }
 0x308   :  { %v11602_v1 = vpop.f32.mrb[73].mxu1  ;;  %8718 = vmatprep.subr.bf16.mxu1 %v8717_v4  ;;  %v8735_v4 = vpack.c.bf16 %v2067_v47, %v2060_v38  ;;  %v2131_v38 = vld [vmem:[#allocation14 + $0xd48] sm:$0xff]  ;;  %v2138_v47 = vld [vmem:[#allocation14 + $0xd80] sm:$0xff] }
 0x309   :  { %v8753_v30 = vpack.c.bf16 %v2138_v47, %v2131_v38 }
 0x30a   :  { %2653 = vmatmul.mubr.f32.gmra.mrb[106].mxu1 %v11255_v34  ;;  %v8729_v34 = vpack.c.bf16 %v2054_v10, %v2047_v19  ;;  %v8745_v10 = vpack.c.bf16 %v2110_v57, %v2103_v46 }
 0x30b   :  { %8720 = vmatpush1.bf16.msra.mxu1 %v8719_v28  ;;  %2723 = vmatprep.mubr.f32.mxu1 %v11263_v39  ;;  %v11606_v18 = vpop.f32.mrb[74].mxu1  ;;  %v2046_v39 = vld [vmem:[#allocation14 + $0xaa0] sm:$0xff]  ;;  %v2089_v28 = vld [vmem:[#allocation14 + $0xbf8] sm:$0xff] }
 0x30c   :  { %v11608_v2 = vpop.f32.mrb[75].mxu1  ;;  %8722 = vmatprep.subr.bf16.mxu1 %v8721_v6  ;;  %v8731_v24 = vpack.c.bf16 %v2053_v59, %v2046_v39  ;;  %v2096_v6 = vld [vmem:[#allocation14 + $0xc30] sm:$0xff]  ;;  %v2117_v39 = vld [vmem:[#allocation14 + $0xcd8] sm:$0xff] }
 0x30d   :  { %v8741_v52 = vpack.c.bf16 %v2096_v6, %v2089_v28  ;;  %v2124_v59 = vld [vmem:[#allocation14 + $0xd10] sm:$0xff]  ;;  %v8757_v6 = vpack.c.bf16 %v2152_v31, %v2145_v63 }
 0x30e   :  { %v8749_v41 = vpack.c.bf16 %v2124_v59, %v2117_v39 }
 0x30f   :  { %8724 = vmatpush1.bf16.msra.mxu1 %v8723_v33  ;;  %v11610_v35 = vpop.f32.mrb[76].mxu1  ;;  %v2088_v33 = vld [vmem:[#allocation14 + $0xbf0] sm:$0xff] }
 0x310   :  { %v11612_v7 = vpop.f32.mrb[77].mxu1  ;;  %8726 = vmatprep.subr.bf16.mxu1 %v8725_v29  ;;  %v2095_v29 = vld [vmem:[#allocation14 + $0xc28] sm:$0xff] }
 0x311   :  { %v8743_v19 = vpack.c.bf16 %v2095_v29, %v2088_v33  ;;  %v2963_v33 = vld [vmem:[#allocation16 + $0x8] sm:$0xff]  ;;  %v2968_v29 = vld [vmem:[#allocation16 + $0x30] sm:$0xff] }
 0x312   :  { %v8825_v57 = vpack.c.bf16 %v2968_v29, %v2963_v33  ;;  %v3002_v33 = vld [vmem:[#allocation16 + $0x140] sm:$0xff]  ;;  %v3013_v29 = vld [vmem:[#allocation16 + $0x198] sm:$0xff] }
 0x313   :  { %8728 = vmatpush1.bf16.msra.mxu1 %v8727_v22  ;;  %v11614_v53 = vpop.f32.mrb[78].mxu1  ;;  %v2102_v22 = vld [vmem:[#allocation14 + $0xc60] sm:$0xff] }
 0x314   :  { %v11616_v21 = vpop.f32.mrb[79].mxu1  ;;  %8730 = vmatprep.subr.bf16.mxu1 %v8729_v34  ;;  %v2109_v34 = vld [vmem:[#allocation14 + $0xc98] sm:$0xff] }
 0x315   :  { %v8747_v16 = vpack.c.bf16 %v2109_v34, %v2102_v22  ;;  %v2973_v22 = vld [vmem:[#allocation16 + $0x58] sm:$0xff]  ;;  %v2978_v34 = vld [vmem:[#allocation16 + $0x80] sm:$0xff] }
 0x316   :  { %v8829_v59 = vpack.c.bf16 %v2978_v34, %v2973_v22 }
 0x317   :  { %8732 = vmatpush1.bf16.msra.mxu1 %v8731_v24  ;;  %v11618_v17 = vpop.f32.mrb[80].mxu1  ;;  %v2116_v24 = vld [vmem:[#allocation14 + $0xcd0] sm:$0xff] }
 0x318   :  { %v11620_v54 = vpop.f32.mrb[81].mxu1  ;;  %8734 = vmatprep.subr.bf16.mxu1 %v8733_v25  ;;  %v2123_v25 = vld [vmem:[#allocation14 + $0xd08] sm:$0xff] }
 0x319   :  { %v8751_v14 = vpack.c.bf16 %v2123_v25, %v2116_v24  ;;  %v2983_v24 = vld [vmem:[#allocation16 + $0xa8] sm:$0xff]  ;;  %v2988_v25 = vld [vmem:[#allocation16 + $0xd0] sm:$0xff] }
 0x31a   :  { %v8833_v47 = vpack.c.bf16 %v2988_v25, %v2983_v24  ;;  %v3032_v24 = vld [vmem:[#allocation16 + $0x230] sm:$0xff]  ;;  %v3037_v25 = vld [vmem:[#allocation16 + $0x258] sm:$0xff] }
 0x31b   :  { %8736 = vmatpush1.bf16.msra.mxu1 %v8735_v4  ;;  %v11622_v32 = vpop.f32.mrb[82].mxu1  ;;  %v2130_v4 = vld [vmem:[#allocation14 + $0xd40] sm:$0xff] }
 0x31c   :  { %v11624_v50 = vpop.f32.mrb[83].mxu1  ;;  %8738 = vmatprep.subr.bf16.mxu1 %v8737_v58  ;;  %v2137_v58 = vld [vmem:[#allocation14 + $0xd78] sm:$0xff] }
 0x31d   :  { %v8755_v28 = vpack.c.bf16 %v2137_v58, %v2130_v4  ;;  %v2993_v4 = vld [vmem:[#allocation16 + $0xf8] sm:$0xff]  ;;  %v2998_v58 = vld [vmem:[#allocation16 + $0x120] sm:$0xff] }
 0x31e   :  { %v8837_v31 = vpack.c.bf16 %v2998_v58, %v2993_v4  ;;  %v3053_v4 = vld [vmem:[#allocation16 + $0x2d8] sm:$0xff]  ;;  %v3058_v58 = vld [vmem:[#allocation16 + $0x300] sm:$0xff] }
 0x31f   :  { %8740 = vmatpush1.bf16.msra.mxu1 %v8739_v15  ;;  %v2144_v15 = vld [vmem:[#allocation14 + $0xdb0] sm:$0xff] }
 0x320   :  { %8742 = vmatprep.subr.bf16.mxu1 %v8741_v52  ;;  %v2151_v52 = vld [vmem:[#allocation14 + $0xde8] sm:$0xff] }
 0x321   :  { %v8759_v46 = vpack.c.bf16 %v2151_v52, %v2144_v15 }
 0x323   :  { %8744 = vmatpush1.bf16.msra.mxu1 %v8743_v19  ;;  %v2962_v19 = vld [vmem:[#allocation16] sm:$0xff] }
 0x324   :  { %8746 = vmatprep.subr.bf16.mxu1 %v8745_v10  ;;  %v2967_v10 = vld [vmem:[#allocation16 + $0x28] sm:$0xff] }
 0x325   :  { %v8827_v39 = vpack.c.bf16 %v2967_v10, %v2962_v19  ;;  %v3012_v19 = vld [vmem:[#allocation16 + $0x190] sm:$0xff]  ;;  %v3023_v10 = vld [vmem:[#allocation16 + $0x1e8] sm:$0xff] }
 0x327   :  { %8748 = vmatpush1.bf16.msra.mxu1 %v8747_v16  ;;  %v2972_v16 = vld [vmem:[#allocation16 + $0x50] sm:$0xff] }
 0x328   :  { %8750 = vmatprep.subr.bf16.mxu1 %v8749_v41  ;;  %v2977_v41 = vld [vmem:[#allocation16 + $0x78] sm:$0xff] }
 0x329   :  { %v8831_v38 = vpack.c.bf16 %v2977_v41, %v2972_v16 }
 0x32b   :  { %8752 = vmatpush1.bf16.msra.mxu1 %v8751_v14  ;;  %v2982_v14 = vld [vmem:[#allocation16 + $0xa0] sm:$0xff] }
 0x32c   :  { %8754 = vmatprep.subr.bf16.mxu1 %v8753_v30  ;;  %v2987_v30 = vld [vmem:[#allocation16 + $0xc8] sm:$0xff] }
 0x32d   :  { %v8835_v63 = vpack.c.bf16 %v2987_v30, %v2982_v14  ;;  %v3042_v14 = vld [vmem:[#allocation16 + $0x280] sm:$0xff]  ;;  %v3047_v30 = vld [vmem:[#allocation16 + $0x2a8] sm:$0xff] }
 0x32f   :  { %8756 = vmatpush1.bf16.msra.mxu1 %v8755_v28  ;;  %v2992_v28 = vld [vmem:[#allocation16 + $0xf0] sm:$0xff] }
 0x330   :  { %8758 = vmatprep.subr.bf16.mxu1 %v8757_v6  ;;  %v3003_v6 = vld [vmem:[#allocation16 + $0x148] sm:$0xff] }
 0x333   :  { %8760 = vmatpush1.bf16.msra.mxu1 %v8759_v46 }
 0x334   :  { %8826 = vmatprep.subr.bf16.mxu1 %v8825_v57 }
 0x336   :  { %2724 = vmatmul.mubr.f32.vlgmr.msra.gmra.mrb[96].mxu1 %v11315_v27  ;;  %v2997_v27 = vld [vmem:[#allocation16 + $0x118] sm:$0xff] }
 0x337   :  { %2729 = vmatprep.mubr.f32.mxu1 %v11318_v45  ;;  %8828 = vmatpush1.bf16.msra.mxu1 %v8827_v39  ;;  %v3008_v45 = vld [vmem:[#allocation16 + $0x170] sm:$0xff]  ;;  %v8839_v15 = vpack.c.bf16 %v2997_v27, %v2992_v28  ;;  %v3022_v39 = vld [vmem:[#allocation16 + $0x1e0] sm:$0xff]  ;;  %v3057_v28 = vld [vmem:[#allocation16 + $0x2f8] sm:$0xff] }
 0x338   :  { %8830 = vmatprep.subr.bf16.mxu1 %v8829_v59  ;;  %v8841_v52 = vpack.c.bf16 %v3008_v45, %v3003_v6  ;;  %v3033_v59 = vld [vmem:[#allocation16 + $0x238] sm:$0xff]  ;;  %v3063_v27 = vld [vmem:[#allocation16 + $0x328] sm:$0xff]  ;;  %v3068_v6 = vld [vmem:[#allocation16 + $0x350] sm:$0xff] }
 0x33a   :  { %2730 = vmatmul.mubr.f32.gmra.mrb[98].mxu1 %v11327_v37  ;;  %v3007_v37 = vld [vmem:[#allocation16 + $0x168] sm:$0xff] }
 0x33b   :  { %2735 = vmatprep.mubr.f32.mxu1 %v11330_v9  ;;  %8832 = vmatpush1.bf16.msra.mxu1 %v8831_v38  ;;  %v3018_v9 = vld [vmem:[#allocation16 + $0x1c0] sm:$0xff]  ;;  %v8843_v46 = vpack.c.bf16 %v3007_v37, %v3002_v33  ;;  %v3043_v38 = vld [vmem:[#allocation16 + $0x288] sm:$0xff]  ;;  %v8865_v37 = vpack.c.bf16 %v3068_v6, %v3063_v27 }
 0x33c   :  { %8834 = vmatprep.subr.bf16.mxu1 %v8833_v47  ;;  %v8845_v57 = vpack.c.bf16 %v3018_v9, %v3013_v29  ;;  %v3062_v29 = vld [vmem:[#allocation16 + $0x320] sm:$0xff]  ;;  %v3067_v9 = vld [vmem:[#allocation16 + $0x348] sm:$0xff] }
 0x33e   :  { %2736 = vmatmul.mubr.f32.gmra.mrb[100].mxu1 %v11339_v49  ;;  %v3017_v49 = vld [vmem:[#allocation16 + $0x1b8] sm:$0xff] }
 0x33f   :  { %2741 = vmatprep.mubr.f32.mxu1 %v11342_v48  ;;  %8836 = vmatpush1.bf16.msra.mxu1 %v8835_v63  ;;  %v3028_v48 = vld [vmem:[#allocation16 + $0x210] sm:$0xff]  ;;  %v8847_v22 = vpack.c.bf16 %v3017_v49, %v3012_v19  ;;  %v8859_v63 = vpack.c.bf16 %v3047_v30, %v3042_v14  ;;  %v3078_v19 = vld [vmem:[#allocation16 + $0x3a0] sm:$0xff] }
 0x340   :  { %8838 = vmatprep.subr.bf16.mxu1 %v8837_v31  ;;  %v8849_v34 = vpack.c.bf16 %v3028_v48, %v3023_v10  ;;  %v3052_v31 = vld [vmem:[#allocation16 + $0x2d0] sm:$0xff]  ;;  %v8867_v10 = vpack.c.bf16 %v3067_v9, %v3062_v29  ;;  %v3118_v29 = vld [vmem:[#allocation16 + $0x4e0] sm:$0xff] }
 0x342   :  { %2742 = vmatmul.mubr.f32.gmra.mrb[102].mxu1 %v11351_v60  ;;  %v3027_v60 = vld [vmem:[#allocation16 + $0x208] sm:$0xff] }
 0x343   :  { %2747 = vmatprep.mubr.f32.mxu1 %v11354_v12  ;;  %8840 = vmatpush1.bf16.msra.mxu1 %v8839_v15  ;;  %v3038_v12 = vld [vmem:[#allocation16 + $0x260] sm:$0xff]  ;;  %v8851_v16 = vpack.c.bf16 %v3027_v60, %v3022_v39  ;;  %v8863_v15 = vpack.c.bf16 %v3057_v28, %v3052_v31  ;;  %v3077_v39 = vld [vmem:[#allocation16 + $0x398] sm:$0xff]  ;;  %v3083_v60 = vld [vmem:[#allocation16 + $0x3c8] sm:$0xff] }
 0x344   :  { %8842 = vmatprep.subr.bf16.mxu1 %v8841_v52  ;;  %v8853_v41 = vpack.c.bf16 %v3038_v12, %v3033_v59  ;;  %v3088_v59 = vld [vmem:[#allocation16 + $0x3f0] sm:$0xff] }
 0x345   :  { %v3108_v31 = vld [vmem:[#allocation16 + $0x490] sm:$0xff] }
 0x346   :  { %2748 = vmatmul.mubr.f32.gmra.mrb[104].mxu1 %v11363_v8  ;;  %v3048_v8 = vld [vmem:[#allocation16 + $0x2b0] sm:$0xff] }
 0x347   :  { %2753 = vmatprep.mubr.f32.mxu1 %v11366_v62  ;;  %8844 = vmatpush1.bf16.msra.mxu1 %v8843_v46  ;;  %v8855_v62 = vpack.c.bf16 %v3037_v25, %v3032_v24  ;;  %v8857_v47 = vpack.c.bf16 %v3048_v8, %v3043_v38  ;;  %v8873_v24 = vpack.c.bf16 %v3088_v59, %v3083_v60  ;;  %v3082_v25 = vld [vmem:[#allocation16 + $0x3c0] sm:$0xff]  ;;  %v3087_v38 = vld [vmem:[#allocation16 + $0x3e8] sm:$0xff]  ;;  %v3093_v8 = vld [vmem:[#allocation16 + $0x418] sm:$0xff] }
 0x348   :  { %8846 = vmatprep.subr.bf16.mxu1 %v8845_v57  ;;  %v3073_v57 = vld [vmem:[#allocation16 + $0x378] sm:$0xff]  ;;  %v8875_v14 = vpack.c.bf16 %v3087_v38, %v3082_v25  ;;  %v2979_v25 = vld [vmem:[#allocation16 + $0x88] sm:$0xff] }
 0x349   :  { %v2969_v59 = vld [vmem:[#allocation16 + $0x38] sm:$0xff] }
 0x34a   :  { %2754 = vmatmul.mubr.f32.gmra.mrb[106].mxu1 %v11375_v20  ;;  %v8861_v20 = vpack.c.bf16 %v3058_v58, %v3053_v4  ;;  %v3092_v58 = vld [vmem:[#allocation16 + $0x410] sm:$0xff]  ;;  %v2985_v38 = vld [vmem:[#allocation16 + $0xb8] sm:$0xff] }
 0x34b   :  { %8848 = vmatpush1.bf16.msra.mxu1 %v8847_v22  ;;  %v8869_v22 = vpack.c.bf16 %v3078_v19, %v3073_v57 }
 0x34c   :  { %8850 = vmatprep.subr.bf16.mxu1 %v8849_v34  ;;  %v3072_v34 = vld [vmem:[#allocation16 + $0x370] sm:$0xff] }
 0x34f   :  { %8852 = vmatpush1.bf16.msra.mxu1 %v8851_v16 }
 0x350   :  { %8854 = vmatprep.subr.bf16.mxu1 %v8853_v41 }
 0x353   :  { %8856 = vmatpush1.bf16.msra.mxu1 %v8855_v62  ;;  %v3098_v62 = vld [vmem:[#allocation16 + $0x440] sm:$0xff] }
 0x354   :  { %8858 = vmatprep.subr.bf16.mxu1 %v8857_v47  ;;  %v8877_v4 = vpack.c.bf16 %v3098_v62, %v3093_v8  ;;  %v2990_v8 = vld [vmem:[#allocation16 + $0xe0] sm:$0xff] }
 0x357   :  { %8860 = vmatpush1.bf16.msra.mxu1 %v8859_v63  ;;  %v1671_v45 = vpop.f32.mrb[72].mxu0  ;;  %v3097_v63 = vld [vmem:[#allocation16 + $0x438] sm:$0xff] }
 0x358   :  { %v11638_v52 = vmul.f32 %v1671_v45, %v11413_v40  ;;  %v1673_v33 = vpop.f32.mrb[73].mxu0  ;;  %8862 = vmatprep.subr.bf16.mxu1 %v8861_v20  ;;  %v3103_v20 = vld [vmem:[#allocation16 + $0x468] sm:$0xff]  ;;  %v8879_v27 = vpack.c.bf16 %v3097_v63, %v3092_v58  ;;  %v2989_v58 = vld [vmem:[#allocation16 + $0xd8] sm:$0xff] }
 0x359   :  { %v11641_v46 = vmul.f32 %v1673_v33, %v11416_v26  ;;  %v8881_v45 = vpack.c.bf16 %v3108_v31, %v3103_v20  ;;  %v3107_v33 = vld [vmem:[#allocation16 + $0x488] sm:$0xff]  ;;  %v3000_v31 = vld [vmem:[#allocation16 + $0x130] sm:$0xff] }
 0x35a   :  { %v2995_v20 = vld [vmem:[#allocation16 + $0x108] sm:$0xff] }
 0x35b   :  { %8864 = vmatpush1.bf16.msra.mxu1 %v8863_v15  ;;  %v1677_v49 = vpop.f32.mrb[74].mxu0  ;;  %3186 = vmatprep.mubr.f32.mxu1 %v11641_v46  ;;  %v3102_v15 = vld [vmem:[#allocation16 + $0x460] sm:$0xff] }
 0x35c   :  { %v11645_v48 = vmul.f32 %v1677_v49, %v11419_v51  ;;  %3388 = vmatprep.mubr.f32.mxu0 %v11641_v46  ;;  %v1679_v40 = vpop.f32.mrb[75].mxu0  ;;  %8866 = vmatprep.subr.bf16.mxu1 %v8865_v37  ;;  %v8871_v51 = vpack.c.bf16 %v3077_v39, %v3072_v34  ;;  %v3113_v37 = vld [vmem:[#allocation16 + $0x4b8] sm:$0xff]  ;;  %v8883_v57 = vpack.c.bf16 %v3107_v33, %v3102_v15  ;;  %v2970_v34 = vld [vmem:[#allocation16 + $0x40] sm:$0xff]  ;;  %v2999_v33 = vld [vmem:[#allocation16 + $0x128] sm:$0xff] }
 0x35d   :  { %v11649_v26 = vmul.f32 %v1679_v40, %v11422_v56  ;;  %3389 = vmatmul.mubr.f32.vlgmr.msra.gmra.mrb[108].mxu0 %v11638_v52  ;;  %v8885_v49 = vpack.c.bf16 %v3118_v29, %v3113_v37  ;;  %v3117_v40 = vld [vmem:[#allocation16 + $0x4d8] sm:$0xff]  ;;  %v2994_v15 = vld [vmem:[#allocation16 + $0x100] sm:$0xff] }
 0x35e   :  { %v3005_v29 = vld [vmem:[#allocation16 + $0x158] sm:$0xff] }
 0x35f   :  { %8868 = vmatpush1.bf16.msra.mxu1 %v8867_v10  ;;  %v1683_v12 = vpop.f32.mrb[76].mxu0  ;;  %3393 = vmatprep.mubr.f32.mxu0 %v11649_v26  ;;  %v3112_v10 = vld [vmem:[#allocation16 + $0x4b0] sm:$0xff] }
 0x360   :  { %v11654_v16 = vmul.f32 %v1683_v12, %v11425_v5  ;;  %v1685_v41 = vpop.f32.mrb[77].mxu0  ;;  %8870 = vmatprep.subr.bf16.mxu1 %v8869_v22  ;;  %v2965_v22 = vld [vmem:[#allocation16 + $0x18] sm:$0xff]  ;;  %v8887_v39 = vpack.c.bf16 %v3117_v40, %v3112_v10  ;;  %v2975_v12 = vld [vmem:[#allocation16 + $0x68] sm:$0xff]  ;;  %v3004_v40 = vld [vmem:[#allocation16 + $0x150] sm:$0xff] }
 0x361   :  { %v11657_v56 = vmul.f32 %v1685_v41, %v11428_v55  ;;  %3394 = vmatmul.mubr.f32.gmra.mrb[110].mxu0 %v11645_v48  ;;  %v8889_v60 = vpack.c.bf16 %v2970_v34, %v2965_v22  ;;  %v3009_v22 = vld [vmem:[#allocation16 + $0x178] sm:$0xff] }
 0x363   :  { %8872 = vmatpush1.bf16.msra.mxu1 %v8871_v51  ;;  %v1689_v47 = vpop.f32.mrb[78].mxu0  ;;  %3398 = vmatprep.mubr.f32.mxu0 %v11657_v56  ;;  %v2980_v51 = vld [vmem:[#allocation16 + $0x90] sm:$0xff] }
 0x364   :  { %v11662_v5 = vmul.f32 %v1689_v47, %v11431_v36  ;;  %v1691_v30 = vpop.f32.mrb[79].mxu0  ;;  %8874 = vmatprep.subr.bf16.mxu1 %v8873_v24  ;;  %v2974_v24 = vld [vmem:[#allocation16 + $0x60] sm:$0xff] }
 0x365   :  { %v11665_v55 = vmul.f32 %v1691_v30, %v11435_v61  ;;  %3399 = vmatmul.mubr.f32.gmra.mrb[112].mxu0 %v11654_v16  ;;  %v8895_v47 = vpack.c.bf16 %v2979_v25, %v2974_v24  ;;  %v8897_v30 = vpack.c.bf16 %v2990_v8, %v2985_v38  ;;  %v3025_v25 = vld [vmem:[#allocation16 + $0x1f8] sm:$0xff]  ;;  %v3030_v38 = vld [vmem:[#allocation16 + $0x220] sm:$0xff] }
 0x367   :  { %8876 = vmatpush1.bf16.msra.mxu1 %v8875_v14  ;;  %v1695_v28 = vpop.f32.mrb[80].mxu0  ;;  %3403 = vmatprep.mubr.f32.mxu0 %v11665_v55 }
 0x368   :  { %v11670_v36 = vmul.f32 %v1695_v28, %v11439_v23  ;;  %v1697_v6 = vpop.f32.mrb[81].mxu0  ;;  %8878 = vmatprep.subr.bf16.mxu1 %v8877_v4  ;;  %v2984_v4 = vld [vmem:[#allocation16 + $0xb0] sm:$0xff] }
 0x369   :  { %v11673_v61 = vmul.f32 %v1697_v6, %v11443_v42  ;;  %3404 = vmatmul.mubr.f32.gmra.mrb[114].mxu0 %v11662_v5 }
 0x36b   :  { %8880 = vmatpush1.bf16.msra.mxu1 %v8879_v27  ;;  %v1701_v9 = vpop.f32.mrb[82].mxu0  ;;  %3408 = vmatprep.mubr.f32.mxu0 %v11673_v61  ;;  %v8899_v27 = vpack.c.bf16 %v2989_v58, %v2984_v4  ;;  %v3024_v4 = vld [vmem:[#allocation16 + $0x1f0] sm:$0xff]  ;;  %v3029_v58 = vld [vmem:[#allocation16 + $0x218] sm:$0xff] }
 0x36c   :  { %v11678_v23 = vmul.f32 %v1701_v9, %v11447_v11  ;;  %v1703_v19 = vpop.f32.mrb[83].mxu0  ;;  %8882 = vmatprep.subr.bf16.mxu1 %v8881_v45  ;;  %v2964_v11 = vld [vmem:[#allocation16 + $0x10] sm:$0xff]  ;;  %v8901_v45 = vpack.c.bf16 %v3000_v31, %v2995_v20  ;;  %v3010_v9 = vld [vmem:[#allocation16 + $0x180] sm:$0xff] }
 0x36d   :  { %v11681_v42 = vmul.f32 %v1703_v19, %v11450_v44  ;;  %3409 = vmatmul.mubr.f32.gmra.mrb[116].mxu0 %v11670_v36  ;;  %v8891_v41 = vpack.c.bf16 %v2969_v59, %v2964_v11  ;;  %v8893_v44 = vpack.c.bf16 %v2980_v51, %v2975_v12  ;;  %v8903_v19 = vpack.c.bf16 %v2999_v33, %v2994_v15 }
 0x36e   :  { %v8905_v10 = vpack.c.bf16 %v3010_v9, %v3005_v29  ;;  %v8907_v59 = vpack.c.bf16 %v3009_v22, %v3004_v40  ;;  %v8915_v33 = vpack.c.bf16 %v3029_v58, %v3024_v4  ;;  %v3449_v9 = vld [vmem:[#allocation17] sm:$0xff]  ;;  %v3039_v22 = vld [vmem:[#allocation16 + $0x268] sm:$0xff] }
 0x36f   :  { %8884 = vmatpush1.bf16.msra.mxu1 %v8883_v57  ;;  %3413 = vmatprep.mubr.f32.mxu0 %v11681_v42  ;;  %v3034_v40 = vld [vmem:[#allocation16 + $0x240] sm:$0xff] }
 0x370   :  { %8886 = vmatprep.subr.bf16.mxu1 %v8885_v49 }
 0x371   :  { %3414 = vmatmul.mubr.f32.gmra.mrb[118].mxu0 %v11678_v23 }
 0x373   :  { %8888 = vmatpush1.bf16.msra.mxu1 %v8887_v39  ;;  %v3015_v39 = vld [vmem:[#allocation16 + $0x1a8] sm:$0xff] }
 0x374   :  { %8890 = vmatprep.subr.bf16.mxu1 %v8889_v60  ;;  %v3020_v60 = vld [vmem:[#allocation16 + $0x1d0] sm:$0xff] }
 0x375   :  { %v8909_v51 = vpack.c.bf16 %v3020_v60, %v3015_v39 }
 0x376   :  { %3187 = vmatmul.mubr.f32.vlgmr.msra.gmra.mrb[108].mxu1 %v11638_v52 }
 0x377   :  { %3192 = vmatprep.mubr.f32.mxu1 %v11649_v26  ;;  %8892 = vmatpush1.bf16.msra.mxu1 %v8891_v41  ;;  %v8100_v62 = vpop.f32.mrb[84].mxu0  ;;  %v3014_v41 = vld [vmem:[#allocation16 + $0x1a0] sm:$0xff] }
 0x378   :  { %v8101_v14 = vpop.f32.mrb[85].mxu0  ;;  %8894 = vmatprep.subr.bf16.mxu1 %v8893_v44  ;;  %v3019_v44 = vld [vmem:[#allocation16 + $0x1c8] sm:$0xff] }
 0x379   :  { %v11688_v63 = vadd.f32 %v8101_v14, %v8100_v62  ;;  %v8911_v62 = vpack.c.bf16 %v3019_v44, %v3014_v41  ;;  %v8919_v41 = vpack.c.bf16 %v3039_v22, %v3034_v40  ;;  %v3059_v40 = vld [vmem:[#allocation16 + $0x308] sm:$0xff] }
 0x37a   :  { %3193 = vmatmul.mubr.f32.gmra.mrb[110].mxu1 %v11645_v48 }
 0x37b   :  { %3198 = vmatprep.mubr.f32.mxu1 %v11657_v56  ;;  %8896 = vmatpush1.bf16.msra.mxu1 %v8895_v47  ;;  %v8103_v28 = vpop.f32.mrb[86].mxu0 }
 0x37c   :  { %v8104_v6 = vpop.f32.mrb[87].mxu0  ;;  %8898 = vmatprep.subr.bf16.mxu1 %v8897_v30  ;;  %v8913_v30 = vpack.c.bf16 %v3030_v38, %v3025_v25  ;;  %v3453_v25 = vld [vmem:[#allocation17 + $0x20] sm:$0xff]  ;;  %v3455_v38 = vld [vmem:[#allocation17 + $0x30] sm:$0xff] }
 0x37d   :  { %v11692_v37 = vadd.f32 %v8104_v6, %v8103_v28  ;;  %v3035_v28 = vld [vmem:[#allocation16 + $0x248] sm:$0xff]  ;;  %v8991_v4 = vpack.c.bf16 %v3455_v38, %v3453_v25  ;;  %v3461_v25 = vld [vmem:[#allocation17 + $0x60] sm:$0xff]  ;;  %v3463_v38 = vld [vmem:[#allocation17 + $0x70] sm:$0xff] }
 0x37e   :  { %3199 = vmatmul.mubr.f32.gmra.mrb[112].mxu1 %v11654_v16  ;;  %v3450_v6 = vld [vmem:[#allocation17 + $0x8] sm:$0xff] }
 0x37f   :  { %3204 = vmatprep.mubr.f32.mxu1 %v11665_v55  ;;  %8900 = vmatpush1.bf16.msra.mxu1 %v8899_v27  ;;  %v8106_v57 = vpop.f32.mrb[88].mxu0  ;;  %v3040_v27 = vld [vmem:[#allocation16 + $0x270] sm:$0xff] }
 0x380   :  { %v8107_v49 = vpop.f32.mrb[89].mxu0  ;;  %8902 = vmatprep.subr.bf16.mxu1 %v8901_v45  ;;  %v3452_v45 = vld [vmem:[#allocation17 + $0x18] sm:$0xff] }
 0x381   :  { %v11696_v34 = vadd.f32 %v8107_v49, %v8106_v57  ;;  %v8985_v29 = vpack.c.bf16 %v3452_v45, %v3450_v6  ;;  %v3451_v57 = vld [vmem:[#allocation17 + $0x10] sm:$0xff]  ;;  %v3458_v6 = vld [vmem:[#allocation17 + $0x48] sm:$0xff]  ;;  %v3460_v45 = vld [vmem:[#allocation17 + $0x58] sm:$0xff] }
 0x382   :  { %3205 = vmatmul.mubr.f32.gmra.mrb[114].mxu1 %v11662_v5  ;;  %v8987_v39 = vpack.c.bf16 %v3451_v57, %v3449_v9  ;;  %v3459_v9 = vld [vmem:[#allocation17 + $0x50] sm:$0xff] }
 0x383   :  { %3210 = vmatprep.mubr.f32.mxu1 %v11673_v61  ;;  %8904 = vmatpush1.bf16.msra.mxu1 %v8903_v19  ;;  %v8109_v11 = vpop.f32.mrb[90].mxu0 }
 0x384   :  { %v8110_v12 = vpop.f32.mrb[91].mxu0  ;;  %8906 = vmatprep.subr.bf16.mxu1 %v8905_v10  ;;  %v8917_v10 = vpack.c.bf16 %v3040_v27, %v3035_v28  ;;  %8986 = vmatprep.subr.bf16.mxu0 %v8985_v29  ;;  %v3055_v28 = vld [vmem:[#allocation16 + $0x2e8] sm:$0xff]  ;;  %v3060_v27 = vld [vmem:[#allocation16 + $0x310] sm:$0xff]  ;;  %v3457_v29 = vld [vmem:[#allocation17 + $0x40] sm:$0xff] }
 0x385   :  { %v11700_v24 = vadd.f32 %v8110_v12, %v8109_v11  ;;  %v3050_v12 = vld [vmem:[#allocation16 + $0x2c0] sm:$0xff]  ;;  %8988 = vmatpush1.bf16.msra.mxu0 %v8987_v39  ;;  %v8995_v22 = vpack.c.bf16 %v3459_v9, %v3457_v29  ;;  %v3468_v9 = vld [vmem:[#allocation17 + $0x98] sm:$0xff] }
 0x386   :  { %3211 = vmatmul.mubr.f32.gmra.mrb[116].mxu1 %v11670_v36 }
 0x387   :  { %3216 = vmatprep.mubr.f32.mxu1 %v11681_v42  ;;  %8908 = vmatpush1.bf16.msra.mxu1 %v8907_v59  ;;  %v8112_v8 = vpop.f32.mrb[92].mxu0  ;;  %v3045_v59 = vld [vmem:[#allocation16 + $0x298] sm:$0xff] }
 0x388   :  { %v11704_v47 = vpop.f32.mrb[84].mxu1  ;;  %v8113_v14 = vpop.f32.mrb[93].mxu0  ;;  %8910 = vmatprep.subr.bf16.mxu1 %v8909_v51  ;;  %v3456_v51 = vld [vmem:[#allocation17 + $0x38] sm:$0xff] }
 0x389   :  { %v11706_v20 = vpop.f32.mrb[85].mxu1  ;;  %v11708_v31 = vadd.f32 %v8113_v14, %v8112_v8  ;;  %v3044_v14 = vld [vmem:[#allocation16 + $0x290] sm:$0xff] }
 0x38a   :  { %3217 = vmatmul.mubr.f32.gmra.mrb[118].mxu1 %v11678_v23 }
 0x38b   :  { %8912 = vmatpush1.bf16.msra.mxu1 %v8911_v62  ;;  %3287 = vmatprep.mubr.f32.mxu1 %v11641_v46  ;;  %v8115_v15 = vpop.f32.mrb[94].mxu0  ;;  %v3454_v46 = vld [vmem:[#allocation17 + $0x28] sm:$0xff]  ;;  %v8921_v62 = vpack.c.bf16 %v3050_v12, %v3045_v59  ;;  %v3065_v59 = vld [vmem:[#allocation16 + $0x338] sm:$0xff]  ;;  %v3070_v12 = vld [vmem:[#allocation16 + $0x360] sm:$0xff] }
 0x38c   :  { %v11712_v19 = vpop.f32.mrb[86].mxu1  ;;  %v8116_v49 = vpop.f32.mrb[95].mxu0  ;;  %8914 = vmatprep.subr.bf16.mxu1 %v8913_v30  ;;  %v8989_v44 = vpack.c.bf16 %v3456_v51, %v3454_v46  ;;  %v3049_v30 = vld [vmem:[#allocation16 + $0x2b8] sm:$0xff]  ;;  %v3462_v46 = vld [vmem:[#allocation17 + $0x68] sm:$0xff] }
 0x38d   :  { %v11714_v60 = vpop.f32.mrb[87].mxu1  ;;  %v11716_v11 = vadd.f32 %v8116_v49, %v8115_v15  ;;  %v8923_v15 = vpack.c.bf16 %v3049_v30, %v3044_v14  ;;  %v8925_v49 = vpack.c.bf16 %v3060_v27, %v3055_v28  ;;  %v3464_v51 = vld [vmem:[#allocation17 + $0x78] sm:$0xff]  ;;  %v3064_v30 = vld [vmem:[#allocation16 + $0x330] sm:$0xff]  ;;  %v8999_v28 = vpack.c.bf16 %v3463_v38, %v3461_v25  ;;  %v3079_v25 = vld [vmem:[#allocation16 + $0x3a8] sm:$0xff] }
 0x38e   :  { %8990 = vmatprep.subr.bf16.mxu0 %v8989_v44  ;;  %v8997_v44 = vpack.c.bf16 %v3464_v51, %v3462_v46  ;;  %v3465_v46 = vld [vmem:[#allocation17 + $0x80] sm:$0xff] }
 0x38f   :  { %8916 = vmatpush1.bf16.msra.mxu1 %v8915_v33  ;;  %8992 = vmatpush1.bf16.msra.mxu0 %v8991_v4  ;;  %v8993_v33 = vpack.c.bf16 %v3460_v45, %v3458_v6  ;;  %v3069_v4 = vld [vmem:[#allocation16 + $0x358] sm:$0xff]  ;;  %v3075_v45 = vld [vmem:[#allocation16 + $0x388] sm:$0xff]  ;;  %v3074_v51 = vld [vmem:[#allocation16 + $0x380] sm:$0xff] }
 0x390   :  { %v11718_v8 = vpop.f32.mrb[88].mxu1  ;;  %8918 = vmatprep.subr.bf16.mxu1 %v8917_v10  ;;  %v3054_v10 = vld [vmem:[#allocation16 + $0x2e0] sm:$0xff] }
 0x391   :  { %v11720_v58 = vpop.f32.mrb[89].mxu1  ;;  %8994 = vmatprep.subr.bf16.mxu0 %v8993_v33  ;;  %v3080_v33 = vld [vmem:[#allocation16 + $0x3b0] sm:$0xff] }
 0x393   :  { %8920 = vmatpush1.bf16.msra.mxu1 %v8919_v41  ;;  %8996 = vmatpush1.bf16.msra.mxu0 %v8995_v22  ;;  %v8927_v41 = vpack.c.bf16 %v3059_v40, %v3054_v10  ;;  %v8931_v40 = vpack.c.bf16 %v3069_v4, %v3064_v30  ;;  %v3084_v30 = vld [vmem:[#allocation16 + $0x3d0] sm:$0xff]  ;;  %v3089_v4 = vld [vmem:[#allocation16 + $0x3f8] sm:$0xff] }
 0x394   :  { %v11722_v57 = vpop.f32.mrb[90].mxu1  ;;  %8922 = vmatprep.subr.bf16.mxu1 %v8921_v62  ;;  %v8929_v62 = vpack.c.bf16 %v3070_v12, %v3065_v59  ;;  %8998 = vmatprep.subr.bf16.mxu0 %v8997_v44  ;;  %v8933_v12 = vpack.c.bf16 %v3080_v33, %v3075_v45  ;;  %v3085_v44 = vld [vmem:[#allocation16 + $0x3d8] sm:$0xff]  ;;  %v8935_v33 = vpack.c.bf16 %v3079_v25, %v3074_v51 }
 0x395   :  { %12707 = vst [vmem:[#allocation132_spill] sm:$0xff] %v11722_v57  ;;  %v11724_v39 = vpop.f32.mrb[91].mxu1  ;;  %v3480_v57 = vld [vmem:[#allocation17 + $0xf8] sm:$0xff] }
 0x396   :  { %12708 = vst [vmem:[#allocation133_spill] sm:$0xff] %v11724_v39  ;;  %v3095_v39 = vld [vmem:[#allocation16 + $0x428] sm:$0xff] }
 0x397   :  { %8924 = vmatpush1.bf16.msra.mxu1 %v8923_v15  ;;  %9000 = vmatpush1.bf16.msra.mxu0 %v8999_v28  ;;  %v3466_v15 = vld [vmem:[#allocation17 + $0x88] sm:$0xff]  ;;  %v3090_v28 = vld [vmem:[#allocation16 + $0x400] sm:$0xff] }
 0x398   :  { %v11726_v14 = vpop.f32.mrb[92].mxu1  ;;  %8926 = vmatprep.subr.bf16.mxu1 %v8925_v49  ;;  %v9001_v22 = vpack.c.bf16 %v3468_v9, %v3466_v15  ;;  %v3467_v49 = vld [vmem:[#allocation17 + $0x90] sm:$0xff]  ;;  %v3472_v15 = vld [vmem:[#allocation17 + $0xb8] sm:$0xff] }
 0x399   :  { %12709 = vst [vmem:[#allocation134_spill] sm:$0xff] %v11726_v14  ;;  %v8150_v27 = vpop.f32.mrb[96].mxu0  ;;  %v11728_v6 = vpop.f32.mrb[93].mxu1  ;;  %v9003_v38 = vpack.c.bf16 %v3467_v49, %v3465_v46  ;;  %v3471_v46 = vld [vmem:[#allocation17 + $0xb0] sm:$0xff]  ;;  %v3474_v49 = vld [vmem:[#allocation17 + $0xc8] sm:$0xff] }
 0x39a   :  { %12710 = vst [vmem:[#allocation135_spill] sm:$0xff] %v11728_v6  ;;  %v8151_v29 = vpop.f32.mrb[97].mxu0  ;;  %9002 = vmatprep.subr.bf16.mxu0 %v9001_v22 }
 0x39b   :  { %v8152_v10 = vadd.f32 %v8151_v29, %v8150_v27  ;;  %8928 = vmatpush1.bf16.msra.mxu1 %v8927_v41  ;;  %9004 = vmatpush1.bf16.msra.mxu0 %v9003_v38  ;;  %v3470_v29 = vld [vmem:[#allocation17 + $0xa8] sm:$0xff]  ;;  %v3100_v38 = vld [vmem:[#allocation16 + $0x450] sm:$0xff] }
 0x39c   :  { %v11730_v59 = vpop.f32.mrb[94].mxu1  ;;  %8930 = vmatprep.subr.bf16.mxu1 %v8929_v62  ;;  %v3469_v62 = vld [vmem:[#allocation17 + $0xa0] sm:$0xff]  ;;  %v9005_v9 = vpack.c.bf16 %v3472_v15, %v3470_v29  ;;  %v8941_v29 = vpack.c.bf16 %v3100_v38, %v3095_v39  ;;  %v3099_v15 = vld [vmem:[#allocation16 + $0x448] sm:$0xff]  ;;  %v3120_v38 = vld [vmem:[#allocation16 + $0x4f0] sm:$0xff] }
 0x39d   :  { %12711 = vst [vmem:[#allocation136_spill] sm:$0xff] %v11730_v59  ;;  %v8153_v13 = vpop.f32.mrb[98].mxu0  ;;  %v11732_v43 = vpop.f32.mrb[95].mxu1  ;;  %v11735_v27 = vadd.f32 %v8152_v10, %v11688_v63  ;;  %v8937_v59 = vpack.c.bf16 %v3090_v28, %v3085_v44  ;;  %v9007_v22 = vpack.c.bf16 %v3471_v46, %v3469_v62  ;;  %v3473_v63 = vld [vmem:[#allocation17 + $0xc0] sm:$0xff]  ;;  %v3475_v10 = vld [vmem:[#allocation17 + $0xd0] sm:$0xff]  ;;  %v3482_v62 = vld [vmem:[#allocation17 + $0x108] sm:$0xff] }
 0x39e   :  { %12712 = vst [vmem:[#allocation137_spill] sm:$0xff] %v11732_v43  ;;  %v8154_v41 = vpop.f32.mrb[99].mxu0  ;;  %v3476_v43 = vld [vmem:[#allocation17 + $0xd8] sm:$0xff]  ;;  %9006 = vmatprep.subr.bf16.mxu0 %v9005_v9  ;;  %v9011_v51 = vpack.c.bf16 %v3475_v10, %v3473_v63  ;;  %v3094_v44 = vld [vmem:[#allocation16 + $0x420] sm:$0xff]  ;;  %v3115_v10 = vld [vmem:[#allocation16 + $0x4c8] sm:$0xff] }
 0x39f   :  { %12713 = vst [vmem:[#allocation138_spill] sm:$0xff] %v11735_v27  ;;  %v8155_v45 = vadd.f32 %v8154_v41, %v8153_v13  ;;  %8932 = vmatpush1.bf16.msra.mxu1 %v8931_v40  ;;  %v9009_v6 = vpack.c.bf16 %v3476_v43, %v3474_v49  ;;  %v3478_v27 = vld [vmem:[#allocation17 + $0xe8] sm:$0xff]  ;;  %9008 = vmatpush1.bf16.msra.mxu0 %v9007_v22  ;;  %v3477_v28 = vld [vmem:[#allocation17 + $0xe0] sm:$0xff]  ;;  %v3479_v41 = vld [vmem:[#allocation17 + $0xf0] sm:$0xff] }
 0x3a0   :  { %8934 = vmatprep.subr.bf16.mxu1 %v8933_v12  ;;  %v8939_v12 = vpack.c.bf16 %v3089_v4, %v3084_v30  ;;  %v9013_v43 = vpack.c.bf16 %v3480_v57, %v3478_v27  ;;  %v3484_v9 = vld [vmem:[#allocation17 + $0x118] sm:$0xff]  ;;  %v3481_v27 = vld [vmem:[#allocation17 + $0x100] sm:$0xff]  ;;  %v3104_v4 = vld [vmem:[#allocation16 + $0x470] sm:$0xff] }
 0x3a1   :  { %v8156_v14 = vpop.f32.mrb[100].mxu0  ;;  %v11738_v13 = vadd.f32 %v8155_v45, %v11692_v37  ;;  %9010 = vmatprep.subr.bf16.mxu0 %v9009_v6  ;;  %v3105_v49 = vld [vmem:[#allocation16 + $0x478] sm:$0xff]  ;;  %v3110_v37 = vld [vmem:[#allocation16 + $0x4a0] sm:$0xff]  ;;  %v8943_v6 = vpack.c.bf16 %v3099_v15, %v3094_v44  ;;  %v9017_v57 = vpack.c.bf16 %v3484_v9, %v3482_v62  ;;  %v8949_v44 = vpack.c.bf16 %v3120_v38, %v3115_v10  ;;  %v3486_v62 = vld [vmem:[#allocation17 + $0x128] sm:$0xff] }
 0x3a2   :  { %v8157_v40 = vpop.f32.mrb[101].mxu0  ;;  %v8945_v39 = vpack.c.bf16 %v3110_v37, %v3105_v49  ;;  %v3485_v37 = vld [vmem:[#allocation17 + $0x120] sm:$0xff] }
 0x3a3   :  { %12714 = vst [vmem:[#allocation139_spill] sm:$0xff] %v11738_v13  ;;  %v8158_v25 = vadd.f32 %v8157_v40, %v8156_v14  ;;  %8936 = vmatpush1.bf16.msra.mxu1 %v8935_v33  ;;  %9012 = vmatpush1.bf16.msra.mxu0 %v9011_v51  ;;  %v9015_v14 = vpack.c.bf16 %v3479_v41, %v3477_v28  ;;  %v3109_v33 = vld [vmem:[#allocation16 + $0x498] sm:$0xff]  ;;  %v3119_v28 = vld [vmem:[#allocation16 + $0x4e8] sm:$0xff]  ;;  %v3493_v10 = vld [vmem:[#allocation17 + $0x160] sm:$0xff] }
 0x3a4   :  { %8938 = vmatprep.subr.bf16.mxu1 %v8937_v59  ;;  %9014 = vmatprep.subr.bf16.mxu0 %v9013_v43  ;;  %v3483_v59 = vld [vmem:[#allocation17 + $0x110] sm:$0xff]  ;;  %v3114_v43 = vld [vmem:[#allocation16 + $0x4c0] sm:$0xff] }
 0x3a5   :  { %v8159_v46 = vpop.f32.mrb[102].mxu0  ;;  %v11741_v45 = vadd.f32 %v8158_v25, %v11696_v34  ;;  %v9019_v51 = vpack.c.bf16 %v3483_v59, %v3481_v27  ;;  %v3489_v27 = vld [vmem:[#allocation17 + $0x140] sm:$0xff]  ;;  %v3491_v59 = vld [vmem:[#allocation17 + $0x150] sm:$0xff] }
 0x3a6   :  { %v8160_v22 = vpop.f32.mrb[103].mxu0  ;;  %v12804_v13 = vld [vmem:[#allocation55_spill] sm:$0xff] }
 0x3a7   :  { %12715 = vst [vmem:[#allocation140_spill] sm:$0xff] %v11741_v45  ;;  %v8161_v30 = vadd.f32 %v8160_v22, %v8159_v46  ;;  %8940 = vmatpush1.bf16.msra.mxu1 %v8939_v12  ;;  %9016 = vmatpush1.bf16.msra.mxu0 %v9015_v14  ;;  %v8947_v12 = vpack.c.bf16 %v3109_v33, %v3104_v4  ;;  %v3487_v22 = vld [vmem:[#allocation17 + $0x130] sm:$0xff]  ;;  %v3494_v4 = vld [vmem:[#allocation17 + $0x168] sm:$0xff]  ;;  %v3496_v33 = vld [vmem:[#allocation17 + $0x178] sm:$0xff] }
 0x3a8   :  { %8942 = vmatprep.subr.bf16.mxu1 %v8941_v29  ;;  %9018 = vmatprep.subr.bf16.mxu0 %v9017_v57  ;;  %v8951_v46 = vpack.c.bf16 %v3119_v28, %v3114_v43  ;;  %v9023_v14 = vpack.c.bf16 %v3487_v22, %v3485_v37  ;;  %v3504_v43 = vld [vmem:[#allocation17 + $0x1b8] sm:$0xff]  ;;  %v3509_v22 = vld [vmem:[#allocation17 + $0x1e0] sm:$0xff]  ;;  %v12802_v45 = vld [vmem:[#allocation53_spill] sm:$0xff] }
 0x3a9   :  { %v8162_v63 = vpop.f32.mrb[104].mxu0  ;;  %v11744_v34 = vadd.f32 %v8161_v30, %v11700_v24  ;;  %v3488_v24 = vld [vmem:[#allocation17 + $0x138] sm:$0xff] }
 0x3aa   :  { %v8163_v40 = vpop.f32.mrb[105].mxu0  ;;  %v9021_v49 = vpack.c.bf16 %v3488_v24, %v3486_v62  ;;  %v3508_v62 = vld [vmem:[#allocation17 + $0x1d8] sm:$0xff] }
 0x3ab   :  { %12716 = vst [vmem:[#allocation141_spill] sm:$0xff] %v11744_v34  ;;  %v8164_v25 = vadd.f32 %v8163_v40, %v8162_v63  ;;  %8944 = vmatpush1.bf16.msra.mxu1 %v8943_v6  ;;  %9020 = vmatpush1.bf16.msra.mxu0 %v9019_v51  ;;  %v3490_v6 = vld [vmem:[#allocation17 + $0x148] sm:$0xff]  ;;  %v9029_v63 = vpack.c.bf16 %v3496_v33, %v3494_v4  ;;  %v3500_v51 = vld [vmem:[#allocation17 + $0x198] sm:$0xff]  ;;  %v12800_v34 = vld [vmem:[#allocation51_spill] sm:$0xff] }
 0x3ac   :  { %8946 = vmatprep.subr.bf16.mxu1 %v8945_v39  ;;  %9022 = vmatprep.subr.bf16.mxu0 %v9021_v49  ;;  %v9027_v39 = vpack.c.bf16 %v3491_v59, %v3489_v27  ;;  %v3498_v40 = vld [vmem:[#allocation17 + $0x188] sm:$0xff]  ;;  %v3512_v49 = vld [vmem:[#allocation17 + $0x1f8] sm:$0xff] }
 0x3ad   :  { %v8165_v41 = vpop.f32.mrb[106].mxu0  ;;  %v11747_v29 = vadd.f32 %v8164_v25, %v11708_v31  ;;  %v3492_v31 = vld [vmem:[#allocation17 + $0x158] sm:$0xff]  ;;  %v9033_v25 = vpack.c.bf16 %v3500_v51, %v3498_v40 }
 0x3ae   :  { %v8166_v15 = vpop.f32.mrb[107].mxu0  ;;  %v9025_v57 = vpack.c.bf16 %v3492_v31, %v3490_v6  ;;  %v3516_v6 = vld [vmem:[#allocation17 + $0x218] sm:$0xff] }
 0x3af   :  { %12717 = vst [vmem:[#allocation142_spill] sm:$0xff] %v11747_v29  ;;  %v8167_v9 = vadd.f32 %v8166_v15, %v8165_v41  ;;  %8948 = vmatpush1.bf16.msra.mxu1 %v8947_v12  ;;  %9024 = vmatpush1.bf16.msra.mxu0 %v9023_v14  ;;  %v3497_v12 = vld [vmem:[#allocation17 + $0x180] sm:$0xff]  ;;  %v12798_v29 = vld [vmem:[#allocation49_spill] sm:$0xff] }
 0x3b0   :  { %8950 = vmatprep.subr.bf16.mxu1 %v8949_v44  ;;  %9026 = vmatprep.subr.bf16.mxu0 %v9025_v57  ;;  %v3501_v41 = vld [vmem:[#allocation17 + $0x1a0] sm:$0xff] }
 0x3b1   :  { %v11750_v30 = vadd.f32 %v8167_v9, %v11716_v11  ;;  %v3495_v11 = vld [vmem:[#allocation17 + $0x170] sm:$0xff]  ;;  %v3505_v9 = vld [vmem:[#allocation17 + $0x1c0] sm:$0xff] }
 0x3b2   :  { %v9031_v38 = vpack.c.bf16 %v3495_v11, %v3493_v10 }
 0x3b3   :  { %12718 = vst [vmem:[#allocation143_spill] sm:$0xff] %v11750_v30  ;;  %8952 = vmatpush1.bf16.msra.mxu1 %v8951_v46  ;;  %9028 = vmatpush1.bf16.msra.mxu0 %v9027_v39  ;;  %v12796_v30 = vld [vmem:[#allocation95_spill] sm:$0xff] }
 0x3b4   :  { %9030 = vmatprep.subr.bf16.mxu0 %v9029_v63 }
 0x3b6   :  { %3288 = vmatmul.mubr.f32.vlgmr.msra.gmra.mrb[120].mxu1 %v11638_v52  ;;  %v3499_v52 = vld [vmem:[#allocation17 + $0x190] sm:$0xff] }
 0x3b7   :  { %3293 = vmatprep.mubr.f32.mxu1 %v11649_v26  ;;  %9032 = vmatpush1.bf16.msra.mxu0 %v9031_v38  ;;  %v9035_v44 = vpack.c.bf16 %v3499_v52, %v3497_v12  ;;  %v3502_v26 = vld [vmem:[#allocation17 + $0x1a8] sm:$0xff] }
 0x3b8   :  { %9034 = vmatprep.subr.bf16.mxu0 %v9033_v25  ;;  %v9037_v28 = vpack.c.bf16 %v3504_v43, %v3502_v26 }
 0x3ba   :  { %3294 = vmatmul.mubr.f32.gmra.mrb[122].mxu1 %v11645_v48  ;;  %v3503_v48 = vld [vmem:[#allocation17 + $0x1b0] sm:$0xff] }
 0x3bb   :  { %3299 = vmatprep.mubr.f32.mxu1 %v11657_v56  ;;  %9036 = vmatpush1.bf16.msra.mxu0 %v9035_v44  ;;  %v9039_v15 = vpack.c.bf16 %v3503_v48, %v3501_v41  ;;  %v3506_v56 = vld [vmem:[#allocation17 + $0x1c8] sm:$0xff] }
 0x3bc   :  { %9038 = vmatprep.subr.bf16.mxu0 %v9037_v28  ;;  %v9041_v24 = vpack.c.bf16 %v3508_v62, %v3506_v56 }
 0x3be   :  { %3300 = vmatmul.mubr.f32.gmra.mrb[124].mxu1 %v11654_v16  ;;  %v3507_v16 = vld [vmem:[#allocation17 + $0x1d0] sm:$0xff] }
 0x3bf   :  { %3305 = vmatprep.mubr.f32.mxu1 %v11665_v55  ;;  %9040 = vmatpush1.bf16.msra.mxu0 %v9039_v15  ;;  %v9043_v46 = vpack.c.bf16 %v3507_v16, %v3505_v9  ;;  %v3510_v55 = vld [vmem:[#allocation17 + $0x1e8] sm:$0xff] }
 0x3c0   :  { %9042 = vmatprep.subr.bf16.mxu0 %v9041_v24  ;;  %v9045_v37 = vpack.c.bf16 %v3512_v49, %v3510_v55 }
 0x3c2   :  { %3306 = vmatmul.mubr.f32.gmra.mrb[126].mxu1 %v11662_v5  ;;  %v3511_v5 = vld [vmem:[#allocation17 + $0x1f0] sm:$0xff] }
 0x3c3   :  { %3311 = vmatprep.mubr.f32.mxu1 %v11673_v61  ;;  %9044 = vmatpush1.bf16.msra.mxu0 %v9043_v46  ;;  %v9047_v14 = vpack.c.bf16 %v3511_v5, %v3509_v22  ;;  %v3514_v61 = vld [vmem:[#allocation17 + $0x208] sm:$0xff] }
 0x3c4   :  { %9046 = vmatprep.subr.bf16.mxu0 %v9045_v37  ;;  %v9049_v31 = vpack.c.bf16 %v3516_v6, %v3514_v61  ;;  %v3515_v61 = vld [vmem:[#allocation17 + $0x210] sm:$0xff] }
 0x3c6   :  { %3312 = vmatmul.mubr.f32.gmra.mrb[128].mxu1 %v11670_v36 }
 0x3c7   :  { %3317 = vmatprep.mubr.f32.mxu1 %v11681_v42  ;;  %9048 = vmatpush1.bf16.msra.mxu0 %v9047_v14  ;;  %v3513_v14 = vld [vmem:[#allocation17 + $0x200] sm:$0xff] }
 0x3c8   :  { %9050 = vmatprep.subr.bf16.mxu0 %v9049_v31  ;;  %v3518_v31 = vld [vmem:[#allocation17 + $0x228] sm:$0xff] }
 0x3ca   :  { %3318 = vmatmul.mubr.f32.gmra.mrb[130].mxu1 %v11678_v23 }
 0x3cb   :  { %3976 = vmatprep.mubr.f32.mxu1 %v12658_v3 }
 0x409   :  { %v2725_v36 = vpop.f32.mrb[96].mxu1 }
 0x40a   :  { %v11764_v57 = vpop.f32.mrb[97].mxu1 }
 0x40b   :  { %12719 = vst [vmem:[#allocation144_spill] sm:$0xff] %v11764_v57  ;;  %v12806_v57 = vld [vmem:[#allocation57_spill] sm:$0xff] }
 0x40d   :  { %v2731_v27 = vpop.f32.mrb[98].mxu1 }
 0x40e   :  { %v11766_v59 = vpop.f32.mrb[99].mxu1 }
 0x40f   :  { %12720 = vst [vmem:[#allocation145_spill] sm:$0xff] %v11766_v59 }
 0x411   :  { %v2737_v42 = vpop.f32.mrb[100].mxu1 }
 0x412   :  { %v11768_v39 = vpop.f32.mrb[101].mxu1 }
 0x413   :  { %12721 = vst [vmem:[#allocation146_spill] sm:$0xff] %v11768_v39 }
 0x415   :  { %v2743_v4 = vpop.f32.mrb[102].mxu1 }
 0x416   :  { %v11770_v33 = vpop.f32.mrb[103].mxu1 }
 0x417   :  { %12722 = vst [vmem:[#allocation147_spill] sm:$0xff] %v11770_v33 }
 0x419   :  { %v2749_v23 = vpop.f32.mrb[104].mxu1 }
 0x41a   :  { %v11772_v63 = vpop.f32.mrb[105].mxu1 }
 0x41b   :  { %12723 = vst [vmem:[#allocation148_spill] sm:$0xff] %v11772_v63 }
 0x41d   :  { %v2755_v10 = vpop.f32.mrb[106].mxu1 }
 0x41e   :  { %v11774_v11 = vpop.f32.mrb[107].mxu1 }
 0x41f   :  { %12724 = vst [vmem:[#allocation149_spill] sm:$0xff] %v11774_v11 }
 0x430   :  { %v8200_v38 = vpop.f32.mrb[108].mxu0 }
 0x431   :  { %v8201_v40 = vpop.f32.mrb[109].mxu0 }
 0x432   :  { %v8202_v51 = vadd.f32 %v8201_v40, %v8200_v38  ;;  %v9051_v38 = vpack.c.bf16 %v3515_v61, %v3513_v14  ;;  %v3530_v61 = vld [vmem:[#allocation17 + $0x288] sm:$0xff] }
 0x434   :  { %v11776_v25 = vmul.f32 %v8202_v51, %v2725_v36  ;;  %v8203_v12 = vpop.f32.mrb[110].mxu0  ;;  %v3520_v36 = vld [vmem:[#allocation17 + $0x238] sm:$0xff]  ;;  %v3517_v51 = vld [vmem:[#allocation17 + $0x220] sm:$0xff] }
 0x435   :  { %v8204_v52 = vpop.f32.mrb[111].mxu0  ;;  %v9053_v40 = vpack.c.bf16 %v3520_v36, %v3518_v31 }
 0x436   :  { %v8205_v44 = vadd.f32 %v8204_v52, %v8203_v12  ;;  %v3522_v52 = vld [vmem:[#allocation17 + $0x248] sm:$0xff] }
 0x438   :  { %v11778_v26 = vmul.f32 %v8205_v44, %v2731_v27  ;;  %v8206_v43 = vpop.f32.mrb[112].mxu0  ;;  %v3524_v44 = vld [vmem:[#allocation17 + $0x258] sm:$0xff] }
 0x439   :  { %v8207_v28 = vpop.f32.mrb[113].mxu0 }
 0x43a   :  { %v8208_v41 = vadd.f32 %v8207_v28, %v8206_v43 }
 0x43c   :  { %v11780_v48 = vmul.f32 %v8208_v41, %v2737_v42  ;;  %v8209_v15 = vpop.f32.mrb[114].mxu0 }
 0x43d   :  { %v8210_v56 = vpop.f32.mrb[115].mxu0 }
 0x43e   :  { %v8211_v62 = vadd.f32 %v8210_v56, %v8209_v15  ;;  %v3521_v15 = vld [vmem:[#allocation17 + $0x240] sm:$0xff] }
 0x440   :  { %v11782_v24 = vmul.f32 %v8211_v62, %v2743_v4  ;;  %v8212_v9 = vpop.f32.mrb[116].mxu0  ;;  %v3526_v62 = vld [vmem:[#allocation17 + $0x268] sm:$0xff] }
 0x441   :  { %v8213_v16 = vpop.f32.mrb[117].mxu0 }
 0x442   :  { %v8214_v46 = vadd.f32 %v8213_v16, %v8212_v9  ;;  %v3528_v9 = vld [vmem:[#allocation17 + $0x278] sm:$0xff] }
 0x444   :  { %v11784_v55 = vmul.f32 %v8214_v46, %v2749_v23  ;;  %v8215_v49 = vpop.f32.mrb[118].mxu0  ;;  %v3519_v23 = vld [vmem:[#allocation17 + $0x230] sm:$0xff] }
 0x445   :  { %v8216_v37 = vpop.f32.mrb[119].mxu0  ;;  %v9055_v41 = vpack.c.bf16 %v3519_v23, %v3517_v51  ;;  %v3536_v51 = vld [vmem:[#allocation17 + $0x2b8] sm:$0xff] }
 0x446   :  { %v8217_v22 = vadd.f32 %v8216_v37, %v8215_v49  ;;  %v3525_v37 = vld [vmem:[#allocation17 + $0x260] sm:$0xff] }
 0x448   :  { %v11786_v5 = vmul.f32 %v8217_v22, %v2755_v10  ;;  %v3527_v22 = vld [vmem:[#allocation17 + $0x270] sm:$0xff] }
 0x449   :  { %v3188_v6 = vpop.f32.mrb[108].mxu1 }
 0x44a   :  { %v3419_v27 = vmul.f32 %v3188_v6, %v11600_v0  ;;  %v3190_v42 = vpop.f32.mrb[109].mxu1  ;;  %v9057_v0 = vpack.c.bf16 %v3524_v44, %v3522_v52  ;;  %v3532_v6 = vld [vmem:[#allocation17 + $0x298] sm:$0xff]  ;;  %v3533_v44 = vld [vmem:[#allocation17 + $0x2a0] sm:$0xff] }
 0x44b   :  { %v3420_v4 = vmul.f32 %v3190_v42, %v11602_v1  ;;  %v3523_v1 = vld [vmem:[#allocation17 + $0x250] sm:$0xff]  ;;  %v3529_v42 = vld [vmem:[#allocation17 + $0x280] sm:$0xff] }
 0x44c   :  { %v9059_v49 = vpack.c.bf16 %v3523_v1, %v3521_v15 }
 0x44d   :  { %v3194_v12 = vpop.f32.mrb[110].mxu1  ;;  %3673 = vmatprep.mubr.f32.mxu0 %v3420_v4  ;;  %v3531_v4 = vld [vmem:[#allocation17 + $0x290] sm:$0xff] }
 0x44e   :  { %v3424_v10 = vmul.f32 %v3194_v12, %v11606_v18  ;;  %v3196_v43 = vpop.f32.mrb[111].mxu1  ;;  %3674 = vmatmul.mubr.f32.vlgmr.msra.gmra.mrb[120].mxu0 %v3419_v27  ;;  %v9063_v27 = vpack.c.bf16 %v3527_v22, %v3525_v37  ;;  %v9067_v52 = vpack.c.bf16 %v3531_v4, %v3529_v42  ;;  %v3548_v37 = vld [vmem:[#allocation17 + $0x318] sm:$0xff]  ;;  %v3554_v42 = vld [vmem:[#allocation17 + $0x348] sm:$0xff] }
 0x44f   :  { %v3425_v28 = vmul.f32 %v3196_v43, %v11608_v2  ;;  %9052 = vmatpush1.bf16.msra.mxu0 %v9051_v38  ;;  %v9061_v2 = vpack.c.bf16 %v3528_v9, %v3526_v62  ;;  %v3539_v62 = vld [vmem:[#allocation17 + $0x2d0] sm:$0xff]  ;;  %v3542_v9 = vld [vmem:[#allocation17 + $0x2e8] sm:$0xff]  ;;  %v3556_v4 = vld [vmem:[#allocation17 + $0x358] sm:$0xff] }
 0x450   :  { %9054 = vmatprep.subr.bf16.mxu0 %v9053_v40  ;;  %v3534_v40 = vld [vmem:[#allocation17 + $0x2a8] sm:$0xff] }
 0x451   :  { %v3200_v56 = vpop.f32.mrb[112].mxu1  ;;  %3679 = vmatprep.mubr.f32.mxu0 %v3425_v28  ;;  %v3538_v28 = vld [vmem:[#allocation17 + $0x2c8] sm:$0xff] }
 0x452   :  { %v3429_v16 = vmul.f32 %v3200_v56, %v11610_v35  ;;  %v3202_v46 = vpop.f32.mrb[113].mxu1  ;;  %3680 = vmatmul.mubr.f32.gmra.mrb[122].mxu0 %v3424_v10  ;;  %v3535_v10 = vld [vmem:[#allocation17 + $0x2b0] sm:$0xff]  ;;  %v3537_v56 = vld [vmem:[#allocation17 + $0x2c0] sm:$0xff] }
 0x453   :  { %v3430_v18 = vmul.f32 %v3202_v46, %v11612_v7  ;;  %9056 = vmatpush1.bf16.msra.mxu0 %v9055_v41  ;;  %v9065_v7 = vpack.c.bf16 %v3532_v6, %v3530_v61  ;;  %v3540_v41 = vld [vmem:[#allocation17 + $0x2d8] sm:$0xff]  ;;  %v9071_v1 = vpack.c.bf16 %v3535_v10, %v3533_v44  ;;  %v9075_v46 = vpack.c.bf16 %v3539_v62, %v3537_v56  ;;  %v3547_v61 = vld [vmem:[#allocation17 + $0x310] sm:$0xff]  ;;  %v3550_v6 = vld [vmem:[#allocation17 + $0x328] sm:$0xff] }
 0x454   :  { %9058 = vmatprep.subr.bf16.mxu0 %v9057_v0  ;;  %v3557_v44 = vld [vmem:[#allocation17 + $0x360] sm:$0xff]  ;;  %v3559_v10 = vld [vmem:[#allocation17 + $0x370] sm:$0xff] }
 0x455   :  { %v3206_v14 = vpop.f32.mrb[114].mxu1  ;;  %3685 = vmatprep.mubr.f32.mxu0 %v3430_v18 }
 0x456   :  { %v3434_v31 = vmul.f32 %v3206_v14, %v11614_v53  ;;  %v3208_v36 = vpop.f32.mrb[115].mxu1  ;;  %3686 = vmatmul.mubr.f32.gmra.mrb[124].mxu0 %v3429_v16  ;;  %v3544_v16 = vld [vmem:[#allocation17 + $0x2f8] sm:$0xff]  ;;  %v3545_v14 = vld [vmem:[#allocation17 + $0x300] sm:$0xff] }
 0x457   :  { %v3435_v35 = vmul.f32 %v3208_v36, %v11616_v21  ;;  %9060 = vmatpush1.bf16.msra.mxu0 %v9059_v49  ;;  %v9069_v21 = vpack.c.bf16 %v3536_v51, %v3534_v40  ;;  %v9077_v18 = vpack.c.bf16 %v3544_v16, %v3542_v9  ;;  %v3541_v49 = vld [vmem:[#allocation17 + $0x2e0] sm:$0xff]  ;;  %v9083_v36 = vpack.c.bf16 %v3547_v61, %v3545_v14  ;;  %v3567_v16 = vld [vmem:[#allocation17 + $0x3b0] sm:$0xff] }
 0x458   :  { %9062 = vmatprep.subr.bf16.mxu0 %v9061_v2  ;;  %v3546_v2 = vld [vmem:[#allocation17 + $0x308] sm:$0xff]  ;;  %v9089_v40 = vpack.c.bf16 %v3556_v4, %v3554_v42  ;;  %v3553_v51 = vld [vmem:[#allocation17 + $0x340] sm:$0xff]  ;;  %v3579_v4 = vld [vmem:[#allocation17 + $0x410] sm:$0xff] }
 0x459   :  { %v3212_v38 = vpop.f32.mrb[116].mxu1  ;;  %3691 = vmatprep.mubr.f32.mxu0 %v3435_v35  ;;  %v9081_v22 = vpack.c.bf16 %v3548_v37, %v3546_v2  ;;  %v3565_v9 = vld [vmem:[#allocation17 + $0x3a0] sm:$0xff]  ;;  %v3571_v37 = vld [vmem:[#allocation17 + $0x3d0] sm:$0xff] }
 0x45a   :  { %v3439_v23 = vmul.f32 %v3212_v38, %v11618_v17  ;;  %v3214_v12 = vpop.f32.mrb[117].mxu1  ;;  %3692 = vmatmul.mubr.f32.gmra.mrb[126].mxu0 %v3434_v31  ;;  %v3552_v31 = vld [vmem:[#allocation17 + $0x338] sm:$0xff]  ;;  %v3569_v2 = vld [vmem:[#allocation17 + $0x3c0] sm:$0xff] }
 0x45b   :  { %v3440_v53 = vmul.f32 %v3214_v12, %v11620_v54  ;;  %9064 = vmatpush1.bf16.msra.mxu0 %v9063_v27  ;;  %v9073_v54 = vpack.c.bf16 %v3540_v41, %v3538_v28  ;;  %v9085_v35 = vpack.c.bf16 %v3552_v31, %v3550_v6  ;;  %v3549_v27 = vld [vmem:[#allocation17 + $0x320] sm:$0xff]  ;;  %v3558_v12 = vld [vmem:[#allocation17 + $0x368] sm:$0xff]  ;;  %v3564_v28 = vld [vmem:[#allocation17 + $0x398] sm:$0xff]  ;;  %v9095_v41 = vpack.c.bf16 %v3559_v10, %v3557_v44 }
 0x45c   :  { %9066 = vmatprep.subr.bf16.mxu0 %v9065_v7  ;;  %v3551_v7 = vld [vmem:[#allocation17 + $0x330] sm:$0xff]  ;;  %v9107_v14 = vpack.c.bf16 %v3571_v37, %v3569_v2  ;;  %v3573_v6 = vld [vmem:[#allocation17 + $0x3e0] sm:$0xff]  ;;  %v3594_v37 = vld [vmem:[#allocation17 + $0x488] sm:$0xff] }
 0x45d   :  { %v3218_v43 = vpop.f32.mrb[118].mxu1  ;;  %3697 = vmatprep.mubr.f32.mxu0 %v3440_v53  ;;  %v9087_v38 = vpack.c.bf16 %v3551_v7, %v3549_v27  ;;  %v3560_v53 = vld [vmem:[#allocation17 + $0x378] sm:$0xff]  ;;  %v3575_v31 = vld [vmem:[#allocation17 + $0x3f0] sm:$0xff]  ;;  %v3577_v42 = vld [vmem:[#allocation17 + $0x400] sm:$0xff] }
 0x45e   :  { %v3444_v0 = vmul.f32 %v3218_v43, %v11622_v32  ;;  %v3220_v15 = vpop.f32.mrb[119].mxu1  ;;  %3698 = vmatmul.mubr.f32.gmra.mrb[128].mxu0 %v3439_v23  ;;  %v3543_v32 = vld [vmem:[#allocation17 + $0x2f0] sm:$0xff]  ;;  %v3562_v43 = vld [vmem:[#allocation17 + $0x388] sm:$0xff]  ;;  %v9111_v27 = vpack.c.bf16 %v3575_v31, %v3573_v6  ;;  %v3581_v44 = vld [vmem:[#allocation17 + $0x420] sm:$0xff] }
 0x45f   :  { %v3445_v17 = vmul.f32 %v3220_v15, %v11624_v50  ;;  %9068 = vmatpush1.bf16.msra.mxu0 %v9067_v52  ;;  %v9079_v50 = vpack.c.bf16 %v3543_v32, %v3541_v49  ;;  %v3555_v23 = vld [vmem:[#allocation17 + $0x350] sm:$0xff]  ;;  %v3561_v15 = vld [vmem:[#allocation17 + $0x380] sm:$0xff]  ;;  %v9103_v49 = vpack.c.bf16 %v3567_v16, %v3565_v9  ;;  %v3592_v9 = vld [vmem:[#allocation17 + $0x478] sm:$0xff] }
 0x460   :  { %9070 = vmatprep.subr.bf16.mxu0 %v9069_v21  ;;  %v9091_v52 = vpack.c.bf16 %v3555_v23, %v3553_v51  ;;  %v9093_v21 = vpack.c.bf16 %v3560_v53, %v3558_v12  ;;  %v3584_v51 = vld [vmem:[#allocation17 + $0x438] sm:$0xff]  ;;  %v3583_v10 = vld [vmem:[#allocation17 + $0x430] sm:$0xff] }
 0x461   :  { %3703 = vmatprep.mubr.f32.mxu0 %v3445_v17  ;;  %v3563_v17 = vld [vmem:[#allocation17 + $0x390] sm:$0xff] }
 0x462   :  { %3704 = vmatmul.mubr.f32.gmra.mrb[130].mxu0 %v3444_v0  ;;  %v9097_v0 = vpack.c.bf16 %v3564_v28, %v3562_v43  ;;  %v9099_v56 = vpack.c.bf16 %v3563_v17, %v3561_v15  ;;  %v3586_v28 = vld [vmem:[#allocation17 + $0x448] sm:$0xff]  ;;  %v12726_v6 = vld [vmem:[#allocation133_spill] sm:$0xff] }
 0x463   :  { %9072 = vmatpush1.bf16.msra.mxu0 %v9071_v1  ;;  %v3566_v1 = vld [vmem:[#allocation17 + $0x3a8] sm:$0xff] }
 0x464   :  { %9074 = vmatprep.subr.bf16.mxu0 %v9073_v54  ;;  %v3568_v54 = vld [vmem:[#allocation17 + $0x3b8] sm:$0xff] }
 0x465   :  { %v9101_v62 = vpack.c.bf16 %v3568_v54, %v3566_v1  ;;  %v3585_v1 = vld [vmem:[#allocation17 + $0x440] sm:$0xff]  ;;  %v3587_v54 = vld [vmem:[#allocation17 + $0x450] sm:$0xff] }
 0x467   :  { %9076 = vmatpush1.bf16.msra.mxu0 %v9075_v46  ;;  %v3570_v46 = vld [vmem:[#allocation17 + $0x3c8] sm:$0xff] }
 0x468   :  { %9078 = vmatprep.subr.bf16.mxu0 %v9077_v18  ;;  %v3572_v18 = vld [vmem:[#allocation17 + $0x3d8] sm:$0xff] }
 0x469   :  { %v9105_v32 = vpack.c.bf16 %v3572_v18, %v3570_v46  ;;  %v9123_v18 = vpack.c.bf16 %v3587_v54, %v3585_v1  ;;  %v3601_v1 = vld [vmem:[#allocation17 + $0x4c0] sm:$0xff]  ;;  %v3603_v54 = vld [vmem:[#allocation17 + $0x4d0] sm:$0xff] }
 0x46b   :  { %9080 = vmatpush1.bf16.msra.mxu0 %v9079_v50  ;;  %v3574_v50 = vld [vmem:[#allocation17 + $0x3e8] sm:$0xff] }
 0x46c   :  { %9082 = vmatprep.subr.bf16.mxu0 %v9081_v22  ;;  %v3576_v22 = vld [vmem:[#allocation17 + $0x3f8] sm:$0xff] }
 0x46d   :  { %v9109_v61 = vpack.c.bf16 %v3576_v22, %v3574_v50  ;;  %v3596_v50 = vld [vmem:[#allocation17 + $0x498] sm:$0xff]  ;;  %v12725_v22 = vld [vmem:[#allocation132_spill] sm:$0xff] }
 0x46f   :  { %9084 = vmatpush1.bf16.msra.mxu0 %v9083_v36  ;;  %v3578_v36 = vld [vmem:[#allocation17 + $0x408] sm:$0xff] }
 0x470   :  { %9086 = vmatprep.subr.bf16.mxu0 %v9085_v35  ;;  %v3580_v35 = vld [vmem:[#allocation17 + $0x418] sm:$0xff] }
 0x471   :  { %v9113_v7 = vpack.c.bf16 %v3580_v35, %v3578_v36  ;;  %v3593_v36 = vld [vmem:[#allocation17 + $0x480] sm:$0xff]  ;;  %v3595_v35 = vld [vmem:[#allocation17 + $0x490] sm:$0xff] }
 0x473   :  { %9088 = vmatpush1.bf16.msra.mxu0 %v9087_v38 }
 0x474   :  { %9090 = vmatprep.subr.bf16.mxu0 %v9089_v40  ;;  %v3582_v40 = vld [vmem:[#allocation17 + $0x428] sm:$0xff] }
 0x477   :  { %9092 = vmatpush1.bf16.msra.mxu0 %v9091_v52  ;;  %v9115_v52 = vpack.c.bf16 %v3579_v4, %v3577_v42  ;;  %v3600_v42 = vld [vmem:[#allocation17 + $0x4b8] sm:$0xff] }
 0x478   :  { %9094 = vmatprep.subr.bf16.mxu0 %v9093_v21  ;;  %v9117_v21 = vpack.c.bf16 %v3584_v51, %v3582_v40  ;;  %v12727_v4 = vld [vmem:[#allocation134_spill] sm:$0xff]  ;;  %v12728_v51 = vld [vmem:[#allocation135_spill] sm:$0xff] }
 0x47b   :  { %9096 = vmatpush1.bf16.msra.mxu0 %v9095_v41  ;;  %v3588_v41 = vld [vmem:[#allocation17 + $0x458] sm:$0xff] }
 0x47c   :  { %9098 = vmatprep.subr.bf16.mxu0 %v9097_v0 }
 0x47f   :  { %9100 = vmatpush1.bf16.msra.mxu0 %v9099_v56 }
 0x480   :  { %9102 = vmatprep.subr.bf16.mxu0 %v9101_v62  ;;  %v3590_v62 = vld [vmem:[#allocation17 + $0x468] sm:$0xff] }
 0x483   :  { %9104 = vmatpush1.bf16.msra.mxu0 %v9103_v49  ;;  %v3589_v49 = vld [vmem:[#allocation17 + $0x460] sm:$0xff] }
 0x484   :  { %9106 = vmatprep.subr.bf16.mxu0 %v9105_v32  ;;  %v3591_v32 = vld [vmem:[#allocation17 + $0x470] sm:$0xff] }
 0x485   :  { %v9127_v31 = vpack.c.bf16 %v3591_v32, %v3589_v49 }
 0x487   :  { %9108 = vmatpush1.bf16.msra.mxu0 %v9107_v14 }
 0x488   :  { %9110 = vmatprep.subr.bf16.mxu0 %v9109_v61 }
 0x489   :  { %v3289_v38 = vpop.f32.mrb[120].mxu1 }
 0x48a   :  { %v3421_v23 = vmul.f32 %v3289_v38, %v11704_v47  ;;  %v3291_v12 = vpop.f32.mrb[121].mxu1  ;;  %v9119_v47 = vpack.c.bf16 %v3583_v10, %v3581_v44  ;;  %v3602_v10 = vld [vmem:[#allocation17 + $0x4c8] sm:$0xff] }
 0x48b   :  { %v3422_v53 = vmul.f32 %v3291_v12, %v11706_v20  ;;  %9112 = vmatpush1.bf16.msra.mxu0 %v9111_v27  ;;  %v9121_v20 = vpack.c.bf16 %v3588_v41, %v3586_v28  ;;  %v9131_v12 = vpack.c.bf16 %v3595_v35, %v3593_v36  ;;  %v12729_v28 = vld [vmem:[#allocation136_spill] sm:$0xff]  ;;  %v10260_v35 = vld [vmem:[#allocation2 + $0x10] sm:$0xff] }
 0x48c   :  { %9114 = vmatprep.subr.bf16.mxu0 %v9113_v7  ;;  %v3598_v7 = vld [vmem:[#allocation17 + $0x4a8] sm:$0xff] }
 0x48d   :  { %v3295_v43 = vpop.f32.mrb[122].mxu1  ;;  %3774 = vmatprep.mubr.f32.mxu0 %v3422_v53  ;;  %v9133_v53 = vpack.c.bf16 %v3600_v42, %v3598_v7  ;;  %v10259_v36 = vld [vmem:[#allocation2 + $0x8] sm:$0xff]  ;;  %v10262_v7 = vld [vmem:[#allocation2 + $0x20] sm:$0xff] }
 0x48e   :  { %v3426_v0 = vmul.f32 %v3295_v43, %v11712_v19  ;;  %v3297_v15 = vpop.f32.mrb[123].mxu1  ;;  %3775 = vmatmul.mubr.f32.vlgmr.msra.gmra.mrb[120].mxu0 %v3421_v23  ;;  %v3604_v43 = vld [vmem:[#allocation17 + $0x4d8] sm:$0xff]  ;;  %v10263_v42 = vld [vmem:[#allocation2 + $0x28] sm:$0xff] }
 0x48f   :  { %v3427_v17 = vmul.f32 %v3297_v15, %v11714_v60  ;;  %9116 = vmatpush1.bf16.msra.mxu0 %v9115_v52  ;;  %v9125_v60 = vpack.c.bf16 %v3592_v9, %v3590_v62  ;;  %v3597_v52 = vld [vmem:[#allocation17 + $0x4a0] sm:$0xff]  ;;  %v12730_v15 = vld [vmem:[#allocation137_spill] sm:$0xff]  ;;  %v3608_v62 = vld [vmem:[#allocation17 + $0x4f8] sm:$0xff]  ;;  %v9139_v9 = vpack.c.bf16 %v3603_v54, %v3601_v1 }
 0x490   :  { %9118 = vmatprep.subr.bf16.mxu0 %v9117_v21  ;;  %v3599_v21 = vld [vmem:[#allocation17 + $0x4b0] sm:$0xff] }
 0x491   :  { %v3301_v56 = vpop.f32.mrb[124].mxu1  ;;  %3780 = vmatprep.mubr.f32.mxu0 %v3427_v17 }
 0x492   :  { %v3431_v16 = vmul.f32 %v3301_v56, %v11718_v8  ;;  %v3303_v46 = vpop.f32.mrb[125].mxu1  ;;  %3781 = vmatmul.mubr.f32.gmra.mrb[122].mxu0 %v3426_v0  ;;  %v3606_v56 = vld [vmem:[#allocation17 + $0x4e8] sm:$0xff] }
 0x493   :  { %v3432_v19 = vmul.f32 %v3303_v46, %v11720_v58  ;;  %9120 = vmatpush1.bf16.msra.mxu0 %v9119_v47  ;;  %v9129_v58 = vpack.c.bf16 %v3596_v50, %v3594_v37  ;;  %v9135_v47 = vpack.c.bf16 %v3599_v21, %v3597_v52  ;;  %v3605_v46 = vld [vmem:[#allocation17 + $0x4e0] sm:$0xff]  ;;  %v4146_v52 = vld [vmem:[#allocation25 + $0x18] sm:$0xff] }
 0x494   :  { %9122 = vmatprep.subr.bf16.mxu0 %v9121_v20  ;;  %v9137_v20 = vpack.c.bf16 %v3604_v43, %v3602_v10 }
 0x495   :  { %v3307_v2 = vpop.f32.mrb[126].mxu1  ;;  %3786 = vmatprep.mubr.f32.mxu0 %v3432_v19  ;;  %v3607_v19 = vld [vmem:[#allocation17 + $0x4f0] sm:$0xff] }
 0x496   :  { %v3436_v14 = vmul.f32 %v3307_v2, %v12725_v22  ;;  %v3309_v61 = vpop.f32.mrb[127].mxu1  ;;  %3787 = vmatmul.mubr.f32.gmra.mrb[124].mxu0 %v3431_v16  ;;  %v9141_v16 = vpack.c.bf16 %v3608_v62, %v3606_v56 }
 0x497   :  { %v3437_v8 = vmul.f32 %v3309_v61, %v12726_v6  ;;  %9124 = vmatpush1.bf16.msra.mxu0 %v9123_v18  ;;  %v9143_v18 = vpack.c.bf16 %v3607_v19, %v3605_v46 }
 0x498   :  { %9126 = vmatprep.subr.bf16.mxu0 %v9125_v60 }
 0x499   :  { %v3313_v27 = vpop.f32.mrb[128].mxu1  ;;  %3792 = vmatprep.mubr.f32.mxu0 %v3437_v8 }
 0x49a   :  { %v3441_v38 = vmul.f32 %v3313_v27, %v12727_v4  ;;  %v3315_v40 = vpop.f32.mrb[129].mxu1  ;;  %3793 = vmatmul.mubr.f32.gmra.mrb[126].mxu0 %v3436_v14  ;;  %v10261_v27 = vld [vmem:[#allocation2 + $0x18] sm:$0xff]  ;;  %v4143_v4 = vld [vmem:[#allocation25] sm:$0xff] }
 0x49b   :  { %v3442_v23 = vmul.f32 %v3315_v40, %v12728_v51  ;;  %9128 = vmatpush1.bf16.msra.mxu0 %v9127_v31  ;;  %v11836_v51 = vld [vmem:[#allocation7] ss:$0 sm:$0xff] }
 0x49c   :  { %9130 = vmatprep.subr.bf16.mxu0 %v9129_v58  ;;  %v10258_v58 = vld [vmem:[#allocation2] sm:$0xff] }
 0x49d   :  { %v3319_v44 = vpop.f32.mrb[130].mxu1  ;;  %3798 = vmatprep.mubr.f32.mxu0 %v3442_v23 }
 0x49e   :  { %v3446_v41 = vmul.f32 %v3319_v44, %v12729_v28  ;;  %v3321_v0 = vpop.f32.mrb[131].mxu1  ;;  %3799 = vmatmul.mubr.f32.gmra.mrb[128].mxu0 %v3441_v38  ;;  %v4144_v38 = vld [vmem:[#allocation25 + $0x8] sm:$0xff] }
 0x49f   :  { %v3447_v17 = vmul.f32 %v3321_v0, %v12730_v15  ;;  %9132 = vmatpush1.bf16.msra.mxu0 %v9131_v12  ;;  %v9157_v40 = vpack.c.bf16 %v4144_v38, %v4143_v4  ;;  %v7962_v12 = vld [vmem:[#allocation8] ss:$0 sm:$0xff] }
 0x4a0   :  { %9134 = vmatprep.subr.bf16.mxu0 %v9133_v53  ;;  %v4145_v53 = vld [vmem:[#allocation25 + $0x10] sm:$0xff] }
 0x4a1   :  { %3804 = vmatprep.mubr.f32.mxu0 %v3447_v17  ;;  %v9161_v43 = vpack.c.bf16 %v4146_v52, %v4145_v53  ;;  %v4391_v52 = vld [vmem:[#allocation20 + $0x58] sm:$0xff] }
 0x4a2   :  { %3805 = vmatmul.mubr.f32.gmra.mrb[130].mxu0 %v3446_v41 }
 0x4a3   :  { %9136 = vmatpush1.bf16.msra.mxu0 %v9135_v47  ;;  %3875 = vmatprep.mubr.f32.mxu0 %v12658_v3 }
 0x4a4   :  { %9138 = vmatprep.subr.bf16.mxu0 %v9137_v20 }
 0x4a7   :  { %9140 = vmatpush1.bf16.msra.mxu0 %v9139_v9 }
 0x4a8   :  { %9142 = vmatprep.subr.bf16.mxu0 %v9141_v16 }
 0x4ab   :  { %9144 = vmatpush1.bf16.msra.mxu0 %v9143_v18 }
 0x4ae   :  { %3876 = vmatmul.mubr.f32.vlgmr.msra.gmra.mrb[120].mxu0 %v11776_v25 }
 0x4af   :  { %3881 = vmatprep.mubr.f32.mxu0 %v12658_v3 }
 0x4b2   :  { %3882 = vmatmul.mubr.f32.gmra.mrb[122].mxu0 %v11778_v26 }
 0x4b3   :  { %3887 = vmatprep.mubr.f32.mxu0 %v12658_v3 }
 0x4b6   :  { %3888 = vmatmul.mubr.f32.gmra.mrb[124].mxu0 %v11780_v48 }
 0x4b7   :  { %3893 = vmatprep.mubr.f32.mxu0 %v12658_v3 }
 0x4ba   :  { %3894 = vmatmul.mubr.f32.gmra.mrb[126].mxu0 %v11782_v24 }
 0x4bb   :  { %3899 = vmatprep.mubr.f32.mxu0 %v12658_v3 }
 0x4be   :  { %3900 = vmatmul.mubr.f32.gmra.mrb[128].mxu0 %v11784_v55 }
 0x4bf   :  { %3905 = vmatprep.mubr.f32.mxu0 %v12658_v3 }
 0x4c2   :  { %3906 = vmatmul.mubr.f32.gmra.mrb[130].mxu0 %v11786_v5 }
 0x4c3   :  { %5160 = vmatprep.mubr.f32.mxu0 %v12658_v3 }
 0x581   :  { %v3877_v25 = vpop.f32.mrb[120].mxu0 }
 0x582   :  { %v3879_v26 = vpop.f32.mrb[121].mxu0 }
 0x585   :  { %v3883_v60 = vpop.f32.mrb[122].mxu0 }
 0x586   :  { %v9147_v49 = vpack.c.bf16 %v3883_v60, %v3877_v25  ;;  %v3885_v32 = vpop.f32.mrb[123].mxu0 }
 0x587   :  { %v9145_v48 = vpack.c.bf16 %v3885_v32, %v3879_v26 }
 0x589   :  { %v3889_v2 = vpop.f32.mrb[124].mxu0  ;;  %9146 = vmatprep.subr.bf16.mxu1 %v9145_v48 }
 0x58a   :  { %v3891_v37 = vpop.f32.mrb[125].mxu0  ;;  %9148 = vmatpush1.bf16.msra.mxu1 %v9147_v49 }
 0x58d   :  { %v3895_v24 = vpop.f32.mrb[126].mxu0 }
 0x58e   :  { %v9151_v50 = vpack.c.bf16 %v3895_v24, %v3889_v2  ;;  %v3897_v22 = vpop.f32.mrb[127].mxu0 }
 0x58f   :  { %v9149_v55 = vpack.c.bf16 %v3897_v22, %v3891_v37 }
 0x591   :  { %v3901_v14 = vpop.f32.mrb[128].mxu0  ;;  %9150 = vmatprep.subr.bf16.mxu1 %v9149_v55 }
 0x592   :  { %v3903_v61 = vpop.f32.mrb[129].mxu0  ;;  %9152 = vmatpush1.bf16.msra.mxu1 %v9151_v50 }
 0x595   :  { %v3907_v5 = vpop.f32.mrb[130].mxu0 }
 0x596   :  { %v9155_v6 = vpack.c.bf16 %v3907_v5, %v3901_v14  ;;  %v3909_v8 = vpop.f32.mrb[131].mxu0 }
 0x597   :  { %v9153_v31 = vpack.c.bf16 %v3909_v8, %v3903_v61 }
 0x599   :  { %9154 = vmatprep.subr.bf16.mxu1 %v9153_v31 }
 0x59a   :  { %9156 = vmatpush1.bf16.msra.mxu1 %v9155_v6 }
 0x59b   :  { %9158 = vmatprep.subr.bf16.mxu1 %v9157_v40 }
 0x59d   :  { %7955 = vmatmul.mubr.msk.f32.vlgmr.msra.gmra.mrb[132].mxu1 %vm1586_vm1, %v10258_v58 }
 0x59e   :  { %3982 = vmatprep.mubr.f32.mxu1 %v12658_v3  ;;  %9160 = vmatpush3.bf16.msra.mxu1 %v9157_v40 }
 0x59f   :  { %9162 = vmatprep.subr.bf16.mxu1 %v9161_v43 }
 0x5a1   :  { %7956 = vmatmul.mubr.msk.f32.gmra.mrb[134].mxu1 %vm1586_vm1, %v10259_v36 }
 0x5a2   :  { %3988 = vmatprep.mubr.f32.mxu1 %v12658_v3  ;;  %9164 = vmatpush3.bf16.msra.mxu1 %v9161_v43 }
 0x5a5   :  { %7957 = vmatmul.mubr.msk.f32.gmra.mrb[136].mxu1 %vm1586_vm1, %v10260_v35 }
 0x5a6   :  { %3994 = vmatprep.mubr.f32.mxu1 %v12658_v3 }
 0x5a9   :  { %7958 = vmatmul.mubr.msk.f32.gmra.mrb[138].mxu1 %vm1586_vm1, %v10261_v27 }
 0x5aa   :  { %4000 = vmatprep.mubr.f32.mxu1 %v12658_v3 }
 0x5ad   :  { %7959 = vmatmul.mubr.msk.f32.gmra.mrb[140].mxu1 %vm1586_vm1, %v10262_v7 }
 0x5ae   :  { %4006 = vmatprep.mubr.f32.mxu1 %v12658_v3 }
 0x5b1   :  { %7960 = vmatmul.mubr.msk.f32.gmra.mrb[142].mxu1 %vm1586_vm1, %v10263_v42 }
 0x670   :  { %v11838_v23 = vpop.f32.mrb[132].mxu1 }
 0x671   :  { %v4033_v21 = vand.u32 2147483647, %v11838_v23  ;;  %10246 = vtanh.f32 %v11838_v23  ;;  %v11842_v44 = vpop.f32.mrb[133].mxu1  ;;  %v4014_v10 = vmax.f32 %v11838_v23, 0.0 }
 0x673   :  { %v4045_v28 = vmul.f32 %v7962_v12, %v4033_v21  ;;  %4070 = vrot.lane.b32.xlu0 %v4014_v10, %s10661_s21  ;;  %v4026_v41 = vmul.f32 %v11836_v51, %v4014_v10  ;;  %v4407_v10 = vld [vmem:[#allocation20 + $0xd8] sm:$0xff] }
 0x674   :  { %v3984_v0 = vpop.f32.mrb[134].mxu1  ;;  %v9285_v43 = vpack.c.bf16 %v4407_v10, %v4391_v52 }
 0x675   :  { %v11847_v15 = vadd.f32 %v4045_v28, %v4026_v41  ;;  %v4034_v17 = vand.u32 2147483647, %v3984_v0  ;;  %10248 = vtanh.f32 %v3984_v0  ;;  %v3986_v47 = vpop.f32.mrb[135].mxu1  ;;  %v4015_v20 = vmax.f32 %v3984_v0, 0.0  ;;  %v4406_v28 = vld [vmem:[#allocation20 + $0xd0] sm:$0xff]  ;;  %v4423_v41 = vld [vmem:[#allocation20 + $0x158] sm:$0xff] }
 0x676   :  { %9286 = vmatprep.subr.bf16.mxu0 %v9285_v43 }
 0x677   :  { %v4046_v1 = vmul.f32 %v7962_v12, %v4034_v17  ;;  %4072 = vrot.lane.b32.xlu1 %v4015_v20, %s10661_s21  ;;  %v4027_v54 = vmul.f32 %v11836_v51, %v4015_v20  ;;  %v4438_v20 = vld [vmem:[#allocation20 + $0x1d0] sm:$0xff] }
 0x678   :  { %v3990_v56 = vpop.f32.mrb[136].mxu1 }
 0x679   :  { %v11851_v62 = vadd.f32 %v4046_v1, %v4027_v54  ;;  %v4035_v9 = vand.u32 2147483647, %v3990_v56  ;;  %10250 = vtanh.f32 %v3990_v56  ;;  %v3992_v16 = vpop.f32.mrb[137].mxu1  ;;  %v4016_v46 = vmax.f32 %v3990_v56, 0.0  ;;  %v4455_v54 = vld [vmem:[#allocation20 + $0x258] sm:$0xff] }
 0x67b   :  { %v10247_v19 = vpop.eup %10246  ;;  %v4047_v18 = vmul.f32 %v7962_v12, %v4035_v9  ;;  %v4028_v25 = vmul.f32 %v11836_v51, %v4016_v46 }
 0x67c   :  { %4113 = vrot.lane.b32.xlu0 %v10247_v19, %s10661_s21  ;;  %v3996_v26 = vpop.f32.mrb[138].mxu1  ;;  %v4487_v19 = vld [vmem:[#allocation20 + $0x358] sm:$0xff] }
 0x67d   :  { %v4036_v60 = vand.u32 2147483647, %v3996_v26  ;;  %10252 = vtanh.f32 %v3996_v26  ;;  %v3998_v49 = vpop.f32.mrb[139].mxu1  ;;  %v11855_v32 = vadd.f32 %v4047_v18, %v4028_v25  ;;  %v4017_v48 = vmax.f32 %v3996_v26, 0.0  ;;  %v4503_v25 = vld [vmem:[#allocation20 + $0x3d8] sm:$0xff] }
 0x67f   :  { %v10249_v2 = vpop.eup %10248  ;;  %v4048_v37 = vmul.f32 %v7962_v12, %v4036_v60  ;;  %v4029_v24 = vmul.f32 %v11836_v51, %v4017_v48  ;;  %v4486_v60 = vld [vmem:[#allocation20 + $0x350] sm:$0xff] }
 0x680   :  { %4115 = vrot.lane.b32.xlu1 %v10249_v2, %s10661_s21  ;;  %4074 = vrot.lane.b32.xlu0 %v4016_v46, %s10661_s21  ;;  %v4002_v50 = vpop.f32.mrb[140].mxu1  ;;  %v4470_v46 = vld [vmem:[#allocation20 + $0x2d0] sm:$0xff]  ;;  %v4535_v2 = vld [vmem:[#allocation20 + $0x4d8] sm:$0xff] }
 0x681   :  { %v4037_v22 = vand.u32 2147483647, %v4002_v50  ;;  %10254 = vtanh.f32 %v4002_v50  ;;  %v4004_v55 = vpop.f32.mrb[141].mxu1  ;;  %v11860_v14 = vadd.f32 %v4048_v37, %v4029_v24  ;;  %v4018_v61 = vmax.f32 %v4002_v50, 0.0 }
 0x683   :  { %v10251_v5 = vpop.eup %10250  ;;  %v4049_v6 = vmul.f32 %v7962_v12, %v4037_v22  ;;  %v4030_v8 = vmul.f32 %v11836_v51, %v4018_v61  ;;  %v4534_v22 = vld [vmem:[#allocation20 + $0x4d0] sm:$0xff] }
 0x684   :  { %4117 = vrot.lane.b32.xlu1 %v10251_v5, %s10661_s21  ;;  %4076 = vrot.lane.b32.xlu0 %v4017_v48, %s10661_s21  ;;  %v4008_v31 = vpop.f32.mrb[142].mxu1  ;;  %v4519_v48 = vld [vmem:[#allocation20 + $0x458] sm:$0xff] }
 0x685   :  { %v4038_v58 = vand.u32 2147483647, %v4008_v31  ;;  %10256 = vtanh.f32 %v4008_v31  ;;  %v4010_v36 = vpop.f32.mrb[143].mxu1  ;;  %v11865_v35 = vadd.f32 %v4049_v6, %v4030_v8  ;;  %v4019_v27 = vmax.f32 %v4008_v31, 0.0  ;;  %v11889_v5 = vld [vmem:[#allocation10] ss:$0 sm:$0xff] }
 0x686   :  { %v9301_v24 = vpack.c.bf16 %v4535_v2, %v4519_v48  ;;  %v11891_v6 = vld [vmem:[#allocation11] ss:$0 sm:$0xff] }
 0x687   :  { %v10253_v7 = vpop.eup %10252  ;;  %v4050_v42 = vmul.f32 %v7962_v12, %v4038_v58  ;;  %v4031_v4 = vmul.f32 %v11836_v51, %v4019_v27  ;;  %v4381_v51 = vld [vmem:[#allocation20 + $0x8] sm:$0xff] }
 0x688   :  { %4119 = vrot.lane.b32.xlu1 %v10253_v7, %s10661_s21  ;;  %4078 = vrot.lane.b32.xlu0 %v4018_v61, %s10661_s21  ;;  %v4397_v12 = vld [vmem:[#allocation20 + $0x88] sm:$0xff]  ;;  %v4380_v7 = vld [vmem:[#allocation20] sm:$0xff] }
 0x689   :  { %v11870_v38 = vadd.f32 %v4050_v42, %v4031_v4  ;;  %v9165_v21 = vpack.c.bf16 %v4397_v12, %v4381_v51  ;;  %v4396_v42 = vld [vmem:[#allocation20 + $0x80] sm:$0xff]  ;;  %v4429_v51 = vld [vmem:[#allocation20 + $0x188] sm:$0xff] }
 0x68b   :  { %v10255_v40 = vpop.eup %10254  ;;  %9166 = vmatprep.subr.bf16.mxu1 %v9165_v21  ;;  %v9167_v21 = vpack.c.bf16 %v4396_v42, %v4380_v7  ;;  %v4508_v7 = vld [vmem:[#allocation20 + $0x400] sm:$0xff] }
 0x68c   :  { %4121 = vrot.lane.b32.xlu1 %v10255_v40, %s10661_s21  ;;  %4080 = vrot.lane.b32.xlu0 %v4019_v27, %s10661_s21  ;;  %v4524_v42 = vld [vmem:[#allocation20 + $0x480] sm:$0xff] }
 0x68f   :  { %v10257_v53 = vpop.eup %10256 }
 0x690   :  { %4123 = vrot.lane.b32.xlu1 %v10257_v53, %s10661_s21  ;;  %4273 = vrot.lane.b32.xlu0 %v11838_v23, %s10662_s17  ;;  %v4390_v23 = vld [vmem:[#allocation20 + $0x50] sm:$0xff]  ;;  %v4413_v53 = vld [vmem:[#allocation20 + $0x108] sm:$0xff] }
 0x691   :  { %v9169_v43 = vpack.c.bf16 %v4429_v51, %v4413_v53  ;;  %v9183_v51 = vpack.c.bf16 %v4524_v42, %v4508_v7  ;;  %v4430_v7 = vld [vmem:[#allocation20 + $0x190] sm:$0xff] }
 0x692   :  { %v4426_v42 = vld [vmem:[#allocation20 + $0x170] sm:$0xff] }
 0x694   :  { %4275 = vrot.lane.b32.xlu1 %v11842_v44, %s10662_s17  ;;  %4277 = vrot.lane.b32.xlu0 %v3984_v0, %s10662_s17  ;;  %v9287_v44 = vpack.c.bf16 %v4406_v28, %v4390_v23  ;;  %v4439_v0 = vld [vmem:[#allocation20 + $0x1d8] sm:$0xff]  ;;  %v4412_v23 = vld [vmem:[#allocation20 + $0x100] sm:$0xff] }
 0x695   :  { %v9289_v17 = vpack.c.bf16 %v4439_v0, %v4423_v41  ;;  %v4428_v28 = vld [vmem:[#allocation20 + $0x180] sm:$0xff]  ;;  %v4445_v0 = vld [vmem:[#allocation20 + $0x208] sm:$0xff] }
 0x696   :  { %9288 = vmatpush1.bf16.msra.mxu0 %v9287_v44 }
 0x697   :  { %9290 = vmatprep.subr.bf16.mxu0 %v9289_v17  ;;  %v4461_v17 = vld [vmem:[#allocation20 + $0x288] sm:$0xff] }
 0x698   :  { %4279 = vrot.lane.b32.xlu1 %v3986_v47, %s10662_s17  ;;  %4281 = vrot.lane.b32.xlu0 %v3990_v56, %s10662_s17  ;;  %v4422_v47 = vld [vmem:[#allocation20 + $0x150] sm:$0xff]  ;;  %v4471_v56 = vld [vmem:[#allocation20 + $0x2d8] sm:$0xff] }
 0x699   :  { %v9291_v1 = vpack.c.bf16 %v4438_v20, %v4422_v47  ;;  %v9293_v9 = vpack.c.bf16 %v4471_v56, %v4455_v54  ;;  %v9173_v56 = vpack.c.bf16 %v4461_v17, %v4445_v0  ;;  %v4566_v0 = vld [vmem:[#allocation20 + $0x5d0] sm:$0xff] }
 0x69b   :  { %9292 = vmatpush1.bf16.msra.mxu0 %v9291_v1  ;;  %v9171_v1 = vpack.c.bf16 %v4428_v28, %v4412_v23  ;;  %v4567_v23 = vld [vmem:[#allocation20 + $0x5d8] sm:$0xff]  ;;  %v4540_v28 = vld [vmem:[#allocation20 + $0x500] sm:$0xff] }
 0x69c   :  { %4283 = vrot.lane.b32.xlu1 %v3992_v16, %s10662_s17  ;;  %4285 = vrot.lane.b32.xlu0 %v3996_v26, %s10662_s17  ;;  %v4454_v16 = vld [vmem:[#allocation20 + $0x250] sm:$0xff]  ;;  %v9297_v26 = vpack.c.bf16 %v4503_v25, %v4487_v19  ;;  %v4493_v25 = vld [vmem:[#allocation20 + $0x388] sm:$0xff] }
 0x69d   :  { %v9295_v18 = vpack.c.bf16 %v4470_v46, %v4454_v16  ;;  %9294 = vmatprep.subr.bf16.mxu0 %v9293_v9  ;;  %v4444_v9 = vld [vmem:[#allocation20 + $0x200] sm:$0xff] }
 0x69e   :  { %v4460_v16 = vld [vmem:[#allocation20 + $0x280] sm:$0xff] }
 0x69f   :  { %9296 = vmatpush1.bf16.msra.mxu0 %v9295_v18  ;;  %v4477_v18 = vld [vmem:[#allocation20 + $0x308] sm:$0xff] }
 0x6a0   :  { %4287 = vrot.lane.b32.xlu1 %v3998_v49, %s10662_s17  ;;  %4289 = vrot.lane.b32.xlu0 %v4002_v50, %s10662_s17  ;;  %v4502_v49 = vld [vmem:[#allocation20 + $0x3d0] sm:$0xff]  ;;  %v9177_v2 = vpack.c.bf16 %v4493_v25, %v4477_v18 }
 0x6a1   :  { %v9299_v37 = vpack.c.bf16 %v4502_v49, %v4486_v60  ;;  %9298 = vmatprep.subr.bf16.mxu0 %v9297_v26  ;;  %v4518_v50 = vld [vmem:[#allocation20 + $0x450] sm:$0xff]  ;;  %v9175_v49 = vpack.c.bf16 %v4460_v16, %v4444_v9 }
 0x6a2   :  { %v9303_v61 = vpack.c.bf16 %v4534_v22, %v4518_v50  ;;  %v4509_v22 = vld [vmem:[#allocation20 + $0x408] sm:$0xff]  ;;  %v4382_v25 = vld [vmem:[#allocation20 + $0x10] sm:$0xff] }
 0x6a3   :  { %9300 = vmatpush1.bf16.msra.mxu0 %v9299_v37  ;;  %v4476_v37 = vld [vmem:[#allocation20 + $0x300] sm:$0xff] }
 0x6a4   :  { %4291 = vrot.lane.b32.xlu1 %v4004_v55, %s10662_s17  ;;  %4293 = vrot.lane.b32.xlu0 %v4008_v31, %s10662_s17 }
 0x6a5   :  { %9302 = vmatprep.subr.bf16.mxu0 %v9301_v24  ;;  %v4492_v24 = vld [vmem:[#allocation20 + $0x380] sm:$0xff] }
 0x6a7   :  { %9304 = vmatpush1.bf16.msra.mxu0 %v9303_v61  ;;  %v4525_v61 = vld [vmem:[#allocation20 + $0x488] sm:$0xff] }
 0x6a8   :  { %4295 = vrot.lane.b32.xlu1 %v4010_v36, %s10662_s17 }
 0x6e5   :  { %v4071_v55 = vpop.permute.xlu0 %4070 }
 0x6e6   :  { %v4088_v58 = vmul.f32 %v11889_v5, %v4071_v55 }
 0x6e9   :  { %v4073_v8 = vpop.permute.xlu1 %4072 }
 0x6ea   :  { %v4089_v12 = vmul.f32 %v11889_v5, %v4073_v8 }
 0x6ee   :  { %v4114_v31 = vpop.permute.xlu0 %4113 }
 0x6ef   :  { %v4131_v27 = vmul.f32 %v11891_v6, %v4114_v31 }
 0x6f1   :  { %v4137_v36 = vadd.f32 %v4131_v27, %v4088_v58  ;;  %v9179_v58 = vpack.c.bf16 %v4492_v24, %v4476_v37  ;;  %v4431_v24 = vld [vmem:[#allocation20 + $0x198] sm:$0xff] }
 0x6f2   :  { %v4116_v4 = vpop.permute.xlu1 %4115  ;;  %v4075_v40 = vpop.permute.xlu0 %4074 }
 0x6f3   :  { %v4132_v52 = vmul.f32 %v11891_v6, %v4116_v4  ;;  %8293 = vmatprep.mubr.msk.f32.mxu1 %vm4147_vm2, %v4137_v36  ;;  %v4090_v47 = vmul.f32 %v11889_v5, %v4075_v40  ;;  %v9181_v36 = vpack.c.bf16 %v4525_v61, %v4509_v22  ;;  %v4443_v22 = vld [vmem:[#allocation20 + $0x1f8] sm:$0xff] }
 0x6f5   :  { %v4138_v10 = vadd.f32 %v4132_v52, %v4089_v12  ;;  %v4541_v52 = vld [vmem:[#allocation20 + $0x508] sm:$0xff] }
 0x6f6   :  { %v4118_v44 = vpop.permute.xlu1 %4117  ;;  %v4077_v41 = vpop.permute.xlu0 %4076 }
 0x6f7   :  { %v4133_v20 = vmul.f32 %v11891_v6, %v4118_v44  ;;  %8294 = vmatmul.mubr.msk.f32.vlgmr.msra.gmra.mrb[144].mxu1 %vm4147_vm2, %v4138_v10  ;;  %v4091_v26 = vmul.f32 %v11889_v5, %v4077_v41  ;;  %v4551_v10 = vld [vmem:[#allocation20 + $0x558] sm:$0xff]  ;;  %v4550_v41 = vld [vmem:[#allocation20 + $0x550] sm:$0xff] }
 0x6f8   :  { %9168 = vmatpush1.bf16.msra.mxu1 %v9167_v21  ;;  %v4557_v21 = vld [vmem:[#allocation20 + $0x588] sm:$0xff]  ;;  %v9305_v44 = vpack.c.bf16 %v4567_v23, %v4551_v10  ;;  %v9307_v17 = vpack.c.bf16 %v4566_v0, %v4550_v41  ;;  %v4458_v41 = vld [vmem:[#allocation20 + $0x270] sm:$0xff] }
 0x6f9   :  { %v4139_v54 = vadd.f32 %v4133_v20, %v4090_v47  ;;  %9170 = vmatprep.subr.bf16.mxu1 %v9169_v43  ;;  %v9185_v43 = vpack.c.bf16 %v4557_v21, %v4541_v52  ;;  %v4383_v47 = vld [vmem:[#allocation20 + $0x18] sm:$0xff]  ;;  %v4474_v0 = vld [vmem:[#allocation20 + $0x2f0] sm:$0xff] }
 0x6fa   :  { %v4120_v46 = vpop.permute.xlu1 %4119  ;;  %v4079_v19 = vpop.permute.xlu0 %4078  ;;  %9306 = vmatprep.subr.bf16.mxu0 %v9305_v44  ;;  %v4399_v20 = vld [vmem:[#allocation20 + $0x98] sm:$0xff] }
 0x6fb   :  { %v4134_v60 = vmul.f32 %v11891_v6, %v4120_v46  ;;  %8296 = vmatprep.mubr.msk.f32.mxu1 %vm4147_vm2, %v4139_v54  ;;  %v4092_v55 = vmul.f32 %v11889_v5, %v4079_v19  ;;  %9308 = vmatpush1.bf16.msra.mxu0 %v9307_v17  ;;  %v9189_v54 = vpack.c.bf16 %v4399_v20, %v4383_v47  ;;  %v4459_v52 = vld [vmem:[#allocation20 + $0x278] sm:$0xff] }
 0x6fc   :  { %9172 = vmatpush1.bf16.msra.mxu1 %v9171_v1  ;;  %v4395_v1 = vld [vmem:[#allocation20 + $0x78] sm:$0xff] }
 0x6fd   :  { %v4140_v48 = vadd.f32 %v4134_v60, %v4091_v26  ;;  %9174 = vmatprep.subr.bf16.mxu1 %v9173_v56  ;;  %v4411_v56 = vld [vmem:[#allocation20 + $0xf8] sm:$0xff]  ;;  %v4398_v26 = vld [vmem:[#allocation20 + $0x90] sm:$0xff] }
 0x6fe   :  { %v4122_v50 = vpop.permute.xlu1 %4121  ;;  %v4081_v31 = vpop.permute.xlu0 %4080  ;;  %v9333_v9 = vpack.c.bf16 %v4411_v56, %v4395_v1  ;;  %v4394_v60 = vld [vmem:[#allocation20 + $0x70] sm:$0xff]  ;;  %v4475_v21 = vld [vmem:[#allocation20 + $0x2f8] sm:$0xff] }
 0x6ff   :  { %v4135_v8 = vmul.f32 %v11891_v6, %v4122_v50  ;;  %8297 = vmatmul.mubr.msk.f32.gmra.mrb[146].mxu1 %vm4147_vm2, %v4140_v48  ;;  %v4093_v40 = vmul.f32 %v11889_v5, %v4081_v31  ;;  %v4556_v5 = vld [vmem:[#allocation20 + $0x580] sm:$0xff]  ;;  %v4415_v48 = vld [vmem:[#allocation20 + $0x118] sm:$0xff]  ;;  %v9341_v47 = vpack.c.bf16 %v4475_v21, %v4459_v52 }
 0x700   :  { %9176 = vmatpush1.bf16.msra.mxu1 %v9175_v49  ;;  %9334 = vmatprep.subr.bf16.mxu0 %v9333_v9  ;;  %v4410_v49 = vld [vmem:[#allocation20 + $0xf0] sm:$0xff]  ;;  %v4427_v50 = vld [vmem:[#allocation20 + $0x178] sm:$0xff] }
 0x701   :  { %v4141_v27 = vadd.f32 %v4135_v8, %v4092_v55  ;;  %9178 = vmatprep.subr.bf16.mxu1 %v9177_v2  ;;  %v9191_v8 = vpack.c.bf16 %v4398_v26, %v4382_v25  ;;  %v9335_v31 = vpack.c.bf16 %v4410_v49, %v4394_v60  ;;  %v4479_v20 = vld [vmem:[#allocation20 + $0x318] sm:$0xff]  ;;  %v9343_v25 = vpack.c.bf16 %v4474_v0, %v4458_v41  ;;  %v4478_v26 = vld [vmem:[#allocation20 + $0x310] sm:$0xff] }
 0x702   :  { %v4124_v4 = vpop.permute.xlu1 %4123  ;;  %v4274_v46 = vpop.permute.xlu0 %4273  ;;  %v4495_v56 = vld [vmem:[#allocation20 + $0x398] sm:$0xff]  ;;  %v4494_v49 = vld [vmem:[#allocation20 + $0x390] sm:$0xff] }
 0x703   :  { %v4136_v53 = vmul.f32 %v11891_v6, %v4124_v4  ;;  %8299 = vmatprep.mubr.msk.f32.mxu1 %vm4147_vm2, %v4141_v27  ;;  %v9187_v6 = vpack.c.bf16 %v4556_v5, %v4540_v28  ;;  %v4442_v4 = vld [vmem:[#allocation20 + $0x1f0] sm:$0xff]  ;;  %v4491_v9 = vld [vmem:[#allocation20 + $0x378] sm:$0xff] }
 0x704   :  { %9180 = vmatpush1.bf16.msra.mxu1 %v9179_v58  ;;  %v4414_v58 = vld [vmem:[#allocation20 + $0x110] sm:$0xff]  ;;  %v9339_v23 = vpack.c.bf16 %v4442_v4, %v4426_v42  ;;  %v4543_v21 = vld [vmem:[#allocation20 + $0x518] sm:$0xff] }
 0x705   :  { %v4142_v12 = vadd.f32 %v4136_v53, %v4093_v40  ;;  %9182 = vmatprep.subr.bf16.mxu1 %v9181_v36  ;;  %v9193_v40 = vpack.c.bf16 %v4431_v24, %v4415_v48  ;;  %v9337_v53 = vpack.c.bf16 %v4443_v22, %v4427_v50  ;;  %v4446_v28 = vld [vmem:[#allocation20 + $0x210] sm:$0xff]  ;;  %v9201_v24 = vpack.c.bf16 %v4495_v56, %v4479_v20  ;;  %v4511_v22 = vld [vmem:[#allocation20 + $0x418] sm:$0xff] }
 0x706   :  { %v4276_v16 = vpop.permute.xlu1 %4275  ;;  %v4278_v18 = vpop.permute.xlu0 %4277  ;;  %v4490_v48 = vld [vmem:[#allocation20 + $0x370] sm:$0xff] }
 0x707   :  { %8300 = vmatmul.mubr.msk.f32.gmra.mrb[148].mxu1 %vm4147_vm2, %v4142_v12  ;;  %v4298_v55 = vsel %vm4297_vm3, %v4274_v46, %v4276_v16  ;;  %v4463_v12 = vld [vmem:[#allocation20 + $0x298] sm:$0xff]  ;;  %v4570_v56 = vld [vmem:[#allocation20 + $0x5f0] sm:$0xff] }
 0x708   :  { %9184 = vmatpush1.bf16.msra.mxu1 %v9183_v51  ;;  %4655 = vmatprep.mubr.f32.mxu1 %v12658_v3  ;;  %v4447_v51 = vld [vmem:[#allocation20 + $0x218] sm:$0xff] }
 0x709   :  { %9186 = vmatprep.subr.bf16.mxu1 %v9185_v43  ;;  %v9195_v43 = vpack.c.bf16 %v4430_v7, %v4414_v58  ;;  %v9197_v17 = vpack.c.bf16 %v4463_v12, %v4447_v51  ;;  %v4507_v16 = vld [vmem:[#allocation20 + $0x3f8] sm:$0xff]  ;;  %v9203_v58 = vpack.c.bf16 %v4494_v49, %v4478_v26  ;;  %v4510_v7 = vld [vmem:[#allocation20 + $0x410] sm:$0xff] }
 0x70a   :  { %v4280_v19 = vpop.permute.xlu1 %4279  ;;  %v4282_v27 = vpop.permute.xlu0 %4281  ;;  %v9345_v50 = vpack.c.bf16 %v4507_v16, %v4491_v9  ;;  %v4538_v51 = vld [vmem:[#allocation20 + $0x4f0] sm:$0xff]  ;;  %v4343_v26 = vld [vmem:[#allocation19 + $0xd8] sm:$0xff] }
 0x70b   :  { %v4299_v10 = vsel %vm4297_vm3, %v4278_v18, %v4280_v19 }
 0x70c   :  { %9188 = vmatpush1.bf16.msra.mxu1 %v9187_v6  ;;  %v4462_v6 = vld [vmem:[#allocation20 + $0x290] sm:$0xff] }
 0x70d   :  { %9190 = vmatprep.subr.bf16.mxu1 %v9189_v54  ;;  %v9199_v18 = vpack.c.bf16 %v4462_v6, %v4446_v28  ;;  %v4571_v28 = vld [vmem:[#allocation20 + $0x5f8] sm:$0xff] }
 0x70e   :  { %v4284_v2 = vpop.permute.xlu1 %4283  ;;  %v4286_v1 = vpop.permute.xlu0 %4285 }
 0x70f   :  { %v4300_v19 = vsel %vm4297_vm3, %v4282_v27, %v4284_v2 }
 0x712   :  { %v4288_v5 = vpop.permute.xlu1 %4287  ;;  %v4290_v42 = vpop.permute.xlu0 %4289 }
 0x716   :  { %v4292_v2 = vpop.permute.xlu1 %4291 }
 0x717   :  { %v4302_v6 = vsel %vm4297_vm3, %v4290_v42, %v4292_v2  ;;  %v4416_v42 = vld [vmem:[#allocation20 + $0x120] sm:$0xff] }
 0x7ca   :  { %v8295_v37 = vpop.f32.mrb[144].mxu1 }
 0x7cb   :  { %v4232_v61 = vpop.f32.mrb[145].mxu1  ;;  %v11920_v44 = vmul.f32 %v8295_v37, %v4299_v10  ;;  %v4506_v37 = vld [vmem:[#allocation20 + $0x3f0] sm:$0xff] }
 0x7cc   :  { %v11913_v36 = vmul.f32 %v4298_v55, %v4232_v61  ;;  %v4527_v61 = vld [vmem:[#allocation20 + $0x498] sm:$0xff]  ;;  %v9347_v27 = vpack.c.bf16 %v4506_v37, %v4490_v48 }
 0x7cd   :  { %v4523_v55 = vld [vmem:[#allocation20 + $0x478] sm:$0xff]  ;;  %v9205_v12 = vpack.c.bf16 %v4527_v61, %v4511_v22  ;;  %v4400_v22 = vld [vmem:[#allocation20 + $0xa0] sm:$0xff]  ;;  %v4417_v61 = vld [vmem:[#allocation20 + $0x128] sm:$0xff] }
 0x7ce   :  { %7971 = vmatmul.mubr.msk.f32.vlgmr.msra.gmra.mrb[150].mxu1 %vm4572_vm4, %v11913_v36  ;;  %8001 = vmatmul.mubr.msk.f32.vlgmr.msra.gmra.mrb[132].mxu0 %vm4572_vm4, %v11913_v36 }
 0x7cf   :  { %9192 = vmatpush1.bf16.msra.mxu1 %v9191_v8  ;;  %9336 = vmatpush1.bf16.msra.mxu0 %v9335_v31  ;;  %v4539_v8 = vld [vmem:[#allocation20 + $0x4f8] sm:$0xff]  ;;  %v4301_v31 = vsel %vm4297_vm3, %v4286_v1, %v4288_v5  ;;  %v4558_v1 = vld [vmem:[#allocation20 + $0x590] sm:$0xff] }
 0x7d0   :  { %4661 = vmatprep.mubr.f32.mxu1 %v12658_v3  ;;  %5166 = vmatprep.mubr.f32.mxu0 %v12658_v3  ;;  %v9349_v52 = vpack.c.bf16 %v4539_v8, %v4523_v55  ;;  %v4433_v55 = vld [vmem:[#allocation20 + $0x1a8] sm:$0xff] }
 0x7d1   :  { %9194 = vmatprep.subr.bf16.mxu1 %v9193_v40  ;;  %9338 = vmatprep.subr.bf16.mxu0 %v9337_v53  ;;  %v4526_v40 = vld [vmem:[#allocation20 + $0x490] sm:$0xff] }
 0x7d2   :  { %v8298_v54 = vpop.f32.mrb[146].mxu1  ;;  %7972 = vmatmul.mubr.msk.f32.gmra.mrb[152].mxu1 %vm4572_vm4, %v11920_v44  ;;  %8002 = vmatmul.mubr.msk.f32.gmra.mrb[134].mxu0 %vm4572_vm4, %v11920_v44  ;;  %v4522_v53 = vld [vmem:[#allocation20 + $0x470] sm:$0xff]  ;;  %v9207_v41 = vpack.c.bf16 %v4526_v40, %v4510_v7  ;;  %v9217_v7 = vpack.c.bf16 %v4433_v55, %v4417_v61  ;;  %v4432_v40 = vld [vmem:[#allocation20 + $0x1a0] sm:$0xff] }
 0x7d3   :  { %v4242_v46 = vpop.f32.mrb[147].mxu1  ;;  %9196 = vmatpush1.bf16.msra.mxu1 %v9195_v43  ;;  %9340 = vmatpush1.bf16.msra.mxu0 %v9339_v23  ;;  %v11938_v4 = vmul.f32 %v8298_v54, %v4301_v31  ;;  %v4559_v43 = vld [vmem:[#allocation20 + $0x598] sm:$0xff]  ;;  %v9351_v0 = vpack.c.bf16 %v4538_v51, %v4522_v53  ;;  %v4554_v54 = vld [vmem:[#allocation20 + $0x570] sm:$0xff]  ;;  %v4449_v53 = vld [vmem:[#allocation20 + $0x228] sm:$0xff] }
 0x7d4   :  { %v11929_v60 = vmul.f32 %v4300_v19, %v4242_v46  ;;  %4667 = vmatprep.mubr.f32.mxu1 %v12658_v3  ;;  %5172 = vmatprep.mubr.f32.mxu0 %v12658_v3  ;;  %v4555_v23 = vld [vmem:[#allocation20 + $0x578] sm:$0xff]  ;;  %v9209_v9 = vpack.c.bf16 %v4559_v43, %v4543_v21  ;;  %v4385_v46 = vld [vmem:[#allocation20 + $0x28] sm:$0xff]  ;;  %v4294_v19 = vpop.permute.xlu0 %4293  ;;  %v9355_v37 = vpack.c.bf16 %v4570_v56, %v4554_v54  ;;  %v4326_v31 = vld [vmem:[#allocation19 + $0x50] sm:$0xff] }
 0x7d5   :  { %9198 = vmatprep.subr.bf16.mxu1 %v9197_v17  ;;  %9342 = vmatprep.subr.bf16.mxu0 %v9341_v47  ;;  %v4542_v17 = vld [vmem:[#allocation20 + $0x510] sm:$0xff]  ;;  %v4296_v47 = vpop.permute.xlu1 %4295  ;;  %v9353_v16 = vpack.c.bf16 %v4571_v28, %v4555_v23  ;;  %v4465_v51 = vld [vmem:[#allocation20 + $0x2a8] sm:$0xff]  ;;  %v4375_v21 = vld [vmem:[#allocation19 + $0x1d8] sm:$0xff] }
 0x7d6   :  { %7973 = vmatmul.mubr.msk.f32.gmra.mrb[154].mxu1 %vm4572_vm4, %v11929_v60  ;;  %8003 = vmatmul.mubr.msk.f32.gmra.mrb[136].mxu0 %vm4572_vm4, %v11929_v60  ;;  %v4303_v49 = vsel %vm4297_vm3, %v4294_v19, %v4296_v47  ;;  %v9211_v48 = vpack.c.bf16 %v4558_v1, %v4542_v17  ;;  %v9221_v43 = vpack.c.bf16 %v4465_v51, %v4449_v53  ;;  %v4448_v23 = vld [vmem:[#allocation20 + $0x220] sm:$0xff]  ;;  %v4374_v17 = vld [vmem:[#allocation19 + $0x1d0] sm:$0xff]  ;;  %v4331_v19 = vld [vmem:[#allocation19 + $0x78] sm:$0xff] }
 0x7d7   :  { %9200 = vmatpush1.bf16.msra.mxu1 %v9199_v18  ;;  %9344 = vmatpush1.bf16.msra.mxu0 %v9343_v25  ;;  %v4401_v18 = vld [vmem:[#allocation20 + $0xa8] sm:$0xff]  ;;  %v4327_v25 = vld [vmem:[#allocation19 + $0x58] sm:$0xff]  ;;  %v4464_v28 = vld [vmem:[#allocation20 + $0x2a0] sm:$0xff] }
 0x7d8   :  { %4673 = vmatprep.mubr.f32.mxu1 %v12658_v3  ;;  %5178 = vmatprep.mubr.f32.mxu0 %v12658_v3  ;;  %v9213_v2 = vpack.c.bf16 %v4401_v18, %v4385_v46  ;;  %v9397_v8 = vpack.c.bf16 %v4343_v26, %v4327_v25  ;;  %v9223_v47 = vpack.c.bf16 %v4464_v28, %v4448_v23  ;;  %v4480_v54 = vld [vmem:[#allocation20 + $0x320] sm:$0xff]  ;;  %v4347_v18 = vld [vmem:[#allocation19 + $0xf8] sm:$0xff]  ;;  %v4434_v23 = vld [vmem:[#allocation20 + $0x1b0] sm:$0xff] }
 0x7d9   :  { %9202 = vmatprep.subr.bf16.mxu1 %v9201_v24  ;;  %9346 = vmatprep.subr.bf16.mxu0 %v9345_v50  ;;  %v4384_v50 = vld [vmem:[#allocation20 + $0x20] sm:$0xff]  ;;  %v4419_v53 = vld [vmem:[#allocation20 + $0x138] sm:$0xff] }
 0x7da   :  { %v8301_v10 = vpop.f32.mrb[148].mxu1  ;;  %7974 = vmatmul.mubr.msk.f32.gmra.mrb[156].mxu1 %vm4572_vm4, %v11938_v4  ;;  %8004 = vmatmul.mubr.msk.f32.gmra.mrb[138].mxu0 %vm4572_vm4, %v11938_v4  ;;  %v4496_v56 = vld [vmem:[#allocation20 + $0x3a0] sm:$0xff]  ;;  %v4435_v51 = vld [vmem:[#allocation20 + $0x1b8] sm:$0xff] }
 0x7db   :  { %v4252_v5 = vpop.f32.mrb[149].mxu1  ;;  %9204 = vmatpush1.bf16.msra.mxu1 %v9203_v58  ;;  %9348 = vmatpush1.bf16.msra.mxu0 %v9347_v27  ;;  %v11956_v24 = vmul.f32 %v8301_v10, %v4303_v49  ;;  %v4342_v58 = vld [vmem:[#allocation19 + $0xd0] sm:$0xff]  ;;  %v9215_v27 = vpack.c.bf16 %v4400_v22, %v4384_v50  ;;  %v9219_v10 = vpack.c.bf16 %v4432_v40, %v4416_v42  ;;  %v4512_v49 = vld [vmem:[#allocation20 + $0x420] sm:$0xff]  ;;  %v4561_v50 = vld [vmem:[#allocation20 + $0x5a8] sm:$0xff] }
 0x7dc   :  { %v11947_v20 = vmul.f32 %v4302_v6, %v4252_v5  ;;  %4679 = vmatprep.mubr.f32.mxu1 %v12658_v3  ;;  %5184 = vmatprep.mubr.f32.mxu0 %v12658_v3  ;;  %v4481_v5 = vld [vmem:[#allocation20 + $0x328] sm:$0xff]  ;;  %v9227_v25 = vpack.c.bf16 %v4496_v56, %v4480_v54  ;;  %v9413_v22 = vpack.c.bf16 %v4347_v18, %v4331_v19  ;;  %v4544_v55 = vld [vmem:[#allocation20 + $0x520] sm:$0xff]  ;;  %v4386_v42 = vld [vmem:[#allocation20 + $0x30] sm:$0xff] }
 0x7dd   :  { %9206 = vmatprep.subr.bf16.mxu1 %v9205_v12  ;;  %9350 = vmatprep.subr.bf16.mxu0 %v9349_v52  ;;  %v9399_v12 = vpack.c.bf16 %v4342_v58, %v4326_v31  ;;  %v4359_v52 = vld [vmem:[#allocation19 + $0x158] sm:$0xff]  ;;  %v4497_v6 = vld [vmem:[#allocation20 + $0x3a8] sm:$0xff]  ;;  %v4402_v40 = vld [vmem:[#allocation20 + $0xb0] sm:$0xff] }
 0x7de   :  { %7975 = vmatmul.mubr.msk.f32.gmra.mrb[158].mxu1 %vm4572_vm4, %v11947_v20  ;;  %8005 = vmatmul.mubr.msk.f32.gmra.mrb[140].mxu0 %vm4572_vm4, %v11947_v20  ;;  %v9225_v1 = vpack.c.bf16 %v4497_v6, %v4481_v5  ;;  %v4387_v31 = vld [vmem:[#allocation20 + $0x38] sm:$0xff]  ;;  %v4466_v54 = vld [vmem:[#allocation20 + $0x2b0] sm:$0xff] }
 0x7df   :  { %9208 = vmatpush1.bf16.msra.mxu1 %v9207_v41  ;;  %9352 = vmatpush1.bf16.msra.mxu0 %v9351_v0  ;;  %v9401_v41 = vpack.c.bf16 %v4375_v21, %v4359_v52  ;;  %v4358_v0 = vld [vmem:[#allocation19 + $0x150] sm:$0xff]  ;;  %v4403_v58 = vld [vmem:[#allocation20 + $0xb8] sm:$0xff]  ;;  %v9239_v21 = vpack.c.bf16 %v4402_v40, %v4386_v42  ;;  %v4389_v40 = vld [vmem:[#allocation20 + $0x48] sm:$0xff] }
 0x7e0   :  { %4685 = vmatprep.mubr.f32.mxu1 %v12658_v3  ;;  %5190 = vmatprep.mubr.f32.mxu0 %v12658_v3  ;;  %v9403_v46 = vpack.c.bf16 %v4374_v17, %v4358_v0  ;;  %v4346_v52 = vld [vmem:[#allocation19 + $0xf0] sm:$0xff]  ;;  %v4451_v28 = vld [vmem:[#allocation20 + $0x238] sm:$0xff] }
 0x7e1   :  { %9210 = vmatprep.subr.bf16.mxu1 %v9209_v9  ;;  %9354 = vmatprep.subr.bf16.mxu0 %v9353_v16  ;;  %v4513_v9 = vld [vmem:[#allocation20 + $0x428] sm:$0xff]  ;;  %v4467_v5 = vld [vmem:[#allocation20 + $0x2b8] sm:$0xff]  ;;  %v4378_v19 = vld [vmem:[#allocation19 + $0x1f0] sm:$0xff] }
 0x7e2   :  { %7976 = vmatmul.mubr.msk.f32.gmra.mrb[160].mxu1 %vm4572_vm4, %v11956_v24  ;;  %8006 = vmatmul.mubr.msk.f32.gmra.mrb[142].mxu0 %vm4572_vm4, %v11956_v24  ;;  %v4529_v16 = vld [vmem:[#allocation20 + $0x4a8] sm:$0xff]  ;;  %v4379_v0 = vld [vmem:[#allocation19 + $0x1f8] sm:$0xff]  ;;  %v4562_v42 = vld [vmem:[#allocation20 + $0x5b0] sm:$0xff] }
 0x7e3   :  { %9212 = vmatpush1.bf16.msra.mxu1 %v9211_v48  ;;  %9356 = vmatpush1.bf16.msra.mxu0 %v9355_v37  ;;  %v9229_v26 = vpack.c.bf16 %v4529_v16, %v4513_v9  ;;  %v4528_v48 = vld [vmem:[#allocation20 + $0x4a0] sm:$0xff]  ;;  %v4545_v37 = vld [vmem:[#allocation20 + $0x528] sm:$0xff]  ;;  %v4483_v56 = vld [vmem:[#allocation20 + $0x338] sm:$0xff] }
 0x7e4   :  { %4756 = vmatprep.mubr.f32.mxu1 %v12658_v3  ;;  %5362 = vmatprep.mubr.f32.mxu0 %v12658_v3  ;;  %v9233_v61 = vpack.c.bf16 %v4561_v50, %v4545_v37  ;;  %v4499_v9 = vld [vmem:[#allocation20 + $0x3b8] sm:$0xff] }
 0x7e5   :  { %9214 = vmatprep.subr.bf16.mxu1 %v9213_v2  ;;  %9398 = vmatprep.subr.bf16.mxu0 %v9397_v8  ;;  %v9231_v2 = vpack.c.bf16 %v4528_v48, %v4512_v49  ;;  %v4560_v8 = vld [vmem:[#allocation20 + $0x5a0] sm:$0xff]  ;;  %v4498_v49 = vld [vmem:[#allocation20 + $0x3b0] sm:$0xff]  ;;  %v4515_v48 = vld [vmem:[#allocation20 + $0x438] sm:$0xff] }
 0x7e6   :  { %7977 = vmatmul.mubr.msk.f32.vlgmr.msra.gmra.mrb[162].mxu1 %vm4572_vm4, %v11913_v36  ;;  %8013 = vmatmul.mubr.msk.f32.vlgmr.msra.gmra.mrb[144].mxu0 %vm4572_vm4, %v11913_v36  ;;  %v4531_v37 = vld [vmem:[#allocation20 + $0x4b8] sm:$0xff] }
 0x7e7   :  { %9216 = vmatpush1.bf16.msra.mxu1 %v9215_v27  ;;  %4762 = vmatprep.mubr.f32.mxu1 %v12658_v3  ;;  %v9235_v27 = vpack.c.bf16 %v4560_v8, %v4544_v55  ;;  %v4530_v55 = vld [vmem:[#allocation20 + $0x4b0] sm:$0xff]  ;;  %v4547_v8 = vld [vmem:[#allocation20 + $0x538] sm:$0xff] }
 0x7e8   :  { %5368 = vmatprep.mubr.f32.mxu0 %v12658_v3  ;;  %9218 = vmatprep.subr.bf16.mxu1 %v9217_v7  ;;  %v9237_v7 = vpack.c.bf16 %v4403_v58, %v4387_v31  ;;  %v4563_v31 = vld [vmem:[#allocation20 + $0x5b8] sm:$0xff] }
 0x7e9   :  { %9400 = vmatpush1.bf16.msra.mxu0 %v9399_v12  ;;  %v4330_v12 = vld [vmem:[#allocation19 + $0x70] sm:$0xff] }
 0x7ea   :  { %7978 = vmatmul.mubr.msk.f32.gmra.mrb[164].mxu1 %vm4572_vm4, %v11920_v44  ;;  %8014 = vmatmul.mubr.msk.f32.gmra.mrb[146].mxu0 %vm4572_vm4, %v11920_v44  ;;  %v9415_v6 = vpack.c.bf16 %v4346_v52, %v4330_v12  ;;  %v4388_v52 = vld [vmem:[#allocation20 + $0x40] sm:$0xff] }
 0x7eb   :  { %9220 = vmatpush1.bf16.msra.mxu1 %v9219_v10  ;;  %4768 = vmatprep.mubr.f32.mxu1 %v12658_v3  ;;  %v9241_v10 = vpack.c.bf16 %v4435_v51, %v4419_v53  ;;  %v4405_v53 = vld [vmem:[#allocation20 + $0xc8] sm:$0xff] }
 0x7ec   :  { %5374 = vmatprep.mubr.f32.mxu0 %v12658_v3  ;;  %9222 = vmatprep.subr.bf16.mxu1 %v9221_v43  ;;  %v4418_v43 = vld [vmem:[#allocation20 + $0x130] sm:$0xff]  ;;  %v9261_v12 = vpack.c.bf16 %v4405_v53, %v4389_v40  ;;  %v4392_v40 = vld [vmem:[#allocation20 + $0x60] sm:$0xff] }
 0x7ed   :  { %9402 = vmatprep.subr.bf16.mxu0 %v9401_v41  ;;  %v4363_v41 = vld [vmem:[#allocation19 + $0x178] sm:$0xff]  ;;  %v9243_v17 = vpack.c.bf16 %v4434_v23, %v4418_v43  ;;  %v4437_v43 = vld [vmem:[#allocation20 + $0x1c8] sm:$0xff]  ;;  %v4408_v53 = vld [vmem:[#allocation20 + $0xe0] sm:$0xff] }
 0x7ee   :  { %7979 = vmatmul.mubr.msk.f32.gmra.mrb[166].mxu1 %vm4572_vm4, %v11929_v60  ;;  %8015 = vmatmul.mubr.msk.f32.gmra.mrb[148].mxu0 %vm4572_vm4, %v11929_v60  ;;  %v9417_v16 = vpack.c.bf16 %v4379_v0, %v4363_v41  ;;  %v4453_v41 = vld [vmem:[#allocation20 + $0x248] sm:$0xff] }
 0x7ef   :  { %9224 = vmatpush1.bf16.msra.mxu1 %v9223_v47  ;;  %4774 = vmatprep.mubr.f32.mxu1 %v12658_v3  ;;  %v9245_v47 = vpack.c.bf16 %v4467_v5, %v4451_v28  ;;  %v4420_v5 = vld [vmem:[#allocation20 + $0x140] sm:$0xff]  ;;  %v4469_v0 = vld [vmem:[#allocation20 + $0x2c8] sm:$0xff] }
 0x7f0   :  { %5380 = vmatprep.mubr.f32.mxu0 %v12658_v3  ;;  %9226 = vmatprep.subr.bf16.mxu1 %v9225_v1  ;;  %v4450_v1 = vld [vmem:[#allocation20 + $0x230] sm:$0xff] }
 0x7f1   :  { %9404 = vmatpush1.bf16.msra.mxu0 %v9403_v46  ;;  %v4362_v46 = vld [vmem:[#allocation19 + $0x170] sm:$0xff]  ;;  %v9247_v18 = vpack.c.bf16 %v4466_v54, %v4450_v1  ;;  %v4452_v1 = vld [vmem:[#allocation20 + $0x240] sm:$0xff] }
 0x7f2   :  { %7980 = vmatmul.mubr.msk.f32.gmra.mrb[168].mxu1 %vm4572_vm4, %v11938_v4  ;;  %8016 = vmatmul.mubr.msk.f32.gmra.mrb[150].mxu0 %vm4572_vm4, %v11938_v4  ;;  %v9419_v50 = vpack.c.bf16 %v4378_v19, %v4362_v46  ;;  %v4468_v54 = vld [vmem:[#allocation20 + $0x2c0] sm:$0xff] }
 0x7f3   :  { %9228 = vmatpush1.bf16.msra.mxu1 %v9227_v25  ;;  %4780 = vmatprep.mubr.f32.mxu1 %v12658_v3  ;;  %v9249_v25 = vpack.c.bf16 %v4499_v9, %v4483_v56  ;;  %v4485_v56 = vld [vmem:[#allocation20 + $0x348] sm:$0xff]  ;;  %v4484_v19 = vld [vmem:[#allocation20 + $0x340] sm:$0xff] }
 0x7f4   :  { %5386 = vmatprep.mubr.f32.mxu0 %v12658_v3  ;;  %9230 = vmatprep.subr.bf16.mxu1 %v9229_v26  ;;  %v4482_v26 = vld [vmem:[#allocation20 + $0x330] sm:$0xff]  ;;  %v4501_v9 = vld [vmem:[#allocation20 + $0x3c8] sm:$0xff] }
 0x7f5   :  { %9414 = vmatprep.subr.bf16.mxu0 %v9413_v22  ;;  %v9251_v22 = vpack.c.bf16 %v4498_v49, %v4482_v26  ;;  %v9273_v46 = vpack.c.bf16 %v4501_v9, %v4485_v56  ;;  %v4533_v26 = vld [vmem:[#allocation20 + $0x4c8] sm:$0xff]  ;;  %v4488_v56 = vld [vmem:[#allocation20 + $0x360] sm:$0xff] }
 0x7f6   :  { %7981 = vmatmul.mubr.msk.f32.gmra.mrb[170].mxu1 %vm4572_vm4, %v11947_v20  ;;  %8017 = vmatmul.mubr.msk.f32.gmra.mrb[152].mxu0 %vm4572_vm4, %v11947_v20  ;;  %v4504_v9 = vld [vmem:[#allocation20 + $0x3e0] sm:$0xff] }
 0x7f7   :  { %9232 = vmatpush1.bf16.msra.mxu1 %v9231_v2  ;;  %4786 = vmatprep.mubr.f32.mxu1 %v12658_v3  ;;  %v9253_v2 = vpack.c.bf16 %v4531_v37, %v4515_v48  ;;  %v4516_v37 = vld [vmem:[#allocation20 + $0x440] sm:$0xff] }
 0x7f8   :  { %5392 = vmatprep.mubr.f32.mxu0 %v12658_v3  ;;  %9234 = vmatprep.subr.bf16.mxu1 %v9233_v61  ;;  %v4514_v61 = vld [vmem:[#allocation20 + $0x430] sm:$0xff] }
 0x7f9   :  { %v9255_v58 = vpack.c.bf16 %v4530_v55, %v4514_v61 }
 0x7fa   :  { %7982 = vmatmul.mubr.msk.f32.gmra.mrb[172].mxu1 %vm4572_vm4, %v11956_v24  ;;  %8018 = vmatmul.mubr.msk.f32.gmra.mrb[154].mxu0 %vm4572_vm4, %v11956_v24 }
 0x7fb   :  { %9236 = vmatpush1.bf16.msra.mxu1 %v9235_v27  ;;  %4857 = vmatprep.mubr.f32.mxu1 %v12658_v3  ;;  %v9257_v27 = vpack.c.bf16 %v4563_v31, %v4547_v8  ;;  %v4548_v8 = vld [vmem:[#allocation20 + $0x540] sm:$0xff] }
 0x7fc   :  { %5986 = vmatprep.mubr.f32.mxu0 %v12658_v3  ;;  %9238 = vmatprep.subr.bf16.mxu1 %v9237_v7  ;;  %v4546_v7 = vld [vmem:[#allocation20 + $0x530] sm:$0xff]  ;;  %v4564_v31 = vld [vmem:[#allocation20 + $0x5c0] sm:$0xff] }
 0x7fd   :  { %v9259_v51 = vpack.c.bf16 %v4562_v42, %v4546_v7  ;;  %v9283_v7 = vpack.c.bf16 %v4564_v31, %v4548_v8 }
 0x7fe   :  { %7983 = vmatmul.mubr.msk.f32.vlgmr.msra.gmra.mrb[174].mxu1 %vm4572_vm4, %v11913_v36  ;;  %8049 = vmatmul.mubr.msk.f32.vlgmr.msra.gmra.mrb[132].mxu0 %vm4147_vm2, %v11847_v15 }
 0x7ff   :  { %9240 = vmatpush1.bf16.msra.mxu1 %v9239_v21  ;;  %4863 = vmatprep.mubr.f32.mxu1 %v12658_v3  ;;  %v4404_v21 = vld [vmem:[#allocation20 + $0xc0] sm:$0xff] }
 0x800   :  { %5992 = vmatprep.mubr.f32.mxu0 %v12658_v3  ;;  %9242 = vmatprep.subr.bf16.mxu1 %v9241_v10  ;;  %v4421_v10 = vld [vmem:[#allocation20 + $0x148] sm:$0xff]  ;;  %v9263_v23 = vpack.c.bf16 %v4404_v21, %v4388_v52  ;;  %v9311_v52 = vpack.c.bf16 %v4408_v53, %v4392_v40 }
 0x801   :  { %9416 = vmatpush1.bf16.msra.mxu0 %v9415_v6  ;;  %v9265_v28 = vpack.c.bf16 %v4437_v43, %v4421_v10  ;;  %v4436_v6 = vld [vmem:[#allocation20 + $0x1c0] sm:$0xff] }
 0x802   :  { %7984 = vmatmul.mubr.msk.f32.gmra.mrb[176].mxu1 %vm4572_vm4, %v11920_v44  ;;  %8050 = vmatmul.mubr.msk.f32.gmra.mrb[134].mxu0 %vm4147_vm2, %v11851_v62  ;;  %v4424_v10 = vld [vmem:[#allocation20 + $0x160] sm:$0xff] }
 0x803   :  { %9244 = vmatpush1.bf16.msra.mxu1 %v9243_v17  ;;  %4869 = vmatprep.mubr.f32.mxu1 %v12658_v3  ;;  %v9267_v17 = vpack.c.bf16 %v4436_v6, %v4420_v5  ;;  %v4440_v43 = vld [vmem:[#allocation20 + $0x1e0] sm:$0xff] }
 0x804   :  { %5998 = vmatprep.mubr.f32.mxu0 %v12658_v3  ;;  %9246 = vmatprep.subr.bf16.mxu1 %v9245_v47  ;;  %v9269_v47 = vpack.c.bf16 %v4469_v0, %v4453_v41  ;;  %v9315_v5 = vpack.c.bf16 %v4440_v43, %v4424_v10  ;;  %v4456_v41 = vld [vmem:[#allocation20 + $0x260] sm:$0xff] }
 0x805   :  { %9418 = vmatprep.subr.bf16.mxu0 %v9417_v16  ;;  %v9271_v16 = vpack.c.bf16 %v4468_v54, %v4452_v1  ;;  %v4472_v0 = vld [vmem:[#allocation20 + $0x2e0] sm:$0xff] }
 0x806   :  { %7985 = vmatmul.mubr.msk.f32.gmra.mrb[178].mxu1 %vm4572_vm4, %v11929_v60  ;;  %8051 = vmatmul.mubr.msk.f32.gmra.mrb[136].mxu0 %vm4147_vm2, %v11855_v32  ;;  %v9319_v1 = vpack.c.bf16 %v4472_v0, %v4456_v41  ;;  %v4321_v41 = vld [vmem:[#allocation19 + $0x28] sm:$0xff] }
 0x807   :  { %9248 = vmatpush1.bf16.msra.mxu1 %v9247_v18  ;;  %4875 = vmatprep.mubr.f32.mxu1 %v12658_v3  ;;  %v4500_v18 = vld [vmem:[#allocation20 + $0x3c0] sm:$0xff]  ;;  %v4337_v0 = vld [vmem:[#allocation19 + $0xa8] sm:$0xff] }
 0x808   :  { %6004 = vmatprep.mubr.f32.mxu0 %v12658_v3  ;;  %9250 = vmatprep.subr.bf16.mxu1 %v9249_v25  ;;  %v4517_v25 = vld [vmem:[#allocation20 + $0x448] sm:$0xff]  ;;  %v9275_v49 = vpack.c.bf16 %v4500_v18, %v4484_v19  ;;  %v9323_v19 = vpack.c.bf16 %v4504_v9, %v4488_v56  ;;  %v6324_v9 = vld [vmem:[#allocation22 + $0x18] sm:$0xff] }
 0x809   :  { %9420 = vmatpush1.bf16.msra.mxu0 %v9419_v50  ;;  %v9277_v48 = vpack.c.bf16 %v4533_v26, %v4517_v25  ;;  %v4532_v50 = vld [vmem:[#allocation20 + $0x4c0] sm:$0xff]  ;;  %v6322_v56 = vld [vmem:[#allocation22 + $0x8] sm:$0xff] }
 0x80a   :  { %7986 = vmatmul.mubr.msk.f32.gmra.mrb[180].mxu1 %vm4572_vm4, %v11938_v4  ;;  %8052 = vmatmul.mubr.msk.f32.gmra.mrb[138].mxu0 %vm4147_vm2, %v11860_v14  ;;  %v9279_v61 = vpack.c.bf16 %v4532_v50, %v4516_v37  ;;  %v4520_v25 = vld [vmem:[#allocation20 + $0x460] sm:$0xff] }
 0x80b   :  { %9252 = vmatpush1.bf16.msra.mxu1 %v9251_v22  ;;  %4881 = vmatprep.mubr.f32.mxu1 %v12658_v3  ;;  %v4549_v22 = vld [vmem:[#allocation20 + $0x548] sm:$0xff]  ;;  %v4536_v26 = vld [vmem:[#allocation20 + $0x4e0] sm:$0xff] }
 0x80c   :  { %6010 = vmatprep.mubr.f32.mxu0 %v12658_v3  ;;  %9254 = vmatprep.subr.bf16.mxu1 %v9253_v2  ;;  %v4565_v2 = vld [vmem:[#allocation20 + $0x5c8] sm:$0xff]  ;;  %v9327_v37 = vpack.c.bf16 %v4536_v26, %v4520_v25  ;;  %v4352_v26 = vld [vmem:[#allocation19 + $0x120] sm:$0xff] }
 0x80d   :  { %v9281_v55 = vpack.c.bf16 %v4565_v2, %v4549_v22  ;;  %v4552_v22 = vld [vmem:[#allocation20 + $0x560] sm:$0xff] }
 0x80e   :  { %7987 = vmatmul.mubr.msk.f32.gmra.mrb[182].mxu1 %vm4572_vm4, %v11947_v20  ;;  %8053 = vmatmul.mubr.msk.f32.gmra.mrb[140].mxu0 %vm4147_vm2, %v11865_v35  ;;  %v4568_v2 = vld [vmem:[#allocation20 + $0x5e0] sm:$0xff] }
 0x80f   :  { %9256 = vmatpush1.bf16.msra.mxu1 %v9255_v58  ;;  %4887 = vmatprep.mubr.f32.mxu1 %v12658_v3  ;;  %v4393_v58 = vld [vmem:[#allocation20 + $0x68] sm:$0xff]  ;;  %v9331_v8 = vpack.c.bf16 %v4568_v2, %v4552_v22  ;;  %v6328_v2 = vld [vmem:[#allocation22 + $0x38] sm:$0xff] }
 0x810   :  { %6016 = vmatprep.mubr.f32.mxu0 %v12658_v3  ;;  %9258 = vmatprep.subr.bf16.mxu1 %v9257_v27  ;;  %v4409_v27 = vld [vmem:[#allocation20 + $0xe8] sm:$0xff] }
 0x811   :  { %v9309_v42 = vpack.c.bf16 %v4409_v27, %v4393_v58  ;;  %v4316_v58 = vld [vmem:[#allocation19] sm:$0xff]  ;;  %v6326_v22 = vld [vmem:[#allocation22 + $0x28] sm:$0xff] }
 0x812   :  { %7988 = vmatmul.mubr.msk.f32.gmra.mrb[184].mxu1 %vm4572_vm4, %v11956_v24  ;;  %8054 = vmatmul.mubr.msk.f32.gmra.mrb[142].mxu0 %vm4147_vm2, %v11870_v38  ;;  %v4332_v27 = vld [vmem:[#allocation19 + $0x80] sm:$0xff] }
 0x813   :  { %9260 = vmatpush1.bf16.msra.mxu1 %v9259_v51  ;;  %4958 = vmatprep.mubr.f32.mxu1 %v12658_v3  ;;  %v4425_v51 = vld [vmem:[#allocation20 + $0x168] sm:$0xff]  ;;  %v9359_v40 = vpack.c.bf16 %v4332_v27, %v4316_v58 }
 0x814   :  { %6188 = vmatprep.mubr.f32.mxu0 %v12658_v3  ;;  %9262 = vmatprep.subr.bf16.mxu1 %v9261_v12  ;;  %v4441_v12 = vld [vmem:[#allocation20 + $0x1e8] sm:$0xff] }
 0x815   :  { %v9313_v21 = vpack.c.bf16 %v4441_v12, %v4425_v51  ;;  %v4348_v51 = vld [vmem:[#allocation19 + $0x100] sm:$0xff] }
 0x816   :  { %7989 = vmatmul.mubr.msk.f32.vlgmr.msra.gmra.mrb[186].mxu1 %vm4572_vm4, %v11913_v36  ;;  %8061 = vmatmul.mubr.msk.f32.vlgmr.msra.gmra.mrb[144].mxu0 %vm4147_vm2, %v11847_v15  ;;  %v4364_v12 = vld [vmem:[#allocation19 + $0x180] sm:$0xff] }
 0x817   :  { %9264 = vmatpush1.bf16.msra.mxu1 %v9263_v23  ;;  %4964 = vmatprep.mubr.f32.mxu1 %v12658_v3  ;;  %v4457_v23 = vld [vmem:[#allocation20 + $0x268] sm:$0xff]  ;;  %v9363_v10 = vpack.c.bf16 %v4364_v12, %v4348_v51  ;;  %v6331_v51 = vld [vmem:[#allocation22 + $0x50] sm:$0xff] }
 0x818   :  { %6194 = vmatprep.mubr.f32.mxu0 %v12658_v3  ;;  %9266 = vmatprep.subr.bf16.mxu1 %v9265_v28  ;;  %v4473_v28 = vld [vmem:[#allocation20 + $0x2e8] sm:$0xff] }
 0x819   :  { %v9317_v6 = vpack.c.bf16 %v4473_v28, %v4457_v23  ;;  %v4351_v23 = vld [vmem:[#allocation19 + $0x118] sm:$0xff] }
 0x81a   :  { %7990 = vmatmul.mubr.msk.f32.gmra.mrb[188].mxu1 %vm4572_vm4, %v11920_v44  ;;  %8062 = vmatmul.mubr.msk.f32.gmra.mrb[146].mxu0 %vm4147_vm2, %v11851_v62  ;;  %v4367_v28 = vld [vmem:[#allocation19 + $0x198] sm:$0xff] }
 0x81b   :  { %9268 = vmatpush1.bf16.msra.mxu1 %v9267_v17  ;;  %4970 = vmatprep.mubr.f32.mxu1 %v12658_v3  ;;  %v4489_v17 = vld [vmem:[#allocation20 + $0x368] sm:$0xff] }
 0x81c   :  { %6200 = vmatprep.mubr.f32.mxu0 %v12658_v3  ;;  %9270 = vmatprep.subr.bf16.mxu1 %v9269_v47  ;;  %v4505_v47 = vld [vmem:[#allocation20 + $0x3e8] sm:$0xff] }
 0x81d   :  { %v9321_v54 = vpack.c.bf16 %v4505_v47, %v4489_v17  ;;  %v9373_v17 = vpack.c.bf16 %v4337_v0, %v4321_v41  ;;  %v4336_v47 = vld [vmem:[#allocation19 + $0xa0] sm:$0xff]  ;;  %v6344_v41 = vld [vmem:[#allocation22 + $0xb8] sm:$0xff] }
 0x81e   :  { %7991 = vmatmul.mubr.msk.f32.gmra.mrb[190].mxu1 %vm4572_vm4, %v11929_v60  ;;  %8063 = vmatmul.mubr.msk.f32.gmra.mrb[148].mxu0 %vm4147_vm2, %v11855_v32 }
 0x81f   :  { %9272 = vmatpush1.bf16.msra.mxu1 %v9271_v16  ;;  %4976 = vmatprep.mubr.f32.mxu1 %v12658_v3  ;;  %v4521_v16 = vld [vmem:[#allocation20 + $0x468] sm:$0xff] }
 0x820   :  { %6206 = vmatprep.mubr.f32.mxu0 %v12658_v3  ;;  %9274 = vmatprep.subr.bf16.mxu1 %v9273_v46  ;;  %v4537_v46 = vld [vmem:[#allocation20 + $0x4e8] sm:$0xff] }
 0x821   :  { %v9325_v18 = vpack.c.bf16 %v4537_v46, %v4521_v16  ;;  %v9421_v46 = vpack.c.bf16 %v6324_v9, %v6322_v56  ;;  %v6345_v9 = vld [vmem:[#allocation22 + $0xc0] sm:$0xff] }
 0x822   :  { %7992 = vmatmul.mubr.msk.f32.gmra.mrb[192].mxu1 %vm4572_vm4, %v11938_v4  ;;  %8064 = vmatmul.mubr.msk.f32.gmra.mrb[150].mxu0 %vm4147_vm2, %v11860_v14 }
 0x823   :  { %9276 = vmatpush1.bf16.msra.mxu1 %v9275_v49  ;;  %4982 = vmatprep.mubr.f32.mxu1 %v12658_v3  ;;  %v4553_v49 = vld [vmem:[#allocation20 + $0x568] sm:$0xff] }
 0x824   :  { %6212 = vmatprep.mubr.f32.mxu0 %v12658_v3  ;;  %9278 = vmatprep.subr.bf16.mxu1 %v9277_v48  ;;  %v4569_v48 = vld [vmem:[#allocation20 + $0x5e8] sm:$0xff] }
 0x825   :  { %v9329_v50 = vpack.c.bf16 %v4569_v48, %v4553_v49  ;;  %v4368_v49 = vld [vmem:[#allocation19 + $0x1a0] sm:$0xff]  ;;  %9422 = vmatprep.subr.bf16.mxu0 %v9421_v46  ;;  %v4322_v46 = vld [vmem:[#allocation19 + $0x30] sm:$0xff] }
 0x826   :  { %7993 = vmatmul.mubr.msk.f32.gmra.mrb[194].mxu1 %vm4572_vm4, %v11947_v20  ;;  %8065 = vmatmul.mubr.msk.f32.gmra.mrb[152].mxu0 %vm4147_vm2, %v11865_v35 }
 0x827   :  { %9280 = vmatpush1.bf16.msra.mxu1 %v9279_v61  ;;  %4988 = vmatprep.mubr.f32.mxu1 %v12658_v3  ;;  %v4317_v61 = vld [vmem:[#allocation19 + $0x8] sm:$0xff] }
 0x828   :  { %6218 = vmatprep.mubr.f32.mxu0 %v12658_v3  ;;  %9282 = vmatprep.subr.bf16.mxu1 %v9281_v55  ;;  %v4333_v55 = vld [vmem:[#allocation19 + $0x88] sm:$0xff] }
 0x829   :  { %v9357_v31 = vpack.c.bf16 %v4333_v55, %v4317_v61  ;;  %v9379_v61 = vpack.c.bf16 %v4368_v49, %v4352_v26  ;;  %v9425_v55 = vpack.c.bf16 %v6328_v2, %v6326_v22  ;;  %v6350_v26 = vld [vmem:[#allocation22 + $0xe8] sm:$0xff]  ;;  %v6352_v49 = vld [vmem:[#allocation22 + $0xf8] sm:$0xff]  ;;  %v6351_v22 = vld [vmem:[#allocation22 + $0xf0] sm:$0xff] }
 0x82a   :  { %7994 = vmatmul.mubr.msk.f32.gmra.mrb[196].mxu1 %vm4572_vm4, %v11956_v24  ;;  %8066 = vmatmul.mubr.msk.f32.gmra.mrb[154].mxu0 %vm4147_vm2, %v11870_v38 }
 0x82b   :  { %9284 = vmatpush1.bf16.msra.mxu1 %v9283_v7  ;;  %5059 = vmatprep.mubr.f32.mxu1 %v12658_v3  ;;  %v4349_v7 = vld [vmem:[#allocation19 + $0x108] sm:$0xff] }
 0x82c   :  { %9310 = vmatprep.subr.bf16.mxu1 %v9309_v42  ;;  %v4365_v42 = vld [vmem:[#allocation19 + $0x188] sm:$0xff] }
 0x82d   :  { %v9361_v53 = vpack.c.bf16 %v4365_v42, %v4349_v7  ;;  %v6330_v7 = vld [vmem:[#allocation22 + $0x48] sm:$0xff]  ;;  %v6332_v42 = vld [vmem:[#allocation22 + $0x58] sm:$0xff] }
 0x82e   :  { %7995 = vmatmul.mubr.msk.f32.vlgmr.msra.gmra.mrb[198].mxu1 %vm4572_vm4, %v11913_v36 }
 0x82f   :  { %9312 = vmatpush1.bf16.msra.mxu1 %v9311_v52  ;;  %5065 = vmatprep.mubr.f32.mxu1 %v12658_v3  ;;  %v4319_v52 = vld [vmem:[#allocation19 + $0x18] sm:$0xff] }
 0x830   :  { %9314 = vmatprep.subr.bf16.mxu1 %v9313_v21  ;;  %v4335_v21 = vld [vmem:[#allocation19 + $0x98] sm:$0xff] }
 0x831   :  { %v9365_v43 = vpack.c.bf16 %v4335_v21, %v4319_v52  ;;  %v6334_v52 = vld [vmem:[#allocation22 + $0x68] sm:$0xff]  ;;  %v6336_v21 = vld [vmem:[#allocation22 + $0x78] sm:$0xff] }
 0x832   :  { %7996 = vmatmul.mubr.msk.f32.gmra.mrb[200].mxu1 %vm4572_vm4, %v11920_v44 }
 0x833   :  { %9316 = vmatpush1.bf16.msra.mxu1 %v9315_v5  ;;  %5071 = vmatprep.mubr.f32.mxu1 %v12658_v3  ;;  %v9369_v5 = vpack.c.bf16 %v4367_v28, %v4351_v23  ;;  %v6340_v28 = vld [vmem:[#allocation22 + $0x98] sm:$0xff] }
 0x834   :  { %9318 = vmatprep.subr.bf16.mxu1 %v9317_v6  ;;  %v4350_v6 = vld [vmem:[#allocation19 + $0x110] sm:$0xff] }
 0x836   :  { %7997 = vmatmul.mubr.msk.f32.gmra.mrb[202].mxu1 %vm4572_vm4, %v11929_v60 }
 0x837   :  { %9320 = vmatpush1.bf16.msra.mxu1 %v9319_v1  ;;  %5077 = vmatprep.mubr.f32.mxu1 %v12658_v3  ;;  %v4353_v1 = vld [vmem:[#allocation19 + $0x128] sm:$0xff] }
 0x838   :  { %9322 = vmatprep.subr.bf16.mxu1 %v9321_v54  ;;  %v4369_v54 = vld [vmem:[#allocation19 + $0x1a8] sm:$0xff] }
 0x839   :  { %v9377_v25 = vpack.c.bf16 %v4369_v54, %v4353_v1  ;;  %v6348_v1 = vld [vmem:[#allocation22 + $0xd8] sm:$0xff] }
 0x83a   :  { %7998 = vmatmul.mubr.msk.f32.gmra.mrb[204].mxu1 %vm4572_vm4, %v11938_v4 }
 0x83b   :  { %9324 = vmatpush1.bf16.msra.mxu1 %v9323_v19  ;;  %5083 = vmatprep.mubr.f32.mxu1 %v12658_v3  ;;  %v6321_v19 = vld [vmem:[#allocation22] sm:$0xff] }
 0x83c   :  { %9326 = vmatprep.subr.bf16.mxu1 %v9325_v18  ;;  %v6323_v18 = vld [vmem:[#allocation22 + $0x10] sm:$0xff] }
 0x83d   :  { %v9423_v48 = vpack.c.bf16 %v6323_v18, %v6321_v19  ;;  %v4338_v19 = vld [vmem:[#allocation19 + $0xb0] sm:$0xff]  ;;  %v4355_v18 = vld [vmem:[#allocation19 + $0x138] sm:$0xff] }
 0x83e   :  { %7999 = vmatmul.mubr.msk.f32.gmra.mrb[206].mxu1 %vm4572_vm4, %v11947_v20 }
 0x83f   :  { %9328 = vmatpush1.bf16.msra.mxu1 %v9327_v37  ;;  %5089 = vmatprep.mubr.f32.mxu1 %v12658_v3  ;;  %v4323_v37 = vld [vmem:[#allocation19 + $0x38] sm:$0xff] }
 0x840   :  { %9330 = vmatprep.subr.bf16.mxu1 %v9329_v50  ;;  %v4339_v50 = vld [vmem:[#allocation19 + $0xb8] sm:$0xff]  ;;  %9424 = vmatpush1.bf16.msra.mxu0 %v9423_v48 }
 0x841   :  { %v9381_v58 = vpack.c.bf16 %v4339_v50, %v4323_v37  ;;  %9426 = vmatprep.subr.bf16.mxu0 %v9425_v55  ;;  %v9383_v37 = vpack.c.bf16 %v4338_v19, %v4322_v46  ;;  %v6349_v50 = vld [vmem:[#allocation22 + $0xe0] sm:$0xff]  ;;  %v4370_v55 = vld [vmem:[#allocation19 + $0x1b0] sm:$0xff] }
 0x842   :  { %8000 = vmatmul.mubr.msk.f32.gmra.mrb[208].mxu1 %vm4572_vm4, %v11956_v24  ;;  %v6369_v46 = vld [vmem:[#allocation22 + $0x180] sm:$0xff]  ;;  %v6371_v19 = vld [vmem:[#allocation22 + $0x190] sm:$0xff] }
 0x843   :  { %9332 = vmatpush1.bf16.msra.mxu1 %v9331_v8  ;;  %5261 = vmatprep.mubr.f32.mxu1 %v12658_v3  ;;  %v6325_v8 = vld [vmem:[#allocation22 + $0x20] sm:$0xff] }
 0x844   :  { %9358 = vmatprep.subr.bf16.mxu1 %v9357_v31  ;;  %v6327_v31 = vld [vmem:[#allocation22 + $0x30] sm:$0xff] }
 0x845   :  { %v9427_v27 = vpack.c.bf16 %v6327_v31, %v6325_v8  ;;  %v4325_v8 = vld [vmem:[#allocation19 + $0x48] sm:$0xff]  ;;  %v9449_v31 = vpack.c.bf16 %v6352_v49, %v6350_v26 }
 0x846   :  { %8007 = vmatmul.mubr.msk.f32.vlgmr.msra.gmra.mrb[210].mxu1 %vm4572_vm4, %v11913_v36  ;;  %v4318_v36 = vld [vmem:[#allocation19 + $0x10] sm:$0xff]  ;;  %v4357_v26 = vld [vmem:[#allocation19 + $0x148] sm:$0xff] }
 0x847   :  { %5267 = vmatprep.mubr.f32.mxu1 %v12658_v3  ;;  %9360 = vmatpush1.bf16.msra.mxu1 %v9359_v40  ;;  %v9429_v40 = vpack.c.bf16 %v6332_v42, %v6330_v7  ;;  %v6356_v7 = vld [vmem:[#allocation22 + $0x118] sm:$0xff]  ;;  %v9451_v42 = vpack.c.bf16 %v6351_v22, %v6349_v50  ;;  %v4373_v49 = vld [vmem:[#allocation19 + $0x1c8] sm:$0xff]  ;;  %v9471_v50 = vpack.c.bf16 %v6371_v19, %v6369_v46 }
 0x848   :  { %9362 = vmatprep.subr.bf16.mxu1 %v9361_v53  ;;  %9428 = vmatpush1.bf16.msra.mxu0 %v9427_v27  ;;  %v6329_v53 = vld [vmem:[#allocation22 + $0x40] sm:$0xff]  ;;  %v6354_v27 = vld [vmem:[#allocation22 + $0x108] sm:$0xff] }
 0x849   :  { %v9431_v12 = vpack.c.bf16 %v6331_v51, %v6329_v53  ;;  %9430 = vmatprep.subr.bf16.mxu0 %v9429_v40  ;;  %v6353_v53 = vld [vmem:[#allocation22 + $0x100] sm:$0xff]  ;;  %v6355_v51 = vld [vmem:[#allocation22 + $0x110] sm:$0xff]  ;;  %v12731_v46 = vld [vmem:[#allocation108_spill] sm:$0xff] }
 0x84a   :  { %8008 = vmatmul.mubr.msk.f32.gmra.mrb[212].mxu1 %vm4572_vm4, %v11920_v44  ;;  %v4334_v44 = vld [vmem:[#allocation19 + $0x90] sm:$0xff] }
 0x84b   :  { %5273 = vmatprep.mubr.f32.mxu1 %v12658_v3  ;;  %9364 = vmatpush1.bf16.msra.mxu1 %v9363_v10  ;;  %v9433_v10 = vpack.c.bf16 %v6336_v21, %v6334_v52  ;;  %v9453_v52 = vpack.c.bf16 %v6356_v7, %v6354_v27  ;;  %v6358_v21 = vld [vmem:[#allocation22 + $0x128] sm:$0xff] }
 0x84c   :  { %9366 = vmatprep.subr.bf16.mxu1 %v9365_v43  ;;  %9432 = vmatpush1.bf16.msra.mxu0 %v9431_v12  ;;  %v6333_v43 = vld [vmem:[#allocation22 + $0x60] sm:$0xff]  ;;  %v4345_v7 = vld [vmem:[#allocation19 + $0xe8] sm:$0xff] }
 0x84d   :  { %9434 = vmatprep.subr.bf16.mxu0 %v9433_v10  ;;  %v6360_v10 = vld [vmem:[#allocation22 + $0x138] sm:$0xff] }
 0x84e   :  { %8009 = vmatmul.mubr.msk.f32.gmra.mrb[214].mxu1 %vm4572_vm4, %v11929_v60  ;;  %v9367_v60 = vpack.c.bf16 %v4334_v44, %v4318_v36  ;;  %v6335_v36 = vld [vmem:[#allocation22 + $0x70] sm:$0xff]  ;;  %v6338_v44 = vld [vmem:[#allocation22 + $0x88] sm:$0xff] }
 0x84f   :  { %5279 = vmatprep.mubr.f32.mxu1 %v12658_v3  ;;  %v9435_v23 = vpack.c.bf16 %v6335_v36, %v6333_v43  ;;  %v9455_v43 = vpack.c.bf16 %v6355_v51, %v6353_v53  ;;  %v9457_v36 = vpack.c.bf16 %v6360_v10, %v6358_v21 }
 0x851   :  { %9436 = vmatpush1.bf16.msra.mxu0 %v9435_v23  ;;  %v6359_v23 = vld [vmem:[#allocation22 + $0x130] sm:$0xff] }
 0x852   :  { %8010 = vmatmul.mubr.msk.f32.gmra.mrb[216].mxu1 %vm4572_vm4, %v11938_v4  ;;  %v4366_v4 = vld [vmem:[#allocation19 + $0x190] sm:$0xff] }
 0x853   :  { %5285 = vmatprep.mubr.f32.mxu1 %v12658_v3 }
 0x856   :  { %8011 = vmatmul.mubr.msk.f32.gmra.mrb[218].mxu1 %vm4572_vm4, %v11947_v20  ;;  %v9371_v20 = vpack.c.bf16 %v4366_v4, %v4350_v6  ;;  %v9437_v6 = vpack.c.bf16 %v6340_v28, %v6338_v44  ;;  %v6342_v4 = vld [vmem:[#allocation22 + $0xa8] sm:$0xff]  ;;  %v6357_v44 = vld [vmem:[#allocation22 + $0x120] sm:$0xff] }
 0x857   :  { %5291 = vmatprep.mubr.f32.mxu1 %v12658_v3  ;;  %v6362_v28 = vld [vmem:[#allocation22 + $0x148] sm:$0xff] }
 0x858   :  { %9438 = vmatprep.subr.bf16.mxu0 %v9437_v6 }
 0x85a   :  { %8012 = vmatmul.mubr.msk.f32.gmra.mrb[220].mxu1 %vm4572_vm4, %v11956_v24  ;;  %v4320_v24 = vld [vmem:[#allocation19 + $0x20] sm:$0xff] }
 0x85b   :  { %5481 = vmatprep.mubr.f32.mxu1 %v12658_v3  ;;  %v9375_v16 = vpack.c.bf16 %v4336_v47, %v4320_v24  ;;  %v6343_v24 = vld [vmem:[#allocation22 + $0xb0] sm:$0xff]  ;;  %v6346_v47 = vld [vmem:[#allocation22 + $0xc8] sm:$0xff] }
 0x85c   :  { %v9445_v56 = vpack.c.bf16 %v6348_v1, %v6346_v47  ;;  %v6365_v47 = vld [vmem:[#allocation22 + $0x160] sm:$0xff]  ;;  %v6367_v1 = vld [vmem:[#allocation22 + $0x170] sm:$0xff] }
 0x85e   :  { %8019 = vmatmul.mubr.msk.f32.vlgmr.msra.gmra.mrb[150].mxu1 %vm4147_vm2, %v11847_v15 }
 0x85f   :  { %5487 = vmatprep.mubr.f32.mxu1 %v12658_v3  ;;  %9368 = vmatpush1.bf16.msra.mxu1 %v9367_v60  ;;  %v6337_v60 = vld [vmem:[#allocation22 + $0x80] sm:$0xff] }
 0x860   :  { %9370 = vmatprep.subr.bf16.mxu1 %v9369_v5  ;;  %v6339_v5 = vld [vmem:[#allocation22 + $0x90] sm:$0xff] }
 0x861   :  { %v9439_v0 = vpack.c.bf16 %v6339_v5, %v6337_v60  ;;  %v6364_v60 = vld [vmem:[#allocation22 + $0x158] sm:$0xff]  ;;  %v9459_v5 = vpack.c.bf16 %v6359_v23, %v6357_v44 }
 0x862   :  { %8020 = vmatmul.mubr.msk.f32.gmra.mrb[152].mxu1 %vm4147_vm2, %v11851_v62  ;;  %v9461_v6 = vpack.c.bf16 %v6364_v60, %v6362_v28  ;;  %v6384_v44 = vld [vmem:[#allocation22 + $0x1f8] sm:$0xff]  ;;  %v6381_v28 = vld [vmem:[#allocation22 + $0x1e0] sm:$0xff]  ;;  %v6383_v60 = vld [vmem:[#allocation22 + $0x1f0] sm:$0xff] }
 0x863   :  { %5493 = vmatprep.mubr.f32.mxu1 %v12658_v3  ;;  %9372 = vmatpush1.bf16.msra.mxu1 %v9371_v20  ;;  %v9441_v20 = vpack.c.bf16 %v6344_v41, %v6342_v4  ;;  %v6361_v4 = vld [vmem:[#allocation22 + $0x140] sm:$0xff]  ;;  %v6363_v41 = vld [vmem:[#allocation22 + $0x150] sm:$0xff] }
 0x864   :  { %9374 = vmatprep.subr.bf16.mxu1 %v9373_v17  ;;  %v6341_v17 = vld [vmem:[#allocation22 + $0xa0] sm:$0xff]  ;;  %9440 = vmatpush1.bf16.msra.mxu0 %v9439_v0  ;;  %v6366_v0 = vld [vmem:[#allocation22 + $0x168] sm:$0xff] }
 0x865   :  { %v9443_v54 = vpack.c.bf16 %v6343_v24, %v6341_v17  ;;  %9442 = vmatprep.subr.bf16.mxu0 %v9441_v20  ;;  %v6368_v20 = vld [vmem:[#allocation22 + $0x178] sm:$0xff]  ;;  %v9463_v17 = vpack.c.bf16 %v6363_v41, %v6361_v4 }
 0x866   :  { %8021 = vmatmul.mubr.msk.f32.gmra.mrb[154].mxu1 %vm4147_vm2, %v11855_v32  ;;  %v9465_v24 = vpack.c.bf16 %v6368_v20, %v6366_v0  ;;  %v6388_v4 = vld [vmem:[#allocation22 + $0x218] sm:$0xff]  ;;  %v4328_v0 = vld [vmem:[#allocation19 + $0x60] sm:$0xff] }
 0x867   :  { %5499 = vmatprep.mubr.f32.mxu1 %v12658_v3  ;;  %v4344_v20 = vld [vmem:[#allocation19 + $0xe0] sm:$0xff] }
 0x868   :  { %9444 = vmatpush1.bf16.msra.mxu0 %v9443_v54  ;;  %v6370_v54 = vld [vmem:[#allocation22 + $0x188] sm:$0xff] }
 0x869   :  { %9446 = vmatprep.subr.bf16.mxu0 %v9445_v56  ;;  %v6372_v56 = vld [vmem:[#allocation22 + $0x198] sm:$0xff] }
 0x86a   :  { %8022 = vmatmul.mubr.msk.f32.gmra.mrb[156].mxu1 %vm4147_vm2, %v11860_v14 }
 0x86b   :  { %5505 = vmatprep.mubr.f32.mxu1 %v12658_v3 }
 0x86e   :  { %8023 = vmatmul.mubr.msk.f32.gmra.mrb[158].mxu1 %vm4147_vm2, %v11865_v35 }
 0x86f   :  { %5511 = vmatprep.mubr.f32.mxu1 %v12658_v3 }
 0x872   :  { %8024 = vmatmul.mubr.msk.f32.gmra.mrb[160].mxu1 %vm4147_vm2, %v11870_v38 }
 0x873   :  { %5582 = vmatprep.mubr.f32.mxu1 %v12658_v3 }
 0x876   :  { %8025 = vmatmul.mubr.msk.f32.vlgmr.msra.gmra.mrb[162].mxu1 %vm4147_vm2, %v11847_v15 }
 0x877   :  { %5588 = vmatprep.mubr.f32.mxu1 %v12658_v3  ;;  %9376 = vmatpush1.bf16.msra.mxu1 %v9375_v16  ;;  %v6347_v16 = vld [vmem:[#allocation22 + $0xd0] sm:$0xff] }
 0x878   :  { %9378 = vmatprep.subr.bf16.mxu1 %v9377_v25  ;;  %v4371_v25 = vld [vmem:[#allocation19 + $0x1b8] sm:$0xff]  ;;  %v9447_v48 = vpack.c.bf16 %v6347_v16, %v6345_v9  ;;  %v9467_v9 = vpack.c.bf16 %v6367_v1, %v6365_v47  ;;  %v9469_v16 = vpack.c.bf16 %v6372_v56, %v6370_v54  ;;  %v9407_v47 = vpack.c.bf16 %v4344_v20, %v4328_v0  ;;  %v4360_v54 = vld [vmem:[#allocation19 + $0x160] sm:$0xff] }
 0x879   :  { %v9385_v2 = vpack.c.bf16 %v4371_v25, %v4355_v18  ;;  %v4324_v18 = vld [vmem:[#allocation19 + $0x40] sm:$0xff] }
 0x87a   :  { %8026 = vmatmul.mubr.msk.f32.gmra.mrb[164].mxu1 %vm4147_vm2, %v11851_v62  ;;  %9448 = vmatpush1.bf16.msra.mxu0 %v9447_v48  ;;  %v4340_v25 = vld [vmem:[#allocation19 + $0xc0] sm:$0xff]  ;;  %v6374_v48 = vld [vmem:[#allocation22 + $0x1a8] sm:$0xff] }
 0x87b   :  { %5594 = vmatprep.mubr.f32.mxu1 %v12658_v3  ;;  %9380 = vmatpush1.bf16.msra.mxu1 %v9379_v61  ;;  %v4354_v61 = vld [vmem:[#allocation19 + $0x130] sm:$0xff]  ;;  %v9391_v22 = vpack.c.bf16 %v4340_v25, %v4324_v18  ;;  %v4376_v56 = vld [vmem:[#allocation19 + $0x1e0] sm:$0xff] }
 0x87c   :  { %9382 = vmatprep.subr.bf16.mxu1 %v9381_v58  ;;  %v4341_v58 = vld [vmem:[#allocation19 + $0xc8] sm:$0xff]  ;;  %v9387_v40 = vpack.c.bf16 %v4370_v55, %v4354_v61  ;;  %9450 = vmatprep.subr.bf16.mxu0 %v9449_v31  ;;  %v6375_v61 = vld [vmem:[#allocation22 + $0x1b0] sm:$0xff]  ;;  %v9393_v55 = vpack.c.bf16 %v4373_v49, %v4357_v26  ;;  %v4372_v31 = vld [vmem:[#allocation19 + $0x1c0] sm:$0xff] }
 0x87d   :  { %v9389_v12 = vpack.c.bf16 %v4341_v58, %v4325_v8  ;;  %v4356_v8 = vld [vmem:[#allocation19 + $0x140] sm:$0xff]  ;;  %v4329_v58 = vld [vmem:[#allocation19 + $0x68] sm:$0xff]  ;;  %v12732_v25 = vld [vmem:[#allocation109_spill] sm:$0xff] }
 0x87e   :  { %8027 = vmatmul.mubr.msk.f32.gmra.mrb[166].mxu1 %vm4147_vm2, %v11855_v32  ;;  %9452 = vmatpush1.bf16.msra.mxu0 %v9451_v42  ;;  %v6378_v42 = vld [vmem:[#allocation22 + $0x1c8] sm:$0xff]  ;;  %v9395_v51 = vpack.c.bf16 %v4372_v31, %v4356_v8  ;;  %v9405_v21 = vpack.c.bf16 %v4345_v7, %v4329_v58  ;;  %v12736_v58 = vld [vmem:[#allocation113_spill] sm:$0xff] }
 0x87f   :  { %5600 = vmatprep.mubr.f32.mxu1 %v12658_v3  ;;  %9454 = vmatprep.subr.bf16.mxu0 %v9453_v52  ;;  %v6379_v52 = vld [vmem:[#allocation22 + $0x1d0] sm:$0xff] }
 0x882   :  { %8028 = vmatmul.mubr.msk.f32.gmra.mrb[168].mxu1 %vm4147_vm2, %v11860_v14  ;;  %9456 = vmatpush1.bf16.msra.mxu0 %v9455_v43 }
 0x883   :  { %5606 = vmatprep.mubr.f32.mxu1 %v12658_v3  ;;  %9458 = vmatprep.subr.bf16.mxu0 %v9457_v36  ;;  %v6382_v36 = vld [vmem:[#allocation22 + $0x1e8] sm:$0xff] }
 0x884   :  { %v9481_v23 = vpack.c.bf16 %v6384_v44, %v6382_v36 }
 0x886   :  { %8029 = vmatmul.mubr.msk.f32.gmra.mrb[170].mxu1 %vm4147_vm2, %v11865_v35  ;;  %9460 = vmatpush1.bf16.msra.mxu0 %v9459_v5  ;;  %v9483_v5 = vpack.c.bf16 %v6383_v60, %v6381_v28  ;;  %v12747_v28 = vld [vmem:[#allocation119_spill] sm:$0xff] }
 0x887   :  { %5612 = vmatprep.mubr.f32.mxu1 %v12658_v3  ;;  %9462 = vmatprep.subr.bf16.mxu0 %v9461_v6  ;;  %v6386_v6 = vld [vmem:[#allocation22 + $0x208] sm:$0xff] }
 0x888   :  { %v9485_v41 = vpack.c.bf16 %v6388_v4, %v6386_v6 }
 0x88a   :  { %8030 = vmatmul.mubr.msk.f32.gmra.mrb[172].mxu1 %vm4147_vm2, %v11870_v38  ;;  %9464 = vmatpush1.bf16.msra.mxu0 %v9463_v17  ;;  %v4361_v17 = vld [vmem:[#allocation19 + $0x168] sm:$0xff] }
 0x88b   :  { %5683 = vmatprep.mubr.f32.mxu1 %v12658_v3  ;;  %9466 = vmatprep.subr.bf16.mxu0 %v9465_v24  ;;  %v4377_v24 = vld [vmem:[#allocation19 + $0x1e8] sm:$0xff] }
 0x88c   :  { %v9409_v1 = vpack.c.bf16 %v4377_v24, %v4361_v17  ;;  %v12753_v17 = vld [vmem:[#allocation122_spill] sm:$0xff] }
 0x88e   :  { %8031 = vmatmul.mubr.msk.f32.vlgmr.msra.gmra.mrb[174].mxu1 %vm4147_vm2, %v11847_v15  ;;  %9468 = vmatpush1.bf16.msra.mxu0 %v9467_v9  ;;  %v9411_v9 = vpack.c.bf16 %v4376_v56, %v4360_v54  ;;  %v12757_v56 = vld [vmem:[#allocation124_spill] sm:$0xff] }
 0x88f   :  { %5689 = vmatprep.mubr.f32.mxu1 %v12658_v3  ;;  %9384 = vmatpush1.bf16.msra.mxu1 %v9383_v37  ;;  %v6376_v37 = vld [vmem:[#allocation22 + $0x1b8] sm:$0xff] }
 0x890   :  { %9386 = vmatprep.subr.bf16.mxu1 %v9385_v2  ;;  %9470 = vmatprep.subr.bf16.mxu0 %v9469_v16  ;;  %v6373_v2 = vld [vmem:[#allocation22 + $0x1a0] sm:$0xff]  ;;  %v9473_v27 = vpack.c.bf16 %v6376_v37, %v6374_v48  ;;  %v12733_v48 = vld [vmem:[#allocation110_spill] sm:$0xff] }
 0x891   :  { %v9475_v53 = vpack.c.bf16 %v6375_v61, %v6373_v2 }
 0x892   :  { %8032 = vmatmul.mubr.msk.f32.gmra.mrb[176].mxu1 %vm4147_vm2, %v11851_v62  ;;  %9472 = vmatpush1.bf16.msra.mxu0 %v9471_v50 }
 0x893   :  { %5695 = vmatprep.mubr.f32.mxu1 %v12658_v3  ;;  %9388 = vmatpush1.bf16.msra.mxu1 %v9387_v40  ;;  %v6380_v40 = vld [vmem:[#allocation22 + $0x1d8] sm:$0xff] }
 0x894   :  { %9390 = vmatprep.subr.bf16.mxu1 %v9389_v12  ;;  %v6377_v12 = vld [vmem:[#allocation22 + $0x1c0] sm:$0xff]  ;;  %9474 = vmatprep.subr.bf16.mxu0 %v9473_v27  ;;  %v9477_v10 = vpack.c.bf16 %v6380_v40, %v6378_v42 }
 0x895   :  { %v9479_v43 = vpack.c.bf16 %v6379_v52, %v6377_v12 }
 0x896   :  { %8033 = vmatmul.mubr.msk.f32.gmra.mrb[178].mxu1 %vm4147_vm2, %v11855_v32  ;;  %9476 = vmatpush1.bf16.msra.mxu0 %v9475_v53  ;;  %v12739_v53 = vld [vmem:[#allocation115_spill] sm:$0xff] }
 0x897   :  { %5701 = vmatprep.mubr.f32.mxu1 %v12658_v3  ;;  %9478 = vmatprep.subr.bf16.mxu0 %v9477_v10  ;;  %v12743_v10 = vld [vmem:[#allocation117_spill] sm:$0xff] }
 0x89a   :  { %8034 = vmatmul.mubr.msk.f32.gmra.mrb[180].mxu1 %vm4147_vm2, %v11860_v14  ;;  %9480 = vmatpush1.bf16.msra.mxu0 %v9479_v43 }
 0x89b   :  { %5707 = vmatprep.mubr.f32.mxu1 %v12658_v3  ;;  %9482 = vmatprep.subr.bf16.mxu0 %v9481_v23 }
 0x89e   :  { %8035 = vmatmul.mubr.msk.f32.gmra.mrb[182].mxu1 %vm4147_vm2, %v11865_v35  ;;  %9484 = vmatpush1.bf16.msra.mxu0 %v9483_v5 }
 0x89f   :  { %5713 = vmatprep.mubr.f32.mxu1 %v12658_v3  ;;  %9486 = vmatprep.subr.bf16.mxu0 %v9485_v41  ;;  %v12751_v41 = vld [vmem:[#allocation121_spill] sm:$0xff] }
 0x8a2   :  { %8036 = vmatmul.mubr.msk.f32.gmra.mrb[184].mxu1 %vm4147_vm2, %v11870_v38 }
 0x8a3   :  { %5784 = vmatprep.mubr.f32.mxu1 %v12658_v3 }
 0x8a6   :  { %8037 = vmatmul.mubr.msk.f32.vlgmr.msra.gmra.mrb[186].mxu1 %vm4147_vm2, %v11847_v15 }
 0x8a7   :  { %5790 = vmatprep.mubr.f32.mxu1 %v12658_v3  ;;  %9392 = vmatpush1.bf16.msra.mxu1 %v9391_v22  ;;  %v12734_v22 = vld [vmem:[#allocation111_spill] sm:$0xff] }
 0x8a8   :  { %9394 = vmatprep.subr.bf16.mxu1 %v9393_v55  ;;  %v12735_v55 = vld [vmem:[#allocation112_spill] sm:$0xff] }
 0x8aa   :  { %8038 = vmatmul.mubr.msk.f32.gmra.mrb[188].mxu1 %vm4147_vm2, %v11851_v62 }
 0x8ab   :  { %5796 = vmatprep.mubr.f32.mxu1 %v12658_v3  ;;  %9396 = vmatpush1.bf16.msra.mxu1 %v9395_v51 }
 0x8ac   :  { %9406 = vmatprep.subr.bf16.mxu1 %v9405_v21 }
 0x8ae   :  { %8039 = vmatmul.mubr.msk.f32.gmra.mrb[190].mxu1 %vm4147_vm2, %v11855_v32 }
 0x8af   :  { %5802 = vmatprep.mubr.f32.mxu1 %v12658_v3 }
 0x8b2   :  { %8040 = vmatmul.mubr.msk.f32.gmra.mrb[192].mxu1 %vm4147_vm2, %v11860_v14 }
 0x8b3   :  { %5808 = vmatprep.mubr.f32.mxu1 %v12658_v3 }
 0x8b6   :  { %8041 = vmatmul.mubr.msk.f32.gmra.mrb[194].mxu1 %vm4147_vm2, %v11865_v35 }
 0x8b7   :  { %5814 = vmatprep.mubr.f32.mxu1 %v12658_v3 }
 0x8ba   :  { %8042 = vmatmul.mubr.msk.f32.gmra.mrb[196].mxu1 %vm4147_vm2, %v11870_v38 }
 0x8bb   :  { %5885 = vmatprep.mubr.f32.mxu1 %v12658_v3 }
 0x8be   :  { %8043 = vmatmul.mubr.msk.f32.vlgmr.msra.gmra.mrb[198].mxu1 %vm4147_vm2, %v11847_v15 }
 0x8bf   :  { %5891 = vmatprep.mubr.f32.mxu1 %v12658_v3  ;;  %9408 = vmatpush1.bf16.msra.mxu1 %v9407_v47  ;;  %v12755_v47 = vld [vmem:[#allocation123_spill] sm:$0xff] }
 0x8c0   :  { %9410 = vmatprep.subr.bf16.mxu1 %v9409_v1 }
 0x8c2   :  { %8044 = vmatmul.mubr.msk.f32.gmra.mrb[200].mxu1 %vm4147_vm2, %v11851_v62 }
 0x8c3   :  { %5897 = vmatprep.mubr.f32.mxu1 %v12658_v3  ;;  %9412 = vmatpush1.bf16.msra.mxu1 %v9411_v9 }
 0x8c6   :  { %8045 = vmatmul.mubr.msk.f32.gmra.mrb[202].mxu1 %vm4147_vm2, %v11855_v32 }
 0x8c7   :  { %5903 = vmatprep.mubr.f32.mxu1 %v12658_v3 }
 0x8ca   :  { %8046 = vmatmul.mubr.msk.f32.gmra.mrb[204].mxu1 %vm4147_vm2, %v11860_v14 }
 0x8cb   :  { %5909 = vmatprep.mubr.f32.mxu1 %v12658_v3 }
 0x8ce   :  { %8047 = vmatmul.mubr.msk.f32.gmra.mrb[206].mxu1 %vm4147_vm2, %v11865_v35 }
 0x8cf   :  { %5915 = vmatprep.mubr.f32.mxu1 %v12658_v3 }
 0x8d1   :  { %v5988_v16 = vpop.f32.mrb[132].mxu0 }
 0x8d2   :  { %v12197_v19 = vmul.f32 %v5988_v16, %v12731_v46  ;;  %8048 = vmatmul.mubr.msk.f32.gmra.mrb[208].mxu1 %vm4147_vm2, %v11870_v38  ;;  %v5990_v18 = vpop.f32.mrb[133].mxu0  ;;  %v12759_v46 = vld [vmem:[#allocation125_spill] sm:$0xff] }
 0x8d3   :  { %v12202_v26 = vmul.f32 %v5990_v18, %v12732_v25  ;;  %6087 = vmatprep.mubr.f32.mxu1 %v12658_v3  ;;  %v12761_v25 = vld [vmem:[#allocation126_spill] sm:$0xff] }
 0x8d5   :  { %v5994_v49 = vpop.f32.mrb[134].mxu0 }
 0x8d6   :  { %v12206_v37 = vmul.f32 %v5994_v49, %v12733_v48  ;;  %v5996_v50 = vpop.f32.mrb[135].mxu0  ;;  %8055 = vmatmul.mubr.msk.f32.vlgmr.msra.gmra.mrb[210].mxu1 %vm4147_vm2, %v11847_v15  ;;  %v12737_v15 = vld [vmem:[#allocation114_spill] sm:$0xff] }
 0x8d7   :  { %v12211_v2 = vmul.f32 %v5996_v50, %v12734_v22  ;;  %6093 = vmatprep.mubr.f32.mxu1 %v12658_v3  ;;  %v12763_v50 = vld [vmem:[#allocation127_spill] sm:$0xff] }
 0x8d9   :  { %v6000_v61 = vpop.f32.mrb[136].mxu0 }
 0x8da   :  { %v12215_v8 = vmul.f32 %v6000_v61, %v12735_v55  ;;  %v6002_v31 = vpop.f32.mrb[137].mxu0  ;;  %8056 = vmatmul.mubr.msk.f32.gmra.mrb[212].mxu1 %vm4147_vm2, %v11851_v62  ;;  %v12741_v62 = vld [vmem:[#allocation116_spill] sm:$0xff] }
 0x8db   :  { %v12220_v27 = vmul.f32 %v6002_v31, %v12736_v58  ;;  %6099 = vmatprep.mubr.f32.mxu1 %v12658_v3  ;;  %v12765_v55 = vld [vmem:[#allocation128_spill] sm:$0xff] }
 0x8dd   :  { %v6006_v7 = vpop.f32.mrb[138].mxu0 }
 0x8de   :  { %v12224_v42 = vmul.f32 %v6006_v7, %v12737_v15  ;;  %v6008_v40 = vpop.f32.mrb[139].mxu0  ;;  %8057 = vmatmul.mubr.msk.f32.gmra.mrb[214].mxu1 %vm4147_vm2, %v11855_v32  ;;  %v12745_v32 = vld [vmem:[#allocation118_spill] sm:$0xff]  ;;  %v12767_v7 = vld [vmem:[#allocation129_spill] sm:$0xff] }
 0x8df   :  { %v12229_v51 = vmul.f32 %v6008_v40, %v12739_v53  ;;  %6105 = vmatprep.mubr.f32.mxu1 %v12658_v3  ;;  %v12769_v53 = vld [vmem:[#allocation130_spill] sm:$0xff] }
 0x8e0   :  { %12738 = vst [vmem:[#allocation132_spill] sm:$0xff] %v12224_v42 }
 0x8e1   :  { %12740 = vst [vmem:[#allocation133_spill] sm:$0xff] %v12229_v51  ;;  %v6012_v12 = vpop.f32.mrb[140].mxu0  ;;  %v12838_v51 = vld [vmem:[#allocation75_spill] sm:$0xff] }
 0x8e2   :  { %v12233_v52 = vmul.f32 %v6012_v12, %v12741_v62  ;;  %v6014_v21 = vpop.f32.mrb[141].mxu0  ;;  %8058 = vmatmul.mubr.msk.f32.gmra.mrb[216].mxu1 %vm4147_vm2, %v11860_v14  ;;  %v12749_v14 = vld [vmem:[#allocation120_spill] sm:$0xff] }
 0x8e3   :  { %v12238_v43 = vmul.f32 %v6014_v21, %v12743_v10  ;;  %6111 = vmatprep.mubr.f32.mxu1 %v12658_v3  ;;  %v12771_v21 = vld [vmem:[#allocation131_spill] sm:$0xff] }
 0x8e4   :  { %12742 = vst [vmem:[#allocation134_spill] sm:$0xff] %v12233_v52 }
 0x8e5   :  { %12744 = vst [vmem:[#allocation135_spill] sm:$0xff] %v12238_v43  ;;  %v6018_v36 = vpop.f32.mrb[142].mxu0  ;;  %v12835_v43 = vld [vmem:[#allocation73_spill] sm:$0xff] }
 0x8e6   :  { %v12242_v44 = vmul.f32 %v6018_v36, %v12745_v32  ;;  %v6020_v23 = vpop.f32.mrb[143].mxu0  ;;  %8059 = vmatmul.mubr.msk.f32.gmra.mrb[218].mxu1 %vm4147_vm2, %v11865_v35  ;;  %v6385_v36 = vld [vmem:[#allocation22 + $0x200] sm:$0xff]  ;;  %v6387_v32 = vld [vmem:[#allocation22 + $0x210] sm:$0xff] }
 0x8e7   :  { %v12247_v60 = vmul.f32 %v6020_v23, %v12747_v28  ;;  %6117 = vmatprep.mubr.f32.mxu1 %v12658_v3  ;;  %v6390_v28 = vld [vmem:[#allocation22 + $0x228] sm:$0xff] }
 0x8e8   :  { %12746 = vst [vmem:[#allocation136_spill] sm:$0xff] %v12242_v44 }
 0x8e9   :  { %12748 = vst [vmem:[#allocation137_spill] sm:$0xff] %v12247_v60  ;;  %v6190_v5 = vpop.f32.mrb[144].mxu0  ;;  %v12832_v60 = vld [vmem:[#allocation71_spill] sm:$0xff] }
 0x8ea   :  { %v12251_v6 = vmul.f32 %v6190_v5, %v12749_v14  ;;  %8060 = vmatmul.mubr.msk.f32.gmra.mrb[220].mxu1 %vm4147_vm2, %v11870_v38  ;;  %v6192_v4 = vpop.f32.mrb[145].mxu0  ;;  %v6392_v5 = vld [vmem:[#allocation22 + $0x238] sm:$0xff]  ;;  %v12773_v14 = vld [vmem:[#allocation36_spill] sm:$0xff] }
 0x8eb   :  { %v12256_v0 = vmul.f32 %v6192_v4, %v12751_v41 }
 0x8ec   :  { %12750 = vst [vmem:[#allocation108_spill] sm:$0xff] %v12251_v6 }
 0x8ed   :  { %12752 = vst [vmem:[#allocation109_spill] sm:$0xff] %v12256_v0  ;;  %v6196_v20 = vpop.f32.mrb[146].mxu0  ;;  %v12830_v0 = vld [vmem:[#allocation69_spill] sm:$0xff] }
 0x8ee   :  { %v12259_v24 = vmul.f32 %v6196_v20, %v12753_v17  ;;  %v6198_v35 = vpop.f32.mrb[147].mxu0  ;;  %v12774_v20 = vld [vmem:[#allocation37_spill] sm:$0xff] }
 0x8ef   :  { %v12262_v1 = vmul.f32 %v6198_v35, %v12755_v47  ;;  %v9487_v35 = vpack.c.bf16 %v6387_v32, %v6385_v36  ;;  %v9489_v47 = vpack.c.bf16 %v6392_v5, %v6390_v28  ;;  %v6400_v36 = vld [vmem:[#allocation22 + $0x278] sm:$0xff]  ;;  %v12777_v32 = vld [vmem:[#allocation40_spill] sm:$0xff]  ;;  %v12778_v5 = vld [vmem:[#allocation41_spill] sm:$0xff] }
 0x8f0   :  { %12754 = vst [vmem:[#allocation110_spill] sm:$0xff] %v12259_v24 }
 0x8f1   :  { %12756 = vst [vmem:[#allocation111_spill] sm:$0xff] %v12262_v1  ;;  %v6202_v54 = vpop.f32.mrb[148].mxu0  ;;  %v12828_v1 = vld [vmem:[#allocation67_spill] sm:$0xff] }
 0x8f2   :  { %v12265_v9 = vmul.f32 %v6202_v54, %v12757_v56  ;;  %v6204_v16 = vpop.f32.mrb[149].mxu0  ;;  %v6389_v54 = vld [vmem:[#allocation22 + $0x220] sm:$0xff]  ;;  %v6391_v56 = vld [vmem:[#allocation22 + $0x230] sm:$0xff] }
 0x8f3   :  { %v12268_v18 = vmul.f32 %v6204_v16, %v12759_v46  ;;  %v6394_v46 = vld [vmem:[#allocation22 + $0x248] sm:$0xff] }
 0x8f4   :  { %12758 = vst [vmem:[#allocation112_spill] sm:$0xff] %v12265_v9 }
 0x8f5   :  { %12760 = vst [vmem:[#allocation113_spill] sm:$0xff] %v12268_v18  ;;  %v6208_v38 = vpop.f32.mrb[150].mxu0  ;;  %v12826_v18 = vld [vmem:[#allocation65_spill] sm:$0xff] }
 0x8f6   :  { %v12271_v49 = vmul.f32 %v6208_v38, %v12761_v25  ;;  %v6210_v48 = vpop.f32.mrb[151].mxu0  ;;  %v6396_v38 = vld [vmem:[#allocation22 + $0x258] sm:$0xff] }
 0x8f7   :  { %v12274_v22 = vmul.f32 %v6210_v48, %v12763_v50  ;;  %v12775_v25 = vld [vmem:[#allocation38_spill] sm:$0xff] }
 0x8f8   :  { %12762 = vst [vmem:[#allocation114_spill] sm:$0xff] %v12271_v49 }
 0x8f9   :  { %12764 = vst [vmem:[#allocation115_spill] sm:$0xff] %v12274_v22  ;;  %v6214_v61 = vpop.f32.mrb[152].mxu0  ;;  %v12824_v22 = vld [vmem:[#allocation63_spill] sm:$0xff] }
 0x8fa   :  { %v12277_v31 = vmul.f32 %v6214_v61, %v12765_v55  ;;  %v6216_v58 = vpop.f32.mrb[153].mxu0  ;;  %v12776_v61 = vld [vmem:[#allocation39_spill] sm:$0xff] }
 0x8fb   :  { %v12280_v15 = vmul.f32 %v6216_v58, %v12767_v7  ;;  %v9491_v58 = vpack.c.bf16 %v6391_v56, %v6389_v54  ;;  %v9493_v7 = vpack.c.bf16 %v6396_v38, %v6394_v46  ;;  %v6404_v54 = vld [vmem:[#allocation22 + $0x298] sm:$0xff]  ;;  %v12780_v38 = vld [vmem:[#allocation43_spill] sm:$0xff] }
 0x8fc   :  { %12766 = vst [vmem:[#allocation116_spill] sm:$0xff] %v12277_v31  ;;  %v12779_v56 = vld [vmem:[#allocation42_spill] sm:$0xff] }
 0x8fd   :  { %12768 = vst [vmem:[#allocation117_spill] sm:$0xff] %v12280_v15  ;;  %v6220_v40 = vpop.f32.mrb[154].mxu0  ;;  %v12822_v15 = vld [vmem:[#allocation61_spill] sm:$0xff] }
 0x8fe   :  { %v12283_v12 = vmul.f32 %v6220_v40, %v12769_v53  ;;  %v6222_v62 = vpop.f32.mrb[155].mxu0  ;;  %v6393_v40 = vld [vmem:[#allocation22 + $0x240] sm:$0xff]  ;;  %v6395_v53 = vld [vmem:[#allocation22 + $0x250] sm:$0xff] }
 0x8ff   :  { %v12286_v10 = vmul.f32 %v6222_v62, %v12771_v21  ;;  %v6398_v21 = vld [vmem:[#allocation22 + $0x268] sm:$0xff] }
 0x900   :  { %12770 = vst [vmem:[#allocation118_spill] sm:$0xff] %v12283_v12 }
 0x901   :  { %12772 = vst [vmem:[#allocation119_spill] sm:$0xff] %v12286_v10 }
 0x931   :  { %v5483_v23 = vpop.f32.mrb[150].mxu1 }
 0x932   :  { %v6225_v4 = vmul.f32 %v5483_v23, %v12773_v14  ;;  %v5485_v41 = vpop.f32.mrb[151].mxu1 }
 0x933   :  { %v6226_v17 = vmul.f32 %v5485_v41, %v12774_v20  ;;  %v9497_v41 = vpack.c.bf16 %v6400_v36, %v6398_v21  ;;  %v6397_v20 = vld [vmem:[#allocation22 + $0x260] sm:$0xff]  ;;  %v12782_v36 = vld [vmem:[#allocation45_spill] sm:$0xff] }
 0x935   :  { %v5489_v16 = vpop.f32.mrb[152].mxu1  ;;  %6897 = vmatprep.mubr.f32.mxu0 %v6226_v17  ;;  %v6399_v17 = vld [vmem:[#allocation22 + $0x270] sm:$0xff] }
 0x936   :  { %v6241_v48 = vmul.f32 %v5489_v16, %v12775_v25  ;;  %v5491_v50 = vpop.f32.mrb[153].mxu1  ;;  %6898 = vmatmul.mubr.f32.vlgmr.msra.gmra.mrb[156].mxu0 %v6225_v4  ;;  %v9495_v4 = vpack.c.bf16 %v6395_v53, %v6393_v40  ;;  %v6408_v40 = vld [vmem:[#allocation22 + $0x2b8] sm:$0xff]  ;;  %v12781_v53 = vld [vmem:[#allocation44_spill] sm:$0xff] }
 0x937   :  { %v6242_v55 = vmul.f32 %v5491_v50, %v12776_v61  ;;  %9488 = vmatpush1.bf16.msra.mxu0 %v9487_v35  ;;  %v6401_v61 = vld [vmem:[#allocation22 + $0x280] sm:$0xff] }
 0x938   :  { %9490 = vmatprep.subr.bf16.mxu0 %v9489_v47  ;;  %v6402_v47 = vld [vmem:[#allocation22 + $0x288] sm:$0xff] }
 0x939   :  { %v5495_v62 = vpop.f32.mrb[154].mxu1  ;;  %6903 = vmatprep.mubr.f32.mxu0 %v6242_v55  ;;  %v9501_v50 = vpack.c.bf16 %v6404_v54, %v6402_v47  ;;  %v6403_v55 = vld [vmem:[#allocation22 + $0x290] sm:$0xff]  ;;  %v12784_v54 = vld [vmem:[#allocation47_spill] sm:$0xff] }
 0x93a   :  { %v6257_v23 = vmul.f32 %v5495_v62, %v12777_v32  ;;  %v5497_v28 = vpop.f32.mrb[155].mxu1  ;;  %6904 = vmatmul.mubr.f32.gmra.mrb[158].mxu0 %v6241_v48  ;;  %v9499_v48 = vpack.c.bf16 %v6399_v17, %v6397_v20  ;;  %v6412_v20 = vld [vmem:[#allocation22 + $0x2d8] sm:$0xff] }
 0x93b   :  { %v6258_v14 = vmul.f32 %v5497_v28, %v12778_v5  ;;  %9492 = vmatpush1.bf16.msra.mxu0 %v9491_v58  ;;  %v6405_v5 = vld [vmem:[#allocation22 + $0x2a0] sm:$0xff]  ;;  %v12783_v17 = vld [vmem:[#allocation46_spill] sm:$0xff] }
 0x93c   :  { %9494 = vmatprep.subr.bf16.mxu0 %v9493_v7  ;;  %v6406_v7 = vld [vmem:[#allocation22 + $0x2a8] sm:$0xff] }
 0x93d   :  { %v5501_v35 = vpop.f32.mrb[156].mxu1  ;;  %6909 = vmatprep.mubr.f32.mxu0 %v6258_v14  ;;  %v9505_v28 = vpack.c.bf16 %v6408_v40, %v6406_v7  ;;  %v6407_v14 = vld [vmem:[#allocation22 + $0x2b0] sm:$0xff] }
 0x93e   :  { %v6273_v16 = vmul.f32 %v5501_v35, %v12779_v56  ;;  %v5503_v46 = vpop.f32.mrb[157].mxu1  ;;  %6910 = vmatmul.mubr.f32.gmra.mrb[160].mxu0 %v6257_v23  ;;  %v9503_v23 = vpack.c.bf16 %v6403_v55, %v6401_v61  ;;  %v6416_v61 = vld [vmem:[#allocation22 + $0x2f8] sm:$0xff]  ;;  %v12785_v55 = vld [vmem:[#allocation84_spill] sm:$0xff]  ;;  %v12786_v40 = vld [vmem:[#allocation85_spill] sm:$0xff] }
 0x93f   :  { %v6274_v25 = vmul.f32 %v5503_v46, %v12780_v38  ;;  %9496 = vmatpush1.bf16.msra.mxu0 %v9495_v4  ;;  %v6409_v38 = vld [vmem:[#allocation22 + $0x2c0] sm:$0xff] }
 0x940   :  { %9498 = vmatprep.subr.bf16.mxu0 %v9497_v41  ;;  %v6410_v41 = vld [vmem:[#allocation22 + $0x2c8] sm:$0xff] }
 0x941   :  { %v5507_v58 = vpop.f32.mrb[158].mxu1  ;;  %6915 = vmatprep.mubr.f32.mxu0 %v6274_v25  ;;  %v9509_v46 = vpack.c.bf16 %v6412_v20, %v6410_v41  ;;  %v6411_v25 = vld [vmem:[#allocation22 + $0x2d0] sm:$0xff]  ;;  %v12788_v20 = vld [vmem:[#allocation87_spill] sm:$0xff] }
 0x942   :  { %v6289_v62 = vmul.f32 %v5507_v58, %v12781_v53  ;;  %v5509_v21 = vpop.f32.mrb[159].mxu1  ;;  %6916 = vmatmul.mubr.f32.gmra.mrb[162].mxu0 %v6273_v16  ;;  %v9507_v16 = vpack.c.bf16 %v6407_v14, %v6405_v5  ;;  %v6420_v5 = vld [vmem:[#allocation22 + $0x318] sm:$0xff] }
 0x943   :  { %v6290_v32 = vmul.f32 %v5509_v21, %v12782_v36  ;;  %9500 = vmatpush1.bf16.msra.mxu0 %v9499_v48  ;;  %v6413_v36 = vld [vmem:[#allocation22 + $0x2e0] sm:$0xff]  ;;  %v12787_v14 = vld [vmem:[#allocation86_spill] sm:$0xff] }
 0x944   :  { %9502 = vmatprep.subr.bf16.mxu0 %v9501_v50  ;;  %v6414_v50 = vld [vmem:[#allocation22 + $0x2e8] sm:$0xff] }
 0x945   :  { %v5513_v4 = vpop.f32.mrb[160].mxu1  ;;  %6921 = vmatprep.mubr.f32.mxu0 %v6290_v32  ;;  %v9513_v21 = vpack.c.bf16 %v6416_v61, %v6414_v50  ;;  %v6415_v32 = vld [vmem:[#allocation22 + $0x2f0] sm:$0xff] }
 0x946   :  { %v6305_v35 = vmul.f32 %v5513_v4, %v12783_v17  ;;  %v5515_v47 = vpop.f32.mrb[161].mxu1  ;;  %6922 = vmatmul.mubr.f32.gmra.mrb[164].mxu0 %v6289_v62  ;;  %v9511_v62 = vpack.c.bf16 %v6411_v25, %v6409_v38  ;;  %v6424_v38 = vld [vmem:[#allocation22 + $0x338] sm:$0xff]  ;;  %v12789_v25 = vld [vmem:[#allocation88_spill] sm:$0xff]  ;;  %v12790_v61 = vld [vmem:[#allocation89_spill] sm:$0xff] }
 0x947   :  { %v6306_v56 = vmul.f32 %v5515_v47, %v12784_v54  ;;  %9504 = vmatpush1.bf16.msra.mxu0 %v9503_v23  ;;  %v6417_v54 = vld [vmem:[#allocation22 + $0x300] sm:$0xff] }
 0x948   :  { %9506 = vmatprep.subr.bf16.mxu0 %v9505_v28  ;;  %v6418_v28 = vld [vmem:[#allocation22 + $0x308] sm:$0xff] }
 0x949   :  { %v5584_v48 = vpop.f32.mrb[162].mxu1  ;;  %6927 = vmatprep.mubr.f32.mxu0 %v6306_v56  ;;  %v9517_v47 = vpack.c.bf16 %v6420_v5, %v6418_v28  ;;  %v6419_v56 = vld [vmem:[#allocation22 + $0x310] sm:$0xff] }
 0x94a   :  { %v12301_v58 = vmul.f32 %v5584_v48, %v12785_v55  ;;  %v5586_v7 = vpop.f32.mrb[163].mxu1  ;;  %6928 = vmatmul.mubr.f32.gmra.mrb[166].mxu0 %v6305_v35  ;;  %v9515_v35 = vpack.c.bf16 %v6415_v32, %v6413_v36  ;;  %v6426_v36 = vld [vmem:[#allocation22 + $0x348] sm:$0xff]  ;;  %v6428_v32 = vld [vmem:[#allocation22 + $0x358] sm:$0xff] }
 0x94b   :  { %v6228_v53 = vmul.f32 %v5586_v7, %v12786_v40  ;;  %9508 = vmatpush1.bf16.msra.mxu0 %v9507_v16  ;;  %v9519_v7 = vpack.c.bf16 %v6419_v56, %v6417_v54  ;;  %v6427_v54 = vld [vmem:[#allocation22 + $0x350] sm:$0xff]  ;;  %v6430_v56 = vld [vmem:[#allocation22 + $0x368] sm:$0xff] }
 0x94c   :  { %9510 = vmatprep.subr.bf16.mxu0 %v9509_v46  ;;  %v6422_v46 = vld [vmem:[#allocation22 + $0x328] sm:$0xff] }
 0x94d   :  { %v5590_v23 = vpop.f32.mrb[164].mxu1  ;;  %6998 = vmatprep.mubr.f32.mxu0 %v6228_v53  ;;  %v9521_v40 = vpack.c.bf16 %v6424_v38, %v6422_v46  ;;  %v6421_v53 = vld [vmem:[#allocation22 + $0x320] sm:$0xff]  ;;  %v6432_v46 = vld [vmem:[#allocation22 + $0x378] sm:$0xff]  ;;  %v12793_v38 = vld [vmem:[#allocation92_spill] sm:$0xff] }
 0x94e   :  { %v12305_v4 = vmul.f32 %v5590_v23, %v12787_v14  ;;  %v5592_v41 = vpop.f32.mrb[165].mxu1  ;;  %v12791_v23 = vld [vmem:[#allocation90_spill] sm:$0xff]  ;;  %v12792_v14 = vld [vmem:[#allocation91_spill] sm:$0xff] }
 0x94f   :  { %v12308_v17 = vmul.f32 %v5592_v41, %v12788_v20  ;;  %9512 = vmatpush1.bf16.msra.mxu0 %v9511_v62  ;;  %v6423_v62 = vld [vmem:[#allocation22 + $0x330] sm:$0xff] }
 0x950   :  { %9514 = vmatprep.subr.bf16.mxu0 %v9513_v21  ;;  %v9523_v20 = vpack.c.bf16 %v6423_v62, %v6421_v53  ;;  %v6431_v53 = vld [vmem:[#allocation22 + $0x370] sm:$0xff]  ;;  %v6434_v62 = vld [vmem:[#allocation22 + $0x388] sm:$0xff] }
 0x951   :  { %v5596_v16 = vpop.f32.mrb[166].mxu1 }
 0x952   :  { %v12311_v48 = vmul.f32 %v5596_v16, %v12789_v25  ;;  %v5598_v50 = vpop.f32.mrb[167].mxu1  ;;  %v9525_v16 = vpack.c.bf16 %v6428_v32, %v6426_v36  ;;  %v6436_v36 = vld [vmem:[#allocation22 + $0x398] sm:$0xff] }
 0x953   :  { %v12314_v55 = vmul.f32 %v5598_v50, %v12790_v61  ;;  %9516 = vmatpush1.bf16.msra.mxu0 %v9515_v35  ;;  %v6425_v35 = vld [vmem:[#allocation22 + $0x340] sm:$0xff]  ;;  %v12794_v61 = vld [vmem:[#allocation93_spill] sm:$0xff]  ;;  %v12795_v32 = vld [vmem:[#allocation94_spill] sm:$0xff] }
 0x954   :  { %9518 = vmatprep.subr.bf16.mxu0 %v9517_v47 }
 0x955   :  { %v5602_v21 = vpop.f32.mrb[168].mxu1 }
 0x956   :  { %v12317_v28 = vmul.f32 %v5602_v21, %v12791_v23  ;;  %v5604_v5 = vpop.f32.mrb[169].mxu1  ;;  %v9527_v23 = vpack.c.bf16 %v6427_v54, %v6425_v35  ;;  %v6435_v35 = vld [vmem:[#allocation22 + $0x390] sm:$0xff]  ;;  %v6438_v54 = vld [vmem:[#allocation22 + $0x3a8] sm:$0xff] }
 0x957   :  { %v12320_v41 = vmul.f32 %v5604_v5, %v12792_v14  ;;  %9520 = vmatpush1.bf16.msra.mxu0 %v9519_v7  ;;  %v9529_v5 = vpack.c.bf16 %v6432_v46, %v6430_v56  ;;  %v6429_v7 = vld [vmem:[#allocation22 + $0x360] sm:$0xff]  ;;  %v6440_v56 = vld [vmem:[#allocation22 + $0x3b8] sm:$0xff]  ;;  %v12797_v46 = vld [vmem:[#allocation48_spill] sm:$0xff] }
 0x958   :  { %9522 = vmatprep.subr.bf16.mxu0 %v9521_v40 }
 0x959   :  { %v5608_v47 = vpop.f32.mrb[170].mxu1 }
 0x95a   :  { %v12323_v25 = vmul.f32 %v5608_v47, %v12793_v38  ;;  %v5610_v50 = vpop.f32.mrb[171].mxu1  ;;  %v9531_v38 = vpack.c.bf16 %v6431_v53, %v6429_v7  ;;  %v6442_v7 = vld [vmem:[#allocation22 + $0x3c8] sm:$0xff]  ;;  %v6444_v53 = vld [vmem:[#allocation22 + $0x3d8] sm:$0xff] }
 0x95b   :  { %v12326_v21 = vmul.f32 %v5610_v50, %v12794_v61  ;;  %9524 = vmatpush1.bf16.msra.mxu0 %v9523_v20  ;;  %v9533_v50 = vpack.c.bf16 %v6436_v36, %v6434_v62  ;;  %v6433_v20 = vld [vmem:[#allocation22 + $0x380] sm:$0xff]  ;;  %v12799_v62 = vld [vmem:[#allocation50_spill] sm:$0xff] }
 0x95c   :  { %9526 = vmatprep.subr.bf16.mxu0 %v9525_v16 }
 0x95d   :  { %v5614_v40 = vpop.f32.mrb[172].mxu1 }
 0x95e   :  { %v12329_v14 = vmul.f32 %v5614_v40, %v12795_v32  ;;  %v5616_v3 = vpop.f32.mrb[173].mxu1  ;;  %v9535_v32 = vpack.c.bf16 %v6435_v35, %v6433_v20  ;;  %v6446_v20 = vld [vmem:[#allocation22 + $0x3e8] sm:$0xff]  ;;  %v6448_v35 = vld [vmem:[#allocation22 + $0x3f8] sm:$0xff] }
 0x95f   :  { %v12332_v47 = vmul.f32 %v5616_v3, %v12796_v30  ;;  %9528 = vmatpush1.bf16.msra.mxu0 %v9527_v23  ;;  %v9537_v3 = vpack.c.bf16 %v6440_v56, %v6438_v54  ;;  %v6437_v30 = vld [vmem:[#allocation22 + $0x3a0] sm:$0xff]  ;;  %v6439_v23 = vld [vmem:[#allocation22 + $0x3b0] sm:$0xff]  ;;  %v12801_v54 = vld [vmem:[#allocation52_spill] sm:$0xff] }
 0x960   :  { %9530 = vmatprep.subr.bf16.mxu0 %v9529_v5 }
 0x961   :  { %v5685_v16 = vpop.f32.mrb[174].mxu1 }
 0x962   :  { %v12335_v61 = vmul.f32 %v5685_v16, %v12797_v46  ;;  %v5687_v11 = vpop.f32.mrb[175].mxu1  ;;  %v9539_v46 = vpack.c.bf16 %v6439_v23, %v6437_v30  ;;  %v6450_v30 = vld [vmem:[#allocation22 + $0x408] sm:$0xff]  ;;  %v6452_v23 = vld [vmem:[#allocation22 + $0x418] sm:$0xff] }
 0x963   :  { %v12338_v40 = vmul.f32 %v5687_v11, %v12798_v29  ;;  %9532 = vmatpush1.bf16.msra.mxu0 %v9531_v38  ;;  %v9541_v29 = vpack.c.bf16 %v6444_v53, %v6442_v7  ;;  %v6441_v11 = vld [vmem:[#allocation22 + $0x3c0] sm:$0xff]  ;;  %v6443_v38 = vld [vmem:[#allocation22 + $0x3d0] sm:$0xff]  ;;  %v12803_v7 = vld [vmem:[#allocation54_spill] sm:$0xff] }
 0x964   :  { %9534 = vmatprep.subr.bf16.mxu0 %v9533_v50 }
 0x965   :  { %v5691_v5 = vpop.f32.mrb[176].mxu1 }
 0x966   :  { %v12341_v36 = vmul.f32 %v5691_v5, %v12799_v62  ;;  %v5693_v63 = vpop.f32.mrb[177].mxu1  ;;  %v9543_v62 = vpack.c.bf16 %v6443_v38, %v6441_v11  ;;  %v6454_v11 = vld [vmem:[#allocation22 + $0x428] sm:$0xff]  ;;  %v6456_v38 = vld [vmem:[#allocation22 + $0x438] sm:$0xff] }
 0x967   :  { %v12344_v16 = vmul.f32 %v5693_v63, %v12800_v34  ;;  %9536 = vmatpush1.bf16.msra.mxu0 %v9535_v32  ;;  %v9545_v34 = vpack.c.bf16 %v6448_v35, %v6446_v20  ;;  %v6445_v63 = vld [vmem:[#allocation22 + $0x3e0] sm:$0xff]  ;;  %v6447_v32 = vld [vmem:[#allocation22 + $0x3f0] sm:$0xff]  ;;  %v12805_v20 = vld [vmem:[#allocation56_spill] sm:$0xff] }
 0x968   :  { %9538 = vmatprep.subr.bf16.mxu0 %v9537_v3 }
 0x969   :  { %v5697_v50 = vpop.f32.mrb[178].mxu1 }
 0x96a   :  { %v12347_v56 = vmul.f32 %v5697_v50, %v12801_v54  ;;  %v5699_v33 = vpop.f32.mrb[179].mxu1  ;;  %v9547_v54 = vpack.c.bf16 %v6447_v32, %v6445_v63  ;;  %v6458_v63 = vld [vmem:[#allocation22 + $0x448] sm:$0xff]  ;;  %v6460_v32 = vld [vmem:[#allocation22 + $0x458] sm:$0xff] }
 0x96b   :  { %v12350_v5 = vmul.f32 %v5699_v33, %v12802_v45  ;;  %9540 = vmatpush1.bf16.msra.mxu0 %v9539_v46  ;;  %v9549_v45 = vpack.c.bf16 %v6452_v23, %v6450_v30  ;;  %v6449_v33 = vld [vmem:[#allocation22 + $0x400] sm:$0xff]  ;;  %v6451_v46 = vld [vmem:[#allocation22 + $0x410] sm:$0xff]  ;;  %v12807_v30 = vld [vmem:[#allocation58_spill] sm:$0xff] }
 0x96c   :  { %9542 = vmatprep.subr.bf16.mxu0 %v9541_v29 }
 0x96d   :  { %v5703_v3 = vpop.f32.mrb[180].mxu1 }
 0x96e   :  { %v12353_v53 = vmul.f32 %v5703_v3, %v12803_v7  ;;  %v5705_v39 = vpop.f32.mrb[181].mxu1  ;;  %v9551_v7 = vpack.c.bf16 %v6451_v46, %v6449_v33  ;;  %v6462_v46 = vld [vmem:[#allocation22 + $0x468] sm:$0xff] }
 0x96f   :  { %v12356_v50 = vmul.f32 %v5705_v39, %v12804_v13  ;;  %9544 = vmatpush1.bf16.msra.mxu0 %v9543_v62  ;;  %v9553_v13 = vpack.c.bf16 %v6456_v38, %v6454_v11  ;;  %v6453_v39 = vld [vmem:[#allocation22 + $0x420] sm:$0xff]  ;;  %v6455_v62 = vld [vmem:[#allocation22 + $0x430] sm:$0xff]  ;;  %v6464_v11 = vld [vmem:[#allocation22 + $0x478] sm:$0xff] }
 0x970   :  { %9546 = vmatprep.subr.bf16.mxu0 %v9545_v34  ;;  %v12809_v38 = vld [vmem:[#allocation96_spill] sm:$0xff] }
 0x971   :  { %v5709_v29 = vpop.f32.mrb[182].mxu1 }
 0x972   :  { %v12359_v35 = vmul.f32 %v5709_v29, %v12805_v20  ;;  %v5711_v59 = vpop.f32.mrb[183].mxu1  ;;  %v12808_v20 = vld [vmem:[#allocation59_spill] sm:$0xff] }
 0x973   :  { %v12362_v3 = vmul.f32 %v5711_v59, %v12806_v57  ;;  %9548 = vmatpush1.bf16.msra.mxu0 %v9547_v54  ;;  %v9555_v57 = vpack.c.bf16 %v6455_v62, %v6453_v39  ;;  %v9557_v59 = vpack.c.bf16 %v6460_v32, %v6458_v63  ;;  %v6457_v54 = vld [vmem:[#allocation22 + $0x440] sm:$0xff]  ;;  %v6463_v39 = vld [vmem:[#allocation22 + $0x470] sm:$0xff]  ;;  %v6466_v63 = vld [vmem:[#allocation22 + $0x488] sm:$0xff] }
 0x974   :  { %9550 = vmatprep.subr.bf16.mxu0 %v9549_v45  ;;  %v6459_v45 = vld [vmem:[#allocation22 + $0x450] sm:$0xff]  ;;  %v6468_v32 = vld [vmem:[#allocation22 + $0x498] sm:$0xff] }
 0x975   :  { %v5715_v34 = vpop.f32.mrb[184].mxu1 }
 0x976   :  { %v12365_v23 = vmul.f32 %v5715_v34, %v12807_v30  ;;  %6999 = vmatmul.mubr.f32.vlgmr.msra.gmra.mrb[156].mxu0 %v12301_v58  ;;  %v5717_v29 = vpop.f32.mrb[185].mxu1  ;;  %v12810_v30 = vld [vmem:[#allocation97_spill] sm:$0xff] }
 0x977   :  { %v12369_v12 = vmul.f32 %v5717_v29, %v12808_v20  ;;  %7004 = vmatprep.mubr.f32.mxu0 %v12308_v17  ;;  %9552 = vmatpush1.bf16.msra.mxu0 %v9551_v7  ;;  %v9559_v17 = vpack.c.bf16 %v6459_v45, %v6457_v54  ;;  %v9561_v7 = vpack.c.bf16 %v6464_v11, %v6462_v46  ;;  %v12811_v20 = vld [vmem:[#allocation98_spill] sm:$0xff]  ;;  %v6467_v54 = vld [vmem:[#allocation22 + $0x490] sm:$0xff]  ;;  %v6470_v46 = vld [vmem:[#allocation22 + $0x4a8] sm:$0xff] }
 0x978   :  { %9554 = vmatprep.subr.bf16.mxu0 %v9553_v13  ;;  %v6461_v13 = vld [vmem:[#allocation22 + $0x460] sm:$0xff]  ;;  %v6472_v11 = vld [vmem:[#allocation22 + $0x4b8] sm:$0xff] }
 0x979   :  { %v5786_v33 = vpop.f32.mrb[186].mxu1 }
 0x97a   :  { %v12373_v34 = vmul.f32 %v5786_v33, %v12809_v38  ;;  %7005 = vmatmul.mubr.f32.gmra.mrb[158].mxu0 %v12305_v4  ;;  %v5788_v58 = vpop.f32.mrb[187].mxu1  ;;  %v12812_v38 = vld [vmem:[#allocation99_spill] sm:$0xff] }
 0x97b   :  { %v12377_v29 = vmul.f32 %v5788_v58, %v12810_v30  ;;  %7010 = vmatprep.mubr.f32.mxu0 %v12314_v55  ;;  %9556 = vmatpush1.bf16.msra.mxu0 %v9555_v57  ;;  %v9563_v55 = vpack.c.bf16 %v6463_v39, %v6461_v13  ;;  %v9565_v57 = vpack.c.bf16 %v6468_v32, %v6466_v63  ;;  %v12813_v30 = vld [vmem:[#allocation100_spill] sm:$0xff]  ;;  %v6471_v13 = vld [vmem:[#allocation22 + $0x4b0] sm:$0xff]  ;;  %v6476_v32 = vld [vmem:[#allocation22 + $0x4d8] sm:$0xff] }
 0x97c   :  { %9558 = vmatprep.subr.bf16.mxu0 %v9557_v59  ;;  %v6465_v59 = vld [vmem:[#allocation22 + $0x480] sm:$0xff]  ;;  %v6474_v63 = vld [vmem:[#allocation22 + $0x4c8] sm:$0xff] }
 0x97d   :  { %v5792_v62 = vpop.f32.mrb[188].mxu1 }
 0x97e   :  { %v12381_v33 = vmul.f32 %v5792_v62, %v12811_v20  ;;  %7011 = vmatmul.mubr.f32.gmra.mrb[160].mxu0 %v12311_v48  ;;  %v5794_v4 = vpop.f32.mrb[189].mxu1  ;;  %v12814_v20 = vld [vmem:[#allocation101_spill] sm:$0xff] }
 0x97f   :  { %v12385_v58 = vmul.f32 %v5794_v4, %v12812_v38  ;;  %7016 = vmatprep.mubr.f32.mxu0 %v12320_v41  ;;  %9560 = vmatpush1.bf16.msra.mxu0 %v9559_v17  ;;  %v9567_v41 = vpack.c.bf16 %v6467_v54, %v6465_v59  ;;  %v9569_v17 = vpack.c.bf16 %v6472_v11, %v6470_v46  ;;  %v12815_v38 = vld [vmem:[#allocation102_spill] sm:$0xff]  ;;  %v6475_v59 = vld [vmem:[#allocation22 + $0x4d0] sm:$0xff]  ;;  %v6478_v46 = vld [vmem:[#allocation22 + $0x4e8] sm:$0xff] }
 0x980   :  { %9562 = vmatprep.subr.bf16.mxu0 %v9561_v7  ;;  %v6469_v7 = vld [vmem:[#allocation22 + $0x4a0] sm:$0xff]  ;;  %v6480_v11 = vld [vmem:[#allocation22 + $0x4f8] sm:$0xff] }
 0x981   :  { %v5798_v45 = vpop.f32.mrb[190].mxu1 }
 0x982   :  { %v12389_v62 = vmul.f32 %v5798_v45, %v12813_v30  ;;  %7017 = vmatmul.mubr.f32.gmra.mrb[162].mxu0 %v12317_v28  ;;  %v5800_v48 = vpop.f32.mrb[191].mxu1  ;;  %v12816_v30 = vld [vmem:[#allocation103_spill] sm:$0xff] }
 0x983   :  { %v12393_v4 = vmul.f32 %v5800_v48, %v12814_v20  ;;  %7022 = vmatprep.mubr.f32.mxu0 %v12326_v21  ;;  %9564 = vmatpush1.bf16.msra.mxu0 %v9563_v55  ;;  %v9571_v21 = vpack.c.bf16 %v6471_v13, %v6469_v7  ;;  %v9573_v55 = vpack.c.bf16 %v6476_v32, %v6474_v63  ;;  %v12817_v20 = vld [vmem:[#allocation104_spill] sm:$0xff]  ;;  %v6479_v7 = vld [vmem:[#allocation22 + $0x4f0] sm:$0xff]  ;;  %v6484_v32 = vld [vmem:[#allocation22 + $0x518] sm:$0xff] }
 0x984   :  { %9566 = vmatprep.subr.bf16.mxu0 %v9565_v57  ;;  %v6473_v57 = vld [vmem:[#allocation22 + $0x4c0] sm:$0xff]  ;;  %v6482_v63 = vld [vmem:[#allocation22 + $0x508] sm:$0xff] }
 0x985   :  { %v5804_v39 = vpop.f32.mrb[192].mxu1 }
 0x986   :  { %v12397_v45 = vmul.f32 %v5804_v39, %v12815_v38  ;;  %7023 = vmatmul.mubr.f32.gmra.mrb[164].mxu0 %v12323_v25  ;;  %v5806_v28 = vpop.f32.mrb[193].mxu1  ;;  %v12818_v38 = vld [vmem:[#allocation105_spill] sm:$0xff] }
 0x987   :  { %v12401_v48 = vmul.f32 %v5806_v28, %v12816_v30  ;;  %7028 = vmatprep.mubr.f32.mxu0 %v12332_v47  ;;  %9568 = vmatpush1.bf16.msra.mxu0 %v9567_v41  ;;  %v9575_v47 = vpack.c.bf16 %v6475_v59, %v6473_v57  ;;  %v9577_v41 = vpack.c.bf16 %v6480_v11, %v6478_v46  ;;  %v12819_v30 = vld [vmem:[#allocation106_spill] sm:$0xff]  ;;  %v6483_v57 = vld [vmem:[#allocation22 + $0x510] sm:$0xff]  ;;  %v6486_v59 = vld [vmem:[#allocation22 + $0x528] sm:$0xff] }
 0x988   :  { %9570 = vmatprep.subr.bf16.mxu0 %v9569_v17  ;;  %v6477_v17 = vld [vmem:[#allocation22 + $0x4e0] sm:$0xff]  ;;  %v6488_v46 = vld [vmem:[#allocation22 + $0x538] sm:$0xff]  ;;  %v12821_v11 = vld [vmem:[#allocation60_spill] sm:$0xff] }
 0x989   :  { %v5810_v54 = vpop.f32.mrb[194].mxu1 }
 0x98a   :  { %v12405_v39 = vmul.f32 %v5810_v54, %v12817_v20  ;;  %7029 = vmatmul.mubr.f32.gmra.mrb[166].mxu0 %v12329_v14  ;;  %v5812_v25 = vpop.f32.mrb[195].mxu1  ;;  %v12820_v14 = vld [vmem:[#allocation107_spill] sm:$0xff] }
 0x98b   :  { %v12409_v28 = vmul.f32 %v5812_v25, %v12818_v38  ;;  %9572 = vmatpush1.bf16.msra.mxu0 %v9571_v21  ;;  %7099 = vmatprep.mubr.f32.mxu0 %v12338_v40  ;;  %v9579_v25 = vpack.c.bf16 %v6479_v7, %v6477_v17  ;;  %v9581_v21 = vpack.c.bf16 %v6484_v32, %v6482_v63  ;;  %v6481_v40 = vld [vmem:[#allocation22 + $0x500] sm:$0xff]  ;;  %v6487_v17 = vld [vmem:[#allocation22 + $0x530] sm:$0xff]  ;;  %v6490_v7 = vld [vmem:[#allocation22 + $0x548] sm:$0xff] }
 0x98c   :  { %9574 = vmatprep.subr.bf16.mxu0 %v9573_v55  ;;  %v6492_v63 = vld [vmem:[#allocation22 + $0x558] sm:$0xff] }
 0x98d   :  { %v5816_v13 = vpop.f32.mrb[196].mxu1  ;;  %v12823_v32 = vld [vmem:[#allocation62_spill] sm:$0xff] }
 0x98e   :  { %v12413_v54 = vmul.f32 %v5816_v13, %v12819_v30  ;;  %v5818_v20 = vpop.f32.mrb[197].mxu1  ;;  %v9583_v30 = vpack.c.bf16 %v6483_v57, %v6481_v40  ;;  %v6494_v40 = vld [vmem:[#allocation22 + $0x568] sm:$0xff]  ;;  %v6496_v57 = vld [vmem:[#allocation22 + $0x578] sm:$0xff] }
 0x98f   :  { %v12416_v10 = vmul.f32 %v5818_v20, %v12820_v14  ;;  %9576 = vmatpush1.bf16.msra.mxu0 %v9575_v47  ;;  %v9585_v20 = vpack.c.bf16 %v6488_v46, %v6486_v59  ;;  %v6485_v47 = vld [vmem:[#allocation22 + $0x520] sm:$0xff]  ;;  %v12825_v59 = vld [vmem:[#allocation64_spill] sm:$0xff] }
 0x990   :  { %9578 = vmatprep.subr.bf16.mxu0 %v9577_v41 }
 0x991   :  { %v5887_v55 = vpop.f32.mrb[198].mxu1 }
 0x992   :  { %v12419_v38 = vmul.f32 %v5887_v55, %v12821_v11  ;;  %v5889_v31 = vpop.f32.mrb[199].mxu1  ;;  %v9587_v11 = vpack.c.bf16 %v6487_v17, %v6485_v47  ;;  %v6498_v47 = vld [vmem:[#allocation22 + $0x588] sm:$0xff]  ;;  %v6500_v17 = vld [vmem:[#allocation22 + $0x598] sm:$0xff] }
 0x993   :  { %v12422_v13 = vmul.f32 %v5889_v31, %v12822_v15  ;;  %9580 = vmatpush1.bf16.msra.mxu0 %v9579_v25  ;;  %v9589_v31 = vpack.c.bf16 %v6492_v63, %v6490_v7  ;;  %v6489_v15 = vld [vmem:[#allocation22 + $0x540] sm:$0xff]  ;;  %v6491_v25 = vld [vmem:[#allocation22 + $0x550] sm:$0xff]  ;;  %v12827_v7 = vld [vmem:[#allocation66_spill] sm:$0xff] }
 0x994   :  { %9582 = vmatprep.subr.bf16.mxu0 %v9581_v21 }
 0x995   :  { %v5893_v41 = vpop.f32.mrb[200].mxu1 }
 0x996   :  { %v12425_v14 = vmul.f32 %v5893_v41, %v12823_v32  ;;  %v5895_v49 = vpop.f32.mrb[201].mxu1  ;;  %v9591_v32 = vpack.c.bf16 %v6491_v25, %v6489_v15  ;;  %v6502_v15 = vld [vmem:[#allocation22 + $0x5a8] sm:$0xff]  ;;  %v6504_v25 = vld [vmem:[#allocation22 + $0x5b8] sm:$0xff] }
 0x997   :  { %v12428_v55 = vmul.f32 %v5895_v49, %v12824_v22  ;;  %9584 = vmatpush1.bf16.msra.mxu0 %v9583_v30  ;;  %v9593_v49 = vpack.c.bf16 %v6496_v57, %v6494_v40  ;;  %v6493_v22 = vld [vmem:[#allocation22 + $0x560] sm:$0xff]  ;;  %v6495_v30 = vld [vmem:[#allocation22 + $0x570] sm:$0xff]  ;;  %v12829_v40 = vld [vmem:[#allocation68_spill] sm:$0xff] }
 0x998   :  { %9586 = vmatprep.subr.bf16.mxu0 %v9585_v20 }
 0x999   :  { %v5899_v21 = vpop.f32.mrb[202].mxu1 }
 0x99a   :  { %v12431_v46 = vmul.f32 %v5899_v21, %v12825_v59  ;;  %v5901_v9 = vpop.f32.mrb[203].mxu1  ;;  %v9595_v59 = vpack.c.bf16 %v6495_v30, %v6493_v22  ;;  %v6506_v22 = vld [vmem:[#allocation22 + $0x5c8] sm:$0xff]  ;;  %v6508_v30 = vld [vmem:[#allocation22 + $0x5d8] sm:$0xff] }
 0x99b   :  { %v12434_v41 = vmul.f32 %v5901_v9, %v12826_v18  ;;  %9588 = vmatpush1.bf16.msra.mxu0 %v9587_v11  ;;  %v9597_v9 = vpack.c.bf16 %v6500_v17, %v6498_v47  ;;  %v6497_v18 = vld [vmem:[#allocation22 + $0x580] sm:$0xff]  ;;  %v6499_v11 = vld [vmem:[#allocation22 + $0x590] sm:$0xff]  ;;  %v12831_v47 = vld [vmem:[#allocation70_spill] sm:$0xff] }
 0x99c   :  { %9590 = vmatprep.subr.bf16.mxu0 %v9589_v31 }
 0x99d   :  { %v5905_v20 = vpop.f32.mrb[204].mxu1 }
 0x99e   :  { %v12437_v63 = vmul.f32 %v5905_v20, %v12827_v7  ;;  %v5907_v24 = vpop.f32.mrb[205].mxu1  ;;  %v9599_v7 = vpack.c.bf16 %v6499_v11, %v6497_v18  ;;  %v6510_v18 = vld [vmem:[#allocation22 + $0x5e8] sm:$0xff]  ;;  %v6512_v11 = vld [vmem:[#allocation22 + $0x5f8] sm:$0xff] }
 0x99f   :  { %v12440_v21 = vmul.f32 %v5907_v24, %v12828_v1  ;;  %9592 = vmatpush1.bf16.msra.mxu0 %v9591_v32  ;;  %v9601_v24 = vpack.c.bf16 %v6504_v25, %v6502_v15  ;;  %v6501_v1 = vld [vmem:[#allocation22 + $0x5a0] sm:$0xff]  ;;  %v6503_v32 = vld [vmem:[#allocation22 + $0x5b0] sm:$0xff]  ;;  %v12833_v15 = vld [vmem:[#allocation72_spill] sm:$0xff] }
 0x9a0   :  { %9594 = vmatprep.subr.bf16.mxu0 %v9593_v49 }
 0x9a1   :  { %v5911_v31 = vpop.f32.mrb[206].mxu1 }
 0x9a2   :  { %v12443_v57 = vmul.f32 %v5911_v31, %v12829_v40  ;;  %v5913_v6 = vpop.f32.mrb[207].mxu1  ;;  %v9603_v40 = vpack.c.bf16 %v6503_v32, %v6501_v1  ;;  %v6514_v1 = vld [vmem:[#allocation22 + $0x608] sm:$0xff]  ;;  %v6516_v32 = vld [vmem:[#allocation22 + $0x618] sm:$0xff] }
 0x9a3   :  { %v12446_v20 = vmul.f32 %v5913_v6, %v12830_v0  ;;  %9596 = vmatpush1.bf16.msra.mxu0 %v9595_v59  ;;  %v9605_v6 = vpack.c.bf16 %v6508_v30, %v6506_v22  ;;  %v6505_v0 = vld [vmem:[#allocation22 + $0x5c0] sm:$0xff]  ;;  %v6507_v59 = vld [vmem:[#allocation22 + $0x5d0] sm:$0xff]  ;;  %v12837_v22 = vld [vmem:[#allocation74_spill] sm:$0xff] }
 0x9a4   :  { %9598 = vmatprep.subr.bf16.mxu0 %v9597_v9 }
 0x9a5   :  { %v5917_v49 = vpop.f32.mrb[208].mxu1 }
 0x9a6   :  { %v12449_v17 = vmul.f32 %v5917_v49, %v12831_v47  ;;  %v5919_v44 = vpop.f32.mrb[209].mxu1  ;;  %v9607_v47 = vpack.c.bf16 %v6507_v59, %v6505_v0  ;;  %v6518_v0 = vld [vmem:[#allocation22 + $0x628] sm:$0xff]  ;;  %v6520_v59 = vld [vmem:[#allocation22 + $0x638] sm:$0xff] }
 0x9a7   :  { %v12452_v31 = vmul.f32 %v5919_v44, %v12832_v60  ;;  %9600 = vmatpush1.bf16.msra.mxu0 %v9599_v7  ;;  %v9609_v44 = vpack.c.bf16 %v6512_v11, %v6510_v18  ;;  %v6509_v60 = vld [vmem:[#allocation22 + $0x5e0] sm:$0xff]  ;;  %v6511_v7 = vld [vmem:[#allocation22 + $0x5f0] sm:$0xff]  ;;  %v12839_v18 = vld [vmem:[#allocation76_spill] sm:$0xff] }
 0x9a8   :  { %9602 = vmatprep.subr.bf16.mxu0 %v9601_v24 }
 0x9a9   :  { %v6089_v9 = vpop.f32.mrb[210].mxu1 }
 0x9aa   :  { %v12455_v25 = vmul.f32 %v6089_v9, %v12833_v15  ;;  %v6091_v52 = vpop.f32.mrb[211].mxu1  ;;  %v9611_v15 = vpack.c.bf16 %v6511_v7, %v6509_v60  ;;  %v6522_v60 = vld [vmem:[#allocation22 + $0x648] sm:$0xff]  ;;  %v6524_v7 = vld [vmem:[#allocation22 + $0x658] sm:$0xff] }
 0x9ab   :  { %v12458_v49 = vmul.f32 %v6091_v52, %v12835_v43  ;;  %9604 = vmatpush1.bf16.msra.mxu0 %v9603_v40  ;;  %v9613_v52 = vpack.c.bf16 %v6516_v32, %v6514_v1  ;;  %v6513_v43 = vld [vmem:[#allocation22 + $0x600] sm:$0xff]  ;;  %v6515_v40 = vld [vmem:[#allocation22 + $0x610] sm:$0xff]  ;;  %v12842_v1 = vld [vmem:[#allocation78_spill] sm:$0xff] }
 0x9ac   :  { %12834 = vst [vmem:[#allocation120_spill] sm:$0xff] %v12455_v25  ;;  %9606 = vmatprep.subr.bf16.mxu0 %v9605_v6 }
 0x9ad   :  { %12836 = vst [vmem:[#allocation121_spill] sm:$0xff] %v12458_v49  ;;  %v6095_v24 = vpop.f32.mrb[212].mxu1  ;;  %v12841_v49 = vld [vmem:[#allocation77_spill] sm:$0xff] }
 0x9ae   :  { %v12461_v30 = vmul.f32 %v6095_v24, %v12837_v22  ;;  %v6097_v42 = vpop.f32.mrb[213].mxu1  ;;  %v9615_v22 = vpack.c.bf16 %v6515_v40, %v6513_v43  ;;  %v6526_v40 = vld [vmem:[#allocation22 + $0x668] sm:$0xff] }
 0x9af   :  { %v12464_v9 = vmul.f32 %v6097_v42, %v12838_v51  ;;  %9608 = vmatpush1.bf16.msra.mxu0 %v9607_v47  ;;  %v9617_v42 = vpack.c.bf16 %v6520_v59, %v6518_v0  ;;  %v6517_v51 = vld [vmem:[#allocation22 + $0x620] sm:$0xff]  ;;  %v6519_v47 = vld [vmem:[#allocation22 + $0x630] sm:$0xff]  ;;  %v6528_v0 = vld [vmem:[#allocation22 + $0x678] sm:$0xff] }
 0x9b0   :  { %9610 = vmatprep.subr.bf16.mxu0 %v9609_v44  ;;  %v12844_v59 = vld [vmem:[#allocation80_spill] sm:$0xff] }
 0x9b1   :  { %v6101_v6 = vpop.f32.mrb[214].mxu1 }
 0x9b2   :  { %v12467_v11 = vmul.f32 %v6101_v6, %v12839_v18  ;;  %v6103_v25 = vpop.f32.mrb[215].mxu1  ;;  %v12843_v18 = vld [vmem:[#allocation79_spill] sm:$0xff] }
 0x9b3   :  { %v12470_v24 = vmul.f32 %v6103_v25, %v12841_v49  ;;  %9612 = vmatpush1.bf16.msra.mxu0 %v9611_v15  ;;  %v9619_v25 = vpack.c.bf16 %v6519_v47, %v6517_v51  ;;  %v9621_v49 = vpack.c.bf16 %v6524_v7, %v6522_v60  ;;  %v6521_v15 = vld [vmem:[#allocation22 + $0x640] sm:$0xff]  ;;  %v6527_v51 = vld [vmem:[#allocation22 + $0x670] sm:$0xff]  ;;  %v6530_v60 = vld [vmem:[#allocation22 + $0x688] sm:$0xff] }
 0x9b4   :  { %12840 = vst [vmem:[#allocation122_spill] sm:$0xff] %v12467_v11  ;;  %9614 = vmatprep.subr.bf16.mxu0 %v9613_v52  ;;  %v6523_v52 = vld [vmem:[#allocation22 + $0x650] sm:$0xff]  ;;  %v6532_v7 = vld [vmem:[#allocation22 + $0x698] sm:$0xff] }
 0x9b5   :  { %v6107_v44 = vpop.f32.mrb[216].mxu1 }
 0x9b6   :  { %v12473_v32 = vmul.f32 %v6107_v44, %v12842_v1  ;;  %7100 = vmatmul.mubr.f32.vlgmr.msra.gmra.mrb[156].mxu0 %v12335_v61  ;;  %v6109_v6 = vpop.f32.mrb[217].mxu1  ;;  %v12845_v1 = vld [vmem:[#allocation81_spill] sm:$0xff] }
 0x9b7   :  { %v12477_v11 = vmul.f32 %v6109_v6, %v12843_v18  ;;  %7105 = vmatprep.mubr.f32.mxu0 %v12344_v16  ;;  %9616 = vmatpush1.bf16.msra.mxu0 %v9615_v22  ;;  %v9623_v16 = vpack.c.bf16 %v6523_v52, %v6521_v15  ;;  %v9625_v22 = vpack.c.bf16 %v6528_v0, %v6526_v40  ;;  %v12846_v18 = vld [vmem:[#allocation82_spill] sm:$0xff]  ;;  %v6531_v15 = vld [vmem:[#allocation22 + $0x690] sm:$0xff]  ;;  %v6534_v52 = vld [vmem:[#allocation22 + $0x6a8] sm:$0xff] }
 0x9b8   :  { %9618 = vmatprep.subr.bf16.mxu0 %v9617_v42  ;;  %v6525_v42 = vld [vmem:[#allocation22 + $0x660] sm:$0xff]  ;;  %v6536_v40 = vld [vmem:[#allocation22 + $0x6b8] sm:$0xff] }
 0x9b9   :  { %v6113_v43 = vpop.f32.mrb[218].mxu1  ;;  %v9633_v0 = vpack.c.bf16 %v6536_v40, %v6534_v52  ;;  %v6550_v52 = vld [vmem:[#allocation22 + $0x728] sm:$0xff]  ;;  %v6552_v40 = vld [vmem:[#allocation22 + $0x738] sm:$0xff] }
 0x9ba   :  { %v12481_v44 = vmul.f32 %v6113_v43, %v12844_v59  ;;  %7106 = vmatmul.mubr.f32.gmra.mrb[158].mxu0 %v12341_v36  ;;  %v6115_v61 = vpop.f32.mrb[219].mxu1  ;;  %v12847_v59 = vld [vmem:[#allocation83_spill] sm:$0xff] }
 0x9bb   :  { %v12485_v6 = vmul.f32 %v6115_v61, %v12845_v1  ;;  %7111 = vmatprep.mubr.f32.mxu0 %v12350_v5  ;;  %9620 = vmatpush1.bf16.msra.mxu0 %v9619_v25  ;;  %v9627_v5 = vpack.c.bf16 %v6527_v51, %v6525_v42  ;;  %v9629_v25 = vpack.c.bf16 %v6532_v7, %v6530_v60  ;;  %v6533_v1 = vld [vmem:[#allocation22 + $0x6a0] sm:$0xff]  ;;  %v6542_v51 = vld [vmem:[#allocation22 + $0x6e8] sm:$0xff] }
 0x9bc   :  { %9622 = vmatprep.subr.bf16.mxu0 %v9621_v49  ;;  %v6529_v49 = vld [vmem:[#allocation22 + $0x680] sm:$0xff] }
 0x9bd   :  { %v6119_v47 = vpop.f32.mrb[220].mxu1  ;;  %v6537_v42 = vld [vmem:[#allocation22 + $0x6c0] sm:$0xff] }
 0x9be   :  { %v12489_v43 = vmul.f32 %v6119_v47, %v12846_v18  ;;  %7112 = vmatmul.mubr.f32.gmra.mrb[160].mxu0 %v12347_v56  ;;  %v6121_v36 = vpop.f32.mrb[221].mxu1  ;;  %v9631_v56 = vpack.c.bf16 %v6531_v15, %v6529_v49  ;;  %v6535_v47 = vld [vmem:[#allocation22 + $0x6b0] sm:$0xff]  ;;  %v6538_v18 = vld [vmem:[#allocation22 + $0x6c8] sm:$0xff]  ;;  %v6545_v49 = vld [vmem:[#allocation22 + $0x700] sm:$0xff] }
 0x9bf   :  { %v12493_v61 = vmul.f32 %v6121_v36, %v12847_v59  ;;  %7117 = vmatprep.mubr.f32.mxu0 %v12356_v50  ;;  %9624 = vmatpush1.bf16.msra.mxu0 %v9623_v16  ;;  %v6540_v50 = vld [vmem:[#allocation22 + $0x6d8] sm:$0xff]  ;;  %v9635_v16 = vpack.c.bf16 %v6535_v47, %v6533_v1  ;;  %v6541_v36 = vld [vmem:[#allocation22 + $0x6e0] sm:$0xff]  ;;  %v6546_v59 = vld [vmem:[#allocation22 + $0x708] sm:$0xff] }
 0x9c0   :  { %9626 = vmatprep.subr.bf16.mxu0 %v9625_v22  ;;  %v9637_v22 = vpack.c.bf16 %v6540_v50, %v6538_v18  ;;  %v6547_v15 = vld [vmem:[#allocation22 + $0x710] sm:$0xff]  ;;  %v6554_v1 = vld [vmem:[#allocation22 + $0x748] sm:$0xff]  ;;  %v6556_v47 = vld [vmem:[#allocation22 + $0x758] sm:$0xff] }
 0x9c1   :  { %v9653_v50 = vpack.c.bf16 %v6556_v47, %v6554_v1 }
 0x9c2   :  { %7118 = vmatmul.mubr.f32.gmra.mrb[162].mxu0 %v12353_v53  ;;  %v6539_v53 = vld [vmem:[#allocation22 + $0x6d0] sm:$0xff] }
 0x9c3   :  { %7123 = vmatprep.mubr.f32.mxu0 %v12362_v3  ;;  %9628 = vmatpush1.bf16.msra.mxu0 %v9627_v5  ;;  %v6544_v3 = vld [vmem:[#allocation22 + $0x6f8] sm:$0xff]  ;;  %v9639_v60 = vpack.c.bf16 %v6539_v53, %v6537_v42  ;;  %v6558_v42 = vld [vmem:[#allocation22 + $0x768] sm:$0xff] }
 0x9c4   :  { %9630 = vmatprep.subr.bf16.mxu0 %v9629_v25  ;;  %v9641_v7 = vpack.c.bf16 %v6544_v3, %v6542_v51  ;;  %v6560_v53 = vld [vmem:[#allocation22 + $0x778] sm:$0xff] }
 0x9c5   :  { %v9657_v3 = vpack.c.bf16 %v6560_v53, %v6558_v42 }
 0x9c6   :  { %7124 = vmatmul.mubr.f32.gmra.mrb[164].mxu0 %v12359_v35  ;;  %v6543_v35 = vld [vmem:[#allocation22 + $0x6f0] sm:$0xff] }
 0x9c7   :  { %7129 = vmatprep.mubr.f32.mxu0 %v12369_v12  ;;  %9632 = vmatpush1.bf16.msra.mxu0 %v9631_v56  ;;  %v6548_v12 = vld [vmem:[#allocation22 + $0x718] sm:$0xff]  ;;  %v9643_v5 = vpack.c.bf16 %v6543_v35, %v6541_v36  ;;  %v9649_v56 = vpack.c.bf16 %v6552_v40, %v6550_v52  ;;  %v6562_v36 = vld [vmem:[#allocation22 + $0x788] sm:$0xff] }
 0x9c8   :  { %9634 = vmatprep.subr.bf16.mxu0 %v9633_v0  ;;  %v9645_v25 = vpack.c.bf16 %v6548_v12, %v6546_v59  ;;  %v6551_v0 = vld [vmem:[#allocation22 + $0x730] sm:$0xff]  ;;  %v6564_v35 = vld [vmem:[#allocation22 + $0x798] sm:$0xff] }
 0x9c9   :  { %v9661_v12 = vpack.c.bf16 %v6564_v35, %v6562_v36 }
 0x9ca   :  { %7130 = vmatmul.mubr.f32.gmra.mrb[166].mxu0 %v12365_v23  ;;  %v9647_v23 = vpack.c.bf16 %v6547_v15, %v6545_v49  ;;  %v6566_v49 = vld [vmem:[#allocation22 + $0x7a8] sm:$0xff]  ;;  %v6568_v15 = vld [vmem:[#allocation22 + $0x7b8] sm:$0xff] }
 0x9cb   :  { %9636 = vmatpush1.bf16.msra.mxu0 %v9635_v16  ;;  %7200 = vmatprep.mubr.f32.mxu0 %v12377_v29  ;;  %v6549_v29 = vld [vmem:[#allocation22 + $0x720] sm:$0xff]  ;;  %v9665_v40 = vpack.c.bf16 %v6568_v15, %v6566_v49 }
 0x9cc   :  { %9638 = vmatprep.subr.bf16.mxu0 %v9637_v22  ;;  %v9651_v18 = vpack.c.bf16 %v6551_v0, %v6549_v29  ;;  %v6553_v16 = vld [vmem:[#allocation22 + $0x740] sm:$0xff]  ;;  %v6555_v22 = vld [vmem:[#allocation22 + $0x750] sm:$0xff]  ;;  %v6570_v29 = vld [vmem:[#allocation22 + $0x7c8] sm:$0xff] }
 0x9cd   :  { %v9655_v51 = vpack.c.bf16 %v6555_v22, %v6553_v16  ;;  %v6572_v0 = vld [vmem:[#allocation22 + $0x7d8] sm:$0xff]  ;;  %v6574_v16 = vld [vmem:[#allocation22 + $0x7e8] sm:$0xff] }
 0x9ce   :  { %v9669_v47 = vpack.c.bf16 %v6572_v0, %v6570_v29  ;;  %v6576_v22 = vld [vmem:[#allocation22 + $0x7f8] sm:$0xff] }
 0x9cf   :  { %9640 = vmatpush1.bf16.msra.mxu0 %v9639_v60  ;;  %v6557_v60 = vld [vmem:[#allocation22 + $0x760] sm:$0xff]  ;;  %v9673_v53 = vpack.c.bf16 %v6576_v22, %v6574_v16 }
 0x9d0   :  { %9642 = vmatprep.subr.bf16.mxu0 %v9641_v7  ;;  %v6559_v7 = vld [vmem:[#allocation22 + $0x770] sm:$0xff] }
 0x9d1   :  { %v9659_v59 = vpack.c.bf16 %v6559_v7, %v6557_v60  ;;  %v6578_v60 = vld [vmem:[#allocation22 + $0x808] sm:$0xff]  ;;  %v6580_v7 = vld [vmem:[#allocation22 + $0x818] sm:$0xff] }
 0x9d2   :  { %v9677_v35 = vpack.c.bf16 %v6580_v7, %v6578_v60  ;;  %v6593_v60 = vld [vmem:[#allocation22 + $0x880] sm:$0xff]  ;;  %v6598_v7 = vld [vmem:[#allocation22 + $0x8a8] sm:$0xff] }
 0x9d3   :  { %9644 = vmatpush1.bf16.msra.mxu0 %v9643_v5  ;;  %v6561_v5 = vld [vmem:[#allocation22 + $0x780] sm:$0xff] }
 0x9d4   :  { %9646 = vmatprep.subr.bf16.mxu0 %v9645_v25  ;;  %v6563_v25 = vld [vmem:[#allocation22 + $0x790] sm:$0xff] }
 0x9d5   :  { %v9663_v52 = vpack.c.bf16 %v6563_v25, %v6561_v5  ;;  %v6582_v5 = vld [vmem:[#allocation22 + $0x828] sm:$0xff]  ;;  %v6584_v25 = vld [vmem:[#allocation22 + $0x838] sm:$0xff] }
 0x9d6   :  { %v9681_v15 = vpack.c.bf16 %v6584_v25, %v6582_v5 }
 0x9d7   :  { %9648 = vmatpush1.bf16.msra.mxu0 %v9647_v23  ;;  %v6565_v23 = vld [vmem:[#allocation22 + $0x7a0] sm:$0xff] }
 0x9d8   :  { %9650 = vmatprep.subr.bf16.mxu0 %v9649_v56  ;;  %v6567_v56 = vld [vmem:[#allocation22 + $0x7b0] sm:$0xff] }
 0x9d9   :  { %v9667_v1 = vpack.c.bf16 %v6567_v56, %v6565_v23  ;;  %v6586_v23 = vld [vmem:[#allocation22 + $0x848] sm:$0xff]  ;;  %v6588_v56 = vld [vmem:[#allocation22 + $0x858] sm:$0xff] }
 0x9da   :  { %v9685_v0 = vpack.c.bf16 %v6588_v56, %v6586_v23  ;;  %v6605_v23 = vld [vmem:[#allocation22 + $0x8e0] sm:$0xff]  ;;  %v6610_v56 = vld [vmem:[#allocation22 + $0x908] sm:$0xff] }
 0x9db   :  { %9652 = vmatpush1.bf16.msra.mxu0 %v9651_v18  ;;  %v6569_v18 = vld [vmem:[#allocation22 + $0x7c0] sm:$0xff] }
 0x9dc   :  { %9654 = vmatprep.subr.bf16.mxu0 %v9653_v50  ;;  %v6571_v50 = vld [vmem:[#allocation22 + $0x7d0] sm:$0xff] }
 0x9dd   :  { %v9671_v42 = vpack.c.bf16 %v6571_v50, %v6569_v18  ;;  %v6590_v18 = vld [vmem:[#allocation22 + $0x868] sm:$0xff]  ;;  %v6592_v50 = vld [vmem:[#allocation22 + $0x878] sm:$0xff] }
 0x9de   :  { %v9689_v22 = vpack.c.bf16 %v6592_v50, %v6590_v18  ;;  %v6614_v18 = vld [vmem:[#allocation22 + $0x928] sm:$0xff]  ;;  %v6616_v50 = vld [vmem:[#allocation22 + $0x938] sm:$0xff] }
 0x9df   :  { %9656 = vmatpush1.bf16.msra.mxu0 %v9655_v51  ;;  %v6573_v51 = vld [vmem:[#allocation22 + $0x7e0] sm:$0xff] }
 0x9e0   :  { %9658 = vmatprep.subr.bf16.mxu0 %v9657_v3  ;;  %v6575_v3 = vld [vmem:[#allocation22 + $0x7f0] sm:$0xff] }
 0x9e1   :  { %v9675_v36 = vpack.c.bf16 %v6575_v3, %v6573_v51 }
 0x9e3   :  { %9660 = vmatpush1.bf16.msra.mxu0 %v9659_v59  ;;  %v6577_v59 = vld [vmem:[#allocation22 + $0x800] sm:$0xff] }
 0x9e4   :  { %9662 = vmatprep.subr.bf16.mxu0 %v9661_v12  ;;  %v6579_v12 = vld [vmem:[#allocation22 + $0x810] sm:$0xff] }
 0x9e5   :  { %v9679_v49 = vpack.c.bf16 %v6579_v12, %v6577_v59  ;;  %v6597_v59 = vld [vmem:[#allocation22 + $0x8a0] sm:$0xff]  ;;  %v6602_v12 = vld [vmem:[#allocation22 + $0x8c8] sm:$0xff] }
 0x9e7   :  { %9664 = vmatpush1.bf16.msra.mxu0 %v9663_v52  ;;  %v6581_v52 = vld [vmem:[#allocation22 + $0x820] sm:$0xff] }
 0x9e8   :  { %9666 = vmatprep.subr.bf16.mxu0 %v9665_v40  ;;  %v6583_v40 = vld [vmem:[#allocation22 + $0x830] sm:$0xff] }
 0x9e9   :  { %v9683_v29 = vpack.c.bf16 %v6583_v40, %v6581_v52 }
 0x9eb   :  { %9668 = vmatpush1.bf16.msra.mxu0 %v9667_v1  ;;  %v6585_v1 = vld [vmem:[#allocation22 + $0x840] sm:$0xff] }
 0x9ec   :  { %9670 = vmatprep.subr.bf16.mxu0 %v9669_v47  ;;  %v6587_v47 = vld [vmem:[#allocation22 + $0x850] sm:$0xff] }
 0x9ed   :  { %v9687_v16 = vpack.c.bf16 %v6587_v47, %v6585_v1  ;;  %v6609_v1 = vld [vmem:[#allocation22 + $0x900] sm:$0xff]  ;;  %v6611_v47 = vld [vmem:[#allocation22 + $0x910] sm:$0xff] }
 0x9ef   :  { %9672 = vmatpush1.bf16.msra.mxu0 %v9671_v42  ;;  %v6589_v42 = vld [vmem:[#allocation22 + $0x860] sm:$0xff] }
 0x9f0   :  { %9674 = vmatprep.subr.bf16.mxu0 %v9673_v53  ;;  %v6594_v53 = vld [vmem:[#allocation22 + $0x888] sm:$0xff] }
 0x9f3   :  { %9676 = vmatpush1.bf16.msra.mxu0 %v9675_v36 }
 0x9f4   :  { %9678 = vmatprep.subr.bf16.mxu0 %v9677_v35 }
 0x9f6   :  { %7201 = vmatmul.mubr.f32.vlgmr.msra.gmra.mrb[156].mxu0 %v12373_v34  ;;  %v6591_v34 = vld [vmem:[#allocation22 + $0x870] sm:$0xff] }
 0x9f7   :  { %7206 = vmatprep.mubr.f32.mxu0 %v12385_v58  ;;  %9680 = vmatpush1.bf16.msra.mxu0 %v9679_v49  ;;  %v6596_v58 = vld [vmem:[#allocation22 + $0x898] sm:$0xff]  ;;  %v9691_v51 = vpack.c.bf16 %v6591_v34, %v6589_v42  ;;  %v6601_v49 = vld [vmem:[#allocation22 + $0x8c0] sm:$0xff]  ;;  %v6618_v42 = vld [vmem:[#allocation22 + $0x948] sm:$0xff] }
 0x9f8   :  { %9682 = vmatprep.subr.bf16.mxu0 %v9681_v15  ;;  %v9693_v3 = vpack.c.bf16 %v6596_v58, %v6594_v53  ;;  %v6606_v15 = vld [vmem:[#allocation22 + $0x8e8] sm:$0xff]  ;;  %v6620_v34 = vld [vmem:[#allocation22 + $0x958] sm:$0xff] }
 0x9f9   :  { %v9717_v58 = vpack.c.bf16 %v6620_v34, %v6618_v42 }
 0x9fa   :  { %7207 = vmatmul.mubr.f32.gmra.mrb[158].mxu0 %v12381_v33  ;;  %v6595_v33 = vld [vmem:[#allocation22 + $0x890] sm:$0xff] }
 0x9fb   :  { %7212 = vmatprep.mubr.f32.mxu0 %v12393_v4  ;;  %9684 = vmatpush1.bf16.msra.mxu0 %v9683_v29  ;;  %v6600_v4 = vld [vmem:[#allocation22 + $0x8b8] sm:$0xff]  ;;  %v9695_v36 = vpack.c.bf16 %v6595_v33, %v6593_v60  ;;  %v6622_v60 = vld [vmem:[#allocation22 + $0x968] sm:$0xff] }
 0x9fc   :  { %9686 = vmatprep.subr.bf16.mxu0 %v9685_v0  ;;  %v9697_v35 = vpack.c.bf16 %v6600_v4, %v6598_v7  ;;  %v6624_v33 = vld [vmem:[#allocation22 + $0x978] sm:$0xff] }
 0x9fd   :  { %v9721_v4 = vpack.c.bf16 %v6624_v33, %v6622_v60 }
 0x9fe   :  { %7213 = vmatmul.mubr.f32.gmra.mrb[160].mxu0 %v12389_v62  ;;  %v6599_v62 = vld [vmem:[#allocation22 + $0x8b0] sm:$0xff] }
 0x9ff   :  { %7218 = vmatprep.mubr.f32.mxu0 %v12401_v48  ;;  %9688 = vmatpush1.bf16.msra.mxu0 %v9687_v16  ;;  %v6604_v48 = vld [vmem:[#allocation22 + $0x8d8] sm:$0xff]  ;;  %v9699_v5 = vpack.c.bf16 %v6599_v62, %v6597_v59  ;;  %v9713_v16 = vpack.c.bf16 %v6616_v50, %v6614_v18  ;;  %v6626_v59 = vld [vmem:[#allocation22 + $0x988] sm:$0xff] }
 0xa00   :  { %9690 = vmatprep.subr.bf16.mxu0 %v9689_v22  ;;  %v9701_v25 = vpack.c.bf16 %v6604_v48, %v6602_v12  ;;  %v6615_v22 = vld [vmem:[#allocation22 + $0x930] sm:$0xff]  ;;  %v6628_v62 = vld [vmem:[#allocation22 + $0x998] sm:$0xff] }
 0xa01   :  { %v9725_v48 = vpack.c.bf16 %v6628_v62, %v6626_v59 }
 0xa02   :  { %7219 = vmatmul.mubr.f32.gmra.mrb[162].mxu0 %v12397_v45  ;;  %v6603_v45 = vld [vmem:[#allocation22 + $0x8d0] sm:$0xff] }
 0xa03   :  { %7224 = vmatprep.mubr.f32.mxu0 %v12409_v28  ;;  %9692 = vmatpush1.bf16.msra.mxu0 %v9691_v51  ;;  %v6608_v28 = vld [vmem:[#allocation22 + $0x8f8] sm:$0xff]  ;;  %v9703_v52 = vpack.c.bf16 %v6603_v45, %v6601_v49  ;;  %v6617_v51 = vld [vmem:[#allocation22 + $0x940] sm:$0xff]  ;;  %v6630_v49 = vld [vmem:[#allocation22 + $0x9a8] sm:$0xff] }
 0xa04   :  { %9694 = vmatprep.subr.bf16.mxu0 %v9693_v3  ;;  %v9705_v40 = vpack.c.bf16 %v6608_v28, %v6606_v15  ;;  %v6619_v3 = vld [vmem:[#allocation22 + $0x950] sm:$0xff]  ;;  %v6632_v45 = vld [vmem:[#allocation22 + $0x9b8] sm:$0xff] }
 0xa05   :  { %v9719_v7 = vpack.c.bf16 %v6619_v3, %v6617_v51  ;;  %v9729_v28 = vpack.c.bf16 %v6632_v45, %v6630_v49  ;;  %v6646_v51 = vld [vmem:[#allocation22 + $0xa28] sm:$0xff]  ;;  %v6648_v3 = vld [vmem:[#allocation22 + $0xa38] sm:$0xff] }
 0xa06   :  { %7225 = vmatmul.mubr.f32.gmra.mrb[164].mxu0 %v12405_v39  ;;  %v6607_v39 = vld [vmem:[#allocation22 + $0x8f0] sm:$0xff]  ;;  %v9745_v33 = vpack.c.bf16 %v6648_v3, %v6646_v51  ;;  %v6678_v51 = vld [vmem:[#allocation22 + $0xb28] sm:$0xff]  ;;  %v6680_v3 = vld [vmem:[#allocation22 + $0xb38] sm:$0xff] }
 0xa07   :  { %7230 = vmatprep.mubr.f32.mxu0 %v12416_v10  ;;  %9696 = vmatpush1.bf16.msra.mxu0 %v9695_v36  ;;  %v6612_v10 = vld [vmem:[#allocation22 + $0x918] sm:$0xff]  ;;  %v9707_v29 = vpack.c.bf16 %v6607_v39, %v6605_v23  ;;  %v6621_v36 = vld [vmem:[#allocation22 + $0x960] sm:$0xff]  ;;  %v6634_v23 = vld [vmem:[#allocation22 + $0x9c8] sm:$0xff] }
 0xa08   :  { %9698 = vmatprep.subr.bf16.mxu0 %v9697_v35  ;;  %v9709_v0 = vpack.c.bf16 %v6612_v10, %v6610_v56  ;;  %v6623_v35 = vld [vmem:[#allocation22 + $0x970] sm:$0xff]  ;;  %v6636_v39 = vld [vmem:[#allocation22 + $0x9d8] sm:$0xff] }
 0xa09   :  { %v9723_v12 = vpack.c.bf16 %v6623_v35, %v6621_v36  ;;  %v9733_v10 = vpack.c.bf16 %v6636_v39, %v6634_v23  ;;  %v6650_v36 = vld [vmem:[#allocation22 + $0xa48] sm:$0xff]  ;;  %v6652_v35 = vld [vmem:[#allocation22 + $0xa58] sm:$0xff]  ;;  %v6657_v23 = vld [vmem:[#allocation22 + $0xa80] sm:$0xff] }
 0xa0a   :  { %7231 = vmatmul.mubr.f32.gmra.mrb[166].mxu0 %v12413_v54  ;;  %v9711_v54 = vpack.c.bf16 %v6611_v47, %v6609_v1  ;;  %v6638_v1 = vld [vmem:[#allocation22 + $0x9e8] sm:$0xff]  ;;  %v6640_v47 = vld [vmem:[#allocation22 + $0x9f8] sm:$0xff]  ;;  %v9749_v62 = vpack.c.bf16 %v6652_v35, %v6650_v36 }
 0xa0b   :  { %9700 = vmatpush1.bf16.msra.mxu0 %v9699_v5  ;;  %7301 = vmatprep.mubr.f32.mxu0 %v12422_v13  ;;  %v6613_v13 = vld [vmem:[#allocation22 + $0x920] sm:$0xff]  ;;  %v9737_v50 = vpack.c.bf16 %v6640_v47, %v6638_v1  ;;  %v6662_v39 = vld [vmem:[#allocation22 + $0xaa8] sm:$0xff] }
 0xa0c   :  { %9702 = vmatprep.subr.bf16.mxu0 %v9701_v25  ;;  %v9715_v53 = vpack.c.bf16 %v6615_v22, %v6613_v13  ;;  %v6625_v5 = vld [vmem:[#allocation22 + $0x980] sm:$0xff]  ;;  %v6627_v25 = vld [vmem:[#allocation22 + $0x990] sm:$0xff]  ;;  %v6642_v13 = vld [vmem:[#allocation22 + $0xa08] sm:$0xff] }
 0xa0d   :  { %v9727_v15 = vpack.c.bf16 %v6627_v25, %v6625_v5  ;;  %v6644_v22 = vld [vmem:[#allocation22 + $0xa18] sm:$0xff]  ;;  %v6654_v5 = vld [vmem:[#allocation22 + $0xa68] sm:$0xff] }
 0xa0e   :  { %v9741_v34 = vpack.c.bf16 %v6644_v22, %v6642_v13  ;;  %v6656_v25 = vld [vmem:[#allocation22 + $0xa78] sm:$0xff]  ;;  %v6669_v13 = vld [vmem:[#allocation22 + $0xae0] sm:$0xff]  ;;  %v6674_v22 = vld [vmem:[#allocation22 + $0xb08] sm:$0xff] }
 0xa0f   :  { %9704 = vmatpush1.bf16.msra.mxu0 %v9703_v52  ;;  %v6629_v52 = vld [vmem:[#allocation22 + $0x9a0] sm:$0xff]  ;;  %v9753_v45 = vpack.c.bf16 %v6656_v25, %v6654_v5 }
 0xa10   :  { %9706 = vmatprep.subr.bf16.mxu0 %v9705_v40  ;;  %v6631_v40 = vld [vmem:[#allocation22 + $0x9b0] sm:$0xff] }
 0xa11   :  { %v9731_v56 = vpack.c.bf16 %v6631_v40, %v6629_v52 }
 0xa13   :  { %9708 = vmatpush1.bf16.msra.mxu0 %v9707_v29  ;;  %v6633_v29 = vld [vmem:[#allocation22 + $0x9c0] sm:$0xff] }
 0xa14   :  { %9710 = vmatprep.subr.bf16.mxu0 %v9709_v0  ;;  %v6635_v0 = vld [vmem:[#allocation22 + $0x9d0] sm:$0xff] }
 0xa15   :  { %v9735_v18 = vpack.c.bf16 %v6635_v0, %v6633_v29  ;;  %v6661_v29 = vld [vmem:[#allocation22 + $0xaa0] sm:$0xff]  ;;  %v6666_v0 = vld [vmem:[#allocation22 + $0xac8] sm:$0xff] }
 0xa17   :  { %9712 = vmatpush1.bf16.msra.mxu0 %v9711_v54  ;;  %v6637_v54 = vld [vmem:[#allocation22 + $0x9e0] sm:$0xff] }
 0xa18   :  { %9714 = vmatprep.subr.bf16.mxu0 %v9713_v16  ;;  %v6639_v16 = vld [vmem:[#allocation22 + $0x9f0] sm:$0xff] }
 0xa19   :  { %v9739_v42 = vpack.c.bf16 %v6639_v16, %v6637_v54 }
 0xa1b   :  { %9716 = vmatpush1.bf16.msra.mxu0 %v9715_v53  ;;  %v6641_v53 = vld [vmem:[#allocation22 + $0xa00] sm:$0xff] }
 0xa1c   :  { %9718 = vmatprep.subr.bf16.mxu0 %v9717_v58  ;;  %v6643_v58 = vld [vmem:[#allocation22 + $0xa10] sm:$0xff] }
 0xa1d   :  { %v9743_v60 = vpack.c.bf16 %v6643_v58, %v6641_v53  ;;  %v6673_v53 = vld [vmem:[#allocation22 + $0xb00] sm:$0xff]  ;;  %v6675_v58 = vld [vmem:[#allocation22 + $0xb10] sm:$0xff] }
 0xa1f   :  { %9720 = vmatpush1.bf16.msra.mxu0 %v9719_v7  ;;  %v6645_v7 = vld [vmem:[#allocation22 + $0xa20] sm:$0xff] }
 0xa20   :  { %9722 = vmatprep.subr.bf16.mxu0 %v9721_v4  ;;  %v6647_v4 = vld [vmem:[#allocation22 + $0xa30] sm:$0xff] }
 0xa21   :  { %v9747_v59 = vpack.c.bf16 %v6647_v4, %v6645_v7  ;;  %v6682_v7 = vld [vmem:[#allocation22 + $0xb48] sm:$0xff]  ;;  %v6684_v4 = vld [vmem:[#allocation22 + $0xb58] sm:$0xff] }
 0xa22   :  { %v9781_v35 = vpack.c.bf16 %v6684_v4, %v6682_v7 }
 0xa23   :  { %9724 = vmatpush1.bf16.msra.mxu0 %v9723_v12  ;;  %v6649_v12 = vld [vmem:[#allocation22 + $0xa40] sm:$0xff] }
 0xa24   :  { %9726 = vmatprep.subr.bf16.mxu0 %v9725_v48  ;;  %v6651_v48 = vld [vmem:[#allocation22 + $0xa50] sm:$0xff] }
 0xa25   :  { %v9751_v49 = vpack.c.bf16 %v6651_v48, %v6649_v12  ;;  %v6686_v12 = vld [vmem:[#allocation22 + $0xb68] sm:$0xff]  ;;  %v6688_v48 = vld [vmem:[#allocation22 + $0xb78] sm:$0xff] }
 0xa26   :  { %v9785_v25 = vpack.c.bf16 %v6688_v48, %v6686_v12 }
 0xa27   :  { %9728 = vmatpush1.bf16.msra.mxu0 %v9727_v15  ;;  %v6653_v15 = vld [vmem:[#allocation22 + $0xa60] sm:$0xff] }
 0xa28   :  { %9730 = vmatprep.subr.bf16.mxu0 %v9729_v28  ;;  %v6658_v28 = vld [vmem:[#allocation22 + $0xa88] sm:$0xff] }
 0xa2b   :  { %9732 = vmatpush1.bf16.msra.mxu0 %v9731_v56 }
 0xa2c   :  { %9734 = vmatprep.subr.bf16.mxu0 %v9733_v10 }
 0xa2f   :  { %9736 = vmatpush1.bf16.msra.mxu0 %v9735_v18  ;;  %v6665_v18 = vld [vmem:[#allocation22 + $0xac0] sm:$0xff] }
 0xa30   :  { %9738 = vmatprep.subr.bf16.mxu0 %v9737_v50  ;;  %v6670_v50 = vld [vmem:[#allocation22 + $0xae8] sm:$0xff] }
 0xa33   :  { %9740 = vmatpush1.bf16.msra.mxu0 %v9739_v42 }
 0xa34   :  { %9742 = vmatprep.subr.bf16.mxu0 %v9741_v34 }
 0xa36   :  { %7302 = vmatmul.mubr.f32.vlgmr.msra.gmra.mrb[156].mxu0 %v12419_v38  ;;  %v6655_v38 = vld [vmem:[#allocation22 + $0xa70] sm:$0xff] }
 0xa37   :  { %7307 = vmatprep.mubr.f32.mxu0 %v12428_v55  ;;  %9744 = vmatpush1.bf16.msra.mxu0 %v9743_v60  ;;  %v6660_v55 = vld [vmem:[#allocation22 + $0xa98] sm:$0xff]  ;;  %v9755_v52 = vpack.c.bf16 %v6655_v38, %v6653_v15  ;;  %v9777_v60 = vpack.c.bf16 %v6680_v3, %v6678_v51  ;;  %v6690_v15 = vld [vmem:[#allocation22 + $0xb88] sm:$0xff] }
 0xa38   :  { %9746 = vmatprep.subr.bf16.mxu0 %v9745_v33  ;;  %v9757_v40 = vpack.c.bf16 %v6660_v55, %v6658_v28  ;;  %v6679_v33 = vld [vmem:[#allocation22 + $0xb30] sm:$0xff]  ;;  %v6692_v38 = vld [vmem:[#allocation22 + $0xb98] sm:$0xff] }
 0xa39   :  { %v9789_v55 = vpack.c.bf16 %v6692_v38, %v6690_v15  ;;  %v6721_v38 = vld [vmem:[#allocation22 + $0xc80] sm:$0xff] }
 0xa3a   :  { %7308 = vmatmul.mubr.f32.gmra.mrb[158].mxu0 %v12425_v14  ;;  %v6659_v14 = vld [vmem:[#allocation22 + $0xa90] sm:$0xff] }
 0xa3b   :  { %7313 = vmatprep.mubr.f32.mxu0 %v12434_v41  ;;  %9748 = vmatpush1.bf16.msra.mxu0 %v9747_v59  ;;  %v6664_v41 = vld [vmem:[#allocation22 + $0xab8] sm:$0xff]  ;;  %v9759_v56 = vpack.c.bf16 %v6659_v14, %v6657_v23  ;;  %v6681_v59 = vld [vmem:[#allocation22 + $0xb40] sm:$0xff]  ;;  %v6694_v23 = vld [vmem:[#allocation22 + $0xba8] sm:$0xff] }
 0xa3c   :  { %9750 = vmatprep.subr.bf16.mxu0 %v9749_v62  ;;  %v9761_v10 = vpack.c.bf16 %v6664_v41, %v6662_v39  ;;  %v6683_v62 = vld [vmem:[#allocation22 + $0xb50] sm:$0xff]  ;;  %v6696_v14 = vld [vmem:[#allocation22 + $0xbb8] sm:$0xff] }
 0xa3d   :  { %v9783_v5 = vpack.c.bf16 %v6683_v62, %v6681_v59  ;;  %v9793_v41 = vpack.c.bf16 %v6696_v14, %v6694_v23  ;;  %v6718_v59 = vld [vmem:[#allocation22 + $0xc68] sm:$0xff]  ;;  %v6720_v62 = vld [vmem:[#allocation22 + $0xc78] sm:$0xff]  ;;  %v6725_v14 = vld [vmem:[#allocation22 + $0xca0] sm:$0xff] }
 0xa3e   :  { %7314 = vmatmul.mubr.f32.gmra.mrb[160].mxu0 %v12431_v46  ;;  %v6663_v46 = vld [vmem:[#allocation22 + $0xab0] sm:$0xff]  ;;  %v9817_v48 = vpack.c.bf16 %v6720_v62, %v6718_v59  ;;  %v7658_v62 = vld [vmem:[#allocation23 + $0x20] sm:$0xff] }
 0xa3f   :  { %7319 = vmatprep.mubr.f32.mxu0 %v12440_v21  ;;  %9752 = vmatpush1.bf16.msra.mxu0 %v9751_v49  ;;  %v6668_v21 = vld [vmem:[#allocation22 + $0xad8] sm:$0xff]  ;;  %v9763_v1 = vpack.c.bf16 %v6663_v46, %v6661_v29  ;;  %v6685_v49 = vld [vmem:[#allocation22 + $0xb60] sm:$0xff]  ;;  %v6698_v29 = vld [vmem:[#allocation22 + $0xbc8] sm:$0xff] }
 0xa40   :  { %9754 = vmatprep.subr.bf16.mxu0 %v9753_v45  ;;  %v9765_v47 = vpack.c.bf16 %v6668_v21, %v6666_v0  ;;  %v6687_v45 = vld [vmem:[#allocation22 + $0xb70] sm:$0xff]  ;;  %v6700_v46 = vld [vmem:[#allocation22 + $0xbd8] sm:$0xff] }
 0xa41   :  { %v9787_v28 = vpack.c.bf16 %v6687_v45, %v6685_v49  ;;  %v9797_v21 = vpack.c.bf16 %v6700_v46, %v6698_v29  ;;  %v12848_v49 = vld [vmem:[#allocation133_spill] sm:$0xff] }
 0xa42   :  { %7320 = vmatmul.mubr.f32.gmra.mrb[162].mxu0 %v12437_v63  ;;  %v6667_v63 = vld [vmem:[#allocation22 + $0xad0] sm:$0xff] }
 0xa43   :  { %7325 = vmatprep.mubr.f32.mxu0 %v12446_v20  ;;  %9756 = vmatpush1.bf16.msra.mxu0 %v9755_v52  ;;  %v6672_v20 = vld [vmem:[#allocation22 + $0xaf8] sm:$0xff]  ;;  %v9767_v54 = vpack.c.bf16 %v6667_v63, %v6665_v18  ;;  %v6689_v52 = vld [vmem:[#allocation22 + $0xb80] sm:$0xff]  ;;  %v6702_v18 = vld [vmem:[#allocation22 + $0xbe8] sm:$0xff] }
 0xa44   :  { %9758 = vmatprep.subr.bf16.mxu0 %v9757_v40  ;;  %v9769_v16 = vpack.c.bf16 %v6672_v20, %v6670_v50  ;;  %v6691_v40 = vld [vmem:[#allocation22 + $0xb90] sm:$0xff]  ;;  %v6704_v63 = vld [vmem:[#allocation22 + $0xbf8] sm:$0xff] }
 0xa45   :  { %v9791_v39 = vpack.c.bf16 %v6691_v40, %v6689_v52  ;;  %v9801_v20 = vpack.c.bf16 %v6704_v63, %v6702_v18  ;;  %v12850_v52 = vld [vmem:[#allocation135_spill] sm:$0xff]  ;;  %v12853_v18 = vld [vmem:[#allocation136_spill] sm:$0xff] }
 0xa46   :  { %7326 = vmatmul.mubr.f32.gmra.mrb[164].mxu0 %v12443_v57  ;;  %v6671_v57 = vld [vmem:[#allocation22 + $0xaf0] sm:$0xff]  ;;  %v6733_v63 = vld [vmem:[#allocation22 + $0xce0] sm:$0xff] }
 0xa47   :  { %7331 = vmatprep.mubr.f32.mxu0 %v12452_v31  ;;  %9760 = vmatpush1.bf16.msra.mxu0 %v9759_v56  ;;  %v6676_v31 = vld [vmem:[#allocation22 + $0xb18] sm:$0xff]  ;;  %v9771_v42 = vpack.c.bf16 %v6671_v57, %v6669_v13  ;;  %v6693_v56 = vld [vmem:[#allocation22 + $0xba0] sm:$0xff]  ;;  %v6706_v13 = vld [vmem:[#allocation22 + $0xc08] sm:$0xff] }
 0xa48   :  { %9762 = vmatprep.subr.bf16.mxu0 %v9761_v10  ;;  %v9773_v34 = vpack.c.bf16 %v6676_v31, %v6674_v22  ;;  %v6695_v10 = vld [vmem:[#allocation22 + $0xbb0] sm:$0xff]  ;;  %v6708_v57 = vld [vmem:[#allocation22 + $0xc18] sm:$0xff] }
 0xa49   :  { %v9795_v0 = vpack.c.bf16 %v6695_v10, %v6693_v56  ;;  %v9805_v31 = vpack.c.bf16 %v6708_v57, %v6706_v13  ;;  %v12851_v56 = vld [vmem:[#allocation134_spill] sm:$0xff]  ;;  %v12852_v10 = vld [vmem:[#allocation137_spill] sm:$0xff] }
 0xa4a   :  { %7332 = vmatmul.mubr.f32.gmra.mrb[166].mxu0 %v12449_v17  ;;  %v9775_v17 = vpack.c.bf16 %v6675_v58, %v6673_v53  ;;  %v6710_v53 = vld [vmem:[#allocation22 + $0xc28] sm:$0xff]  ;;  %v6712_v58 = vld [vmem:[#allocation22 + $0xc38] sm:$0xff]  ;;  %v12854_v13 = vld [vmem:[#allocation121_spill] sm:$0xff] }
 0xa4b   :  { %9764 = vmatpush1.bf16.msra.mxu0 %v9763_v1  ;;  %7402 = vmatprep.mubr.f32.mxu0 %v12202_v26  ;;  %v6677_v26 = vld [vmem:[#allocation22 + $0xb20] sm:$0xff]  ;;  %v9809_v3 = vpack.c.bf16 %v6712_v58, %v6710_v53 }
 0xa4c   :  { %9766 = vmatprep.subr.bf16.mxu0 %v9765_v47  ;;  %v9779_v36 = vpack.c.bf16 %v6679_v33, %v6677_v26  ;;  %v6697_v1 = vld [vmem:[#allocation22 + $0xbc0] sm:$0xff]  ;;  %v6699_v47 = vld [vmem:[#allocation22 + $0xbd0] sm:$0xff]  ;;  %v6714_v26 = vld [vmem:[#allocation22 + $0xc48] sm:$0xff] }
 0xa4d   :  { %v9799_v50 = vpack.c.bf16 %v6699_v47, %v6697_v1  ;;  %v6716_v33 = vld [vmem:[#allocation22 + $0xc58] sm:$0xff]  ;;  %v6734_v1 = vld [vmem:[#allocation22 + $0xce8] sm:$0xff] }
 0xa4e   :  { %v9813_v4 = vpack.c.bf16 %v6716_v33, %v6714_v26  ;;  %v6736_v47 = vld [vmem:[#allocation22 + $0xcf8] sm:$0xff]  ;;  %v6738_v26 = vld [vmem:[#allocation22 + $0xd08] sm:$0xff] }
 0xa4f   :  { %9768 = vmatpush1.bf16.msra.mxu0 %v9767_v54  ;;  %v6701_v54 = vld [vmem:[#allocation22 + $0xbe0] sm:$0xff]  ;;  %v9833_v53 = vpack.c.bf16 %v6736_v47, %v6734_v1  ;;  %v6740_v33 = vld [vmem:[#allocation22 + $0xd18] sm:$0xff]  ;;  %v7680_v1 = vld [vmem:[#allocation23 + $0xd0] sm:$0xff] }
 0xa50   :  { %9770 = vmatprep.subr.bf16.mxu0 %v9769_v16  ;;  %v6703_v16 = vld [vmem:[#allocation22 + $0xbf0] sm:$0xff]  ;;  %v7681_v47 = vld [vmem:[#allocation23 + $0xd8] sm:$0xff] }
 0xa51   :  { %v9803_v22 = vpack.c.bf16 %v6703_v16, %v6701_v54  ;;  %v7671_v54 = vld [vmem:[#allocation23 + $0x88] sm:$0xff]  ;;  %v7654_v16 = vld [vmem:[#allocation23] sm:$0xff] }
 0xa53   :  { %9772 = vmatpush1.bf16.msra.mxu0 %v9771_v42  ;;  %v6705_v42 = vld [vmem:[#allocation22 + $0xc00] sm:$0xff] }
 0xa54   :  { %9774 = vmatprep.subr.bf16.mxu0 %v9773_v34  ;;  %v6707_v34 = vld [vmem:[#allocation22 + $0xc10] sm:$0xff] }
 0xa55   :  { %v9807_v51 = vpack.c.bf16 %v6707_v34, %v6705_v42  ;;  %v7672_v42 = vld [vmem:[#allocation23 + $0x90] sm:$0xff]  ;;  %v7673_v34 = vld [vmem:[#allocation23 + $0x98] sm:$0xff] }
 0xa57   :  { %9776 = vmatpush1.bf16.msra.mxu0 %v9775_v17  ;;  %v6709_v17 = vld [vmem:[#allocation22 + $0xc20] sm:$0xff] }
 0xa58   :  { %9778 = vmatprep.subr.bf16.mxu0 %v9777_v60  ;;  %v6711_v60 = vld [vmem:[#allocation22 + $0xc30] sm:$0xff] }
 0xa59   :  { %v9811_v7 = vpack.c.bf16 %v6711_v60, %v6709_v17  ;;  %v7657_v17 = vld [vmem:[#allocation23 + $0x18] sm:$0xff]  ;;  %v7674_v60 = vld [vmem:[#allocation23 + $0xa0] sm:$0xff] }
 0xa5b   :  { %9780 = vmatpush1.bf16.msra.mxu0 %v9779_v36  ;;  %v6713_v36 = vld [vmem:[#allocation22 + $0xc40] sm:$0xff] }
 0xa5c   :  { %9782 = vmatprep.subr.bf16.mxu0 %v9781_v35  ;;  %v6715_v35 = vld [vmem:[#allocation22 + $0xc50] sm:$0xff] }
 0xa5d   :  { %v9815_v12 = vpack.c.bf16 %v6715_v35, %v6713_v36  ;;  %v6737_v35 = vld [vmem:[#allocation22 + $0xd00] sm:$0xff] }
 0xa5f   :  { %9784 = vmatpush1.bf16.msra.mxu0 %v9783_v5  ;;  %v6717_v5 = vld [vmem:[#allocation22 + $0xc60] sm:$0xff] }
 0xa60   :  { %9786 = vmatprep.subr.bf16.mxu0 %v9785_v25  ;;  %v6722_v25 = vld [vmem:[#allocation22 + $0xc88] sm:$0xff] }
 0xa63   :  { %9788 = vmatpush1.bf16.msra.mxu0 %v9787_v28  ;;  %v6726_v28 = vld [vmem:[#allocation22 + $0xca8] sm:$0xff] }
 0xa64   :  { %9790 = vmatprep.subr.bf16.mxu0 %v9789_v55  ;;  %v12849_v55 = vld [vmem:[#allocation132_spill] sm:$0xff] }
 0xa67   :  { %9792 = vmatpush1.bf16.msra.mxu0 %v9791_v39  ;;  %v6730_v39 = vld [vmem:[#allocation22 + $0xcc8] sm:$0xff] }
 0xa68   :  { %9794 = vmatprep.subr.bf16.mxu0 %v9793_v41  ;;  %v6732_v41 = vld [vmem:[#allocation22 + $0xcd8] sm:$0xff] }
 0xa69   :  { %v9829_v46 = vpack.c.bf16 %v6732_v41, %v6730_v39 }
 0xa6b   :  { %9796 = vmatpush1.bf16.msra.mxu0 %v9795_v0  ;;  %v6729_v0 = vld [vmem:[#allocation22 + $0xcc0] sm:$0xff] }
 0xa6c   :  { %9798 = vmatprep.subr.bf16.mxu0 %v9797_v21  ;;  %v6731_v21 = vld [vmem:[#allocation22 + $0xcd0] sm:$0xff] }
 0xa6d   :  { %v9831_v57 = vpack.c.bf16 %v6731_v21, %v6729_v0  ;;  %v6747_v21 = vld [vmem:[#allocation22 + $0xd50] sm:$0xff] }
 0xa6f   :  { %9800 = vmatpush1.bf16.msra.mxu0 %v9799_v50  ;;  %v6735_v50 = vld [vmem:[#allocation22 + $0xcf0] sm:$0xff] }
 0xa70   :  { %9802 = vmatprep.subr.bf16.mxu0 %v9801_v20  ;;  %v7670_v20 = vld [vmem:[#allocation23 + $0x80] sm:$0xff]  ;;  %v9835_v36 = vpack.c.bf16 %v6735_v50, %v6733_v63  ;;  %v6752_v63 = vld [vmem:[#allocation22 + $0xd78] sm:$0xff] }
 0xa73   :  { %9804 = vmatpush1.bf16.msra.mxu0 %v9803_v22  ;;  %v9933_v22 = vpack.c.bf16 %v7671_v54, %v7670_v20  ;;  %v6749_v54 = vld [vmem:[#allocation22 + $0xd60] sm:$0xff] }
 0xa74   :  { %9806 = vmatprep.subr.bf16.mxu0 %v9805_v31  ;;  %v7655_v31 = vld [vmem:[#allocation23 + $0x8] sm:$0xff] }
 0xa75   :  { %v9935_v58 = vpack.c.bf16 %v7655_v31, %v7654_v16  ;;  %9934 = vmatprep.subr.bf16.mxu1 %v9933_v22  ;;  %v9953_v16 = vpack.c.bf16 %v7681_v47, %v7680_v1  ;;  %v6751_v31 = vld [vmem:[#allocation22 + $0xd70] sm:$0xff]  ;;  %v6778_v1 = vld [vmem:[#allocation22 + $0xe48] sm:$0xff]  ;;  %v6780_v47 = vld [vmem:[#allocation22 + $0xe58] sm:$0xff] }
 0xa76   :  { %7403 = vmatmul.mubr.f32.vlgmr.msra.gmra.mrb[156].mxu0 %v12197_v19  ;;  %v6719_v19 = vld [vmem:[#allocation22 + $0xc70] sm:$0xff] }
 0xa77   :  { %7408 = vmatprep.mubr.f32.mxu0 %v12211_v2  ;;  %9808 = vmatpush1.bf16.msra.mxu0 %v9807_v51  ;;  %v6724_v2 = vld [vmem:[#allocation22 + $0xc98] sm:$0xff]  ;;  %v9819_v45 = vpack.c.bf16 %v6719_v19, %v6717_v5  ;;  %v9937_v51 = vpack.c.bf16 %v7673_v34, %v7672_v42  ;;  %v6739_v5 = vld [vmem:[#allocation22 + $0xd10] sm:$0xff]  ;;  %v7682_v42 = vld [vmem:[#allocation23 + $0xe0] sm:$0xff] }
 0xa78   :  { %9810 = vmatprep.subr.bf16.mxu0 %v9809_v3  ;;  %v9821_v15 = vpack.c.bf16 %v6724_v2, %v6722_v25  ;;  %v7656_v3 = vld [vmem:[#allocation23 + $0x10] sm:$0xff]  ;;  %9936 = vmatpush3.bf16.msra.mxu1 %v9935_v58  ;;  %v7677_v25 = vld [vmem:[#allocation23 + $0xb8] sm:$0xff]  ;;  %v6742_v2 = vld [vmem:[#allocation22 + $0xd28] sm:$0xff] }
 0xa79   :  { %9938 = vmatprep.subr.bf16.mxu1 %v9937_v51  ;;  %v7676_v19 = vld [vmem:[#allocation23 + $0xb0] sm:$0xff]  ;;  %v7683_v34 = vld [vmem:[#allocation23 + $0xe8] sm:$0xff]  ;;  %v6756_v58 = vld [vmem:[#allocation22 + $0xd98] sm:$0xff] }
 0xa7a   :  { %7409 = vmatmul.mubr.f32.gmra.mrb[158].mxu0 %v12206_v37  ;;  %v6723_v37 = vld [vmem:[#allocation22 + $0xc90] sm:$0xff] }
 0xa7b   :  { %7414 = vmatprep.mubr.f32.mxu0 %v12220_v27  ;;  %9812 = vmatpush1.bf16.msra.mxu0 %v9811_v7  ;;  %v6728_v27 = vld [vmem:[#allocation22 + $0xcb8] sm:$0xff]  ;;  %v9823_v40 = vpack.c.bf16 %v6723_v37, %v6721_v38  ;;  %v7675_v7 = vld [vmem:[#allocation23 + $0xa8] sm:$0xff]  ;;  %v6741_v38 = vld [vmem:[#allocation22 + $0xd20] sm:$0xff]  ;;  %v9945_v37 = vpack.c.bf16 %v7677_v25, %v7676_v19 }
 0xa7c   :  { %9814 = vmatprep.subr.bf16.mxu0 %v9813_v4  ;;  %v9825_v23 = vpack.c.bf16 %v6728_v27, %v6726_v28  ;;  %v9939_v4 = vpack.c.bf16 %v7657_v17, %v7656_v3  ;;  %v9941_v59 = vpack.c.bf16 %v7675_v7, %v7674_v60  ;;  %v7660_v28 = vld [vmem:[#allocation23 + $0x30] sm:$0xff]  ;;  %v7661_v27 = vld [vmem:[#allocation23 + $0x38] sm:$0xff]  ;;  %v9851_v3 = vpack.c.bf16 %v6751_v31, %v6749_v54  ;;  %v7666_v60 = vld [vmem:[#allocation23 + $0x60] sm:$0xff] }
 0xa7d   :  { %v9947_v39 = vpack.c.bf16 %v7661_v27, %v7660_v28  ;;  %v9957_v17 = vpack.c.bf16 %v7683_v34, %v7682_v42  ;;  %v6753_v7 = vld [vmem:[#allocation22 + $0xd80] sm:$0xff]  ;;  %v6762_v19 = vld [vmem:[#allocation22 + $0xdc8] sm:$0xff]  ;;  %v6764_v25 = vld [vmem:[#allocation22 + $0xdd8] sm:$0xff] }
 0xa7e   :  { %7415 = vmatmul.mubr.f32.gmra.mrb[160].mxu0 %v12215_v8  ;;  %v6727_v8 = vld [vmem:[#allocation22 + $0xcb0] sm:$0xff]  ;;  %9940 = vmatpush3.bf16.msra.mxu1 %v9939_v4  ;;  %v6781_v31 = vld [vmem:[#allocation22 + $0xe60] sm:$0xff]  ;;  %v6786_v34 = vld [vmem:[#allocation22 + $0xe88] sm:$0xff] }
 0xa7f   :  { %7420 = vmatprep.mubr.f32.mxu0 %v12848_v49  ;;  %9816 = vmatpush1.bf16.msra.mxu0 %v9815_v12  ;;  %v9827_v29 = vpack.c.bf16 %v6727_v8, %v6725_v14  ;;  %v7659_v12 = vld [vmem:[#allocation23 + $0x28] sm:$0xff]  ;;  %v6744_v49 = vld [vmem:[#allocation22 + $0xd38] sm:$0xff]  ;;  %v6755_v4 = vld [vmem:[#allocation22 + $0xd90] sm:$0xff] }
 0xa80   :  { %9818 = vmatprep.subr.bf16.mxu0 %v9817_v48  ;;  %v9837_v48 = vpack.c.bf16 %v6740_v33, %v6738_v26  ;;  %9942 = vmatprep.subr.bf16.mxu1 %v9941_v59  ;;  %v6746_v14 = vld [vmem:[#allocation22 + $0xd48] sm:$0xff]  ;;  %v6748_v8 = vld [vmem:[#allocation22 + $0xd58] sm:$0xff]  ;;  %v6779_v54 = vld [vmem:[#allocation22 + $0xe50] sm:$0xff] }
 0xa81   :  { %v9845_v0 = vpack.c.bf16 %v6748_v8, %v6746_v14  ;;  %v7667_v26 = vld [vmem:[#allocation23 + $0x68] sm:$0xff]  ;;  %v6783_v42 = vld [vmem:[#allocation22 + $0xe70] sm:$0xff] }
 0xa82   :  { %7421 = vmatmul.mubr.f32.gmra.mrb[162].mxu0 %v12849_v55  ;;  %v9841_v55 = vpack.c.bf16 %v6744_v49, %v6742_v2  ;;  %v9959_v59 = vpack.c.bf16 %v7667_v26, %v7666_v60  ;;  %v9861_v49 = vpack.c.bf16 %v6764_v25, %v6762_v19  ;;  %v6797_v19 = vld [vmem:[#allocation22 + $0xee0] sm:$0xff]  ;;  %v6802_v25 = vld [vmem:[#allocation22 + $0xf08] sm:$0xff] }
 0xa83   :  { %7426 = vmatprep.mubr.f32.mxu0 %v12850_v52  ;;  %9820 = vmatpush1.bf16.msra.mxu0 %v9819_v45  ;;  %v9943_v45 = vpack.c.bf16 %v7659_v12, %v7658_v62  ;;  %v6743_v52 = vld [vmem:[#allocation22 + $0xd30] sm:$0xff]  ;;  %v9855_v62 = vpack.c.bf16 %v6755_v4, %v6753_v7  ;;  %v6794_v4 = vld [vmem:[#allocation22 + $0xec8] sm:$0xff] }
 0xa84   :  { %9822 = vmatprep.subr.bf16.mxu0 %v9821_v15  ;;  %v9839_v15 = vpack.c.bf16 %v6739_v5, %v6737_v35  ;;  %v9843_v41 = vpack.c.bf16 %v6743_v52, %v6741_v38  ;;  %v6760_v35 = vld [vmem:[#allocation22 + $0xdb8] sm:$0xff]  ;;  %v6759_v5 = vld [vmem:[#allocation22 + $0xdb0] sm:$0xff]  ;;  %v6766_v38 = vld [vmem:[#allocation22 + $0xde8] sm:$0xff] }
 0xa85   :  { %9944 = vmatpush3.bf16.msra.mxu1 %v9943_v45  ;;  %v6761_v45 = vld [vmem:[#allocation22 + $0xdc0] sm:$0xff]  ;;  %v6767_v52 = vld [vmem:[#allocation22 + $0xdf0] sm:$0xff] }
 0xa86   :  { %7427 = vmatmul.mubr.f32.gmra.mrb[164].mxu0 %v12851_v56  ;;  %v6745_v56 = vld [vmem:[#allocation22 + $0xd40] sm:$0xff]  ;;  %9946 = vmatprep.subr.bf16.mxu1 %v9945_v37  ;;  %v6768_v37 = vld [vmem:[#allocation22 + $0xdf8] sm:$0xff]  ;;  %v6791_v7 = vld [vmem:[#allocation22 + $0xeb0] sm:$0xff] }
 0xa87   :  { %7432 = vmatprep.mubr.f32.mxu0 %v12852_v10  ;;  %9824 = vmatpush1.bf16.msra.mxu0 %v9823_v40  ;;  %v7678_v40 = vld [vmem:[#allocation23 + $0xc0] sm:$0xff]  ;;  %v9847_v20 = vpack.c.bf16 %v6747_v21, %v6745_v56  ;;  %v9865_v27 = vpack.c.bf16 %v6768_v37, %v6766_v38  ;;  %v6774_v56 = vld [vmem:[#allocation22 + $0xe28] sm:$0xff]  ;;  %v6775_v21 = vld [vmem:[#allocation22 + $0xe30] sm:$0xff] }
 0xa88   :  { %9826 = vmatprep.subr.bf16.mxu0 %v9825_v23  ;;  %v7679_v23 = vld [vmem:[#allocation23 + $0xc8] sm:$0xff]  ;;  %v6808_v37 = vld [vmem:[#allocation22 + $0xf38] sm:$0xff] }
 0xa89   :  { %v9949_v10 = vpack.c.bf16 %v7679_v23, %v7678_v40  ;;  %9948 = vmatpush3.bf16.msra.mxu1 %v9947_v39  ;;  %v6770_v40 = vld [vmem:[#allocation22 + $0xe08] sm:$0xff]  ;;  %v6772_v23 = vld [vmem:[#allocation22 + $0xe18] sm:$0xff]  ;;  %v6769_v39 = vld [vmem:[#allocation22 + $0xe00] sm:$0xff] }
 0xa8a   :  { %7433 = vmatmul.mubr.f32.gmra.mrb[166].mxu0 %v12853_v18  ;;  %v6750_v18 = vld [vmem:[#allocation22 + $0xd68] sm:$0xff]  ;;  %v9869_v8 = vpack.c.bf16 %v6772_v23, %v6770_v40  ;;  %v6812_v40 = vld [vmem:[#allocation22 + $0xf58] sm:$0xff] }
 0xa8b   :  { %9828 = vmatpush1.bf16.msra.mxu0 %v9827_v29  ;;  %7503 = vmatprep.mubr.f32.mxu0 %v12854_v13  ;;  %v7662_v29 = vld [vmem:[#allocation23 + $0x40] sm:$0xff]  ;;  %v7664_v13 = vld [vmem:[#allocation23 + $0x50] sm:$0xff]  ;;  %v9849_v22 = vpack.c.bf16 %v6752_v63, %v6750_v18  ;;  %v12855_v18 = vld [vmem:[#allocation120_spill] sm:$0xff] }
 0xa8c   :  { %9830 = vmatprep.subr.bf16.mxu0 %v9829_v46  ;;  %v7663_v46 = vld [vmem:[#allocation23 + $0x48] sm:$0xff]  ;;  %9950 = vmatprep.subr.bf16.mxu1 %v9949_v10  ;;  %v6776_v10 = vld [vmem:[#allocation22 + $0xe38] sm:$0xff] }
 0xa8d   :  { %v9951_v50 = vpack.c.bf16 %v7663_v46, %v7662_v29  ;;  %v9873_v46 = vpack.c.bf16 %v6776_v10, %v6774_v56  ;;  %v6806_v38 = vld [vmem:[#allocation22 + $0xf28] sm:$0xff]  ;;  %v6816_v56 = vld [vmem:[#allocation22 + $0xf78] sm:$0xff] }
 0xa8f   :  { %9832 = vmatpush1.bf16.msra.mxu0 %v9831_v57  ;;  %v7665_v57 = vld [vmem:[#allocation23 + $0x58] sm:$0xff]  ;;  %9952 = vmatpush3.bf16.msra.mxu1 %v9951_v50  ;;  %v9877_v50 = vpack.c.bf16 %v6780_v47, %v6778_v1 }
 0xa90   :  { %9834 = vmatprep.subr.bf16.mxu0 %v9833_v53  ;;  %v6754_v53 = vld [vmem:[#allocation22 + $0xd88] sm:$0xff]  ;;  %v9955_v51 = vpack.c.bf16 %v7665_v57, %v7664_v13  ;;  %9954 = vmatprep.subr.bf16.mxu1 %v9953_v16  ;;  %v6784_v13 = vld [vmem:[#allocation22 + $0xe78] sm:$0xff] }
 0xa91   :  { %v9853_v33 = vpack.c.bf16 %v6756_v58, %v6754_v53  ;;  %v6782_v16 = vld [vmem:[#allocation22 + $0xe68] sm:$0xff]  ;;  %v12856_v53 = vld [vmem:[#allocation122_spill] sm:$0xff]  ;;  %v9883_v58 = vpack.c.bf16 %v6783_v42, %v6781_v31 }
 0xa92   :  { %v6820_v1 = vld [vmem:[#allocation22 + $0xf98] sm:$0xff]  ;;  %v6826_v31 = vld [vmem:[#allocation22 + $0xfc8] sm:$0xff] }
 0xa93   :  { %9836 = vmatpush1.bf16.msra.mxu0 %v9835_v36  ;;  %v6758_v36 = vld [vmem:[#allocation22 + $0xda8] sm:$0xff]  ;;  %9956 = vmatpush3.bf16.msra.mxu1 %v9955_v51  ;;  %v6828_v42 = vld [vmem:[#allocation22 + $0xfd8] sm:$0xff] }
 0xa94   :  { %9838 = vmatprep.subr.bf16.mxu0 %v9837_v48  ;;  %9958 = vmatprep.subr.bf16.mxu1 %v9957_v17  ;;  %v9857_v12 = vpack.c.bf16 %v6760_v35, %v6758_v36  ;;  %v6757_v48 = vld [vmem:[#allocation22 + $0xda0] sm:$0xff]  ;;  %v6790_v17 = vld [vmem:[#allocation22 + $0xea8] sm:$0xff] }
 0xa95   :  { %v9859_v2 = vpack.c.bf16 %v6759_v5, %v6757_v48 }
 0xa97   :  { %9840 = vmatpush1.bf16.msra.mxu0 %v9839_v15  ;;  %9960 = vmatpush3.bf16.msra.mxu1 %v9959_v59  ;;  %v6763_v15 = vld [vmem:[#allocation22 + $0xdd0] sm:$0xff]  ;;  %v6793_v59 = vld [vmem:[#allocation22 + $0xec0] sm:$0xff] }
 0xa98   :  { %9842 = vmatprep.subr.bf16.mxu0 %v9841_v55  ;;  %v9863_v28 = vpack.c.bf16 %v6763_v15, %v6761_v45  ;;  %v6765_v55 = vld [vmem:[#allocation22 + $0xde0] sm:$0xff]  ;;  %v6803_v15 = vld [vmem:[#allocation22 + $0xf10] sm:$0xff] }
 0xa99   :  { %v9867_v14 = vpack.c.bf16 %v6767_v52, %v6765_v55  ;;  %v6801_v45 = vld [vmem:[#allocation22 + $0xf00] sm:$0xff]  ;;  %v6807_v55 = vld [vmem:[#allocation22 + $0xf30] sm:$0xff]  ;;  %v6810_v52 = vld [vmem:[#allocation22 + $0xf48] sm:$0xff] }
 0xa9b   :  { %9844 = vmatpush1.bf16.msra.mxu0 %v9843_v41  ;;  %v6771_v41 = vld [vmem:[#allocation22 + $0xe10] sm:$0xff] }
 0xa9c   :  { %9846 = vmatprep.subr.bf16.mxu0 %v9845_v0  ;;  %v9871_v29 = vpack.c.bf16 %v6771_v41, %v6769_v39  ;;  %v6773_v0 = vld [vmem:[#allocation22 + $0xe20] sm:$0xff]  ;;  %v6811_v39 = vld [vmem:[#allocation22 + $0xf50] sm:$0xff]  ;;  %v6814_v41 = vld [vmem:[#allocation22 + $0xf68] sm:$0xff] }
 0xa9d   :  { %v9875_v63 = vpack.c.bf16 %v6775_v21, %v6773_v0  ;;  %v6815_v0 = vld [vmem:[#allocation22 + $0xf70] sm:$0xff]  ;;  %v6818_v21 = vld [vmem:[#allocation22 + $0xf88] sm:$0xff] }
 0xa9f   :  { %9848 = vmatpush1.bf16.msra.mxu0 %v9847_v20  ;;  %v6777_v20 = vld [vmem:[#allocation22 + $0xe40] sm:$0xff] }
 0xaa0   :  { %9850 = vmatprep.subr.bf16.mxu0 %v9849_v22  ;;  %v9879_v57 = vpack.c.bf16 %v6779_v54, %v6777_v20  ;;  %v9881_v22 = vpack.c.bf16 %v6784_v13, %v6782_v16  ;;  %v6822_v20 = vld [vmem:[#allocation22 + $0xfa8] sm:$0xff]  ;;  %v6824_v54 = vld [vmem:[#allocation22 + $0xfb8] sm:$0xff] }
 0xaa1   :  { %v9921_v13 = vpack.c.bf16 %v6824_v54, %v6822_v20  ;;  %v12878_v20 = vld [vmem:[#allocation142_spill] sm:$0xff] }
 0xaa3   :  { %9852 = vmatpush1.bf16.msra.mxu0 %v9851_v3  ;;  %v6785_v3 = vld [vmem:[#allocation22 + $0xe80] sm:$0xff] }
 0xaa4   :  { %9854 = vmatprep.subr.bf16.mxu0 %v9853_v33  ;;  %v6789_v33 = vld [vmem:[#allocation22 + $0xea0] sm:$0xff] }
 0xaa5   :  { %v9891_v36 = vpack.c.bf16 %v6791_v7, %v6789_v33  ;;  %v12858_v33 = vld [vmem:[#allocation108_spill] sm:$0xff]  ;;  %v12859_v7 = vld [vmem:[#allocation111_spill] sm:$0xff] }
 0xaa7   :  { %9856 = vmatpush1.bf16.msra.mxu0 %v9855_v62  ;;  %v6798_v62 = vld [vmem:[#allocation22 + $0xee8] sm:$0xff] }
 0xaa8   :  { %9858 = vmatprep.subr.bf16.mxu0 %v9857_v12  ;;  %v12857_v12 = vld [vmem:[#allocation109_spill] sm:$0xff] }
 0xaab   :  { %9860 = vmatpush1.bf16.msra.mxu0 %v9859_v2 }
 0xaac   :  { %9862 = vmatprep.subr.bf16.mxu0 %v9861_v49 }
 0xaaf   :  { %9864 = vmatpush1.bf16.msra.mxu0 %v9863_v28  ;;  %v9905_v28 = vpack.c.bf16 %v6808_v37, %v6806_v38  ;;  %v12870_v38 = vld [vmem:[#allocation138_spill] sm:$0xff] }
 0xab0   :  { %9866 = vmatprep.subr.bf16.mxu0 %v9865_v27  ;;  %v6805_v27 = vld [vmem:[#allocation22 + $0xf20] sm:$0xff] }
 0xab1   :  { %v9907_v23 = vpack.c.bf16 %v6807_v55, %v6805_v27 }
 0xab3   :  { %9868 = vmatpush1.bf16.msra.mxu0 %v9867_v14  ;;  %v9909_v14 = vpack.c.bf16 %v6812_v40, %v6810_v52  ;;  %v12872_v52 = vld [vmem:[#allocation139_spill] sm:$0xff] }
 0xab4   :  { %9870 = vmatprep.subr.bf16.mxu0 %v9869_v8  ;;  %v6809_v8 = vld [vmem:[#allocation22 + $0xf40] sm:$0xff] }
 0xab5   :  { %v9911_v10 = vpack.c.bf16 %v6811_v39, %v6809_v8 }
 0xab6   :  { %7504 = vmatmul.mubr.f32.vlgmr.msra.gmra.mrb[156].mxu0 %v12855_v18  ;;  %v9917_v18 = vpack.c.bf16 %v6820_v1, %v6818_v21  ;;  %v12876_v21 = vld [vmem:[#allocation141_spill] sm:$0xff] }
 0xab7   :  { %7509 = vmatprep.mubr.f32.mxu0 %v12464_v9  ;;  %9872 = vmatpush1.bf16.msra.mxu0 %v9871_v29  ;;  %v6788_v9 = vld [vmem:[#allocation22 + $0xe98] sm:$0xff]  ;;  %v9913_v29 = vpack.c.bf16 %v6816_v56, %v6814_v41  ;;  %v12874_v41 = vld [vmem:[#allocation140_spill] sm:$0xff] }
 0xab8   :  { %9874 = vmatprep.subr.bf16.mxu0 %v9873_v46  ;;  %v9885_v51 = vpack.c.bf16 %v6788_v9, %v6786_v34  ;;  %v6813_v46 = vld [vmem:[#allocation22 + $0xf60] sm:$0xff]  ;;  %v9925_v9 = vpack.c.bf16 %v6828_v42, %v6826_v31 }
 0xab9   :  { %v9915_v47 = vpack.c.bf16 %v6815_v0, %v6813_v46  ;;  %v12880_v31 = vld [vmem:[#allocation143_spill] sm:$0xff] }
 0xaba   :  { %7510 = vmatmul.mubr.f32.gmra.mrb[158].mxu0 %v12461_v30  ;;  %v6787_v30 = vld [vmem:[#allocation22 + $0xe90] sm:$0xff] }
 0xabb   :  { %7515 = vmatprep.mubr.f32.mxu0 %v12470_v24  ;;  %9876 = vmatpush1.bf16.msra.mxu0 %v9875_v63  ;;  %v6792_v24 = vld [vmem:[#allocation22 + $0xeb8] sm:$0xff]  ;;  %v9887_v60 = vpack.c.bf16 %v6787_v30, %v6785_v3  ;;  %v6817_v63 = vld [vmem:[#allocation22 + $0xf80] sm:$0xff] }
 0xabc   :  { %9878 = vmatprep.subr.bf16.mxu0 %v9877_v50  ;;  %v9889_v26 = vpack.c.bf16 %v6792_v24, %v6790_v17  ;;  %v6819_v50 = vld [vmem:[#allocation22 + $0xf90] sm:$0xff]  ;;  %v6832_v3 = vld [vmem:[#allocation22 + $0xff8] sm:$0xff]  ;;  %v6829_v24 = vld [vmem:[#allocation22 + $0xfe0] sm:$0xff] }
 0xabd   :  { %v9919_v16 = vpack.c.bf16 %v6819_v50, %v6817_v63 }
 0xabe   :  { %7516 = vmatmul.mubr.f32.gmra.mrb[160].mxu0 %v12856_v53  ;;  %v6825_v53 = vld [vmem:[#allocation22 + $0xfc0] sm:$0xff] }
 0xabf   :  { %7521 = vmatprep.mubr.f32.mxu0 %v12477_v11  ;;  %9880 = vmatpush1.bf16.msra.mxu0 %v9879_v57  ;;  %v6796_v11 = vld [vmem:[#allocation22 + $0xed8] sm:$0xff]  ;;  %v6821_v57 = vld [vmem:[#allocation22 + $0xfa0] sm:$0xff] }
 0xac0   :  { %9882 = vmatprep.subr.bf16.mxu0 %v9881_v22  ;;  %v9893_v35 = vpack.c.bf16 %v6796_v11, %v6794_v4  ;;  %v6823_v22 = vld [vmem:[#allocation22 + $0xfb0] sm:$0xff]  ;;  %v12860_v4 = vld [vmem:[#allocation110_spill] sm:$0xff] }
 0xac1   :  { %v9923_v34 = vpack.c.bf16 %v6823_v22, %v6821_v57  ;;  %v12861_v11 = vld [vmem:[#allocation113_spill] sm:$0xff] }
 0xac2   :  { %7522 = vmatmul.mubr.f32.gmra.mrb[162].mxu0 %v12473_v32  ;;  %v6795_v32 = vld [vmem:[#allocation22 + $0xed0] sm:$0xff] }
 0xac3   :  { %7527 = vmatprep.mubr.f32.mxu0 %v12485_v6  ;;  %9884 = vmatpush1.bf16.msra.mxu0 %v9883_v58  ;;  %v6800_v6 = vld [vmem:[#allocation22 + $0xef8] sm:$0xff]  ;;  %v9895_v48 = vpack.c.bf16 %v6795_v32, %v6793_v59  ;;  %v6827_v58 = vld [vmem:[#allocation22 + $0xfd0] sm:$0xff] }
 0xac4   :  { %9886 = vmatprep.subr.bf16.mxu0 %v9885_v51  ;;  %v9897_v5 = vpack.c.bf16 %v6800_v6, %v6798_v62  ;;  %v6830_v51 = vld [vmem:[#allocation22 + $0xfe8] sm:$0xff]  ;;  %v9927_v30 = vpack.c.bf16 %v6827_v58, %v6825_v53  ;;  %v12864_v59 = vld [vmem:[#allocation114_spill] sm:$0xff]  ;;  %v12865_v32 = vld [vmem:[#allocation117_spill] sm:$0xff] }
 0xac5   :  { %v9929_v17 = vpack.c.bf16 %v6832_v3, %v6830_v51  ;;  %v12866_v62 = vld [vmem:[#allocation116_spill] sm:$0xff]  ;;  %v12867_v6 = vld [vmem:[#allocation119_spill] sm:$0xff] }
 0xac6   :  { %7528 = vmatmul.mubr.f32.gmra.mrb[164].mxu0 %v12481_v44  ;;  %v6799_v44 = vld [vmem:[#allocation22 + $0xef0] sm:$0xff] }
 0xac7   :  { %7533 = vmatprep.mubr.f32.mxu0 %v12493_v61  ;;  %9888 = vmatpush1.bf16.msra.mxu0 %v9887_v60  ;;  %v6804_v61 = vld [vmem:[#allocation22 + $0xf18] sm:$0xff]  ;;  %v9899_v2 = vpack.c.bf16 %v6799_v44, %v6797_v19  ;;  %v6831_v60 = vld [vmem:[#allocation22 + $0xff0] sm:$0xff] }
 0xac8   :  { %9890 = vmatprep.subr.bf16.mxu0 %v9889_v26  ;;  %v9901_v49 = vpack.c.bf16 %v6804_v61, %v6802_v25  ;;  %v9931_v26 = vpack.c.bf16 %v6831_v60, %v6829_v24  ;;  %v7668_v44 = vld [vmem:[#allocation23 + $0x70] sm:$0xff]  ;;  %v7669_v25 = vld [vmem:[#allocation23 + $0x78] sm:$0xff] }
 0xac9   :  { %v9963_v61 = vpack.c.bf16 %v7669_v25, %v7668_v44 }
 0xaca   :  { %7534 = vmatmul.mubr.f32.gmra.mrb[166].mxu0 %v12489_v43  ;;  %v9903_v43 = vpack.c.bf16 %v6803_v15, %v6801_v45 }
 0xacb   :  { %9892 = vmatpush1.bf16.msra.mxu0 %v9891_v36  ;;  %7604 = vmatprep.mubr.f32.mxu0 %v12857_v12  ;;  %v12862_v36 = vld [vmem:[#allocation112_spill] sm:$0xff]  ;;  %v12868_v12 = vld [vmem:[#allocation118_spill] sm:$0xff] }
 0xacc   :  { %9894 = vmatprep.subr.bf16.mxu0 %v9893_v35  ;;  %v12863_v35 = vld [vmem:[#allocation115_spill] sm:$0xff] }
 0xacf   :  { %9896 = vmatpush1.bf16.msra.mxu0 %v9895_v48  ;;  %v7684_v48 = vld [vmem:[#allocation23 + $0xf0] sm:$0xff] }
 0xad0   :  { %9898 = vmatprep.subr.bf16.mxu0 %v9897_v5  ;;  %v7685_v5 = vld [vmem:[#allocation23 + $0xf8] sm:$0xff] }
 0xad1   :  { %v9961_v19 = vpack.c.bf16 %v7685_v5, %v7684_v48  ;;  %v7653_v5 = vld [vmem:[#allocation5] sm:$0xff] }
 0xad3   :  { %9900 = vmatpush1.bf16.msra.mxu0 %v9899_v2  ;;  %9962 = vmatprep.subr.bf16.mxu1 %v9961_v19 }
 0xad4   :  { %9902 = vmatprep.subr.bf16.mxu0 %v9901_v49  ;;  %9964 = vmatpush3.bf16.msra.mxu1 %v9963_v61  ;;  %v12869_v49 = vld [vmem:[#allocation144_spill] sm:$0xff] }
 0xad7   :  { %9904 = vmatpush1.bf16.msra.mxu0 %v9903_v43 }
 0xad8   :  { %9906 = vmatprep.subr.bf16.mxu0 %v9905_v28  ;;  %v12871_v28 = vld [vmem:[#allocation145_spill] sm:$0xff] }
 0xadb   :  { %9908 = vmatpush1.bf16.msra.mxu0 %v9907_v23 }
 0xadc   :  { %9910 = vmatprep.subr.bf16.mxu0 %v9909_v14  ;;  %v12873_v14 = vld [vmem:[#allocation146_spill] sm:$0xff] }
 0xadf   :  { %9912 = vmatpush1.bf16.msra.mxu0 %v9911_v10 }
 0xae0   :  { %9914 = vmatprep.subr.bf16.mxu0 %v9913_v29  ;;  %v12875_v29 = vld [vmem:[#allocation147_spill] sm:$0xff] }
 0xae3   :  { %9916 = vmatpush1.bf16.msra.mxu0 %v9915_v47 }
 0xae4   :  { %9918 = vmatprep.subr.bf16.mxu0 %v9917_v18  ;;  %v12877_v18 = vld [vmem:[#allocation148_spill] sm:$0xff] }
 0xae7   :  { %9920 = vmatpush1.bf16.msra.mxu0 %v9919_v16 }
 0xae8   :  { %9922 = vmatprep.subr.bf16.mxu0 %v9921_v13  ;;  %v12879_v13 = vld [vmem:[#allocation149_spill] sm:$0xff] }
 0xaeb   :  { %9924 = vmatpush1.bf16.msra.mxu0 %v9923_v34  ;;  %v10663_v34 = vmov 0.0|0.0  }
 0xaec   :  { %9926 = vmatprep.subr.bf16.mxu0 %v9925_v9  ;;  %9965 = vmatprep.subr.bf16.mxu1 %v10663_v34  ;;  %v12881_v9 = vmov 0.0  }
 0xaef   :  { %9928 = vmatpush1.bf16.msra.mxu0 %v9927_v30 }
 0xaf0   :  { %9930 = vmatprep.subr.bf16.mxu0 %v9929_v17 }
 0xaf3   :  { %9932 = vmatpush1.bf16.msra.mxu0 %v9931_v26 }
 0xaf6   :  { %7605 = vmatmul.mubr.f32.vlgmr.msra.gmra.mrb[156].mxu0 %v12858_v33 }
 0xaf7   :  { %7610 = vmatprep.mubr.f32.mxu0 %v12859_v7 }
 0xafa   :  { %7611 = vmatmul.mubr.f32.gmra.mrb[158].mxu0 %v12860_v4 }
 0xafb   :  { %7616 = vmatprep.mubr.f32.mxu0 %v12861_v11 }
 0xafe   :  { %7617 = vmatmul.mubr.f32.gmra.mrb[160].mxu0 %v12862_v36 }
 0xaff   :  { %7622 = vmatprep.mubr.f32.mxu0 %v12863_v35 }
 0xb02   :  { %7623 = vmatmul.mubr.f32.gmra.mrb[162].mxu0 %v12864_v59 }
 0xb03   :  { %7628 = vmatprep.mubr.f32.mxu0 %v12865_v32 }
 0xb06   :  { %7629 = vmatmul.mubr.f32.gmra.mrb[164].mxu0 %v12866_v62 }
 0xb07   :  { %7634 = vmatprep.mubr.f32.mxu0 %v12867_v6 }
 0xb0a   :  { %7635 = vmatmul.mubr.f32.gmra.mrb[166].mxu0 %v12868_v12 }
 0xbc9   :  { %v7606_v2 = vpop.f32.mrb[156].mxu0 }
 0xbca   :  { %v7641_v45 = vmul.f32 %v7606_v2, %v12869_v49  ;;  %v7608_v15 = vpop.f32.mrb[157].mxu0 }
 0xbcb   :  { %v7642_v37 = vmul.f32 %v7608_v15, %v12870_v38 }
 0xbcd   :  { %v7612_v43 = vpop.f32.mrb[158].mxu0  ;;  %7750 = vmatprep.mubr.f32.mxu1 %v7642_v37 }
 0xbce   :  { %v7643_v27 = vmul.f32 %v7612_v43, %v12871_v28  ;;  %v7614_v55 = vpop.f32.mrb[159].mxu0  ;;  %7751 = vmatmul.mubr.f32.vlgmr.msra.gmra.mrb[222].mxu1 %v7641_v45 }
 0xbcf   :  { %v7644_v40 = vmul.f32 %v7614_v55, %v12872_v52 }
 0xbd1   :  { %v7618_v23 = vpop.f32.mrb[160].mxu0  ;;  %7755 = vmatprep.mubr.f32.mxu1 %v7644_v40 }
 0xbd2   :  { %v7645_v8 = vmul.f32 %v7618_v23, %v12873_v14  ;;  %v7620_v39 = vpop.f32.mrb[161].mxu0  ;;  %7756 = vmatmul.mubr.f32.gmra.mrb[224].mxu1 %v7643_v27 }
 0xbd3   :  { %v7646_v56 = vmul.f32 %v7620_v39, %v12874_v41 }
 0xbd5   :  { %v7624_v10 = vpop.f32.mrb[162].mxu0  ;;  %7760 = vmatprep.mubr.f32.mxu1 %v7646_v56 }
 0xbd6   :  { %v7647_v46 = vmul.f32 %v7624_v10, %v12875_v29  ;;  %v7626_v0 = vpop.f32.mrb[163].mxu0  ;;  %7761 = vmatmul.mubr.f32.gmra.mrb[226].mxu1 %v7645_v8 }
 0xbd7   :  { %v7648_v1 = vmul.f32 %v7626_v0, %v12876_v21 }
 0xbd9   :  { %v7630_v47 = vpop.f32.mrb[164].mxu0  ;;  %7765 = vmatprep.mubr.f32.mxu1 %v7648_v1 }
 0xbda   :  { %v7649_v63 = vmul.f32 %v7630_v47, %v12877_v18  ;;  %v7632_v50 = vpop.f32.mrb[165].mxu0  ;;  %7766 = vmatmul.mubr.f32.gmra.mrb[228].mxu1 %v7647_v46 }
 0xbdb   :  { %v7650_v54 = vmul.f32 %v7632_v50, %v12878_v20 }
 0xbdd   :  { %v7636_v16 = vpop.f32.mrb[166].mxu0  ;;  %7770 = vmatprep.mubr.f32.mxu1 %v7650_v54 }
 0xbde   :  { %v7651_v57 = vmul.f32 %v7636_v16, %v12879_v13  ;;  %v7638_v22 = vpop.f32.mrb[167].mxu0  ;;  %7771 = vmatmul.mubr.f32.gmra.mrb[230].mxu1 %v7649_v63 }
 0xbdf   :  { %v7652_v42 = vmul.f32 %v7638_v22, %v12880_v31 }
 0xbe1   :  { %7775 = vmatprep.mubr.f32.mxu1 %v7652_v42 }
 0xbe2   :  { %7776 = vmatmul.mubr.f32.gmra.mrb[232].mxu1 %v7651_v57 }
 0xbe3   :  { %8314 = vmatprep.mubr.msk.f32.mxu1 %vm10664_vm5, %v12881_v9 }
 0xca1   :  { %v8260_v53 = vpop.f32.mrb[222].mxu1 }
 0xca2   :  { %v8261_v58 = vpop.f32.mrb[223].mxu1 }
 0xca3   :  { %v8262_v51 = vadd.f32 %v8261_v58, %v8260_v53 }
 0xca5   :  { %v8263_v3 = vpop.f32.mrb[224].mxu1 }
 0xca6   :  { %v8264_v30 = vpop.f32.mrb[225].mxu1 }
 0xca7   :  { %v8265_v17 = vadd.f32 %v8264_v30, %v8263_v3 }
 0xca9   :  { %v9966_v24 = vpack.c.bf16 %v8265_v17, %v8262_v51  ;;  %v8266_v60 = vpop.f32.mrb[226].mxu1 }
 0xcaa   :  { %v8267_v26 = vpop.f32.mrb[227].mxu1 }
 0xcab   :  { %v8268_v33 = vadd.f32 %v8267_v26, %v8266_v60  ;;  %9967 = vmatpush3.bf16.msra.mxu1 %v9966_v24 }
 0xcac   :  { %9968 = vmatprep.subr.bf16.mxu1 %v10663_v34 }
 0xcad   :  { %v8269_v7 = vpop.f32.mrb[228].mxu1 }
 0xcae   :  { %v8270_v4 = vpop.f32.mrb[229].mxu1 }
 0xcaf   :  { %v8271_v11 = vadd.f32 %v8270_v4, %v8269_v7 }
 0xcb1   :  { %v9969_v36 = vpack.c.bf16 %v8271_v11, %v8268_v33  ;;  %v8272_v35 = vpop.f32.mrb[230].mxu1 }
 0xcb2   :  { %v8273_v59 = vpop.f32.mrb[231].mxu1 }
 0xcb3   :  { %v8274_v32 = vadd.f32 %v8273_v59, %v8272_v35  ;;  %9970 = vmatpush3.bf16.msra.mxu1 %v9969_v36 }
 0xcb4   :  { %9971 = vmatprep.subr.bf16.mxu1 %v10663_v34 }
 0xcb5   :  { %v8275_v62 = vpop.f32.mrb[232].mxu1 }
 0xcb6   :  { %v8276_v6 = vpop.f32.mrb[233].mxu1 }
 0xcb7   :  { %v8277_v12 = vadd.f32 %v8276_v6, %v8275_v62 }
 0xcb9   :  { %v9972_v48 = vpack.c.bf16 %v8277_v12, %v8274_v32 }
 0xcbb   :  { %9973 = vmatpush3.bf16.msra.mxu1 %v9972_v48 }
 0xcbe   :  { %8315 = vmatmul.mubr.msk.f32.vlgmr.msra.gmra.mrb[234].mxu1 %vm1586_vm1, %v7653_v5 }
 0xd91   :  { %v7850_v19 = vpop.f32.mrb[234].mxu1 }
 0xd92   :  { %7854 = vst [vmem:[#allocation26] sm:$0xff] %v7850_v19  ;;  %v8316_v44 = vpop.f32.mrb[235].mxu1 }
 0xd93   :  { %10605 = shalt.err (!%p10602_p12)
}
 0xd94   :  { %s10606_s20 = scalar_lea.hbm %s12603_s16, 128 }
 0xd95   :  { %p10607_p13 = scmp.ne.s32.totalorder %s12603_s16, %s10606_s20  ;;  %p10610_p0 = scmp.lt.u32.totalorder %s10606_s20, %s12603_s16 }
 0xd97   :  { %p10612_p1 = pnand %p10610_p0, %p10607_p13 }
 0xd99   :  { %10615 = shalt.err (!%p10612_p1)
}
 0xd9a   :  { %7864 = dma.vmem_to_hbm [thread:$0]  %s7862_s11, 128, %s12603_s16, [#allocation4]  }
 0xd9b   :  { %10632 = dma.done.wait [#allocation4], 128  }
 0xd9c   :  { %10633 = vsyncadd [#allocation4], 4294967168 }
 0xd9d   :  { %7868 = vsyncpa [#allocation3], 1 }
 0xd9e   :  { %7869 = vsyncpa [#allocation6], 1 }
 0xd9f   :  { %7870 = vsyncpa [#allocation9], 1 }
 0xda0   :  { %7871 = vsyncpa [#allocation12], 1 }
 0xda1   :  { %7872 = vsyncpa [#allocation15], 1 }
 0xda2   :  { %7873 = vsyncpa [#allocation18], 1 }
 0xda3   :  { %7874 = vsyncpa [#allocation21], 1 }
 0xda4   :  { %7875 = vsyncpa [#allocation24], 1 }
 0xda5   :  { %7876 = vsyncpa [#allocation4], 1 }

</bundles_post_ra>
